<compile_context>
chip_gen: v7x
topology: tpu7x:2x2x1
jax: 0.10.0
libtpu: 0.0.40
codegen_flags: <defaults>
</compile_context>

<pallas_src>
import functools

import jax
import jax.numpy as jnp
from jax.experimental import pallas as pl
from jax.experimental.pallas import tpu as pltpu

EPS = 1e-5
LANE = 128


def _round_up(n, m=LANE):
    return ((n + m - 1) // m) * m


def _pad_axis(x, axis, target):
    cur = x.shape[axis]
    if cur == target:
        return x
    pads = [(0, 0)] * x.ndim
    pads[axis] = (0, target - cur)
    return jnp.pad(x, pads)


# ---------------------------------------------------------------------------
# Fused conv (+bias +InstanceNorm +residual-add +ReLU) Pallas kernel.
# One MXU matmul over the packed K = ksize*ksize*cin axis, epilogue fused.
# ---------------------------------------------------------------------------
def _fused_conv_kernel(*refs, apply_norm, apply_relu, has_bias, has_residual):
    x_ref, w_ref = refs[0], refs[1]
    i = 2
    b_ref = None
    res_ref = None
    if has_bias:
        b_ref = refs[i]
        i += 1
    if has_residual:
        res_ref = refs[i]
        i += 1
    o_ref = refs[i]

    # bf16 MXU inputs, f32 accumulation (single K block, no scratch needed)
    y = jnp.dot(x_ref[...], w_ref[...], preferred_element_type=jnp.float32)

    if has_bias:
        y = y + b_ref[...]                       # (1, Cp) broadcast

    if apply_norm:
        # Per-image InstanceNorm over the spatial rows P (biased variance,
        # two-pass mean-centred stats in f32).  Zero-padded channels stay 0.
        inv_p = 1.0 / y.shape[0]
        mean = jnp.sum(y, axis=0, keepdims=True) * inv_p
        yc = y - mean
        var = jnp.sum(yc * yc, axis=0, keepdims=True) * inv_p
        y = yc * jax.lax.rsqrt(var + EPS)

    if has_residual:
        y = y + res_ref[...].astype(jnp.float32)   # residual carried in f32

    if apply_relu:
        y = jnp.maximum(y, 0.0)

    o_ref[...] = y.astype(o_ref.dtype)


# ---------------------------------------------------------------------------
# Glue: im2col packing of the taps into the K axis (channels unpadded here;
# only the final K axis gets lane-padded once).
# ---------------------------------------------------------------------------
def _im2col(x, ksize, stride, pad):
    """x: (N, H, W, C) -> cols (N, Ho*Wo, ksize*ksize*C), plus (Ho, Wo)."""
    N, H, W, C = x.shape
    if pad:
        x = jnp.pad(x, ((0, 0), (pad, pad), (pad, pad), (0, 0)))
    Ho = (H + 2 * pad - ksize) // stride + 1
    Wo = (W + 2 * pad - ksize) // stride + 1
    if ksize == 1:
        cols = x[:, ::stride, ::stride, :]
    else:
        views = []
        for dy in range(ksize):
            for dx in range(ksize):
                views.append(x[:, dy: dy + stride * (Ho - 1) + 1: stride,
                                  dx: dx + stride * (Wo - 1) + 1: stride, :])
        cols = jnp.concatenate(views, axis=-1)     # tap-major, channel-minor
    return cols.reshape(N, Ho * Wo, ksize * ksize * C), Ho, Wo


def fused_conv(x, w, b, *, stride, ksize, pad, apply_norm, apply_relu,
               residual=None, out_dtype=jnp.bfloat16):
    """x: (N,H,W,C) with C >= cin (extra padded channels are sliced off).
    w: (k,k,cin,cout) f32.  Returns (N,Ho,Wo,Cp) with Cp = round_up(cout,128)."""
    cin, cout = w.shape[2], w.shape[3]
    if x.shape[-1] != cin:
        x = x[..., :cin]                       # drop lane padding before im2col

    cols, Ho, Wo = _im2col(x.astype(jnp.bfloat16), ksize, stride, pad)
    N, P, K = cols.shape
    Kp, Cp = _round_up(K), _round_up(cout)

    cols = _pad_axis(cols, 2, Kp)
    w_p = _pad_axis(_pad_axis(w.reshape(K, cout), 0, Kp), 1, Cp).astype(jnp.bfloat16)

    # bias before affine=False InstanceNorm is a mathematical no-op -> drop it
    has_bias = (not apply_norm) and (b is not None)
    has_res = residual is not None

    inputs = [cols, w_p]
    in_specs = [
        pl.BlockSpec((None, P, Kp), lambda n: (n, 0, 0)),
        pl.BlockSpec((Kp, Cp), lambda n: (0, 0)),
    ]
    if has_bias:
        inputs.append(_pad_axis(b, 0, Cp).reshape(1, Cp).astype(jnp.float32))
        in_specs.append(pl.BlockSpec((1, Cp), lambda n: (0, 0)))
    if has_res:
        inputs.append(residual.reshape(N, P, Cp).astype(jnp.float32))
        in_specs.append(pl.BlockSpec((None, P, Cp), lambda n: (n, 0, 0)))

    kernel = functools.partial(_fused_conv_kernel, apply_norm=apply_norm,
                               apply_relu=apply_relu, has_bias=has_bias,
                               has_residual=has_res)
    out = pl.pallas_call(
        kernel,
        out_shape=jax.ShapeDtypeStruct((N, P, Cp), out_dtype),
        grid=(N,),                                  # one image per step
        in_specs=in_specs,
        out_specs=pl.BlockSpec((None, P, Cp), lambda n: (n, 0, 0)),
        compiler_params=pltpu.CompilerParams(
            dimension_semantics=("parallel",)),
    )(*inputs)
    return out.reshape(N, Ho, Wo, Cp)


# ---------------------------------------------------------------------------
# Model
# ---------------------------------------------------------------------------
def residual_block(x, p, stride):
    # y = relu(IN(conv1(x))); y = relu(IN(conv2(y)))
    # out = relu(IN(downsample_1x1(x)) + y)   (downsample always present)
    y = fused_conv(x, p["w1"], p["b1"], stride=stride, ksize=3, pad=1,
                   apply_norm=True, apply_relu=True)
    y = fused_conv(y, p["w2"], p["b2"], stride=1, ksize=3, pad=1,
                   apply_norm=True, apply_relu=True, out_dtype=jnp.float32)
    return fused_conv(x, p["wd"], p["bd"], stride=stride, ksize=1, pad=0,
                      apply_norm=True, apply_relu=True, residual=y)


def rhwf_encoder_forward(x_nchw, params):
    # NCHW -> NHWC; channels stay UNPADDED until after im2col (only the packed
    # K axis is padded, so conv1 carries 27 real columns padded to 128 once).
    x = jnp.transpose(x_nchw, (0, 2, 3, 1)).astype(jnp.float32)

    x = fused_conv(x, params["conv1_w"], params["conv1_b"], stride=1, ksize=3,
                   pad=1, apply_norm=True, apply_relu=True)

    x = residual_block(x, params["layer1_0"], stride=2)
    x = residual_block(x, params["layer1_1"], stride=1)

    x = residual_block(x, params["layer2_0"], stride=2)
    x = residual_block(x, params["layer2_1"], stride=1)
    x_32 = fused_conv(x, params["conv_2_w"], params["conv_2_b"], stride=1,
                      ksize=1, pad=0, apply_norm=False, apply_relu=False,
                      out_dtype=jnp.float32)

    x = residual_block(x, params["layer3_0"], stride=2)
    x = residual_block(x, params["layer3_1"], stride=1)
    x_16 = fused_conv(x, params["conv_3_w"], params["conv_3_b"], stride=1,
                      ksize=1, pad=0, apply_norm=False, apply_relu=False,
                      out_dtype=jnp.float32)

    # TODO(synk): layer4/conv_4 (x_8) and conv_1 (x_64) are computed by the
    # PyTorch forward but unused in the returned tuple; omitted here.

    out_dim = params["conv_2_w"].shape[-1]
    x_32 = jnp.transpose(x_32[..., :out_dim], (0, 3, 1, 2))   # back to NCHW
    x_16 = jnp.transpose(x_16[..., :out_dim], (0, 3, 1, 2))
    return x_16, x_32


# ---------------------------------------------------------------------------
# Deterministic parameter construction (kaiming-normal-like, fan_out, relu)
# ---------------------------------------------------------------------------
def _conv_params(key, ksize, cin, cout):
    kw, kb = jax.random.split(key)
    fan_out = cout * ksize * ksize
    std = (2.0 / fan_out) ** 0.5
    w = std * jax.random.normal(kw, (ksize, ksize, cin, cout), dtype=jnp.float32)
    b = 0.01 * jax.random.normal(kb, (cout,), dtype=jnp.float32)
    return w, b


def _block_params(key, cin, cout):
    k1, k2, kd = jax.random.split(key, 3)
    w1, b1 = _conv_params(k1, 3, cin, cout)
    w2, b2 = _conv_params(k2, 3, cout, cout)
    wd, bd = _conv_params(kd, 1, cin, cout)
    return {"w1": w1, "b1": b1, "w2": w2, "b2": b2, "wd": wd, "bd": bd}


def make_params(key, output_dim=256):
    keys = jax.random.split(key, 16)
    params = {}
    params["conv1_w"], params["conv1_b"] = _conv_params(keys[0], 3, 3, 32)
    params["layer1_0"] = _block_params(keys[1], 32, 56)
    params["layer1_1"] = _block_params(keys[2], 56, 56)
    params["layer2_0"] = _block_params(keys[3], 56, 80)
    params["layer2_1"] = _block_params(keys[4], 80, 80)
    params["layer3_0"] = _block_params(keys[5], 80, 80)
    params["layer3_1"] = _block_params(keys[6], 80, 80)
    params["conv_2_w"], params["conv_2_b"] = _conv_params(keys[7], 1, 80, output_dim)
    params["conv_3_w"], params["conv_3_b"] = _conv_params(keys[8], 1, 80, output_dim)
    return params


# ---------------------------------------------------------------------------
if __name__ == "__main__":
    key = jax.random.PRNGKey(0)
    kx, kp = jax.random.split(key)

    # small input consistent with the module: NCHW, 3 channels
    x = jax.random.normal(kx, (2, 3, 32, 32), dtype=jnp.float32)
    params = make_params(kp, output_dim=256)

    fwd = jax.jit(functools.partial(rhwf_encoder_forward, params=params))
    x_16, x_32 = fwd(x)
    jax.block_until_ready(x_16)
    jax.block_until_ready(x_32)

    assert x_16.shape == (2, 256, 4, 4), x_16.shape
    assert x_32.shape == (2, 256, 8, 8), x_32.shape
    assert jnp.all(jnp.isfinite(x_16)) and jnp.all(jnp.isfinite(x_32))

    print("KERNEL_OK")
</pallas_src>

<mosaic_0001>
module attributes {stable_mosaic.version = 11 : i64} {
  func.func @_fused_conv_kernel(%arg0: i32, %arg1: memref<1x1024x128xbf16, #tpu.memory_space<vmem>>, %arg2: memref<128x128xbf16, #tpu.memory_space<vmem>>, %arg3: memref<1x1024x128xbf16, #tpu.memory_space<vmem>>) attributes {dimension_semantics = [#tpu.dimension_semantics<parallel>], iteration_bounds = array<i64: 2>, scalar_prefetch = 0 : i64, scratch_operands = 0 : i64, tpu.core_type = #tpu.core_type<tc>, window_params = [{transform_indices = @transform_0, window_bounds = array<i64: 1, 1024, 128>}, {pipeline_mode = #tpu.pipeline_mode<synchronous>, transform_indices = @transform_1, window_bounds = array<i64: 128, 128>}, {transform_indices = @transform_2, window_bounds = array<i64: 1, 1024, 128>}]} {
    %c0 = arith.constant 0 : index
    %c0_0 = arith.constant 0 : index
    %c0_1 = arith.constant 0 : index
    %0 = vector.load %arg1[%c0, %c0_0, %c0_1] : memref<1x1024x128xbf16, #tpu.memory_space<vmem>>, vector<1x1024x128xbf16>
    %1 = vector.shape_cast %0 : vector<1x1024x128xbf16> to vector<1024x128xbf16>
    %c0_2 = arith.constant 0 : index
    %c0_3 = arith.constant 0 : index
    %2 = vector.load %arg2[%c0_2, %c0_3] : memref<128x128xbf16, #tpu.memory_space<vmem>>, vector<128x128xbf16>
    %cst = arith.constant dense<0.000000e+00> : vector<1024x128xf32>
    %3 = tpu.matmul %1, %2, %cst {dimension_numbers = #tpu.dot_dimension_numbers<[1], [0], [0], [1], [0, 0, 1, 1], [], []>} : vector<1024x128xbf16>, vector<128x128xbf16>, vector<1024x128xf32> -> vector<1024x128xf32>
    %cst_4 = arith.constant dense<0.000000e+00> : vector<128xf32>
    %4 = vector.multi_reduction <add>, %3, %cst_4 [0] : vector<1024x128xf32> to vector<128xf32>
    %5 = vector.shape_cast %4 : vector<128xf32> to vector<1x128xf32>
    %cst_5 = arith.constant 9.765625E-4 : f32
    %6 = vector.broadcast %cst_5 : f32 to vector<1x128xf32>
    %7 = arith.mulf %5, %6 : vector<1x128xf32>
    %8 = vector.broadcast %7 : vector<1x128xf32> to vector<1024x128xf32>
    %9 = arith.subf %3, %8 : vector<1024x128xf32>
    %10 = arith.mulf %9, %9 : vector<1024x128xf32>
    %cst_6 = arith.constant dense<0.000000e+00> : vector<128xf32>
    %11 = vector.multi_reduction <add>, %10, %cst_6 [0] : vector<1024x128xf32> to vector<128xf32>
    %12 = vector.shape_cast %11 : vector<128xf32> to vector<1x128xf32>
    %cst_7 = arith.constant 9.765625E-4 : f32
    %13 = vector.broadcast %cst_7 : f32 to vector<1x128xf32>
    %14 = arith.mulf %12, %13 : vector<1x128xf32>
    %cst_8 = arith.constant 9.99999974E-6 : f32
    %15 = vector.broadcast %cst_8 : f32 to vector<1x128xf32>
    %16 = arith.addf %14, %15 : vector<1x128xf32>
    %17 = math.rsqrt %16 : vector<1x128xf32>
    %18 = vector.broadcast %17 : vector<1x128xf32> to vector<1024x128xf32>
    %19 = arith.mulf %9, %18 : vector<1024x128xf32>
    %cst_9 = arith.constant 0.000000e+00 : f32
    %20 = vector.broadcast %cst_9 : f32 to vector<1024x128xf32>
    %21 = arith.maximumf %19, %20 : vector<1024x128xf32>
    %22 = arith.truncf %21 : vector<1024x128xf32> to vector<1024x128xbf16>
    %c0_10 = arith.constant 0 : index
    %c0_11 = arith.constant 0 : index
    %c0_12 = arith.constant 0 : index
    %23 = vector.load %arg3[%c0_10, %c0_11, %c0_12] : memref<1x1024x128xbf16, #tpu.memory_space<vmem>>, vector<1x1024x128xbf16>
    %24 = vector.shape_cast %23 : vector<1x1024x128xbf16> to vector<1024x128xbf16>
    %25 = vector.shape_cast %22 : vector<1024x128xbf16> to vector<1x1024x128xbf16>
    tpu.vector_store %arg3[%c0_10, %c0_11, %c0_12], %25 {strides = array<i32>} : memref<1x1024x128xbf16, #tpu.memory_space<vmem>>, vector<1x1024x128xbf16>,
    return
  }
  func.func @transform_0(%arg0: i32) -> (i32, i32, i32) {
    %c0_i32 = arith.constant 0 : i32
    %c0_i32_0 = arith.constant 0 : i32
    %c0_i32_1 = arith.constant 0 : i32
    return %arg0, %c0_i32, %c0_i32_0 : i32, i32, i32
  }
  func.func @transform_1(%arg0: i32) -> (i32, i32) {
    %c0_i32 = arith.constant 0 : i32
    %c0_i32_0 = arith.constant 0 : i32
    %c0_i32_1 = arith.constant 0 : i32
    return %c0_i32, %c0_i32_0 : i32, i32
  }
  func.func @transform_2(%arg0: i32) -> (i32, i32, i32) {
    %c0_i32 = arith.constant 0 : i32
    %c0_i32_0 = arith.constant 0 : i32
    %c0_i32_1 = arith.constant 0 : i32
    return %arg0, %c0_i32, %c0_i32_0 : i32, i32, i32
  }
}

module attributes {stable_mosaic.version = 11 : i64} {
  func.func @_fused_conv_kernel(%arg0: i32, %arg1: memref<1x256x384xbf16, #tpu.memory_space<vmem>>, %arg2: memref<384x128xbf16, #tpu.memory_space<vmem>>, %arg3: memref<1x256x128xbf16, #tpu.memory_space<vmem>>) attributes {dimension_semantics = [#tpu.dimension_semantics<parallel>], iteration_bounds = array<i64: 2>, scalar_prefetch = 0 : i64, scratch_operands = 0 : i64, tpu.core_type = #tpu.core_type<tc>, window_params = [{transform_indices = @transform_0, window_bounds = array<i64: 1, 256, 384>}, {pipeline_mode = #tpu.pipeline_mode<synchronous>, transform_indices = @transform_1, window_bounds = array<i64: 384, 128>}, {transform_indices = @transform_2, window_bounds = array<i64: 1, 256, 128>}]} {
    %c0 = arith.constant 0 : index
    %c0_0 = arith.constant 0 : index
    %c0_1 = arith.constant 0 : index
    %0 = vector.load %arg1[%c0, %c0_0, %c0_1] : memref<1x256x384xbf16, #tpu.memory_space<vmem>>, vector<1x256x384xbf16>
    %1 = vector.shape_cast %0 : vector<1x256x384xbf16> to vector<256x384xbf16>
    %c0_2 = arith.constant 0 : index
    %c0_3 = arith.constant 0 : index
    %2 = vector.load %arg2[%c0_2, %c0_3] : memref<384x128xbf16, #tpu.memory_space<vmem>>, vector<384x128xbf16>
    %cst = arith.constant dense<0.000000e+00> : vector<256x128xf32>
    %3 = tpu.matmul %1, %2, %cst {dimension_numbers = #tpu.dot_dimension_numbers<[1], [0], [0], [1], [0, 0, 1, 1], [], []>} : vector<256x384xbf16>, vector<384x128xbf16>, vector<256x128xf32> -> vector<256x128xf32>
    %cst_4 = arith.constant dense<0.000000e+00> : vector<128xf32>
    %4 = vector.multi_reduction <add>, %3, %cst_4 [0] : vector<256x128xf32> to vector<128xf32>
    %5 = vector.shape_cast %4 : vector<128xf32> to vector<1x128xf32>
    %cst_5 = arith.constant 3.906250e-03 : f32
    %6 = vector.broadcast %cst_5 : f32 to vector<1x128xf32>
    %7 = arith.mulf %5, %6 : vector<1x128xf32>
    %8 = vector.broadcast %7 : vector<1x128xf32> to vector<256x128xf32>
    %9 = arith.subf %3, %8 : vector<256x128xf32>
    %10 = arith.mulf %9, %9 : vector<256x128xf32>
    %cst_6 = arith.constant dense<0.000000e+00> : vector<128xf32>
    %11 = vector.multi_reduction <add>, %10, %cst_6 [0] : vector<256x128xf32> to vector<128xf32>
    %12 = vector.shape_cast %11 : vector<128xf32> to vector<1x128xf32>
    %cst_7 = arith.constant 3.906250e-03 : f32
    %13 = vector.broadcast %cst_7 : f32 to vector<1x128xf32>
    %14 = arith.mulf %12, %13 : vector<1x128xf32>
    %cst_8 = arith.constant 9.99999974E-6 : f32
    %15 = vector.broadcast %cst_8 : f32 to vector<1x128xf32>
    %16 = arith.addf %14, %15 : vector<1x128xf32>
    %17 = math.rsqrt %16 : vector<1x128xf32>
    %18 = vector.broadcast %17 : vector<1x128xf32> to vector<256x128xf32>
    %19 = arith.mulf %9, %18 : vector<256x128xf32>
    %cst_9 = arith.constant 0.000000e+00 : f32
    %20 = vector.broadcast %cst_9 : f32 to vector<256x128xf32>
    %21 = arith.maximumf %19, %20 : vector<256x128xf32>
    %22 = arith.truncf %21 : vector<256x128xf32> to vector<256x128xbf16>
    %c0_10 = arith.constant 0 : index
    %c0_11 = arith.constant 0 : index
    %c0_12 = arith.constant 0 : index
    %23 = vector.load %arg3[%c0_10, %c0_11, %c0_12] : memref<1x256x128xbf16, #tpu.memory_space<vmem>>, vector<1x256x128xbf16>
    %24 = vector.shape_cast %23 : vector<1x256x128xbf16> to vector<256x128xbf16>
    %25 = vector.shape_cast %22 : vector<256x128xbf16> to vector<1x256x128xbf16>
    tpu.vector_store %arg3[%c0_10, %c0_11, %c0_12], %25 {strides = array<i32>} : memref<1x256x128xbf16, #tpu.memory_space<vmem>>, vector<1x256x128xbf16>,
    return
  }
  func.func @transform_0(%arg0: i32) -> (i32, i32, i32) {
    %c0_i32 = arith.constant 0 : i32
    %c0_i32_0 = arith.constant 0 : i32
    %c0_i32_1 = arith.constant 0 : i32
    return %arg0, %c0_i32, %c0_i32_0 : i32, i32, i32
  }
  func.func @transform_1(%arg0: i32) -> (i32, i32) {
    %c0_i32 = arith.constant 0 : i32
    %c0_i32_0 = arith.constant 0 : i32
    %c0_i32_1 = arith.constant 0 : i32
    return %c0_i32, %c0_i32_0 : i32, i32
  }
  func.func @transform_2(%arg0: i32) -> (i32, i32, i32) {
    %c0_i32 = arith.constant 0 : i32
    %c0_i32_0 = arith.constant 0 : i32
    %c0_i32_1 = arith.constant 0 : i32
    return %arg0, %c0_i32, %c0_i32_0 : i32, i32, i32
  }
}

module attributes {stable_mosaic.version = 11 : i64} {
  func.func @_fused_conv_kernel(%arg0: i32, %arg1: memref<1x256x512xbf16, #tpu.memory_space<vmem>>, %arg2: memref<512x128xbf16, #tpu.memory_space<vmem>>, %arg3: memref<1x256x128xf32, #tpu.memory_space<vmem>>) attributes {dimension_semantics = [#tpu.dimension_semantics<parallel>], iteration_bounds = array<i64: 2>, scalar_prefetch = 0 : i64, scratch_operands = 0 : i64, tpu.core_type = #tpu.core_type<tc>, window_params = [{transform_indices = @transform_0, window_bounds = array<i64: 1, 256, 512>}, {pipeline_mode = #tpu.pipeline_mode<synchronous>, transform_indices = @transform_1, window_bounds = array<i64: 512, 128>}, {transform_indices = @transform_2, window_bounds = array<i64: 1, 256, 128>}]} {
    %c0 = arith.constant 0 : index
    %c0_0 = arith.constant 0 : index
    %c0_1 = arith.constant 0 : index
    %0 = vector.load %arg1[%c0, %c0_0, %c0_1] : memref<1x256x512xbf16, #tpu.memory_space<vmem>>, vector<1x256x512xbf16>
    %1 = vector.shape_cast %0 : vector<1x256x512xbf16> to vector<256x512xbf16>
    %c0_2 = arith.constant 0 : index
    %c0_3 = arith.constant 0 : index
    %2 = vector.load %arg2[%c0_2, %c0_3] : memref<512x128xbf16, #tpu.memory_space<vmem>>, vector<512x128xbf16>
    %cst = arith.constant dense<0.000000e+00> : vector<256x128xf32>
    %3 = tpu.matmul %1, %2, %cst {dimension_numbers = #tpu.dot_dimension_numbers<[1], [0], [0], [1], [0, 0, 1, 1], [], []>} : vector<256x512xbf16>, vector<512x128xbf16>, vector<256x128xf32> -> vector<256x128xf32>
    %cst_4 = arith.constant dense<0.000000e+00> : vector<128xf32>
    %4 = vector.multi_reduction <add>, %3, %cst_4 [0] : vector<256x128xf32> to vector<128xf32>
    %5 = vector.shape_cast %4 : vector<128xf32> to vector<1x128xf32>
    %cst_5 = arith.constant 3.906250e-03 : f32
    %6 = vector.broadcast %cst_5 : f32 to vector<1x128xf32>
    %7 = arith.mulf %5, %6 : vector<1x128xf32>
    %8 = vector.broadcast %7 : vector<1x128xf32> to vector<256x128xf32>
    %9 = arith.subf %3, %8 : vector<256x128xf32>
    %10 = arith.mulf %9, %9 : vector<256x128xf32>
    %cst_6 = arith.constant dense<0.000000e+00> : vector<128xf32>
    %11 = vector.multi_reduction <add>, %10, %cst_6 [0] : vector<256x128xf32> to vector<128xf32>
    %12 = vector.shape_cast %11 : vector<128xf32> to vector<1x128xf32>
    %cst_7 = arith.constant 3.906250e-03 : f32
    %13 = vector.broadcast %cst_7 : f32 to vector<1x128xf32>
    %14 = arith.mulf %12, %13 : vector<1x128xf32>
    %cst_8 = arith.constant 9.99999974E-6 : f32
    %15 = vector.broadcast %cst_8 : f32 to vector<1x128xf32>
    %16 = arith.addf %14, %15 : vector<1x128xf32>
    %17 = math.rsqrt %16 : vector<1x128xf32>
    %18 = vector.broadcast %17 : vector<1x128xf32> to vector<256x128xf32>
    %19 = arith.mulf %9, %18 : vector<256x128xf32>
    %cst_9 = arith.constant 0.000000e+00 : f32
    %20 = vector.broadcast %cst_9 : f32 to vector<256x128xf32>
    %21 = arith.maximumf %19, %20 : vector<256x128xf32>
    %c0_10 = arith.constant 0 : index
    %c0_11 = arith.constant 0 : index
    %c0_12 = arith.constant 0 : index
    %22 = vector.load %arg3[%c0_10, %c0_11, %c0_12] : memref<1x256x128xf32, #tpu.memory_space<vmem>>, vector<1x256x128xf32>
    %23 = vector.shape_cast %22 : vector<1x256x128xf32> to vector<256x128xf32>
    %24 = vector.shape_cast %21 : vector<256x128xf32> to vector<1x256x128xf32>
    tpu.vector_store %arg3[%c0_10, %c0_11, %c0_12], %24 {strides = array<i32>} : memref<1x256x128xf32, #tpu.memory_space<vmem>>, vector<1x256x128xf32>,
    return
  }
  func.func @transform_0(%arg0: i32) -> (i32, i32, i32) {
    %c0_i32 = arith.constant 0 : i32
    %c0_i32_0 = arith.constant 0 : i32
    %c0_i32_1 = arith.constant 0 : i32
    return %arg0, %c0_i32, %c0_i32_0 : i32, i32, i32
  }
  func.func @transform_1(%arg0: i32) -> (i32, i32) {
    %c0_i32 = arith.constant 0 : i32
    %c0_i32_0 = arith.constant 0 : i32
    %c0_i32_1 = arith.constant 0 : i32
    return %c0_i32, %c0_i32_0 : i32, i32
  }
  func.func @transform_2(%arg0: i32) -> (i32, i32, i32) {
    %c0_i32 = arith.constant 0 : i32
    %c0_i32_0 = arith.constant 0 : i32
    %c0_i32_1 = arith.constant 0 : i32
    return %arg0, %c0_i32, %c0_i32_0 : i32, i32, i32
  }
}

module attributes {stable_mosaic.version = 11 : i64} {
  func.func @_fused_conv_kernel(%arg0: i32, %arg1: memref<1x256x128xbf16, #tpu.memory_space<vmem>>, %arg2: memref<128x128xbf16, #tpu.memory_space<vmem>>, %arg3: memref<1x256x128xf32, #tpu.memory_space<vmem>>, %arg4: memref<1x256x128xbf16, #tpu.memory_space<vmem>>) attributes {dimension_semantics = [#tpu.dimension_semantics<parallel>], iteration_bounds = array<i64: 2>, scalar_prefetch = 0 : i64, scratch_operands = 0 : i64, tpu.core_type = #tpu.core_type<tc>, window_params = [{transform_indices = @transform_0, window_bounds = array<i64: 1, 256, 128>}, {pipeline_mode = #tpu.pipeline_mode<synchronous>, transform_indices = @transform_1, window_bounds = array<i64: 128, 128>}, {transform_indices = @transform_2, window_bounds = array<i64: 1, 256, 128>}, {transform_indices = @transform_3, window_bounds = array<i64: 1, 256, 128>}]} {
    %c0 = arith.constant 0 : index
    %c0_0 = arith.constant 0 : index
    %c0_1 = arith.constant 0 : index
    %0 = vector.load %arg1[%c0, %c0_0, %c0_1] : memref<1x256x128xbf16, #tpu.memory_space<vmem>>, vector<1x256x128xbf16>
    %1 = vector.shape_cast %0 : vector<1x256x128xbf16> to vector<256x128xbf16>
    %c0_2 = arith.constant 0 : index
    %c0_3 = arith.constant 0 : index
    %2 = vector.load %arg2[%c0_2, %c0_3] : memref<128x128xbf16, #tpu.memory_space<vmem>>, vector<128x128xbf16>
    %cst = arith.constant dense<0.000000e+00> : vector<256x128xf32>
    %3 = tpu.matmul %1, %2, %cst {dimension_numbers = #tpu.dot_dimension_numbers<[1], [0], [0], [1], [0, 0, 1, 1], [], []>} : vector<256x128xbf16>, vector<128x128xbf16>, vector<256x128xf32> -> vector<256x128xf32>
    %cst_4 = arith.constant dense<0.000000e+00> : vector<128xf32>
    %4 = vector.multi_reduction <add>, %3, %cst_4 [0] : vector<256x128xf32> to vector<128xf32>
    %5 = vector.shape_cast %4 : vector<128xf32> to vector<1x128xf32>
    %cst_5 = arith.constant 3.906250e-03 : f32
    %6 = vector.broadcast %cst_5 : f32 to vector<1x128xf32>
    %7 = arith.mulf %5, %6 : vector<1x128xf32>
    %8 = vector.broadcast %7 : vector<1x128xf32> to vector<256x128xf32>
    %9 = arith.subf %3, %8 : vector<256x128xf32>
    %10 = arith.mulf %9, %9 : vector<256x128xf32>
    %cst_6 = arith.constant dense<0.000000e+00> : vector<128xf32>
    %11 = vector.multi_reduction <add>, %10, %cst_6 [0] : vector<256x128xf32> to vector<128xf32>
    %12 = vector.shape_cast %11 : vector<128xf32> to vector<1x128xf32>
    %cst_7 = arith.constant 3.906250e-03 : f32
    %13 = vector.broadcast %cst_7 : f32 to vector<1x128xf32>
    %14 = arith.mulf %12, %13 : vector<1x128xf32>
    %cst_8 = arith.constant 9.99999974E-6 : f32
    %15 = vector.broadcast %cst_8 : f32 to vector<1x128xf32>
    %16 = arith.addf %14, %15 : vector<1x128xf32>
    %17 = math.rsqrt %16 : vector<1x128xf32>
    %18 = vector.broadcast %17 : vector<1x128xf32> to vector<256x128xf32>
    %19 = arith.mulf %9, %18 : vector<256x128xf32>
    %c0_9 = arith.constant 0 : index
    %c0_10 = arith.constant 0 : index
    %c0_11 = arith.constant 0 : index
    %20 = vector.load %arg3[%c0_9, %c0_10, %c0_11] : memref<1x256x128xf32, #tpu.memory_space<vmem>>, vector<1x256x128xf32>
    %21 = vector.shape_cast %20 : vector<1x256x128xf32> to vector<256x128xf32>
    %22 = arith.addf %19, %21 : vector<256x128xf32>
    %cst_12 = arith.constant 0.000000e+00 : f32
    %23 = vector.broadcast %cst_12 : f32 to vector<256x128xf32>
    %24 = arith.maximumf %22, %23 : vector<256x128xf32>
    %25 = arith.truncf %24 : vector<256x128xf32> to vector<256x128xbf16>
    %c0_13 = arith.constant 0 : index
    %c0_14 = arith.constant 0 : index
    %c0_15 = arith.constant 0 : index
    %26 = vector.load %arg4[%c0_13, %c0_14, %c0_15] : memref<1x256x128xbf16, #tpu.memory_space<vmem>>, vector<1x256x128xbf16>
    %27 = vector.shape_cast %26 : vector<1x256x128xbf16> to vector<256x128xbf16>
    %28 = vector.shape_cast %25 : vector<256x128xbf16> to vector<1x256x128xbf16>
    tpu.vector_store %arg4[%c0_13, %c0_14, %c0_15], %28 {strides = array<i32>} : memref<1x256x128xbf16, #tpu.memory_space<vmem>>, vector<1x256x128xbf16>,
    return
  }
  func.func @transform_0(%arg0: i32) -> (i32, i32, i32) {
    %c0_i32 = arith.constant 0 : i32
    %c0_i32_0 = arith.constant 0 : i32
    %c0_i32_1 = arith.constant 0 : i32
    return %arg0, %c0_i32, %c0_i32_0 : i32, i32, i32
  }
  func.func @transform_1(%arg0: i32) -> (i32, i32) {
    %c0_i32 = arith.constant 0 : i32
    %c0_i32_0 = arith.constant 0 : i32
    %c0_i32_1 = arith.constant 0 : i32
    return %c0_i32, %c0_i32_0 : i32, i32
  }
  func.func @transform_2(%arg0: i32) -> (i32, i32, i32) {
    %c0_i32 = arith.constant 0 : i32
    %c0_i32_0 = arith.constant 0 : i32
    %c0_i32_1 = arith.constant 0 : i32
    return %arg0, %c0_i32, %c0_i32_0 : i32, i32, i32
  }
  func.func @transform_3(%arg0: i32) -> (i32, i32, i32) {
    %c0_i32 = arith.constant 0 : i32
    %c0_i32_0 = arith.constant 0 : i32
    %c0_i32_1 = arith.constant 0 : i32
    return %arg0, %c0_i32, %c0_i32_0 : i32, i32, i32
  }
}

module attributes {stable_mosaic.version = 11 : i64} {
  func.func @_fused_conv_kernel(%arg0: i32, %arg1: memref<1x256x512xbf16, #tpu.memory_space<vmem>>, %arg2: memref<512x128xbf16, #tpu.memory_space<vmem>>, %arg3: memref<1x256x128xbf16, #tpu.memory_space<vmem>>) attributes {dimension_semantics = [#tpu.dimension_semantics<parallel>], iteration_bounds = array<i64: 2>, scalar_prefetch = 0 : i64, scratch_operands = 0 : i64, tpu.core_type = #tpu.core_type<tc>, window_params = [{transform_indices = @transform_0, window_bounds = array<i64: 1, 256, 512>}, {pipeline_mode = #tpu.pipeline_mode<synchronous>, transform_indices = @transform_1, window_bounds = array<i64: 512, 128>}, {transform_indices = @transform_2, window_bounds = array<i64: 1, 256, 128>}]} {
    %c0 = arith.constant 0 : index
    %c0_0 = arith.constant 0 : index
    %c0_1 = arith.constant 0 : index
    %0 = vector.load %arg1[%c0, %c0_0, %c0_1] : memref<1x256x512xbf16, #tpu.memory_space<vmem>>, vector<1x256x512xbf16>
    %1 = vector.shape_cast %0 : vector<1x256x512xbf16> to vector<256x512xbf16>
    %c0_2 = arith.constant 0 : index
    %c0_3 = arith.constant 0 : index
    %2 = vector.load %arg2[%c0_2, %c0_3] : memref<512x128xbf16, #tpu.memory_space<vmem>>, vector<512x128xbf16>
    %cst = arith.constant dense<0.000000e+00> : vector<256x128xf32>
    %3 = tpu.matmul %1, %2, %cst {dimension_numbers = #tpu.dot_dimension_numbers<[1], [0], [0], [1], [0, 0, 1, 1], [], []>} : vector<256x512xbf16>, vector<512x128xbf16>, vector<256x128xf32> -> vector<256x128xf32>
    %cst_4 = arith.constant dense<0.000000e+00> : vector<128xf32>
    %4 = vector.multi_reduction <add>, %3, %cst_4 [0] : vector<256x128xf32> to vector<128xf32>
    %5 = vector.shape_cast %4 : vector<128xf32> to vector<1x128xf32>
    %cst_5 = arith.constant 3.906250e-03 : f32
    %6 = vector.broadcast %cst_5 : f32 to vector<1x128xf32>
    %7 = arith.mulf %5, %6 : vector<1x128xf32>
    %8 = vector.broadcast %7 : vector<1x128xf32> to vector<256x128xf32>
    %9 = arith.subf %3, %8 : vector<256x128xf32>
    %10 = arith.mulf %9, %9 : vector<256x128xf32>
    %cst_6 = arith.constant dense<0.000000e+00> : vector<128xf32>
    %11 = vector.multi_reduction <add>, %10, %cst_6 [0] : vector<256x128xf32> to vector<128xf32>
    %12 = vector.shape_cast %11 : vector<128xf32> to vector<1x128xf32>
    %cst_7 = arith.constant 3.906250e-03 : f32
    %13 = vector.broadcast %cst_7 : f32 to vector<1x128xf32>
    %14 = arith.mulf %12, %13 : vector<1x128xf32>
    %cst_8 = arith.constant 9.99999974E-6 : f32
    %15 = vector.broadcast %cst_8 : f32 to vector<1x128xf32>
    %16 = arith.addf %14, %15 : vector<1x128xf32>
    %17 = math.rsqrt %16 : vector<1x128xf32>
    %18 = vector.broadcast %17 : vector<1x128xf32> to vector<256x128xf32>
    %19 = arith.mulf %9, %18 : vector<256x128xf32>
    %cst_9 = arith.constant 0.000000e+00 : f32
    %20 = vector.broadcast %cst_9 : f32 to vector<256x128xf32>
    %21 = arith.maximumf %19, %20 : vector<256x128xf32>
    %22 = arith.truncf %21 : vector<256x128xf32> to vector<256x128xbf16>
    %c0_10 = arith.constant 0 : index
    %c0_11 = arith.constant 0 : index
    %c0_12 = arith.constant 0 : index
    %23 = vector.load %arg3[%c0_10, %c0_11, %c0_12] : memref<1x256x128xbf16, #tpu.memory_space<vmem>>, vector<1x256x128xbf16>
    %24 = vector.shape_cast %23 : vector<1x256x128xbf16> to vector<256x128xbf16>
    %25 = vector.shape_cast %22 : vector<256x128xbf16> to vector<1x256x128xbf16>
    tpu.vector_store %arg3[%c0_10, %c0_11, %c0_12], %25 {strides = array<i32>} : memref<1x256x128xbf16, #tpu.memory_space<vmem>>, vector<1x256x128xbf16>,
    return
  }
  func.func @transform_0(%arg0: i32) -> (i32, i32, i32) {
    %c0_i32 = arith.constant 0 : i32
    %c0_i32_0 = arith.constant 0 : i32
    %c0_i32_1 = arith.constant 0 : i32
    return %arg0, %c0_i32, %c0_i32_0 : i32, i32, i32
  }
  func.func @transform_1(%arg0: i32) -> (i32, i32) {
    %c0_i32 = arith.constant 0 : i32
    %c0_i32_0 = arith.constant 0 : i32
    %c0_i32_1 = arith.constant 0 : i32
    return %c0_i32, %c0_i32_0 : i32, i32
  }
  func.func @transform_2(%arg0: i32) -> (i32, i32, i32) {
    %c0_i32 = arith.constant 0 : i32
    %c0_i32_0 = arith.constant 0 : i32
    %c0_i32_1 = arith.constant 0 : i32
    return %arg0, %c0_i32, %c0_i32_0 : i32, i32, i32
  }
}

module attributes {stable_mosaic.version = 11 : i64} {
  func.func @_fused_conv_kernel(%arg0: i32, %arg1: memref<1x64x512xbf16, #tpu.memory_space<vmem>>, %arg2: memref<512x128xbf16, #tpu.memory_space<vmem>>, %arg3: memref<1x64x128xbf16, #tpu.memory_space<vmem>>) attributes {dimension_semantics = [#tpu.dimension_semantics<parallel>], iteration_bounds = array<i64: 2>, scalar_prefetch = 0 : i64, scratch_operands = 0 : i64, tpu.core_type = #tpu.core_type<tc>, window_params = [{transform_indices = @transform_0, window_bounds = array<i64: 1, 64, 512>}, {pipeline_mode = #tpu.pipeline_mode<synchronous>, transform_indices = @transform_1, window_bounds = array<i64: 512, 128>}, {transform_indices = @transform_2, window_bounds = array<i64: 1, 64, 128>}]} {
    %c0 = arith.constant 0 : index
    %c0_0 = arith.constant 0 : index
    %c0_1 = arith.constant 0 : index
    %0 = vector.load %arg1[%c0, %c0_0, %c0_1] : memref<1x64x512xbf16, #tpu.memory_space<vmem>>, vector<1x64x512xbf16>
    %1 = vector.shape_cast %0 : vector<1x64x512xbf16> to vector<64x512xbf16>
    %c0_2 = arith.constant 0 : index
    %c0_3 = arith.constant 0 : index
    %2 = vector.load %arg2[%c0_2, %c0_3] : memref<512x128xbf16, #tpu.memory_space<vmem>>, vector<512x128xbf16>
    %cst = arith.constant dense<0.000000e+00> : vector<64x128xf32>
    %3 = tpu.matmul %1, %2, %cst {dimension_numbers = #tpu.dot_dimension_numbers<[1], [0], [0], [1], [0, 0, 1, 1], [], []>} : vector<64x512xbf16>, vector<512x128xbf16>, vector<64x128xf32> -> vector<64x128xf32>
    %cst_4 = arith.constant dense<0.000000e+00> : vector<128xf32>
    %4 = vector.multi_reduction <add>, %3, %cst_4 [0] : vector<64x128xf32> to vector<128xf32>
    %5 = vector.shape_cast %4 : vector<128xf32> to vector<1x128xf32>
    %cst_5 = arith.constant 1.562500e-02 : f32
    %6 = vector.broadcast %cst_5 : f32 to vector<1x128xf32>
    %7 = arith.mulf %5, %6 : vector<1x128xf32>
    %8 = vector.broadcast %7 : vector<1x128xf32> to vector<64x128xf32>
    %9 = arith.subf %3, %8 : vector<64x128xf32>
    %10 = arith.mulf %9, %9 : vector<64x128xf32>
    %cst_6 = arith.constant dense<0.000000e+00> : vector<128xf32>
    %11 = vector.multi_reduction <add>, %10, %cst_6 [0] : vector<64x128xf32> to vector<128xf32>
    %12 = vector.shape_cast %11 : vector<128xf32> to vector<1x128xf32>
    %cst_7 = arith.constant 1.562500e-02 : f32
    %13 = vector.broadcast %cst_7 : f32 to vector<1x128xf32>
    %14 = arith.mulf %12, %13 : vector<1x128xf32>
    %cst_8 = arith.constant 9.99999974E-6 : f32
    %15 = vector.broadcast %cst_8 : f32 to vector<1x128xf32>
    %16 = arith.addf %14, %15 : vector<1x128xf32>
    %17 = math.rsqrt %16 : vector<1x128xf32>
    %18 = vector.broadcast %17 : vector<1x128xf32> to vector<64x128xf32>
    %19 = arith.mulf %9, %18 : vector<64x128xf32>
    %cst_9 = arith.constant 0.000000e+00 : f32
    %20 = vector.broadcast %cst_9 : f32 to vector<64x128xf32>
    %21 = arith.maximumf %19, %20 : vector<64x128xf32>
    %22 = arith.truncf %21 : vector<64x128xf32> to vector<64x128xbf16>
    %c0_10 = arith.constant 0 : index
    %c0_11 = arith.constant 0 : index
    %c0_12 = arith.constant 0 : index
    %23 = vector.load %arg3[%c0_10, %c0_11, %c0_12] : memref<1x64x128xbf16, #tpu.memory_space<vmem>>, vector<1x64x128xbf16>
    %24 = vector.shape_cast %23 : vector<1x64x128xbf16> to vector<64x128xbf16>
    %25 = vector.shape_cast %22 : vector<64x128xbf16> to vector<1x64x128xbf16>
    tpu.vector_store %arg3[%c0_10, %c0_11, %c0_12], %25 {strides = array<i32>} : memref<1x64x128xbf16, #tpu.memory_space<vmem>>, vector<1x64x128xbf16>,
    return
  }
  func.func @transform_0(%arg0: i32) -> (i32, i32, i32) {
    %c0_i32 = arith.constant 0 : i32
    %c0_i32_0 = arith.constant 0 : i32
    %c0_i32_1 = arith.constant 0 : i32
    return %arg0, %c0_i32, %c0_i32_0 : i32, i32, i32
  }
  func.func @transform_1(%arg0: i32) -> (i32, i32) {
    %c0_i32 = arith.constant 0 : i32
    %c0_i32_0 = arith.constant 0 : i32
    %c0_i32_1 = arith.constant 0 : i32
    return %c0_i32, %c0_i32_0 : i32, i32
  }
  func.func @transform_2(%arg0: i32) -> (i32, i32, i32) {
    %c0_i32 = arith.constant 0 : i32
    %c0_i32_0 = arith.constant 0 : i32
    %c0_i32_1 = arith.constant 0 : i32
    return %arg0, %c0_i32, %c0_i32_0 : i32, i32, i32
  }
}

module attributes {stable_mosaic.version = 11 : i64} {
  func.func @_fused_conv_kernel(%arg0: i32, %arg1: memref<1x64x128xbf16, #tpu.memory_space<vmem>>, %arg2: memref<128x128xbf16, #tpu.memory_space<vmem>>, %arg3: memref<1x64x128xf32, #tpu.memory_space<vmem>>, %arg4: memref<1x64x128xbf16, #tpu.memory_space<vmem>>) attributes {dimension_semantics = [#tpu.dimension_semantics<parallel>], iteration_bounds = array<i64: 2>, scalar_prefetch = 0 : i64, scratch_operands = 0 : i64, tpu.core_type = #tpu.core_type<tc>, window_params = [{transform_indices = @transform_0, window_bounds = array<i64: 1, 64, 128>}, {pipeline_mode = #tpu.pipeline_mode<synchronous>, transform_indices = @transform_1, window_bounds = array<i64: 128, 128>}, {transform_indices = @transform_2, window_bounds = array<i64: 1, 64, 128>}, {transform_indices = @transform_3, window_bounds = array<i64: 1, 64, 128>}]} {
    %c0 = arith.constant 0 : index
    %c0_0 = arith.constant 0 : index
    %c0_1 = arith.constant 0 : index
    %0 = vector.load %arg1[%c0, %c0_0, %c0_1] : memref<1x64x128xbf16, #tpu.memory_space<vmem>>, vector<1x64x128xbf16>
    %1 = vector.shape_cast %0 : vector<1x64x128xbf16> to vector<64x128xbf16>
    %c0_2 = arith.constant 0 : index
    %c0_3 = arith.constant 0 : index
    %2 = vector.load %arg2[%c0_2, %c0_3] : memref<128x128xbf16, #tpu.memory_space<vmem>>, vector<128x128xbf16>
    %cst = arith.constant dense<0.000000e+00> : vector<64x128xf32>
    %3 = tpu.matmul %1, %2, %cst {dimension_numbers = #tpu.dot_dimension_numbers<[1], [0], [0], [1], [0, 0, 1, 1], [], []>} : vector<64x128xbf16>, vector<128x128xbf16>, vector<64x128xf32> -> vector<64x128xf32>
    %cst_4 = arith.constant dense<0.000000e+00> : vector<128xf32>
    %4 = vector.multi_reduction <add>, %3, %cst_4 [0] : vector<64x128xf32> to vector<128xf32>
    %5 = vector.shape_cast %4 : vector<128xf32> to vector<1x128xf32>
    %cst_5 = arith.constant 1.562500e-02 : f32
    %6 = vector.broadcast %cst_5 : f32 to vector<1x128xf32>
    %7 = arith.mulf %5, %6 : vector<1x128xf32>
    %8 = vector.broadcast %7 : vector<1x128xf32> to vector<64x128xf32>
    %9 = arith.subf %3, %8 : vector<64x128xf32>
    %10 = arith.mulf %9, %9 : vector<64x128xf32>
    %cst_6 = arith.constant dense<0.000000e+00> : vector<128xf32>
    %11 = vector.multi_reduction <add>, %10, %cst_6 [0] : vector<64x128xf32> to vector<128xf32>
    %12 = vector.shape_cast %11 : vector<128xf32> to vector<1x128xf32>
    %cst_7 = arith.constant 1.562500e-02 : f32
    %13 = vector.broadcast %cst_7 : f32 to vector<1x128xf32>
    %14 = arith.mulf %12, %13 : vector<1x128xf32>
    %cst_8 = arith.constant 9.99999974E-6 : f32
    %15 = vector.broadcast %cst_8 : f32 to vector<1x128xf32>
    %16 = arith.addf %14, %15 : vector<1x128xf32>
    %17 = math.rsqrt %16 : vector<1x128xf32>
    %18 = vector.broadcast %17 : vector<1x128xf32> to vector<64x128xf32>
    %19 = arith.mulf %9, %18 : vector<64x128xf32>
    %c0_9 = arith.constant 0 : index
    %c0_10 = arith.constant 0 : index
    %c0_11 = arith.constant 0 : index
    %20 = vector.load %arg3[%c0_9, %c0_10, %c0_11] : memref<1x64x128xf32, #tpu.memory_space<vmem>>, vector<1x64x128xf32>
    %21 = vector.shape_cast %20 : vector<1x64x128xf32> to vector<64x128xf32>
    %22 = arith.addf %19, %21 : vector<64x128xf32>
    %cst_12 = arith.constant 0.000000e+00 : f32
    %23 = vector.broadcast %cst_12 : f32 to vector<64x128xf32>
    %24 = arith.maximumf %22, %23 : vector<64x128xf32>
    %25 = arith.truncf %24 : vector<64x128xf32> to vector<64x128xbf16>
    %c0_13 = arith.constant 0 : index
    %c0_14 = arith.constant 0 : index
    %c0_15 = arith.constant 0 : index
    %26 = vector.load %arg4[%c0_13, %c0_14, %c0_15] : memref<1x64x128xbf16, #tpu.memory_space<vmem>>, vector<1x64x128xbf16>
    %27 = vector.shape_cast %26 : vector<1x64x128xbf16> to vector<64x128xbf16>
    %28 = vector.shape_cast %25 : vector<64x128xbf16> to vector<1x64x128xbf16>
    tpu.vector_store %arg4[%c0_13, %c0_14, %c0_15], %28 {strides = array<i32>} : memref<1x64x128xbf16, #tpu.memory_space<vmem>>, vector<1x64x128xbf16>,
    return
  }
  func.func @transform_0(%arg0: i32) -> (i32, i32, i32) {
    %c0_i32 = arith.constant 0 : i32
    %c0_i32_0 = arith.constant 0 : i32
    %c0_i32_1 = arith.constant 0 : i32
    return %arg0, %c0_i32, %c0_i32_0 : i32, i32, i32
  }
  func.func @transform_1(%arg0: i32) -> (i32, i32) {
    %c0_i32 = arith.constant 0 : i32
    %c0_i32_0 = arith.constant 0 : i32
    %c0_i32_1 = arith.constant 0 : i32
    return %c0_i32, %c0_i32_0 : i32, i32
  }
  func.func @transform_2(%arg0: i32) -> (i32, i32, i32) {
    %c0_i32 = arith.constant 0 : i32
    %c0_i32_0 = arith.constant 0 : i32
    %c0_i32_1 = arith.constant 0 : i32
    return %arg0, %c0_i32, %c0_i32_0 : i32, i32, i32
  }
  func.func @transform_3(%arg0: i32) -> (i32, i32, i32) {
    %c0_i32 = arith.constant 0 : i32
    %c0_i32_0 = arith.constant 0 : i32
    %c0_i32_1 = arith.constant 0 : i32
    return %arg0, %c0_i32, %c0_i32_0 : i32, i32, i32
  }
}

module attributes {stable_mosaic.version = 11 : i64} {
  func.func @_fused_conv_kernel(%arg0: i32, %arg1: memref<1x64x768xbf16, #tpu.memory_space<vmem>>, %arg2: memref<768x128xbf16, #tpu.memory_space<vmem>>, %arg3: memref<1x64x128xf32, #tpu.memory_space<vmem>>) attributes {dimension_semantics = [#tpu.dimension_semantics<parallel>], iteration_bounds = array<i64: 2>, scalar_prefetch = 0 : i64, scratch_operands = 0 : i64, tpu.core_type = #tpu.core_type<tc>, window_params = [{transform_indices = @transform_0, window_bounds = array<i64: 1, 64, 768>}, {pipeline_mode = #tpu.pipeline_mode<synchronous>, transform_indices = @transform_1, window_bounds = array<i64: 768, 128>}, {transform_indices = @transform_2, window_bounds = array<i64: 1, 64, 128>}]} {
    %c0 = arith.constant 0 : index
    %c0_0 = arith.constant 0 : index
    %c0_1 = arith.constant 0 : index
    %0 = vector.load %arg1[%c0, %c0_0, %c0_1] : memref<1x64x768xbf16, #tpu.memory_space<vmem>>, vector<1x64x768xbf16>
    %1 = vector.shape_cast %0 : vector<1x64x768xbf16> to vector<64x768xbf16>
    %c0_2 = arith.constant 0 : index
    %c0_3 = arith.constant 0 : index
    %2 = vector.load %arg2[%c0_2, %c0_3] : memref<768x128xbf16, #tpu.memory_space<vmem>>, vector<768x128xbf16>
    %cst = arith.constant dense<0.000000e+00> : vector<64x128xf32>
    %3 = tpu.matmul %1, %2, %cst {dimension_numbers = #tpu.dot_dimension_numbers<[1], [0], [0], [1], [0, 0, 1, 1], [], []>} : vector<64x768xbf16>, vector<768x128xbf16>, vector<64x128xf32> -> vector<64x128xf32>
    %cst_4 = arith.constant dense<0.000000e+00> : vector<128xf32>
    %4 = vector.multi_reduction <add>, %3, %cst_4 [0] : vector<64x128xf32> to vector<128xf32>
    %5 = vector.shape_cast %4 : vector<128xf32> to vector<1x128xf32>
    %cst_5 = arith.constant 1.562500e-02 : f32
    %6 = vector.broadcast %cst_5 : f32 to vector<1x128xf32>
    %7 = arith.mulf %5, %6 : vector<1x128xf32>
    %8 = vector.broadcast %7 : vector<1x128xf32> to vector<64x128xf32>
    %9 = arith.subf %3, %8 : vector<64x128xf32>
    %10 = arith.mulf %9, %9 : vector<64x128xf32>
    %cst_6 = arith.constant dense<0.000000e+00> : vector<128xf32>
    %11 = vector.multi_reduction <add>, %10, %cst_6 [0] : vector<64x128xf32> to vector<128xf32>
    %12 = vector.shape_cast %11 : vector<128xf32> to vector<1x128xf32>
    %cst_7 = arith.constant 1.562500e-02 : f32
    %13 = vector.broadcast %cst_7 : f32 to vector<1x128xf32>
    %14 = arith.mulf %12, %13 : vector<1x128xf32>
    %cst_8 = arith.constant 9.99999974E-6 : f32
    %15 = vector.broadcast %cst_8 : f32 to vector<1x128xf32>
    %16 = arith.addf %14, %15 : vector<1x128xf32>
    %17 = math.rsqrt %16 : vector<1x128xf32>
    %18 = vector.broadcast %17 : vector<1x128xf32> to vector<64x128xf32>
    %19 = arith.mulf %9, %18 : vector<64x128xf32>
    %cst_9 = arith.constant 0.000000e+00 : f32
    %20 = vector.broadcast %cst_9 : f32 to vector<64x128xf32>
    %21 = arith.maximumf %19, %20 : vector<64x128xf32>
    %c0_10 = arith.constant 0 : index
    %c0_11 = arith.constant 0 : index
    %c0_12 = arith.constant 0 : index
    %22 = vector.load %arg3[%c0_10, %c0_11, %c0_12] : memref<1x64x128xf32, #tpu.memory_space<vmem>>, vector<1x64x128xf32>
    %23 = vector.shape_cast %22 : vector<1x64x128xf32> to vector<64x128xf32>
    %24 = vector.shape_cast %21 : vector<64x128xf32> to vector<1x64x128xf32>
    tpu.vector_store %arg3[%c0_10, %c0_11, %c0_12], %24 {strides = array<i32>} : memref<1x64x128xf32, #tpu.memory_space<vmem>>, vector<1x64x128xf32>,
    return
  }
  func.func @transform_0(%arg0: i32) -> (i32, i32, i32) {
    %c0_i32 = arith.constant 0 : i32
    %c0_i32_0 = arith.constant 0 : i32
    %c0_i32_1 = arith.constant 0 : i32
    return %arg0, %c0_i32, %c0_i32_0 : i32, i32, i32
  }
  func.func @transform_1(%arg0: i32) -> (i32, i32) {
    %c0_i32 = arith.constant 0 : i32
    %c0_i32_0 = arith.constant 0 : i32
    %c0_i32_1 = arith.constant 0 : i32
    return %c0_i32, %c0_i32_0 : i32, i32
  }
  func.func @transform_2(%arg0: i32) -> (i32, i32, i32) {
    %c0_i32 = arith.constant 0 : i32
    %c0_i32_0 = arith.constant 0 : i32
    %c0_i32_1 = arith.constant 0 : i32
    return %arg0, %c0_i32, %c0_i32_0 : i32, i32, i32
  }
}

module attributes {stable_mosaic.version = 11 : i64} {
  func.func @_fused_conv_kernel(%arg0: i32, %arg1: memref<1x64x768xbf16, #tpu.memory_space<vmem>>, %arg2: memref<768x128xbf16, #tpu.memory_space<vmem>>, %arg3: memref<1x64x128xbf16, #tpu.memory_space<vmem>>) attributes {dimension_semantics = [#tpu.dimension_semantics<parallel>], iteration_bounds = array<i64: 2>, scalar_prefetch = 0 : i64, scratch_operands = 0 : i64, tpu.core_type = #tpu.core_type<tc>, window_params = [{transform_indices = @transform_0, window_bounds = array<i64: 1, 64, 768>}, {pipeline_mode = #tpu.pipeline_mode<synchronous>, transform_indices = @transform_1, window_bounds = array<i64: 768, 128>}, {transform_indices = @transform_2, window_bounds = array<i64: 1, 64, 128>}]} {
    %c0 = arith.constant 0 : index
    %c0_0 = arith.constant 0 : index
    %c0_1 = arith.constant 0 : index
    %0 = vector.load %arg1[%c0, %c0_0, %c0_1] : memref<1x64x768xbf16, #tpu.memory_space<vmem>>, vector<1x64x768xbf16>
    %1 = vector.shape_cast %0 : vector<1x64x768xbf16> to vector<64x768xbf16>
    %c0_2 = arith.constant 0 : index
    %c0_3 = arith.constant 0 : index
    %2 = vector.load %arg2[%c0_2, %c0_3] : memref<768x128xbf16, #tpu.memory_space<vmem>>, vector<768x128xbf16>
    %cst = arith.constant dense<0.000000e+00> : vector<64x128xf32>
    %3 = tpu.matmul %1, %2, %cst {dimension_numbers = #tpu.dot_dimension_numbers<[1], [0], [0], [1], [0, 0, 1, 1], [], []>} : vector<64x768xbf16>, vector<768x128xbf16>, vector<64x128xf32> -> vector<64x128xf32>
    %cst_4 = arith.constant dense<0.000000e+00> : vector<128xf32>
    %4 = vector.multi_reduction <add>, %3, %cst_4 [0] : vector<64x128xf32> to vector<128xf32>
    %5 = vector.shape_cast %4 : vector<128xf32> to vector<1x128xf32>
    %cst_5 = arith.constant 1.562500e-02 : f32
    %6 = vector.broadcast %cst_5 : f32 to vector<1x128xf32>
    %7 = arith.mulf %5, %6 : vector<1x128xf32>
    %8 = vector.broadcast %7 : vector<1x128xf32> to vector<64x128xf32>
    %9 = arith.subf %3, %8 : vector<64x128xf32>
    %10 = arith.mulf %9, %9 : vector<64x128xf32>
    %cst_6 = arith.constant dense<0.000000e+00> : vector<128xf32>
    %11 = vector.multi_reduction <add>, %10, %cst_6 [0] : vector<64x128xf32> to vector<128xf32>
    %12 = vector.shape_cast %11 : vector<128xf32> to vector<1x128xf32>
    %cst_7 = arith.constant 1.562500e-02 : f32
    %13 = vector.broadcast %cst_7 : f32 to vector<1x128xf32>
    %14 = arith.mulf %12, %13 : vector<1x128xf32>
    %cst_8 = arith.constant 9.99999974E-6 : f32
    %15 = vector.broadcast %cst_8 : f32 to vector<1x128xf32>
    %16 = arith.addf %14, %15 : vector<1x128xf32>
    %17 = math.rsqrt %16 : vector<1x128xf32>
    %18 = vector.broadcast %17 : vector<1x128xf32> to vector<64x128xf32>
    %19 = arith.mulf %9, %18 : vector<64x128xf32>
    %cst_9 = arith.constant 0.000000e+00 : f32
    %20 = vector.broadcast %cst_9 : f32 to vector<64x128xf32>
    %21 = arith.maximumf %19, %20 : vector<64x128xf32>
    %22 = arith.truncf %21 : vector<64x128xf32> to vector<64x128xbf16>
    %c0_10 = arith.constant 0 : index
    %c0_11 = arith.constant 0 : index
    %c0_12 = arith.constant 0 : index
    %23 = vector.load %arg3[%c0_10, %c0_11, %c0_12] : memref<1x64x128xbf16, #tpu.memory_space<vmem>>, vector<1x64x128xbf16>
    %24 = vector.shape_cast %23 : vector<1x64x128xbf16> to vector<64x128xbf16>
    %25 = vector.shape_cast %22 : vector<64x128xbf16> to vector<1x64x128xbf16>
    tpu.vector_store %arg3[%c0_10, %c0_11, %c0_12], %25 {strides = array<i32>} : memref<1x64x128xbf16, #tpu.memory_space<vmem>>, vector<1x64x128xbf16>,
    return
  }
  func.func @transform_0(%arg0: i32) -> (i32, i32, i32) {
    %c0_i32 = arith.constant 0 : i32
    %c0_i32_0 = arith.constant 0 : i32
    %c0_i32_1 = arith.constant 0 : i32
    return %arg0, %c0_i32, %c0_i32_0 : i32, i32, i32
  }
  func.func @transform_1(%arg0: i32) -> (i32, i32) {
    %c0_i32 = arith.constant 0 : i32
    %c0_i32_0 = arith.constant 0 : i32
    %c0_i32_1 = arith.constant 0 : i32
    return %c0_i32, %c0_i32_0 : i32, i32
  }
  func.func @transform_2(%arg0: i32) -> (i32, i32, i32) {
    %c0_i32 = arith.constant 0 : i32
    %c0_i32_0 = arith.constant 0 : i32
    %c0_i32_1 = arith.constant 0 : i32
    return %arg0, %c0_i32, %c0_i32_0 : i32, i32, i32
  }
}

module attributes {stable_mosaic.version = 11 : i64} {
  func.func @_fused_conv_kernel(%arg0: i32, %arg1: memref<1x16x768xbf16, #tpu.memory_space<vmem>>, %arg2: memref<768x128xbf16, #tpu.memory_space<vmem>>, %arg3: memref<1x16x128xbf16, #tpu.memory_space<vmem>>) attributes {dimension_semantics = [#tpu.dimension_semantics<parallel>], iteration_bounds = array<i64: 2>, scalar_prefetch = 0 : i64, scratch_operands = 0 : i64, tpu.core_type = #tpu.core_type<tc>, window_params = [{transform_indices = @transform_0, window_bounds = array<i64: 1, 16, 768>}, {pipeline_mode = #tpu.pipeline_mode<synchronous>, transform_indices = @transform_1, window_bounds = array<i64: 768, 128>}, {transform_indices = @transform_2, window_bounds = array<i64: 1, 16, 128>}]} {
    %c0 = arith.constant 0 : index
    %c0_0 = arith.constant 0 : index
    %c0_1 = arith.constant 0 : index
    %0 = vector.load %arg1[%c0, %c0_0, %c0_1] : memref<1x16x768xbf16, #tpu.memory_space<vmem>>, vector<1x16x768xbf16>
    %1 = vector.shape_cast %0 : vector<1x16x768xbf16> to vector<16x768xbf16>
    %c0_2 = arith.constant 0 : index
    %c0_3 = arith.constant 0 : index
    %2 = vector.load %arg2[%c0_2, %c0_3] : memref<768x128xbf16, #tpu.memory_space<vmem>>, vector<768x128xbf16>
    %cst = arith.constant dense<0.000000e+00> : vector<16x128xf32>
    %3 = tpu.matmul %1, %2, %cst {dimension_numbers = #tpu.dot_dimension_numbers<[1], [0], [0], [1], [0, 0, 1, 1], [], []>} : vector<16x768xbf16>, vector<768x128xbf16>, vector<16x128xf32> -> vector<16x128xf32>
    %cst_4 = arith.constant dense<0.000000e+00> : vector<128xf32>
    %4 = vector.multi_reduction <add>, %3, %cst_4 [0] : vector<16x128xf32> to vector<128xf32>
    %5 = vector.shape_cast %4 : vector<128xf32> to vector<1x128xf32>
    %cst_5 = arith.constant 6.250000e-02 : f32
    %6 = vector.broadcast %cst_5 : f32 to vector<1x128xf32>
    %7 = arith.mulf %5, %6 : vector<1x128xf32>
    %8 = vector.broadcast %7 : vector<1x128xf32> to vector<16x128xf32>
    %9 = arith.subf %3, %8 : vector<16x128xf32>
    %10 = arith.mulf %9, %9 : vector<16x128xf32>
    %cst_6 = arith.constant dense<0.000000e+00> : vector<128xf32>
    %11 = vector.multi_reduction <add>, %10, %cst_6 [0] : vector<16x128xf32> to vector<128xf32>
    %12 = vector.shape_cast %11 : vector<128xf32> to vector<1x128xf32>
    %cst_7 = arith.constant 6.250000e-02 : f32
    %13 = vector.broadcast %cst_7 : f32 to vector<1x128xf32>
    %14 = arith.mulf %12, %13 : vector<1x128xf32>
    %cst_8 = arith.constant 9.99999974E-6 : f32
    %15 = vector.broadcast %cst_8 : f32 to vector<1x128xf32>
    %16 = arith.addf %14, %15 : vector<1x128xf32>
    %17 = math.rsqrt %16 : vector<1x128xf32>
    %18 = vector.broadcast %17 : vector<1x128xf32> to vector<16x128xf32>
    %19 = arith.mulf %9, %18 : vector<16x128xf32>
    %cst_9 = arith.constant 0.000000e+00 : f32
    %20 = vector.broadcast %cst_9 : f32 to vector<16x128xf32>
    %21 = arith.maximumf %19, %20 : vector<16x128xf32>
    %22 = arith.truncf %21 : vector<16x128xf32> to vector<16x128xbf16>
    %c0_10 = arith.constant 0 : index
    %c0_11 = arith.constant 0 : index
    %c0_12 = arith.constant 0 : index
    %23 = vector.load %arg3[%c0_10, %c0_11, %c0_12] : memref<1x16x128xbf16, #tpu.memory_space<vmem>>, vector<1x16x128xbf16>
    %24 = vector.shape_cast %23 : vector<1x16x128xbf16> to vector<16x128xbf16>
    %25 = vector.shape_cast %22 : vector<16x128xbf16> to vector<1x16x128xbf16>
    tpu.vector_store %arg3[%c0_10, %c0_11, %c0_12], %25 {strides = array<i32>} : memref<1x16x128xbf16, #tpu.memory_space<vmem>>, vector<1x16x128xbf16>,
    return
  }
  func.func @transform_0(%arg0: i32) -> (i32, i32, i32) {
    %c0_i32 = arith.constant 0 : i32
    %c0_i32_0 = arith.constant 0 : i32
    %c0_i32_1 = arith.constant 0 : i32
    return %arg0, %c0_i32, %c0_i32_0 : i32, i32, i32
  }
  func.func @transform_1(%arg0: i32) -> (i32, i32) {
    %c0_i32 = arith.constant 0 : i32
    %c0_i32_0 = arith.constant 0 : i32
    %c0_i32_1 = arith.constant 0 : i32
    return %c0_i32, %c0_i32_0 : i32, i32
  }
  func.func @transform_2(%arg0: i32) -> (i32, i32, i32) {
    %c0_i32 = arith.constant 0 : i32
    %c0_i32_0 = arith.constant 0 : i32
    %c0_i32_1 = arith.constant 0 : i32
    return %arg0, %c0_i32, %c0_i32_0 : i32, i32, i32
  }
}

module attributes {stable_mosaic.version = 11 : i64} {
  func.func @_fused_conv_kernel(%arg0: i32, %arg1: memref<1x16x768xbf16, #tpu.memory_space<vmem>>, %arg2: memref<768x128xbf16, #tpu.memory_space<vmem>>, %arg3: memref<1x16x128xf32, #tpu.memory_space<vmem>>) attributes {dimension_semantics = [#tpu.dimension_semantics<parallel>], iteration_bounds = array<i64: 2>, scalar_prefetch = 0 : i64, scratch_operands = 0 : i64, tpu.core_type = #tpu.core_type<tc>, window_params = [{transform_indices = @transform_0, window_bounds = array<i64: 1, 16, 768>}, {pipeline_mode = #tpu.pipeline_mode<synchronous>, transform_indices = @transform_1, window_bounds = array<i64: 768, 128>}, {transform_indices = @transform_2, window_bounds = array<i64: 1, 16, 128>}]} {
    %c0 = arith.constant 0 : index
    %c0_0 = arith.constant 0 : index
    %c0_1 = arith.constant 0 : index
    %0 = vector.load %arg1[%c0, %c0_0, %c0_1] : memref<1x16x768xbf16, #tpu.memory_space<vmem>>, vector<1x16x768xbf16>
    %1 = vector.shape_cast %0 : vector<1x16x768xbf16> to vector<16x768xbf16>
    %c0_2 = arith.constant 0 : index
    %c0_3 = arith.constant 0 : index
    %2 = vector.load %arg2[%c0_2, %c0_3] : memref<768x128xbf16, #tpu.memory_space<vmem>>, vector<768x128xbf16>
    %cst = arith.constant dense<0.000000e+00> : vector<16x128xf32>
    %3 = tpu.matmul %1, %2, %cst {dimension_numbers = #tpu.dot_dimension_numbers<[1], [0], [0], [1], [0, 0, 1, 1], [], []>} : vector<16x768xbf16>, vector<768x128xbf16>, vector<16x128xf32> -> vector<16x128xf32>
    %cst_4 = arith.constant dense<0.000000e+00> : vector<128xf32>
    %4 = vector.multi_reduction <add>, %3, %cst_4 [0] : vector<16x128xf32> to vector<128xf32>
    %5 = vector.shape_cast %4 : vector<128xf32> to vector<1x128xf32>
    %cst_5 = arith.constant 6.250000e-02 : f32
    %6 = vector.broadcast %cst_5 : f32 to vector<1x128xf32>
    %7 = arith.mulf %5, %6 : vector<1x128xf32>
    %8 = vector.broadcast %7 : vector<1x128xf32> to vector<16x128xf32>
    %9 = arith.subf %3, %8 : vector<16x128xf32>
    %10 = arith.mulf %9, %9 : vector<16x128xf32>
    %cst_6 = arith.constant dense<0.000000e+00> : vector<128xf32>
    %11 = vector.multi_reduction <add>, %10, %cst_6 [0] : vector<16x128xf32> to vector<128xf32>
    %12 = vector.shape_cast %11 : vector<128xf32> to vector<1x128xf32>
    %cst_7 = arith.constant 6.250000e-02 : f32
    %13 = vector.broadcast %cst_7 : f32 to vector<1x128xf32>
    %14 = arith.mulf %12, %13 : vector<1x128xf32>
    %cst_8 = arith.constant 9.99999974E-6 : f32
    %15 = vector.broadcast %cst_8 : f32 to vector<1x128xf32>
    %16 = arith.addf %14, %15 : vector<1x128xf32>
    %17 = math.rsqrt %16 : vector<1x128xf32>
    %18 = vector.broadcast %17 : vector<1x128xf32> to vector<16x128xf32>
    %19 = arith.mulf %9, %18 : vector<16x128xf32>
    %cst_9 = arith.constant 0.000000e+00 : f32
    %20 = vector.broadcast %cst_9 : f32 to vector<16x128xf32>
    %21 = arith.maximumf %19, %20 : vector<16x128xf32>
    %c0_10 = arith.constant 0 : index
    %c0_11 = arith.constant 0 : index
    %c0_12 = arith.constant 0 : index
    %22 = vector.load %arg3[%c0_10, %c0_11, %c0_12] : memref<1x16x128xf32, #tpu.memory_space<vmem>>, vector<1x16x128xf32>
    %23 = vector.shape_cast %22 : vector<1x16x128xf32> to vector<16x128xf32>
    %24 = vector.shape_cast %21 : vector<16x128xf32> to vector<1x16x128xf32>
    tpu.vector_store %arg3[%c0_10, %c0_11, %c0_12], %24 {strides = array<i32>} : memref<1x16x128xf32, #tpu.memory_space<vmem>>, vector<1x16x128xf32>,
    return
  }
  func.func @transform_0(%arg0: i32) -> (i32, i32, i32) {
    %c0_i32 = arith.constant 0 : i32
    %c0_i32_0 = arith.constant 0 : i32
    %c0_i32_1 = arith.constant 0 : i32
    return %arg0, %c0_i32, %c0_i32_0 : i32, i32, i32
  }
  func.func @transform_1(%arg0: i32) -> (i32, i32) {
    %c0_i32 = arith.constant 0 : i32
    %c0_i32_0 = arith.constant 0 : i32
    %c0_i32_1 = arith.constant 0 : i32
    return %c0_i32, %c0_i32_0 : i32, i32
  }
  func.func @transform_2(%arg0: i32) -> (i32, i32, i32) {
    %c0_i32 = arith.constant 0 : i32
    %c0_i32_0 = arith.constant 0 : i32
    %c0_i32_1 = arith.constant 0 : i32
    return %arg0, %c0_i32, %c0_i32_0 : i32, i32, i32
  }
}

module attributes {stable_mosaic.version = 11 : i64} {
  func.func @_fused_conv_kernel(%arg0: i32, %arg1: memref<1x16x128xbf16, #tpu.memory_space<vmem>>, %arg2: memref<128x256xbf16, #tpu.memory_space<vmem>>, %arg3: memref<1x256xf32, #tpu.memory_space<vmem>>, %arg4: memref<1x16x256xf32, #tpu.memory_space<vmem>>) attributes {dimension_semantics = [#tpu.dimension_semantics<parallel>], iteration_bounds = array<i64: 2>, scalar_prefetch = 0 : i64, scratch_operands = 0 : i64, tpu.core_type = #tpu.core_type<tc>, window_params = [{transform_indices = @transform_0, window_bounds = array<i64: 1, 16, 128>}, {pipeline_mode = #tpu.pipeline_mode<synchronous>, transform_indices = @transform_1, window_bounds = array<i64: 128, 256>}, {pipeline_mode = #tpu.pipeline_mode<synchronous>, transform_indices = @transform_2, window_bounds = array<i64: 1, 256>}, {transform_indices = @transform_3, window_bounds = array<i64: 1, 16, 256>}]} {
    %c0 = arith.constant 0 : index
    %c0_0 = arith.constant 0 : index
    %c0_1 = arith.constant 0 : index
    %0 = vector.load %arg1[%c0, %c0_0, %c0_1] : memref<1x16x128xbf16, #tpu.memory_space<vmem>>, vector<1x16x128xbf16>
    %1 = vector.shape_cast %0 : vector<1x16x128xbf16> to vector<16x128xbf16>
    %c0_2 = arith.constant 0 : index
    %c0_3 = arith.constant 0 : index
    %2 = vector.load %arg2[%c0_2, %c0_3] : memref<128x256xbf16, #tpu.memory_space<vmem>>, vector<128x256xbf16>
    %cst = arith.constant dense<0.000000e+00> : vector<16x256xf32>
    %3 = tpu.matmul %1, %2, %cst {dimension_numbers = #tpu.dot_dimension_numbers<[1], [0], [0], [1], [0, 0, 1, 1], [], []>} : vector<16x128xbf16>, vector<128x256xbf16>, vector<16x256xf32> -> vector<16x256xf32>
    %c0_4 = arith.constant 0 : index
    %c0_5 = arith.constant 0 : index
    %4 = vector.load %arg3[%c0_4, %c0_5] : memref<1x256xf32, #tpu.memory_space<vmem>>, vector<1x256xf32>
    %5 = vector.broadcast %4 : vector<1x256xf32> to vector<16x256xf32>
    %6 = arith.addf %3, %5 : vector<16x256xf32>
    %c0_6 = arith.constant 0 : index
    %c0_7 = arith.constant 0 : index
    %c0_8 = arith.constant 0 : index
    %7 = vector.load %arg4[%c0_6, %c0_7, %c0_8] : memref<1x16x256xf32, #tpu.memory_space<vmem>>, vector<1x16x256xf32>
    %8 = vector.shape_cast %7 : vector<1x16x256xf32> to vector<16x256xf32>
    %9 = vector.shape_cast %6 : vector<16x256xf32> to vector<1x16x256xf32>
    tpu.vector_store %arg4[%c0_6, %c0_7, %c0_8], %9 {strides = array<i32>} : memref<1x16x256xf32, #tpu.memory_space<vmem>>, vector<1x16x256xf32>,
    return
  }
  func.func @transform_0(%arg0: i32) -> (i32, i32, i32) {
    %c0_i32 = arith.constant 0 : i32
    %c0_i32_0 = arith.constant 0 : i32
    %c0_i32_1 = arith.constant 0 : i32
    return %arg0, %c0_i32, %c0_i32_0 : i32, i32, i32
  }
  func.func @transform_1(%arg0: i32) -> (i32, i32) {
    %c0_i32 = arith.constant 0 : i32
    %c0_i32_0 = arith.constant 0 : i32
    %c0_i32_1 = arith.constant 0 : i32
    return %c0_i32, %c0_i32_0 : i32, i32
  }
  func.func @transform_2(%arg0: i32) -> (i32, i32) {
    %c0_i32 = arith.constant 0 : i32
    %c0_i32_0 = arith.constant 0 : i32
    %c0_i32_1 = arith.constant 0 : i32
    return %c0_i32, %c0_i32_0 : i32, i32
  }
  func.func @transform_3(%arg0: i32) -> (i32, i32, i32) {
    %c0_i32 = arith.constant 0 : i32
    %c0_i32_0 = arith.constant 0 : i32
    %c0_i32_1 = arith.constant 0 : i32
    return %arg0, %c0_i32, %c0_i32_0 : i32, i32, i32
  }
}

module attributes {stable_mosaic.version = 11 : i64} {
  func.func @_fused_conv_kernel(%arg0: i32, %arg1: memref<1x16x128xbf16, #tpu.memory_space<vmem>>, %arg2: memref<128x128xbf16, #tpu.memory_space<vmem>>, %arg3: memref<1x16x128xf32, #tpu.memory_space<vmem>>, %arg4: memref<1x16x128xbf16, #tpu.memory_space<vmem>>) attributes {dimension_semantics = [#tpu.dimension_semantics<parallel>], iteration_bounds = array<i64: 2>, scalar_prefetch = 0 : i64, scratch_operands = 0 : i64, tpu.core_type = #tpu.core_type<tc>, window_params = [{transform_indices = @transform_0, window_bounds = array<i64: 1, 16, 128>}, {pipeline_mode = #tpu.pipeline_mode<synchronous>, transform_indices = @transform_1, window_bounds = array<i64: 128, 128>}, {transform_indices = @transform_2, window_bounds = array<i64: 1, 16, 128>}, {transform_indices = @transform_3, window_bounds = array<i64: 1, 16, 128>}]} {
    %c0 = arith.constant 0 : index
    %c0_0 = arith.constant 0 : index
    %c0_1 = arith.constant 0 : index
    %0 = vector.load %arg1[%c0, %c0_0, %c0_1] : memref<1x16x128xbf16, #tpu.memory_space<vmem>>, vector<1x16x128xbf16>
    %1 = vector.shape_cast %0 : vector<1x16x128xbf16> to vector<16x128xbf16>
    %c0_2 = arith.constant 0 : index
    %c0_3 = arith.constant 0 : index
    %2 = vector.load %arg2[%c0_2, %c0_3] : memref<128x128xbf16, #tpu.memory_space<vmem>>, vector<128x128xbf16>
    %cst = arith.constant dense<0.000000e+00> : vector<16x128xf32>
    %3 = tpu.matmul %1, %2, %cst {dimension_numbers = #tpu.dot_dimension_numbers<[1], [0], [0], [1], [0, 0, 1, 1], [], []>} : vector<16x128xbf16>, vector<128x128xbf16>, vector<16x128xf32> -> vector<16x128xf32>
    %cst_4 = arith.constant dense<0.000000e+00> : vector<128xf32>
    %4 = vector.multi_reduction <add>, %3, %cst_4 [0] : vector<16x128xf32> to vector<128xf32>
    %5 = vector.shape_cast %4 : vector<128xf32> to vector<1x128xf32>
    %cst_5 = arith.constant 6.250000e-02 : f32
    %6 = vector.broadcast %cst_5 : f32 to vector<1x128xf32>
    %7 = arith.mulf %5, %6 : vector<1x128xf32>
    %8 = vector.broadcast %7 : vector<1x128xf32> to vector<16x128xf32>
    %9 = arith.subf %3, %8 : vector<16x128xf32>
    %10 = arith.mulf %9, %9 : vector<16x128xf32>
    %cst_6 = arith.constant dense<0.000000e+00> : vector<128xf32>
    %11 = vector.multi_reduction <add>, %10, %cst_6 [0] : vector<16x128xf32> to vector<128xf32>
    %12 = vector.shape_cast %11 : vector<128xf32> to vector<1x128xf32>
    %cst_7 = arith.constant 6.250000e-02 : f32
    %13 = vector.broadcast %cst_7 : f32 to vector<1x128xf32>
    %14 = arith.mulf %12, %13 : vector<1x128xf32>
    %cst_8 = arith.constant 9.99999974E-6 : f32
    %15 = vector.broadcast %cst_8 : f32 to vector<1x128xf32>
    %16 = arith.addf %14, %15 : vector<1x128xf32>
    %17 = math.rsqrt %16 : vector<1x128xf32>
    %18 = vector.broadcast %17 : vector<1x128xf32> to vector<16x128xf32>
    %19 = arith.mulf %9, %18 : vector<16x128xf32>
    %c0_9 = arith.constant 0 : index
    %c0_10 = arith.constant 0 : index
    %c0_11 = arith.constant 0 : index
    %20 = vector.load %arg3[%c0_9, %c0_10, %c0_11] : memref<1x16x128xf32, #tpu.memory_space<vmem>>, vector<1x16x128xf32>
    %21 = vector.shape_cast %20 : vector<1x16x128xf32> to vector<16x128xf32>
    %22 = arith.addf %19, %21 : vector<16x128xf32>
    %cst_12 = arith.constant 0.000000e+00 : f32
    %23 = vector.broadcast %cst_12 : f32 to vector<16x128xf32>
    %24 = arith.maximumf %22, %23 : vector<16x128xf32>
    %25 = arith.truncf %24 : vector<16x128xf32> to vector<16x128xbf16>
    %c0_13 = arith.constant 0 : index
    %c0_14 = arith.constant 0 : index
    %c0_15 = arith.constant 0 : index
    %26 = vector.load %arg4[%c0_13, %c0_14, %c0_15] : memref<1x16x128xbf16, #tpu.memory_space<vmem>>, vector<1x16x128xbf16>
    %27 = vector.shape_cast %26 : vector<1x16x128xbf16> to vector<16x128xbf16>
    %28 = vector.shape_cast %25 : vector<16x128xbf16> to vector<1x16x128xbf16>
    tpu.vector_store %arg4[%c0_13, %c0_14, %c0_15], %28 {strides = array<i32>} : memref<1x16x128xbf16, #tpu.memory_space<vmem>>, vector<1x16x128xbf16>,
    return
  }
  func.func @transform_0(%arg0: i32) -> (i32, i32, i32) {
    %c0_i32 = arith.constant 0 : i32
    %c0_i32_0 = arith.constant 0 : i32
    %c0_i32_1 = arith.constant 0 : i32
    return %arg0, %c0_i32, %c0_i32_0 : i32, i32, i32
  }
  func.func @transform_1(%arg0: i32) -> (i32, i32) {
    %c0_i32 = arith.constant 0 : i32
    %c0_i32_0 = arith.constant 0 : i32
    %c0_i32_1 = arith.constant 0 : i32
    return %c0_i32, %c0_i32_0 : i32, i32
  }
  func.func @transform_2(%arg0: i32) -> (i32, i32, i32) {
    %c0_i32 = arith.constant 0 : i32
    %c0_i32_0 = arith.constant 0 : i32
    %c0_i32_1 = arith.constant 0 : i32
    return %arg0, %c0_i32, %c0_i32_0 : i32, i32, i32
  }
  func.func @transform_3(%arg0: i32) -> (i32, i32, i32) {
    %c0_i32 = arith.constant 0 : i32
    %c0_i32_0 = arith.constant 0 : i32
    %c0_i32_1 = arith.constant 0 : i32
    return %arg0, %c0_i32, %c0_i32_0 : i32, i32, i32
  }
}

module attributes {stable_mosaic.version = 11 : i64} {
  func.func @_fused_conv_kernel(%arg0: i32, %arg1: memref<1x64x128xbf16, #tpu.memory_space<vmem>>, %arg2: memref<128x256xbf16, #tpu.memory_space<vmem>>, %arg3: memref<1x256xf32, #tpu.memory_space<vmem>>, %arg4: memref<1x64x256xf32, #tpu.memory_space<vmem>>) attributes {dimension_semantics = [#tpu.dimension_semantics<parallel>], iteration_bounds = array<i64: 2>, scalar_prefetch = 0 : i64, scratch_operands = 0 : i64, tpu.core_type = #tpu.core_type<tc>, window_params = [{transform_indices = @transform_0, window_bounds = array<i64: 1, 64, 128>}, {pipeline_mode = #tpu.pipeline_mode<synchronous>, transform_indices = @transform_1, window_bounds = array<i64: 128, 256>}, {pipeline_mode = #tpu.pipeline_mode<synchronous>, transform_indices = @transform_2, window_bounds = array<i64: 1, 256>}, {transform_indices = @transform_3, window_bounds = array<i64: 1, 64, 256>}]} {
    %c0 = arith.constant 0 : index
    %c0_0 = arith.constant 0 : index
    %c0_1 = arith.constant 0 : index
    %0 = vector.load %arg1[%c0, %c0_0, %c0_1] : memref<1x64x128xbf16, #tpu.memory_space<vmem>>, vector<1x64x128xbf16>
    %1 = vector.shape_cast %0 : vector<1x64x128xbf16> to vector<64x128xbf16>
    %c0_2 = arith.constant 0 : index
    %c0_3 = arith.constant 0 : index
    %2 = vector.load %arg2[%c0_2, %c0_3] : memref<128x256xbf16, #tpu.memory_space<vmem>>, vector<128x256xbf16>
    %cst = arith.constant dense<0.000000e+00> : vector<64x256xf32>
    %3 = tpu.matmul %1, %2, %cst {dimension_numbers = #tpu.dot_dimension_numbers<[1], [0], [0], [1], [0, 0, 1, 1], [], []>} : vector<64x128xbf16>, vector<128x256xbf16>, vector<64x256xf32> -> vector<64x256xf32>
    %c0_4 = arith.constant 0 : index
    %c0_5 = arith.constant 0 : index
    %4 = vector.load %arg3[%c0_4, %c0_5] : memref<1x256xf32, #tpu.memory_space<vmem>>, vector<1x256xf32>
    %5 = vector.broadcast %4 : vector<1x256xf32> to vector<64x256xf32>
    %6 = arith.addf %3, %5 : vector<64x256xf32>
    %c0_6 = arith.constant 0 : index
    %c0_7 = arith.constant 0 : index
    %c0_8 = arith.constant 0 : index
    %7 = vector.load %arg4[%c0_6, %c0_7, %c0_8] : memref<1x64x256xf32, #tpu.memory_space<vmem>>, vector<1x64x256xf32>
    %8 = vector.shape_cast %7 : vector<1x64x256xf32> to vector<64x256xf32>
    %9 = vector.shape_cast %6 : vector<64x256xf32> to vector<1x64x256xf32>
    tpu.vector_store %arg4[%c0_6, %c0_7, %c0_8], %9 {strides = array<i32>} : memref<1x64x256xf32, #tpu.memory_space<vmem>>, vector<1x64x256xf32>,
    return
  }
  func.func @transform_0(%arg0: i32) -> (i32, i32, i32) {
    %c0_i32 = arith.constant 0 : i32
    %c0_i32_0 = arith.constant 0 : i32
    %c0_i32_1 = arith.constant 0 : i32
    return %arg0, %c0_i32, %c0_i32_0 : i32, i32, i32
  }
  func.func @transform_1(%arg0: i32) -> (i32, i32) {
    %c0_i32 = arith.constant 0 : i32
    %c0_i32_0 = arith.constant 0 : i32
    %c0_i32_1 = arith.constant 0 : i32
    return %c0_i32, %c0_i32_0 : i32, i32
  }
  func.func @transform_2(%arg0: i32) -> (i32, i32) {
    %c0_i32 = arith.constant 0 : i32
    %c0_i32_0 = arith.constant 0 : i32
    %c0_i32_1 = arith.constant 0 : i32
    return %c0_i32, %c0_i32_0 : i32, i32
  }
  func.func @transform_3(%arg0: i32) -> (i32, i32, i32) {
    %c0_i32 = arith.constant 0 : i32
    %c0_i32_0 = arith.constant 0 : i32
    %c0_i32_1 = arith.constant 0 : i32
    return %arg0, %c0_i32, %c0_i32_0 : i32, i32, i32
  }
}

</mosaic_0001>

<bundles_post_ra>
// kernel: rhwf_encoder_forward.21
= control target key start
LH: loop header
LB: loop body
LE: loop exit
PB: predicated region body
PF: predicated region fallthrough
CT: control target
= control target key end

     0   :  { %s3804_s9 = smov 0   ;;  %s6036_s0 = inlined_call_operand.vmem [shape: bf16[2,1024,128], index: 0, kind: input, shape index: {}]   ;;  %s6037_s1 = inlined_call_operand.vmem [shape: bf16[128,128], index: 1, kind: input, shape index: {}]   ;;  %s6038_s2 = inlined_call_operand.vmem [shape: bf16[2,1024,128], index: 2, kind: output, shape index: {}]  }
   0x1 LB: > { %s2743_s10 = sadd.s32 4294967295, %s3787_s9   ;;  %p2747_p0 = scmp.ge.s32.totalorder %s3787_s9, 1  ;;  %s3787_s9 = sphi %s3804_s9, %s12_s9  }
   0x2   : > { %p112_p1 = scmp.lt.s32.totalorder %s3787_s9, 3 }
   0x4   : > { %p113_p2 = pnand %p2747_p0, %p112_p1 }
   0x6   : > { %116 = sbr.rel (%p113_p2) target bundleno = 980 (0x3d4), region = 28 }
   0xd   : > { %v3707_v0 = vld [vmem:[%s6037_s1] sm:$0xff]   ;;  %p134_p3 = scmp.lt.s32.totalorder %s2743_s10, 1  ;;  %v3708_v1 = vld [vmem:[%s6037_s1 + $0x8] sm:$0xff]   ;;  %v3709_v2 = vld [vmem:[%s6037_s1 + $0x10] sm:$0xff]  }
   0xe   : > { %3539 = vmatprep.subr.bf16.mxu0 %v3707_v0  ;;  %3683 = vmatprep.subr.bf16.mxu1 %v3707_v0  ;;  %v3710_v3 = vld [vmem:[%s6037_s1 + $0x18] sm:$0xff]   ;;  %v3711_v5 = vld [vmem:[%s6037_s1 + $0x20] sm:$0xff]   ;;  %v3712_v6 = vld [vmem:[%s6037_s1 + $0x28] sm:$0xff]  }
   0xf   : > { %s7144_s10 = smov (!%p134_p3, %s2743_s10), 1  ;;  %3540 = vmatpush3.bf16.msra.mxu0 %v3707_v0  ;;  %3691 = vmatpush3.bf16.msra.mxu1 %v3707_v0  ;;  %v3713_v7 = vld [vmem:[%s6037_s1 + $0x30] sm:$0xff]   ;;  %v3714_v8 = vld [vmem:[%s6037_s1 + $0x38] sm:$0xff]  }
  0x10   : > { %3541 = vmatprep.subr.bf16.mxu0 %v3708_v1  ;;  %s2954_s17 = sshll.u32 %s7144_s10, 9  ;;  %3684 = vmatprep.subr.bf16.mxu1 %v3708_v1 }
  0x11   : > { %s3829_s20 = scalar_lea.vmem %s6036_s0, %s2954_s17  ;;  %s5707_s5 = scalar_lea.vmem %s6038_s2, %s2954_s17 }
  0x12   : > { %v3715_v4 = vld [vmem:[%s3829_s20] sm:$0xff]   ;;  %v3716_v9 = vld [vmem:[%s3829_s20 + $0x8] sm:$0xff]   ;;  %v3717_v10 = vld [vmem:[%s3829_s20 + $0x10] sm:$0xff]  }
  0x13   : > { %3542 = vmatpush3.bf16.msra.mxu0 %v3708_v1  ;;  %3692 = vmatpush3.bf16.msra.mxu1 %v3708_v1  ;;  %v3718_v11 = vld [vmem:[%s3829_s20 + $0x18] sm:$0xff]   ;;  %v3719_v12 = vld [vmem:[%s3829_s20 + $0x20] sm:$0xff]   ;;  %v3748_v14 = vld [vmem:[%s3829_s20 + $0x108] sm:$0xff]  }
  0x14   : > { %3543 = vmatprep.subr.bf16.mxu0 %v3709_v2  ;;  %3685 = vmatprep.subr.bf16.mxu1 %v3709_v2  ;;  %v3747_v13 = vld [vmem:[%s3829_s20 + $0x100] sm:$0xff]   ;;  %v3749_v15 = vld [vmem:[%s3829_s20 + $0x110] sm:$0xff]   ;;  %v3720_v16 = vld [vmem:[%s3829_s20 + $0x28] sm:$0xff]  }
  0x15   : > { %3555 = vmatprep.mubr.bf16.mxu0 %v3715_v4  ;;  %3619 = vmatprep.mubr.bf16.mxu1 %v3747_v13  ;;  %v3721_v17 = vld [vmem:[%s3829_s20 + $0x30] sm:$0xff]   ;;  %v3750_v18 = vld [vmem:[%s3829_s20 + $0x118] sm:$0xff]   ;;  %v3751_v19 = vld [vmem:[%s3829_s20 + $0x120] sm:$0xff]  }
  0x16   : > { %v3722_v20 = vld [vmem:[%s3829_s20 + $0x38] sm:$0xff]   ;;  %v3723_v21 = vld [vmem:[%s3829_s20 + $0x40] sm:$0xff]   ;;  %v3752_v22 = vld [vmem:[%s3829_s20 + $0x128] sm:$0xff]  }
  0x17   : > { %3544 = vmatpush3.bf16.msra.mxu0 %v3709_v2  ;;  %3693 = vmatpush3.bf16.msra.mxu1 %v3709_v2  ;;  %v3753_v23 = vld [vmem:[%s3829_s20 + $0x130] sm:$0xff]   ;;  %v3724_v24 = vld [vmem:[%s3829_s20 + $0x48] sm:$0xff]   ;;  %v3754_v26 = vld [vmem:[%s3829_s20 + $0x138] sm:$0xff]  }
  0x18   : > { %3545 = vmatprep.subr.bf16.mxu0 %v3710_v3  ;;  %3686 = vmatprep.subr.bf16.mxu1 %v3710_v3  ;;  %v3725_v25 = vld [vmem:[%s3829_s20 + $0x50] sm:$0xff]   ;;  %v3755_v27 = vld [vmem:[%s3829_s20 + $0x140] sm:$0xff]   ;;  %v3726_v28 = vld [vmem:[%s3829_s20 + $0x58] sm:$0xff]  }
  0x19   : > { %v3727_v29 = vld [vmem:[%s3829_s20 + $0x60] sm:$0xff]   ;;  %v3756_v30 = vld [vmem:[%s3829_s20 + $0x148] sm:$0xff]   ;;  %v3757_v31 = vld [vmem:[%s3829_s20 + $0x150] sm:$0xff]  }
  0x1a   : > { %v3728_v32 = vld [vmem:[%s3829_s20 + $0x68] sm:$0xff]   ;;  %v3729_v33 = vld [vmem:[%s3829_s20 + $0x70] sm:$0xff]   ;;  %v3758_v34 = vld [vmem:[%s3829_s20 + $0x158] sm:$0xff]  }
  0x1b   : > { %3546 = vmatpush3.bf16.msra.mxu0 %v3710_v3  ;;  %3694 = vmatpush3.bf16.msra.mxu1 %v3710_v3  ;;  %v3759_v35 = vld [vmem:[%s3829_s20 + $0x160] sm:$0xff]   ;;  %v3730_v36 = vld [vmem:[%s3829_s20 + $0x78] sm:$0xff]   ;;  %v3760_v38 = vld [vmem:[%s3829_s20 + $0x168] sm:$0xff]  }
  0x1c   : > { %3547 = vmatprep.subr.bf16.mxu0 %v3711_v5  ;;  %3687 = vmatprep.subr.bf16.mxu1 %v3711_v5  ;;  %v3731_v37 = vld [vmem:[%s3829_s20 + $0x80] sm:$0xff]   ;;  %v3761_v39 = vld [vmem:[%s3829_s20 + $0x170] sm:$0xff]   ;;  %v3732_v40 = vld [vmem:[%s3829_s20 + $0x88] sm:$0xff]  }
  0x1d   : > { %v3733_v41 = vld [vmem:[%s3829_s20 + $0x90] sm:$0xff]   ;;  %v3762_v42 = vld [vmem:[%s3829_s20 + $0x178] sm:$0xff]   ;;  %v3763_v43 = vld [vmem:[%s3829_s20 + $0x180] sm:$0xff]  }
  0x1e   : > { %v3734_v44 = vld [vmem:[%s3829_s20 + $0x98] sm:$0xff]   ;;  %v3735_v45 = vld [vmem:[%s3829_s20 + $0xa0] sm:$0xff]   ;;  %v3764_v46 = vld [vmem:[%s3829_s20 + $0x188] sm:$0xff]  }
  0x1f   : > { %3548 = vmatpush3.bf16.msra.mxu0 %v3711_v5  ;;  %3695 = vmatpush3.bf16.msra.mxu1 %v3711_v5  ;;  %v3765_v47 = vld [vmem:[%s3829_s20 + $0x190] sm:$0xff]   ;;  %v3736_v48 = vld [vmem:[%s3829_s20 + $0xa8] sm:$0xff]   ;;  %v3766_v50 = vld [vmem:[%s3829_s20 + $0x198] sm:$0xff]  }
  0x20   : > { %3549 = vmatprep.subr.bf16.mxu0 %v3712_v6  ;;  %3688 = vmatprep.subr.bf16.mxu1 %v3712_v6  ;;  %v3737_v49 = vld [vmem:[%s3829_s20 + $0xb0] sm:$0xff]   ;;  %v3767_v51 = vld [vmem:[%s3829_s20 + $0x1a0] sm:$0xff]   ;;  %v3738_v52 = vld [vmem:[%s3829_s20 + $0xb8] sm:$0xff]  }
  0x21   : > { %v3739_v53 = vld [vmem:[%s3829_s20 + $0xc0] sm:$0xff]   ;;  %v3768_v54 = vld [vmem:[%s3829_s20 + $0x1a8] sm:$0xff]   ;;  %v3769_v55 = vld [vmem:[%s3829_s20 + $0x1b0] sm:$0xff]  }
  0x22   : > { %v3740_v56 = vld [vmem:[%s3829_s20 + $0xc8] sm:$0xff]   ;;  %v3741_v57 = vld [vmem:[%s3829_s20 + $0xd0] sm:$0xff]   ;;  %v3770_v58 = vld [vmem:[%s3829_s20 + $0x1b8] sm:$0xff]  }
  0x23   : > { %3550 = vmatpush3.bf16.msra.mxu0 %v3712_v6  ;;  %3696 = vmatpush3.bf16.msra.mxu1 %v3712_v6  ;;  %v3771_v59 = vld [vmem:[%s3829_s20 + $0x1c0] sm:$0xff]   ;;  %v3742_v60 = vld [vmem:[%s3829_s20 + $0xd8] sm:$0xff]   ;;  %v3772_v62 = vld [vmem:[%s3829_s20 + $0x1c8] sm:$0xff]  }
  0x24   : > { %3551 = vmatprep.subr.bf16.mxu0 %v3713_v7  ;;  %3689 = vmatprep.subr.bf16.mxu1 %v3713_v7  ;;  %v3743_v61 = vld [vmem:[%s3829_s20 + $0xe0] sm:$0xff]   ;;  %v3773_v63 = vld [vmem:[%s3829_s20 + $0x1d0] sm:$0xff]   ;;  %v3744_v0 = vld [vmem:[%s3829_s20 + $0xe8] sm:$0xff]  }
  0x25   : > { %v3745_v1 = vld [vmem:[%s3829_s20 + $0xf0] sm:$0xff]   ;;  %v3774_v2 = vld [vmem:[%s3829_s20 + $0x1d8] sm:$0xff]   ;;  %v3775_v3 = vld [vmem:[%s3829_s20 + $0x1e0] sm:$0xff]  }
  0x26   : > { %v3746_v4 = vld [vmem:[%s3829_s20 + $0xf8] sm:$0xff]   ;;  %v3776_v5 = vld [vmem:[%s3829_s20 + $0x1e8] sm:$0xff]   ;;  %v3777_v6 = vld [vmem:[%s3829_s20 + $0x1f0] sm:$0xff]  }
  0x27   : > { %3552 = vmatpush3.bf16.msra.mxu0 %v3713_v7  ;;  %3697 = vmatpush3.bf16.msra.mxu1 %v3713_v7  ;;  %v3778_v7 = vld [vmem:[%s3829_s20 + $0x1f8] sm:$0xff]  }
  0x28   : > { %3553 = vmatprep.subr.bf16.mxu0 %v3714_v8  ;;  %3690 = vmatprep.subr.bf16.mxu1 %v3714_v8 }
  0x2b   : > { %3554 = vmatpush3.bf16.msra.mxu0 %v3714_v8  ;;  %3698 = vmatpush3.bf16.msra.mxu1 %v3714_v8 }
  0x2e   : > { %3556 = vmatmul.mubr.bf16.vlgmr.msra.gmra.mrb[0].mxu0 %v3716_v9  ;;  %3620 = vmatmul.mubr.bf16.vlgmr.msra.gmra.mrb[0].mxu1 %v3748_v14 }
  0x2f   : > { %3559 = vmatprep.mubr.bf16.mxu0 %v3717_v10  ;;  %3623 = vmatprep.mubr.bf16.mxu1 %v3749_v15 }
  0x36   : > { %3560 = vmatmul.mubr.bf16.gmra.mrb[4].mxu0 %v3718_v11  ;;  %3624 = vmatmul.mubr.bf16.gmra.mrb[4].mxu1 %v3750_v18 }
  0x37   : > { %3563 = vmatprep.mubr.bf16.mxu0 %v3719_v12  ;;  %3627 = vmatprep.mubr.bf16.mxu1 %v3751_v19 }
  0x3e   : > { %3564 = vmatmul.mubr.bf16.gmra.mrb[8].mxu0 %v3720_v16  ;;  %3628 = vmatmul.mubr.bf16.gmra.mrb[8].mxu1 %v3752_v22 }
  0x3f   : > { %3567 = vmatprep.mubr.bf16.mxu0 %v3721_v17  ;;  %3631 = vmatprep.mubr.bf16.mxu1 %v3753_v23 }
  0x46   : > { %3568 = vmatmul.mubr.bf16.gmra.mrb[12].mxu0 %v3722_v20  ;;  %3632 = vmatmul.mubr.bf16.gmra.mrb[12].mxu1 %v3754_v26 }
  0x47   : > { %3571 = vmatprep.mubr.bf16.mxu0 %v3723_v21  ;;  %3635 = vmatprep.mubr.bf16.mxu1 %v3755_v27 }
  0x4e   : > { %3572 = vmatmul.mubr.bf16.gmra.mrb[16].mxu0 %v3724_v24  ;;  %3636 = vmatmul.mubr.bf16.gmra.mrb[16].mxu1 %v3756_v30 }
  0x4f   : > { %3575 = vmatprep.mubr.bf16.mxu0 %v3725_v25  ;;  %3639 = vmatprep.mubr.bf16.mxu1 %v3757_v31 }
  0x56   : > { %3576 = vmatmul.mubr.bf16.gmra.mrb[20].mxu0 %v3726_v28  ;;  %3640 = vmatmul.mubr.bf16.gmra.mrb[20].mxu1 %v3758_v34 }
  0x57   : > { %3579 = vmatprep.mubr.bf16.mxu0 %v3727_v29  ;;  %3643 = vmatprep.mubr.bf16.mxu1 %v3759_v35 }
  0x5e   : > { %3580 = vmatmul.mubr.bf16.gmra.mrb[24].mxu0 %v3728_v32  ;;  %3644 = vmatmul.mubr.bf16.gmra.mrb[24].mxu1 %v3760_v38 }
  0x5f   : > { %3583 = vmatprep.mubr.bf16.mxu0 %v3729_v33  ;;  %3647 = vmatprep.mubr.bf16.mxu1 %v3761_v39 }
  0x66   : > { %3584 = vmatmul.mubr.bf16.gmra.mrb[28].mxu0 %v3730_v36  ;;  %3648 = vmatmul.mubr.bf16.gmra.mrb[28].mxu1 %v3762_v42 }
  0x67   : > { %3587 = vmatprep.mubr.bf16.mxu0 %v3731_v37  ;;  %3651 = vmatprep.mubr.bf16.mxu1 %v3763_v43 }
  0x6e   : > { %3588 = vmatmul.mubr.bf16.gmra.mrb[32].mxu0 %v3732_v40  ;;  %3652 = vmatmul.mubr.bf16.gmra.mrb[32].mxu1 %v3764_v46 }
  0x6f   : > { %3591 = vmatprep.mubr.bf16.mxu0 %v3733_v41  ;;  %3655 = vmatprep.mubr.bf16.mxu1 %v3765_v47 }
  0x76   : > { %3592 = vmatmul.mubr.bf16.gmra.mrb[36].mxu0 %v3734_v44  ;;  %3656 = vmatmul.mubr.bf16.gmra.mrb[36].mxu1 %v3766_v50 }
  0x77   : > { %3595 = vmatprep.mubr.bf16.mxu0 %v3735_v45  ;;  %3659 = vmatprep.mubr.bf16.mxu1 %v3767_v51 }
  0x7e   : > { %3596 = vmatmul.mubr.bf16.gmra.mrb[40].mxu0 %v3736_v48  ;;  %3660 = vmatmul.mubr.bf16.gmra.mrb[40].mxu1 %v3768_v54 }
  0x7f   : > { %3599 = vmatprep.mubr.bf16.mxu0 %v3737_v49  ;;  %3663 = vmatprep.mubr.bf16.mxu1 %v3769_v55 }
  0x86   : > { %3600 = vmatmul.mubr.bf16.gmra.mrb[44].mxu0 %v3738_v52  ;;  %3664 = vmatmul.mubr.bf16.gmra.mrb[44].mxu1 %v3770_v58 }
  0x87   : > { %3603 = vmatprep.mubr.bf16.mxu0 %v3739_v53  ;;  %3667 = vmatprep.mubr.bf16.mxu1 %v3771_v59 }
  0x8e   : > { %3604 = vmatmul.mubr.bf16.gmra.mrb[48].mxu0 %v3740_v56  ;;  %3668 = vmatmul.mubr.bf16.gmra.mrb[48].mxu1 %v3772_v62 }
  0x8f   : > { %3607 = vmatprep.mubr.bf16.mxu0 %v3741_v57  ;;  %3671 = vmatprep.mubr.bf16.mxu1 %v3773_v63 }
  0x96   : > { %3608 = vmatmul.mubr.bf16.gmra.mrb[52].mxu0 %v3742_v60  ;;  %3672 = vmatmul.mubr.bf16.gmra.mrb[52].mxu1 %v3774_v2 }
  0x97   : > { %3611 = vmatprep.mubr.bf16.mxu0 %v3743_v61  ;;  %3675 = vmatprep.mubr.bf16.mxu1 %v3775_v3 }
  0x9e   : > { %3612 = vmatmul.mubr.bf16.gmra.mrb[56].mxu0 %v3744_v0  ;;  %3676 = vmatmul.mubr.bf16.gmra.mrb[56].mxu1 %v3776_v5 }
  0x9f   : > { %3615 = vmatprep.mubr.bf16.mxu0 %v3745_v1  ;;  %3679 = vmatprep.mubr.bf16.mxu1 %v3777_v6 }
  0xa6   : > { %3616 = vmatmul.mubr.bf16.gmra.mrb[60].mxu0 %v3746_v4  ;;  %3680 = vmatmul.mubr.bf16.gmra.mrb[60].mxu1 %v3778_v7 }
 0x101   : > { %v3910_v8 = vpop.f32.mrb[0].mxu0  ;;  %v3926_v17 = vpop.f32.mrb[0].mxu1 }
 0x102   : > { %6319 = vst [vmem:[#allocation2_spill] sm:$0xff] %v3910_v8  ;;  %v3912_v9 = vpop.f32.mrb[1].mxu0  ;;  %v3931_v20 = vpop.f32.mrb[1].mxu1 }
 0x103   : > { %6320 = vst [vmem:[#allocation3_spill] sm:$0xff] %v3912_v9  ;;  %v3914_v10 = vpop.f32.mrb[2].mxu0  ;;  %6326 = vst [vmem:[#allocation9_spill] sm:$0xff] %v3931_v20  ;;  %v3935_v22 = vpop.f32.mrb[2].mxu1 }
 0x104   : > { %6321 = vst [vmem:[#allocation4_spill] sm:$0xff] %v3914_v10  ;;  %v3916_v11 = vpop.f32.mrb[3].mxu0  ;;  %v3938_v24 = vpop.f32.mrb[3].mxu1 }
 0x105   : > { %6322 = vst [vmem:[#allocation5_spill] sm:$0xff] %v3916_v11  ;;  %v1266_v12 = vadd.f32 %v3916_v11, %v3912_v9  ;;  %6328 = vst [vmem:[#allocation11_spill] sm:$0xff] %v3938_v24 }
 0x107   : > { %v1267_v13 = vadd.f32 %v3910_v8, %v1266_v12 }
 0x109   : > { %v1268_v14 = vadd.f32 %v3914_v10, %v1267_v13  ;;  %v3922_v15 = vpop.f32.mrb[4].mxu0  ;;  %v3946_v29 = vpop.f32.mrb[4].mxu1 }
 0x10a   : > { %6323 = vst [vmem:[#allocation6_spill] sm:$0xff] %v3922_v15  ;;  %v3924_v16 = vpop.f32.mrb[5].mxu0  ;;  %v3951_v32 = vpop.f32.mrb[5].mxu1 }
 0x10b   : > { %6324 = vst [vmem:[#allocation7_spill] sm:$0xff] %v3924_v16  ;;  %v1269_v18 = vadd.f32 %v1268_v14, %v3924_v16  ;;  %v3929_v19 = vpop.f32.mrb[6].mxu0  ;;  %v3955_v34 = vpop.f32.mrb[6].mxu1 }
 0x10c   : > { %6325 = vst [vmem:[#allocation8_spill] sm:$0xff] %v3929_v19  ;;  %v3933_v21 = vpop.f32.mrb[7].mxu0  ;;  %v3958_v36 = vpop.f32.mrb[7].mxu1 }
 0x10d   : > { %6327 = vst [vmem:[#allocation10_spill] sm:$0xff] %v3933_v21  ;;  %v1270_v23 = vadd.f32 %v1269_v18, %v3933_v21 }
 0x10f   : > { %v1271_v25 = vadd.f32 %v3922_v15, %v1270_v23 }
 0x111   : > { %v3941_v26 = vpop.f32.mrb[8].mxu0  ;;  %v1272_v27 = vadd.f32 %v3929_v19, %v1271_v25  ;;  %v3966_v41 = vpop.f32.mrb[8].mxu1 }
 0x112   : > { %6329 = vst [vmem:[#allocation12_spill] sm:$0xff] %v3941_v26  ;;  %v3944_v28 = vpop.f32.mrb[9].mxu0  ;;  %v3971_v44 = vpop.f32.mrb[9].mxu1 }
 0x113   : > { %6330 = vst [vmem:[#allocation13_spill] sm:$0xff] %v3944_v28  ;;  %v1273_v30 = vadd.f32 %v1272_v27, %v3944_v28  ;;  %v3949_v31 = vpop.f32.mrb[10].mxu0  ;;  %v3975_v46 = vpop.f32.mrb[10].mxu1 }
 0x114   : > { %6331 = vst [vmem:[#allocation14_spill] sm:$0xff] %v3949_v31  ;;  %v3953_v33 = vpop.f32.mrb[11].mxu0  ;;  %v3978_v48 = vpop.f32.mrb[11].mxu1 }
 0x115   : > { %6332 = vst [vmem:[#allocation15_spill] sm:$0xff] %v3953_v33  ;;  %v1274_v35 = vadd.f32 %v1273_v30, %v3953_v33 }
 0x117   : > { %v1275_v37 = vadd.f32 %v3941_v26, %v1274_v35 }
 0x119   : > { %v3961_v38 = vpop.f32.mrb[12].mxu0  ;;  %v1276_v39 = vadd.f32 %v3949_v31, %v1275_v37  ;;  %v3986_v53 = vpop.f32.mrb[12].mxu1 }
 0x11a   : > { %6333 = vst [vmem:[#allocation16_spill] sm:$0xff] %v3961_v38  ;;  %v3964_v40 = vpop.f32.mrb[13].mxu0  ;;  %v3991_v56 = vpop.f32.mrb[13].mxu1 }
 0x11b   : > { %6334 = vst [vmem:[#allocation17_spill] sm:$0xff] %v3964_v40  ;;  %v1277_v42 = vadd.f32 %v1276_v39, %v3964_v40  ;;  %v3969_v43 = vpop.f32.mrb[14].mxu0  ;;  %v3995_v58 = vpop.f32.mrb[14].mxu1 }
 0x11c   : > { %6335 = vst [vmem:[#allocation18_spill] sm:$0xff] %v3969_v43  ;;  %v3973_v45 = vpop.f32.mrb[15].mxu0  ;;  %v3998_v60 = vpop.f32.mrb[15].mxu1 }
 0x11d   : > { %6336 = vst [vmem:[#allocation19_spill] sm:$0xff] %v3973_v45  ;;  %v1278_v47 = vadd.f32 %v1277_v42, %v3973_v45 }
 0x11f   : > { %v1279_v49 = vadd.f32 %v3961_v38, %v1278_v47 }
 0x121   : > { %v3981_v50 = vpop.f32.mrb[16].mxu0  ;;  %v1280_v51 = vadd.f32 %v3969_v43, %v1279_v49  ;;  %v4006_v1 = vpop.f32.mrb[16].mxu1 }
 0x122   : > { %6337 = vst [vmem:[#allocation20_spill] sm:$0xff] %v3981_v50  ;;  %v3984_v52 = vpop.f32.mrb[17].mxu0  ;;  %v4011_v4 = vpop.f32.mrb[17].mxu1 }
 0x123   : > { %6338 = vst [vmem:[#allocation21_spill] sm:$0xff] %v3984_v52  ;;  %v1281_v54 = vadd.f32 %v1280_v51, %v3984_v52  ;;  %v3989_v55 = vpop.f32.mrb[18].mxu0  ;;  %v4015_v6 = vpop.f32.mrb[18].mxu1 }
 0x124   : > { %6339 = vst [vmem:[#allocation22_spill] sm:$0xff] %v3989_v55  ;;  %v3993_v57 = vpop.f32.mrb[19].mxu0  ;;  %v4018_v12 = vpop.f32.mrb[19].mxu1 }
 0x125   : > { %6340 = vst [vmem:[#allocation23_spill] sm:$0xff] %v3993_v57  ;;  %v1282_v59 = vadd.f32 %v1281_v54, %v3993_v57 }
 0x127   : > { %v1283_v61 = vadd.f32 %v3981_v50, %v1282_v59 }
 0x129   : > { %v4001_v62 = vpop.f32.mrb[20].mxu0  ;;  %v1284_v63 = vadd.f32 %v3989_v55, %v1283_v61  ;;  %v4026_v25 = vpop.f32.mrb[20].mxu1 }
 0x12a   : > { %6341 = vst [vmem:[#allocation24_spill] sm:$0xff] %v4001_v62  ;;  %v4004_v0 = vpop.f32.mrb[21].mxu0  ;;  %v4031_v35 = vpop.f32.mrb[21].mxu1 }
 0x12b   : > { %6342 = vst [vmem:[#allocation25_spill] sm:$0xff] %v4004_v0  ;;  %v1285_v2 = vadd.f32 %v1284_v63, %v4004_v0  ;;  %v4009_v3 = vpop.f32.mrb[22].mxu0  ;;  %v4035_v39 = vpop.f32.mrb[22].mxu1 }
 0x12c   : > { %6343 = vst [vmem:[#allocation26_spill] sm:$0xff] %v4009_v3  ;;  %v4013_v5 = vpop.f32.mrb[23].mxu0  ;;  %v4038_v47 = vpop.f32.mrb[23].mxu1 }
 0x12d   : > { %6344 = vst [vmem:[#allocation27_spill] sm:$0xff] %v4013_v5  ;;  %v1286_v7 = vadd.f32 %v1285_v2, %v4013_v5 }
 0x12f   : > { %v1287_v13 = vadd.f32 %v4001_v62, %v1286_v7 }
 0x131   : > { %v4021_v14 = vpop.f32.mrb[24].mxu0  ;;  %v1288_v18 = vadd.f32 %v4009_v3, %v1287_v13  ;;  %v4046_v61 = vpop.f32.mrb[24].mxu1 }
 0x132   : > { %6345 = vst [vmem:[#allocation28_spill] sm:$0xff] %v4021_v14  ;;  %v4024_v23 = vpop.f32.mrb[25].mxu0  ;;  %v4051_v7 = vpop.f32.mrb[25].mxu1 }
 0x133   : > { %6346 = vst [vmem:[#allocation29_spill] sm:$0xff] %v4024_v23  ;;  %v1289_v27 = vadd.f32 %v1288_v18, %v4024_v23  ;;  %v4029_v30 = vpop.f32.mrb[26].mxu0  ;;  %v4055_v18 = vpop.f32.mrb[26].mxu1 }
 0x134   : > { %6347 = vst [vmem:[#allocation30_spill] sm:$0xff] %v4029_v30  ;;  %v4033_v37 = vpop.f32.mrb[27].mxu0 }
 0x135   : > { %6348 = vst [vmem:[#allocation31_spill] sm:$0xff] %v4033_v37  ;;  %v1290_v42 = vadd.f32 %v1289_v27, %v4033_v37 }
 0x137   : > { %v1291_v49 = vadd.f32 %v4021_v14, %v1290_v42  ;;  %v4058_v42 = vpop.f32.mrb[27].mxu1 }
 0x139   : > { %v4041_v51 = vpop.f32.mrb[28].mxu0  ;;  %v1292_v54 = vadd.f32 %v4029_v30, %v1291_v49 }
 0x13a   : > { %6349 = vst [vmem:[#allocation32_spill] sm:$0xff] %v4041_v51  ;;  %v4044_v59 = vpop.f32.mrb[29].mxu0 }
 0x13b   : > { %6350 = vst [vmem:[#allocation33_spill] sm:$0xff] %v4044_v59  ;;  %v1293_v63 = vadd.f32 %v1292_v54, %v4044_v59  ;;  %v4049_v2 = vpop.f32.mrb[30].mxu0  ;;  %v4066_v54 = vpop.f32.mrb[28].mxu1 }
 0x13c   : > { %6351 = vst [vmem:[#allocation34_spill] sm:$0xff] %v4049_v2  ;;  %v4053_v13 = vpop.f32.mrb[31].mxu0  ;;  %v4071_v3 = vpop.f32.mrb[29].mxu1 }
 0x13d   : > { %6352 = vst [vmem:[#allocation35_spill] sm:$0xff] %v4053_v13  ;;  %v1294_v27 = vadd.f32 %v1293_v63, %v4053_v13  ;;  %v4075_v63 = vpop.f32.mrb[30].mxu1 }
 0x13f   : > { %v1295_v49 = vadd.f32 %v4041_v51, %v1294_v27  ;;  %v4078_v51 = vpop.f32.mrb[31].mxu1 }
 0x141   : > { %v4061_v30 = vpop.f32.mrb[32].mxu0  ;;  %v1296_v14 = vadd.f32 %v4049_v2, %v1295_v49 }
 0x142   : > { %6353 = vst [vmem:[#allocation36_spill] sm:$0xff] %v4061_v30  ;;  %v4064_v37 = vpop.f32.mrb[33].mxu0 }
 0x143   : > { %6354 = vst [vmem:[#allocation37_spill] sm:$0xff] %v4064_v37  ;;  %v1297_v59 = vadd.f32 %v1296_v14, %v4064_v37  ;;  %v4069_v23 = vpop.f32.mrb[34].mxu0  ;;  %v4086_v14 = vpop.f32.mrb[32].mxu1 }
 0x144   : > { %6355 = vst [vmem:[#allocation38_spill] sm:$0xff] %v4069_v23  ;;  %v4073_v62 = vpop.f32.mrb[35].mxu0  ;;  %v4091_v55 = vpop.f32.mrb[33].mxu1 }
 0x145   : > { %6356 = vst [vmem:[#allocation39_spill] sm:$0xff] %v4073_v62  ;;  %v1298_v27 = vadd.f32 %v1297_v59, %v4073_v62  ;;  %v4095_v59 = vpop.f32.mrb[34].mxu1 }
 0x147   : > { %v1299_v49 = vadd.f32 %v4061_v30, %v1298_v27  ;;  %v4098_v30 = vpop.f32.mrb[35].mxu1 }
 0x149   : > { %v4081_v2 = vpop.f32.mrb[36].mxu0  ;;  %v1300_v13 = vadd.f32 %v4069_v23, %v1299_v49 }
 0x14a   : > { %6357 = vst [vmem:[#allocation40_spill] sm:$0xff] %v4081_v2  ;;  %v4084_v5 = vpop.f32.mrb[37].mxu0 }
 0x14b   : > { %6358 = vst [vmem:[#allocation41_spill] sm:$0xff] %v4084_v5  ;;  %v1301_v37 = vadd.f32 %v1300_v13, %v4084_v5  ;;  %v4089_v0 = vpop.f32.mrb[38].mxu0  ;;  %v4106_v13 = vpop.f32.mrb[36].mxu1 }
 0x14c   : > { %6359 = vst [vmem:[#allocation42_spill] sm:$0xff] %v4089_v0  ;;  %v4093_v50 = vpop.f32.mrb[39].mxu0  ;;  %6363 = vst [vmem:[#allocation46_spill] sm:$0xff] %v4106_v13  ;;  %v4111_v43 = vpop.f32.mrb[37].mxu1 }
 0x14d   : > { %6360 = vst [vmem:[#allocation43_spill] sm:$0xff] %v4093_v50  ;;  %v1302_v27 = vadd.f32 %v1301_v37, %v4093_v50  ;;  %v4115_v37 = vpop.f32.mrb[38].mxu1 }
 0x14e   : > { %6366 = vst [vmem:[#allocation49_spill] sm:$0xff] %v4115_v37 }
 0x14f   : > { %v1303_v49 = vadd.f32 %v4081_v2, %v1302_v27  ;;  %v4118_v2 = vpop.f32.mrb[39].mxu1 }
 0x151   : > { %v4101_v23 = vpop.f32.mrb[40].mxu0  ;;  %v1304_v62 = vadd.f32 %v4089_v0, %v1303_v49 }
 0x152   : > { %6361 = vst [vmem:[#allocation44_spill] sm:$0xff] %v4101_v23  ;;  %v4104_v57 = vpop.f32.mrb[41].mxu0 }
 0x153   : > { %6362 = vst [vmem:[#allocation45_spill] sm:$0xff] %v4104_v57  ;;  %v1305_v5 = vadd.f32 %v1304_v62, %v4104_v57  ;;  %v4109_v52 = vpop.f32.mrb[42].mxu0  ;;  %v4126_v62 = vpop.f32.mrb[40].mxu1 }
 0x154   : > { %6364 = vst [vmem:[#allocation47_spill] sm:$0xff] %v4109_v52  ;;  %v4113_v38 = vpop.f32.mrb[43].mxu0  ;;  %6369 = vst [vmem:[#allocation52_spill] sm:$0xff] %v4126_v62  ;;  %v4131_v31 = vpop.f32.mrb[41].mxu1 }
 0x155   : > { %6365 = vst [vmem:[#allocation48_spill] sm:$0xff] %v4113_v38  ;;  %v1306_v27 = vadd.f32 %v1305_v5, %v4113_v38  ;;  %6371 = vst [vmem:[#allocation54_spill] sm:$0xff] %v4131_v31  ;;  %v4135_v5 = vpop.f32.mrb[42].mxu1 }
 0x156   : > { %6373 = vst [vmem:[#allocation56_spill] sm:$0xff] %v4135_v5 }
 0x157   : > { %v1307_v49 = vadd.f32 %v4101_v23, %v1306_v27  ;;  %v4138_v23 = vpop.f32.mrb[43].mxu1 }
 0x158   : > { %6374 = vst [vmem:[#allocation57_spill] sm:$0xff] %v4138_v23 }
 0x159   : > { %v4121_v0 = vpop.f32.mrb[44].mxu0  ;;  %v1308_v50 = vadd.f32 %v4109_v52, %v1307_v49 }
 0x15a   : > { %6367 = vst [vmem:[#allocation50_spill] sm:$0xff] %v4121_v0  ;;  %v4124_v45 = vpop.f32.mrb[45].mxu0 }
 0x15b   : > { %6368 = vst [vmem:[#allocation51_spill] sm:$0xff] %v4124_v45  ;;  %v1309_v57 = vadd.f32 %v1308_v50, %v4124_v45  ;;  %v4129_v40 = vpop.f32.mrb[46].mxu0  ;;  %v4146_v50 = vpop.f32.mrb[44].mxu1 }
 0x15c   : > { %6370 = vst [vmem:[#allocation53_spill] sm:$0xff] %v4129_v40  ;;  %v4133_v26 = vpop.f32.mrb[47].mxu0  ;;  %v4151_v19 = vpop.f32.mrb[45].mxu1 }
 0x15d   : > { %6372 = vst [vmem:[#allocation55_spill] sm:$0xff] %v4133_v26  ;;  %v1310_v27 = vadd.f32 %v1309_v57, %v4133_v26  ;;  %6378 = vst [vmem:[#allocation61_spill] sm:$0xff] %v4151_v19  ;;  %v4155_v57 = vpop.f32.mrb[46].mxu1 }
 0x15e   : > { %6380 = vst [vmem:[#allocation63_spill] sm:$0xff] %v4155_v57 }
 0x15f   : > { %v1311_v49 = vadd.f32 %v4121_v0, %v1310_v27  ;;  %v4158_v0 = vpop.f32.mrb[47].mxu1 }
 0x160   : > { %6381 = vst [vmem:[#allocation64_spill] sm:$0xff] %v4158_v0 }
 0x161   : > { %v4141_v52 = vpop.f32.mrb[48].mxu0  ;;  %v1312_v38 = vadd.f32 %v4129_v40, %v1311_v49 }
 0x162   : > { %6375 = vst [vmem:[#allocation58_spill] sm:$0xff] %v4141_v52  ;;  %v4144_v33 = vpop.f32.mrb[49].mxu0 }
 0x163   : > { %6376 = vst [vmem:[#allocation59_spill] sm:$0xff] %v4144_v33  ;;  %v1313_v45 = vadd.f32 %v1312_v38, %v4144_v33  ;;  %v4149_v28 = vpop.f32.mrb[50].mxu0  ;;  %v4166_v38 = vpop.f32.mrb[48].mxu1 }
 0x164   : > { %6377 = vst [vmem:[#allocation60_spill] sm:$0xff] %v4149_v28  ;;  %v4153_v15 = vpop.f32.mrb[51].mxu0  ;;  %6384 = vst [vmem:[#allocation67_spill] sm:$0xff] %v4166_v38  ;;  %v4171_v10 = vpop.f32.mrb[49].mxu1 }
 0x165   : > { %6379 = vst [vmem:[#allocation62_spill] sm:$0xff] %v4153_v15  ;;  %v1314_v27 = vadd.f32 %v1313_v45, %v4153_v15  ;;  %v4175_v45 = vpop.f32.mrb[50].mxu1 }
 0x166   : > { %6387 = vst [vmem:[#allocation70_spill] sm:$0xff] %v4175_v45 }
 0x167   : > { %v1315_v49 = vadd.f32 %v4141_v52, %v1314_v27  ;;  %v4178_v52 = vpop.f32.mrb[51].mxu1 }
 0x168   : > { %6388 = vst [vmem:[#allocation71_spill] sm:$0xff] %v4178_v52 }
 0x169   : > { %v4161_v40 = vpop.f32.mrb[52].mxu0  ;;  %v1316_v26 = vadd.f32 %v4149_v28, %v1315_v49 }
 0x16a   : > { %6382 = vst [vmem:[#allocation65_spill] sm:$0xff] %v4161_v40  ;;  %v4164_v21 = vpop.f32.mrb[53].mxu0 }
 0x16b   : > { %6383 = vst [vmem:[#allocation66_spill] sm:$0xff] %v4164_v21  ;;  %v1317_v33 = vadd.f32 %v1316_v26, %v4164_v21  ;;  %v4169_v16 = vpop.f32.mrb[54].mxu0  ;;  %v4186_v26 = vpop.f32.mrb[52].mxu1 }
 0x16c   : > { %6385 = vst [vmem:[#allocation68_spill] sm:$0xff] %v4169_v16  ;;  %v4173_v8 = vpop.f32.mrb[55].mxu0  ;;  %6391 = vst [vmem:[#allocation74_spill] sm:$0xff] %v4186_v26  ;;  %v4191_v38 = vpop.f32.mrb[53].mxu1 }
 0x16d   : > { %6386 = vst [vmem:[#allocation69_spill] sm:$0xff] %v4173_v8  ;;  %v1318_v27 = vadd.f32 %v1317_v33, %v4173_v8  ;;  %6393 = vst [vmem:[#allocation76_spill] sm:$0xff] %v4191_v38  ;;  %v4195_v33 = vpop.f32.mrb[54].mxu1 }
 0x16e   : > { %6395 = vst [vmem:[#allocation78_spill] sm:$0xff] %v4195_v33 }
 0x16f   : > { %v1319_v49 = vadd.f32 %v4161_v40, %v1318_v27  ;;  %v4198_v40 = vpop.f32.mrb[55].mxu1 }
 0x170   : > { %6396 = vst [vmem:[#allocation79_spill] sm:$0xff] %v4198_v40 }
 0x171   : > { %v4181_v28 = vpop.f32.mrb[56].mxu0  ;;  %v1320_v15 = vadd.f32 %v4169_v16, %v1319_v49 }
 0x172   : > { %6389 = vst [vmem:[#allocation72_spill] sm:$0xff] %v4181_v28  ;;  %v4184_v11 = vpop.f32.mrb[57].mxu0 }
 0x173   : > { %6390 = vst [vmem:[#allocation73_spill] sm:$0xff] %v4184_v11  ;;  %v1321_v21 = vadd.f32 %v1320_v15, %v4184_v11  ;;  %v4189_v9 = vpop.f32.mrb[58].mxu0  ;;  %v4206_v15 = vpop.f32.mrb[56].mxu1 }
 0x174   : > { %6392 = vst [vmem:[#allocation75_spill] sm:$0xff] %v4189_v9  ;;  %v4193_v45 = vpop.f32.mrb[59].mxu0  ;;  %6399 = vst [vmem:[#allocation82_spill] sm:$0xff] %v4206_v15  ;;  %v4211_v52 = vpop.f32.mrb[57].mxu1 }
 0x175   : > { %6394 = vst [vmem:[#allocation77_spill] sm:$0xff] %v4193_v45  ;;  %v1322_v27 = vadd.f32 %v1321_v21, %v4193_v45  ;;  %6401 = vst [vmem:[#allocation84_spill] sm:$0xff] %v4211_v52  ;;  %v4215_v21 = vpop.f32.mrb[58].mxu1 }
 0x177   : > { %v1323_v49 = vadd.f32 %v4181_v28, %v1322_v27  ;;  %v4218_v28 = vpop.f32.mrb[59].mxu1 }
 0x179   : > { %v4201_v16 = vpop.f32.mrb[60].mxu0  ;;  %v1324_v8 = vadd.f32 %v4189_v9, %v1323_v49  ;;  %v4222_v45 = vpop.f32.mrb[60].mxu1 }
 0x17a   : > { %6397 = vst [vmem:[#allocation80_spill] sm:$0xff] %v4201_v16  ;;  %v4204_v26 = vpop.f32.mrb[61].mxu0 }
 0x17b   : > { %6398 = vst [vmem:[#allocation81_spill] sm:$0xff] %v4204_v26  ;;  %v1325_v11 = vadd.f32 %v1324_v8, %v4204_v26  ;;  %v4209_v38 = vpop.f32.mrb[62].mxu0  ;;  %v4225_v26 = vpop.f32.mrb[61].mxu1 }
 0x17c   : > { %6400 = vst [vmem:[#allocation83_spill] sm:$0xff] %v4209_v38  ;;  %v4213_v33 = vpop.f32.mrb[63].mxu0  ;;  %v4227_v15 = vpop.f32.mrb[62].mxu1 }
 0x17d   : > { %6402 = vst [vmem:[#allocation85_spill] sm:$0xff] %v4213_v33  ;;  %v1326_v27 = vadd.f32 %v1325_v11, %v4213_v33  ;;  %v4230_v40 = vpop.f32.mrb[63].mxu1 }
 0x17f   : > { %v1327_v49 = vadd.f32 %v4201_v16, %v1326_v27 }
 0x181   : > { %v1328_v9 = vadd.f32 %v4209_v38, %v1327_v49 }
 0x183   : > { %v1329_v8 = vadd.f32 %v1328_v9, %v3931_v20 }
 0x185   : > { %v1330_v52 = vadd.f32 %v1329_v8, %v3938_v24 }
 0x187   : > { %v1331_v11 = vadd.f32 %v3926_v17, %v1330_v52 }
 0x189   : > { %v1332_v33 = vadd.f32 %v3935_v22, %v1331_v11 }
 0x18b   : > { %v1333_v27 = vadd.f32 %v1332_v33, %v3951_v32 }
 0x18d   : > { %v1334_v49 = vadd.f32 %v1333_v27, %v3958_v36 }
 0x18f   : > { %v1335_v38 = vadd.f32 %v3946_v29, %v1334_v49 }
 0x191   : > { %v1336_v9 = vadd.f32 %v3955_v34, %v1335_v38 }
 0x193   : > { %v1337_v20 = vadd.f32 %v1336_v9, %v3971_v44 }
 0x195   : > { %v1338_v16 = vadd.f32 %v1337_v20, %v3978_v48 }
 0x197   : > { %v1339_v8 = vadd.f32 %v3966_v41, %v1338_v16 }
 0x199   : > { %v1340_v24 = vadd.f32 %v3975_v46, %v1339_v8 }
 0x19b   : > { %v1341_v52 = vadd.f32 %v1340_v24, %v3991_v56 }
 0x19d   : > { %v1342_v11 = vadd.f32 %v1341_v52, %v3998_v60 }
 0x19f   : > { %v1343_v33 = vadd.f32 %v3986_v53, %v1342_v11 }
 0x1a1   : > { %v1344_v27 = vadd.f32 %v3995_v58, %v1343_v33 }
 0x1a3   : > { %v1345_v49 = vadd.f32 %v1344_v27, %v4011_v4 }
 0x1a5   : > { %v1346_v38 = vadd.f32 %v1345_v49, %v4018_v12 }
 0x1a7   : > { %v1347_v9 = vadd.f32 %v4006_v1, %v1346_v38 }
 0x1a9   : > { %v1348_v20 = vadd.f32 %v4015_v6, %v1347_v9 }
 0x1ab   : > { %v1349_v16 = vadd.f32 %v1348_v20, %v4031_v35 }
 0x1ad   : > { %v1350_v8 = vadd.f32 %v1349_v16, %v4038_v47 }
 0x1af   : > { %v1351_v24 = vadd.f32 %v4026_v25, %v1350_v8 }
 0x1b1   : > { %v1352_v52 = vadd.f32 %v4035_v39, %v1351_v24 }
 0x1b3   : > { %v1353_v11 = vadd.f32 %v1352_v52, %v4051_v7 }
 0x1b5   : > { %v1354_v33 = vadd.f32 %v1353_v11, %v4058_v42 }
 0x1b7   : > { %v1355_v27 = vadd.f32 %v4046_v61, %v1354_v33 }
 0x1b9   : > { %v1356_v49 = vadd.f32 %v4055_v18, %v1355_v27 }
 0x1bb   : > { %v1357_v38 = vadd.f32 %v1356_v49, %v4071_v3 }
 0x1bd   : > { %v1358_v9 = vadd.f32 %v1357_v38, %v4078_v51 }
 0x1bf   : > { %v1359_v20 = vadd.f32 %v4066_v54, %v1358_v9 }
 0x1c1   : > { %v1360_v16 = vadd.f32 %v4075_v63, %v1359_v20 }
 0x1c3   : > { %v1361_v8 = vadd.f32 %v1360_v16, %v4091_v55 }
 0x1c5   : > { %v1362_v24 = vadd.f32 %v1361_v8, %v4098_v30 }
 0x1c7   : > { %v1363_v52 = vadd.f32 %v4086_v14, %v1362_v24 }
 0x1c9   : > { %v1364_v11 = vadd.f32 %v4095_v59, %v1363_v52 }
 0x1cb   : > { %v1365_v33 = vadd.f32 %v1364_v11, %v4111_v43 }
 0x1cd   : > { %v1366_v27 = vadd.f32 %v1365_v33, %v4118_v2 }
 0x1cf   : > { %v1367_v49 = vadd.f32 %v4106_v13, %v1366_v27  ;;  %v6403_v13 = vld [vmem:[#allocation71_spill] sm:$0xff] }
 0x1d1   : > { %v1368_v38 = vadd.f32 %v4115_v37, %v1367_v49  ;;  %v6404_v37 = vld [vmem:[#allocation67_spill] sm:$0xff] }
 0x1d3   : > { %v1369_v9 = vadd.f32 %v1368_v38, %v4131_v31  ;;  %v6405_v31 = vld [vmem:[#allocation70_spill] sm:$0xff] }
 0x1d5   : > { %v1370_v20 = vadd.f32 %v1369_v9, %v4138_v23  ;;  %v6406_v23 = vld [vmem:[#allocation76_spill] sm:$0xff] }
 0x1d7   : > { %v1371_v16 = vadd.f32 %v4126_v62, %v1370_v20  ;;  %v6407_v62 = vld [vmem:[#allocation79_spill] sm:$0xff] }
 0x1d9   : > { %v1372_v8 = vadd.f32 %v4135_v5, %v1371_v16  ;;  %v6408_v5 = vld [vmem:[#allocation74_spill] sm:$0xff] }
 0x1db   : > { %v1373_v24 = vadd.f32 %v1372_v8, %v4151_v19  ;;  %v6409_v19 = vld [vmem:[#allocation78_spill] sm:$0xff] }
 0x1dd   : > { %v1374_v52 = vadd.f32 %v1373_v24, %v4158_v0  ;;  %v6410_v0 = vld [vmem:[#allocation84_spill] sm:$0xff] }
 0x1df   : > { %v1375_v11 = vadd.f32 %v4146_v50, %v1374_v52 }
 0x1e1   : > { %v1376_v33 = vadd.f32 %v4155_v57, %v1375_v11  ;;  %v6411_v57 = vld [vmem:[#allocation82_spill] sm:$0xff] }
 0x1e3   : > { %v1377_v27 = vadd.f32 %v1376_v33, %v4171_v10 }
 0x1e5   : > { %v1378_v49 = vadd.f32 %v1377_v27, %v6403_v13 }
 0x1e7   : > { %v1379_v38 = vadd.f32 %v6404_v37, %v1378_v49 }
 0x1e9   : > { %v1380_v9 = vadd.f32 %v6405_v31, %v1379_v38 }
 0x1eb   : > { %v1381_v20 = vadd.f32 %v1380_v9, %v6406_v23 }
 0x1ed   : > { %v1382_v16 = vadd.f32 %v1381_v20, %v6407_v62 }
 0x1ef   : > { %v1383_v8 = vadd.f32 %v6408_v5, %v1382_v16 }
 0x1f1   : > { %v1384_v24 = vadd.f32 %v6409_v19, %v1383_v8 }
 0x1f3   : > { %v1385_v52 = vadd.f32 %v1384_v24, %v6410_v0 }
 0x1f5   : > { %v1386_v11 = vadd.f32 %v1385_v52, %v4218_v28  ;;  %v6412_v52 = vld [vmem:[#allocation3_spill] sm:$0xff] }
 0x1f7   : > { %v1387_v33 = vadd.f32 %v6411_v57, %v1386_v11 }
 0x1f9   : > { %v1388_v27 = vadd.f32 %v4215_v21, %v1387_v33  ;;  %v6414_v33 = vld [vmem:[#allocation5_spill] sm:$0xff] }
 0x1fb   : > { %v1389_v49 = vadd.f32 %v1388_v27, %v4225_v26 }
 0x1fd   : > { %v1390_v38 = vadd.f32 %v1389_v49, %v4230_v40  ;;  %v6416_v49 = vld [vmem:[#allocation2_spill] sm:$0xff] }
 0x1ff   : > { %v1391_v9 = vadd.f32 %v4222_v45, %v1390_v38 }
 0x201   : > { %v1392_v20 = vadd.f32 %v4227_v15, %v1391_v9 }
 0x203   : > { %v1393_v62 = vrot.slane %v1392_v20, 4 }
 0x205   : > { %v1394_v16 = vadd.f32 %v1393_v62, %v1392_v20  ;;  %v6418_v62 = vld [vmem:[#allocation4_spill] sm:$0xff]  ;;  %v6422_v20 = vld [vmem:[#allocation10_spill] sm:$0xff] }
 0x207   : > { %v1395_v5 = vrot.slane %v1394_v16, 2 }
 0x209   : > { %v1396_v8 = vadd.f32 %v1395_v5, %v1394_v16 }
 0x20b   : > { %v1397_v19 = vrot.slane %v1396_v8, 1 }
 0x20d   : > { %v1398_v24 = vadd.f32 %v1397_v19, %v1396_v8  ;;  %v6420_v19 = vld [vmem:[#allocation7_spill] sm:$0xff]  ;;  %v6424_v8 = vld [vmem:[#allocation6_spill] sm:$0xff] }
 0x20f   : > { %v4294_v0 = vmul.f32 0.0009765625, %v1398_v24 }
 0x211   : > { %v4298_v11 = vsub.f32 %v6412_v52, %v4294_v0  ;;  %v4302_v27 = vsub.f32 %v6414_v33, %v4294_v0  ;;  %v4306_v38 = vsub.f32 %v6416_v49, %v4294_v0  ;;  %v4310_v9 = vsub.f32 %v6418_v62, %v4294_v0  ;;  %v6426_v52 = vld [vmem:[#allocation8_spill] sm:$0xff]  ;;  %v6428_v49 = vld [vmem:[#allocation13_spill] sm:$0xff] }
 0x212   : > { %v4314_v5 = vsub.f32 %v6420_v19, %v4294_v0  ;;  %v4318_v16 = vsub.f32 %v6422_v20, %v4294_v0  ;;  %v4322_v24 = vsub.f32 %v6424_v8, %v4294_v0  ;;  %v4326_v33 = vsub.f32 %v6426_v52, %v4294_v0 }
 0x213   : > { %6413 = vst [vmem:[#allocation71_spill] sm:$0xff] %v4298_v11  ;;  %6415 = vst [vmem:[#allocation67_spill] sm:$0xff] %v4302_v27  ;;  %v4330_v62 = vsub.f32 %v6428_v49, %v4294_v0 }
 0x214   : > { %6417 = vst [vmem:[#allocation70_spill] sm:$0xff] %v4306_v38  ;;  %6419 = vst [vmem:[#allocation76_spill] sm:$0xff] %v4310_v9  ;;  %v6430_v9 = vld [vmem:[#allocation15_spill] sm:$0xff] }
 0x215   : > { %6421 = vst [vmem:[#allocation82_spill] sm:$0xff] %v4314_v5  ;;  %6423 = vst [vmem:[#allocation3_spill] sm:$0xff] %v4318_v16  ;;  %v4334_v19 = vsub.f32 %v6430_v9, %v4294_v0  ;;  %v6432_v5 = vld [vmem:[#allocation12_spill] sm:$0xff]  ;;  %v6434_v16 = vld [vmem:[#allocation14_spill] sm:$0xff] }
 0x216   : > { %6425 = vst [vmem:[#allocation5_spill] sm:$0xff] %v4322_v24  ;;  %6427 = vst [vmem:[#allocation2_spill] sm:$0xff] %v4326_v33  ;;  %v4338_v20 = vsub.f32 %v6432_v5, %v4294_v0  ;;  %v4342_v8 = vsub.f32 %v6434_v16, %v4294_v0  ;;  %v6436_v24 = vld [vmem:[#allocation17_spill] sm:$0xff]  ;;  %v6438_v33 = vld [vmem:[#allocation19_spill] sm:$0xff] }
 0x217   : > { %6429 = vst [vmem:[#allocation4_spill] sm:$0xff] %v4330_v62  ;;  %6431 = vst [vmem:[#allocation7_spill] sm:$0xff] %v4334_v19  ;;  %v4346_v52 = vsub.f32 %v6436_v24, %v4294_v0  ;;  %v4350_v49 = vsub.f32 %v6438_v33, %v4294_v0  ;;  %v6440_v62 = vld [vmem:[#allocation16_spill] sm:$0xff]  ;;  %v6442_v19 = vld [vmem:[#allocation18_spill] sm:$0xff] }
 0x218   : > { %6433 = vst [vmem:[#allocation10_spill] sm:$0xff] %v4338_v20  ;;  %6435 = vst [vmem:[#allocation6_spill] sm:$0xff] %v4342_v8  ;;  %v4354_v9 = vsub.f32 %v6440_v62, %v4294_v0  ;;  %v4358_v5 = vsub.f32 %v6442_v19, %v4294_v0  ;;  %v6444_v20 = vld [vmem:[#allocation21_spill] sm:$0xff]  ;;  %v6446_v8 = vld [vmem:[#allocation23_spill] sm:$0xff] }
 0x219   : > { %6437 = vst [vmem:[#allocation8_spill] sm:$0xff] %v4346_v52  ;;  %6439 = vst [vmem:[#allocation13_spill] sm:$0xff] %v4350_v49  ;;  %v4362_v16 = vsub.f32 %v6444_v20, %v4294_v0  ;;  %v4366_v24 = vsub.f32 %v6446_v8, %v4294_v0  ;;  %v6448_v52 = vld [vmem:[#allocation20_spill] sm:$0xff]  ;;  %v6450_v49 = vld [vmem:[#allocation22_spill] sm:$0xff] }
 0x21a   : > { %6441 = vst [vmem:[#allocation15_spill] sm:$0xff] %v4354_v9  ;;  %6443 = vst [vmem:[#allocation12_spill] sm:$0xff] %v4358_v5  ;;  %v4370_v33 = vsub.f32 %v6448_v52, %v4294_v0  ;;  %v4374_v62 = vsub.f32 %v6450_v49, %v4294_v0  ;;  %v6452_v9 = vld [vmem:[#allocation25_spill] sm:$0xff]  ;;  %v6454_v5 = vld [vmem:[#allocation27_spill] sm:$0xff] }
 0x21b   : > { %6445 = vst [vmem:[#allocation14_spill] sm:$0xff] %v4362_v16  ;;  %6447 = vst [vmem:[#allocation17_spill] sm:$0xff] %v4366_v24  ;;  %v4378_v19 = vsub.f32 %v6452_v9, %v4294_v0  ;;  %v4382_v20 = vsub.f32 %v6454_v5, %v4294_v0  ;;  %v6456_v16 = vld [vmem:[#allocation24_spill] sm:$0xff]  ;;  %v6458_v24 = vld [vmem:[#allocation26_spill] sm:$0xff] }
 0x21c   : > { %6449 = vst [vmem:[#allocation19_spill] sm:$0xff] %v4370_v33  ;;  %6451 = vst [vmem:[#allocation16_spill] sm:$0xff] %v4374_v62  ;;  %v4386_v8 = vsub.f32 %v6456_v16, %v4294_v0  ;;  %v4390_v52 = vsub.f32 %v6458_v24, %v4294_v0  ;;  %v6460_v33 = vld [vmem:[#allocation29_spill] sm:$0xff]  ;;  %v6462_v62 = vld [vmem:[#allocation31_spill] sm:$0xff] }
 0x21d   : > { %6453 = vst [vmem:[#allocation18_spill] sm:$0xff] %v4378_v19  ;;  %6455 = vst [vmem:[#allocation21_spill] sm:$0xff] %v4382_v20  ;;  %v4394_v49 = vsub.f32 %v6460_v33, %v4294_v0  ;;  %v4398_v9 = vsub.f32 %v6462_v62, %v4294_v0  ;;  %v6464_v19 = vld [vmem:[#allocation28_spill] sm:$0xff]  ;;  %v6466_v20 = vld [vmem:[#allocation30_spill] sm:$0xff] }
 0x21e   : > { %6457 = vst [vmem:[#allocation23_spill] sm:$0xff] %v4386_v8  ;;  %6459 = vst [vmem:[#allocation20_spill] sm:$0xff] %v4390_v52  ;;  %v4402_v5 = vsub.f32 %v6464_v19, %v4294_v0  ;;  %v4406_v16 = vsub.f32 %v6466_v20, %v4294_v0  ;;  %v6468_v8 = vld [vmem:[#allocation33_spill] sm:$0xff]  ;;  %v6470_v52 = vld [vmem:[#allocation35_spill] sm:$0xff] }
 0x21f   : > { %6461 = vst [vmem:[#allocation22_spill] sm:$0xff] %v4394_v49  ;;  %6463 = vst [vmem:[#allocation25_spill] sm:$0xff] %v4398_v9  ;;  %v4410_v24 = vsub.f32 %v6468_v8, %v4294_v0  ;;  %v4414_v33 = vsub.f32 %v6470_v52, %v4294_v0  ;;  %v6472_v49 = vld [vmem:[#allocation32_spill] sm:$0xff]  ;;  %v6474_v9 = vld [vmem:[#allocation34_spill] sm:$0xff] }
 0x220   : > { %6465 = vst [vmem:[#allocation27_spill] sm:$0xff] %v4402_v5  ;;  %6467 = vst [vmem:[#allocation24_spill] sm:$0xff] %v4406_v16  ;;  %v4418_v62 = vsub.f32 %v6472_v49, %v4294_v0  ;;  %v4422_v19 = vsub.f32 %v6474_v9, %v4294_v0  ;;  %v6476_v5 = vld [vmem:[#allocation37_spill] sm:$0xff]  ;;  %v6478_v16 = vld [vmem:[#allocation39_spill] sm:$0xff] }
 0x221   : > { %6469 = vst [vmem:[#allocation26_spill] sm:$0xff] %v4410_v24  ;;  %6471 = vst [vmem:[#allocation29_spill] sm:$0xff] %v4414_v33  ;;  %v4426_v20 = vsub.f32 %v6476_v5, %v4294_v0  ;;  %v4430_v8 = vsub.f32 %v6478_v16, %v4294_v0  ;;  %v6480_v24 = vld [vmem:[#allocation36_spill] sm:$0xff]  ;;  %v6482_v33 = vld [vmem:[#allocation38_spill] sm:$0xff] }
 0x222   : > { %6473 = vst [vmem:[#allocation31_spill] sm:$0xff] %v4418_v62  ;;  %6475 = vst [vmem:[#allocation28_spill] sm:$0xff] %v4422_v19  ;;  %v4434_v52 = vsub.f32 %v6480_v24, %v4294_v0  ;;  %v4438_v49 = vsub.f32 %v6482_v33, %v4294_v0  ;;  %v6484_v62 = vld [vmem:[#allocation41_spill] sm:$0xff]  ;;  %v6486_v19 = vld [vmem:[#allocation43_spill] sm:$0xff] }
 0x223   : > { %6477 = vst [vmem:[#allocation30_spill] sm:$0xff] %v4426_v20  ;;  %6479 = vst [vmem:[#allocation33_spill] sm:$0xff] %v4430_v8  ;;  %v4442_v9 = vsub.f32 %v6484_v62, %v4294_v0  ;;  %v4446_v5 = vsub.f32 %v6486_v19, %v4294_v0  ;;  %v6488_v20 = vld [vmem:[#allocation40_spill] sm:$0xff]  ;;  %v6490_v8 = vld [vmem:[#allocation42_spill] sm:$0xff] }
 0x224   : > { %6481 = vst [vmem:[#allocation35_spill] sm:$0xff] %v4434_v52  ;;  %6483 = vst [vmem:[#allocation32_spill] sm:$0xff] %v4438_v49  ;;  %v4450_v16 = vsub.f32 %v6488_v20, %v4294_v0  ;;  %v4454_v24 = vsub.f32 %v6490_v8, %v4294_v0  ;;  %v6492_v52 = vld [vmem:[#allocation45_spill] sm:$0xff]  ;;  %v6494_v49 = vld [vmem:[#allocation48_spill] sm:$0xff] }
 0x225   : > { %6485 = vst [vmem:[#allocation34_spill] sm:$0xff] %v4442_v9  ;;  %6487 = vst [vmem:[#allocation37_spill] sm:$0xff] %v4446_v5  ;;  %v4458_v33 = vsub.f32 %v6492_v52, %v4294_v0  ;;  %v4462_v62 = vsub.f32 %v6494_v49, %v4294_v0  ;;  %v6496_v9 = vld [vmem:[#allocation44_spill] sm:$0xff]  ;;  %v6498_v5 = vld [vmem:[#allocation47_spill] sm:$0xff] }
 0x226   : > { %6489 = vst [vmem:[#allocation39_spill] sm:$0xff] %v4450_v16  ;;  %6491 = vst [vmem:[#allocation36_spill] sm:$0xff] %v4454_v24  ;;  %v4466_v19 = vsub.f32 %v6496_v9, %v4294_v0  ;;  %v4470_v20 = vsub.f32 %v6498_v5, %v4294_v0  ;;  %v6500_v16 = vld [vmem:[#allocation51_spill] sm:$0xff] }
 0x227   : > { %6493 = vst [vmem:[#allocation38_spill] sm:$0xff] %v4458_v33  ;;  %6495 = vst [vmem:[#allocation41_spill] sm:$0xff] %v4462_v62  ;;  %v4474_v8 = vsub.f32 %v6500_v16, %v4294_v0  ;;  %v6502_v24 = vld [vmem:[#allocation55_spill] sm:$0xff]  ;;  %v6504_v33 = vld [vmem:[#allocation50_spill] sm:$0xff] }
 0x228   : > { %6497 = vst [vmem:[#allocation43_spill] sm:$0xff] %v4466_v19  ;;  %6499 = vst [vmem:[#allocation40_spill] sm:$0xff] %v4470_v20  ;;  %v4478_v52 = vsub.f32 %v6502_v24, %v4294_v0  ;;  %v4482_v49 = vsub.f32 %v6504_v33, %v4294_v0  ;;  %v6506_v62 = vld [vmem:[#allocation53_spill] sm:$0xff]  ;;  %v6508_v19 = vld [vmem:[#allocation59_spill] sm:$0xff] }
 0x229   : > { %6501 = vst [vmem:[#allocation42_spill] sm:$0xff] %v4474_v8  ;;  %v4486_v9 = vsub.f32 %v6506_v62, %v4294_v0  ;;  %v4490_v5 = vsub.f32 %v6508_v19, %v4294_v0  ;;  %v6510_v20 = vld [vmem:[#allocation62_spill] sm:$0xff] }
 0x22a   : > { %6503 = vst [vmem:[#allocation45_spill] sm:$0xff] %v4478_v52  ;;  %6505 = vst [vmem:[#allocation48_spill] sm:$0xff] %v4482_v49  ;;  %v4494_v16 = vsub.f32 %v6510_v20, %v4294_v0  ;;  %v6512_v8 = vld [vmem:[#allocation58_spill] sm:$0xff]  ;;  %v6514_v52 = vld [vmem:[#allocation60_spill] sm:$0xff] }
 0x22b   : > { %6507 = vst [vmem:[#allocation44_spill] sm:$0xff] %v4486_v9  ;;  %6509 = vst [vmem:[#allocation47_spill] sm:$0xff] %v4490_v5  ;;  %v4498_v24 = vsub.f32 %v6512_v8, %v4294_v0  ;;  %v4502_v33 = vsub.f32 %v6514_v52, %v4294_v0  ;;  %v6516_v49 = vld [vmem:[#allocation66_spill] sm:$0xff]  ;;  %v6518_v9 = vld [vmem:[#allocation69_spill] sm:$0xff] }
 0x22c   : > { %6511 = vst [vmem:[#allocation51_spill] sm:$0xff] %v4494_v16  ;;  %v4506_v62 = vsub.f32 %v6516_v49, %v4294_v0  ;;  %v4510_v19 = vsub.f32 %v6518_v9, %v4294_v0  ;;  %v6520_v5 = vld [vmem:[#allocation65_spill] sm:$0xff]  ;;  %v6522_v16 = vld [vmem:[#allocation68_spill] sm:$0xff] }
 0x22d   : > { %6513 = vst [vmem:[#allocation55_spill] sm:$0xff] %v4498_v24  ;;  %6515 = vst [vmem:[#allocation50_spill] sm:$0xff] %v4502_v33  ;;  %v4514_v20 = vsub.f32 %v6520_v5, %v4294_v0  ;;  %v4518_v8 = vsub.f32 %v6522_v16, %v4294_v0  ;;  %v6524_v24 = vld [vmem:[#allocation73_spill] sm:$0xff] }
 0x22e   : > { %6517 = vst [vmem:[#allocation53_spill] sm:$0xff] %v4506_v62  ;;  %6519 = vst [vmem:[#allocation59_spill] sm:$0xff] %v4510_v19  ;;  %v4522_v52 = vsub.f32 %v6524_v24, %v4294_v0  ;;  %v6526_v33 = vld [vmem:[#allocation77_spill] sm:$0xff]  ;;  %v6528_v62 = vld [vmem:[#allocation72_spill] sm:$0xff] }
 0x22f   : > { %6521 = vst [vmem:[#allocation62_spill] sm:$0xff] %v4514_v20  ;;  %6523 = vst [vmem:[#allocation58_spill] sm:$0xff] %v4518_v8  ;;  %v4526_v49 = vsub.f32 %v6526_v33, %v4294_v0  ;;  %v4530_v9 = vsub.f32 %v6528_v62, %v4294_v0  ;;  %v6530_v19 = vld [vmem:[#allocation75_spill] sm:$0xff]  ;;  %v6532_v20 = vld [vmem:[#allocation81_spill] sm:$0xff] }
 0x230   : > { %6525 = vst [vmem:[#allocation60_spill] sm:$0xff] %v4522_v52  ;;  %v4534_v5 = vsub.f32 %v6530_v19, %v4294_v0  ;;  %v4538_v16 = vsub.f32 %v6532_v20, %v4294_v0  ;;  %v6533_v8 = vld [vmem:[#allocation85_spill] sm:$0xff]  ;;  %v6534_v52 = vld [vmem:[#allocation80_spill] sm:$0xff] }
 0x231   : > { %6527 = vst [vmem:[#allocation66_spill] sm:$0xff] %v4526_v49  ;;  %6529 = vst [vmem:[#allocation69_spill] sm:$0xff] %v4530_v9  ;;  %v4542_v24 = vsub.f32 %v6533_v8, %v4294_v0  ;;  %v4546_v33 = vsub.f32 %v6534_v52, %v4294_v0  ;;  %v6535_v49 = vld [vmem:[#allocation83_spill] sm:$0xff]  ;;  %v6536_v9 = vld [vmem:[#allocation9_spill] sm:$0xff]  ;;  %v4562_v8 = vsub.f32 %v3926_v17, %v4294_v0 }
 0x232   : > { %6531 = vst [vmem:[#allocation65_spill] sm:$0xff] %v4534_v5  ;;  %v4550_v62 = vsub.f32 %v6535_v49, %v4294_v0  ;;  %v4554_v19 = vsub.f32 %v6536_v9, %v4294_v0  ;;  %v6537_v5 = vld [vmem:[#allocation11_spill] sm:$0xff]  ;;  %v4566_v52 = vsub.f32 %v3935_v22, %v4294_v0  ;;  %v4570_v49 = vsub.f32 %v3951_v32, %v4294_v0 }
 0x233   : > { %v4558_v20 = vsub.f32 %v6537_v5, %v4294_v0  ;;  %v4574_v9 = vsub.f32 %v3958_v36, %v4294_v0  ;;  %v4578_v5 = vsub.f32 %v3946_v29, %v4294_v0  ;;  %v4582_v17 = vsub.f32 %v3955_v34, %v4294_v0 }
 0x234   : > { %v4586_v22 = vsub.f32 %v3971_v44, %v4294_v0  ;;  %v4590_v32 = vsub.f32 %v3978_v48, %v4294_v0  ;;  %v4594_v36 = vsub.f32 %v3966_v41, %v4294_v0  ;;  %v4598_v29 = vsub.f32 %v3975_v46, %v4294_v0 }
 0x235   : > { %v4602_v34 = vsub.f32 %v3991_v56, %v4294_v0  ;;  %v4606_v44 = vsub.f32 %v3998_v60, %v4294_v0  ;;  %v4610_v48 = vsub.f32 %v3986_v53, %v4294_v0  ;;  %v4614_v41 = vsub.f32 %v3995_v58, %v4294_v0 }
 0x236   : > { %v4618_v46 = vsub.f32 %v4011_v4, %v4294_v0  ;;  %v4622_v56 = vsub.f32 %v4018_v12, %v4294_v0  ;;  %v4626_v60 = vsub.f32 %v4006_v1, %v4294_v0  ;;  %v4630_v53 = vsub.f32 %v4015_v6, %v4294_v0 }
 0x237   : > { %v4634_v58 = vsub.f32 %v4031_v35, %v4294_v0  ;;  %v4638_v4 = vsub.f32 %v4038_v47, %v4294_v0  ;;  %v4642_v12 = vsub.f32 %v4026_v25, %v4294_v0  ;;  %v4646_v1 = vsub.f32 %v4035_v39, %v4294_v0 }
 0x238   : > { %v4650_v6 = vsub.f32 %v4051_v7, %v4294_v0  ;;  %v4654_v35 = vsub.f32 %v4058_v42, %v4294_v0  ;;  %v4658_v47 = vsub.f32 %v4046_v61, %v4294_v0  ;;  %v4662_v25 = vsub.f32 %v4055_v18, %v4294_v0 }
 0x239   : > { %v4666_v39 = vsub.f32 %v4071_v3, %v4294_v0  ;;  %v4670_v7 = vsub.f32 %v4078_v51, %v4294_v0  ;;  %v4674_v42 = vsub.f32 %v4066_v54, %v4294_v0  ;;  %v4678_v61 = vsub.f32 %v4075_v63, %v4294_v0 }
 0x23a   : > { %6538 = vst [vmem:[#allocation68_spill] sm:$0xff] %v4662_v25  ;;  %v4682_v18 = vsub.f32 %v4091_v55, %v4294_v0  ;;  %v4686_v3 = vsub.f32 %v4098_v30, %v4294_v0  ;;  %v4690_v51 = vsub.f32 %v4086_v14, %v4294_v0  ;;  %v4694_v54 = vsub.f32 %v4095_v59, %v4294_v0 }
 0x23b   : > { %6539 = vst [vmem:[#allocation73_spill] sm:$0xff] %v4666_v39  ;;  %6540 = vst [vmem:[#allocation77_spill] sm:$0xff] %v4670_v7  ;;  %v4698_v63 = vsub.f32 %v4111_v43, %v4294_v0  ;;  %v4702_v55 = vsub.f32 %v4118_v2, %v4294_v0 }
 0x23c   : > { %6541 = vst [vmem:[#allocation72_spill] sm:$0xff] %v4674_v42  ;;  %6542 = vst [vmem:[#allocation75_spill] sm:$0xff] %v4678_v61 }
 0x23d   : > { %6543 = vst [vmem:[#allocation81_spill] sm:$0xff] %v4682_v18  ;;  %6544 = vst [vmem:[#allocation85_spill] sm:$0xff] %v4686_v3  ;;  %v6549_v18 = vld [vmem:[#allocation46_spill] sm:$0xff]  ;;  %v6551_v3 = vld [vmem:[#allocation49_spill] sm:$0xff] }
 0x23e   : > { %6545 = vst [vmem:[#allocation80_spill] sm:$0xff] %v4690_v51  ;;  %6546 = vst [vmem:[#allocation83_spill] sm:$0xff] %v4694_v54  ;;  %v4706_v30 = vsub.f32 %v6549_v18, %v4294_v0  ;;  %v4710_v14 = vsub.f32 %v6551_v3, %v4294_v0  ;;  %v6553_v51 = vld [vmem:[#allocation54_spill] sm:$0xff]  ;;  %v6554_v54 = vld [vmem:[#allocation57_spill] sm:$0xff] }
 0x23f   : > { %6547 = vst [vmem:[#allocation9_spill] sm:$0xff] %v4698_v63  ;;  %6548 = vst [vmem:[#allocation11_spill] sm:$0xff] %v4702_v55  ;;  %v4714_v59 = vsub.f32 %v6553_v51, %v4294_v0  ;;  %v4718_v43 = vsub.f32 %v6554_v54, %v4294_v0  ;;  %v6556_v63 = vld [vmem:[#allocation52_spill] sm:$0xff]  ;;  %v4738_v54 = vsub.f32 %v4146_v50, %v4294_v0 }
 0x240   : > { %6550 = vst [vmem:[#allocation46_spill] sm:$0xff] %v4706_v30  ;;  %6552 = vst [vmem:[#allocation49_spill] sm:$0xff] %v4710_v14  ;;  %v4722_v2 = vsub.f32 %v6556_v63, %v4294_v0  ;;  %v6558_v55 = vld [vmem:[#allocation56_spill] sm:$0xff]  ;;  %v6560_v30 = vld [vmem:[#allocation61_spill] sm:$0xff]  ;;  %v4758_v50 = vsub.f32 %v6405_v31, %v4294_v0 }
 0x241   : > { %6555 = vst [vmem:[#allocation54_spill] sm:$0xff] %v4718_v43  ;;  %v4726_v18 = vsub.f32 %v6558_v55, %v4294_v0  ;;  %v4730_v3 = vsub.f32 %v6560_v30, %v4294_v0  ;;  %v6562_v14 = vld [vmem:[#allocation64_spill] sm:$0xff]  ;;  %v6564_v43 = vld [vmem:[#allocation63_spill] sm:$0xff]  ;;  %v4746_v55 = vsub.f32 %v4171_v10, %v4294_v0  ;;  %v4750_v30 = vsub.f32 %v6403_v13, %v4294_v0 }
 0x242   : > { %6557 = vst [vmem:[#allocation57_spill] sm:$0xff] %v4722_v2  ;;  %v4734_v51 = vsub.f32 %v6562_v14, %v4294_v0  ;;  %v4742_v63 = vsub.f32 %v6564_v43, %v4294_v0  ;;  %v4754_v14 = vsub.f32 %v6404_v37, %v4294_v0  ;;  %6569 = vst [vmem:[#allocation88_spill] sm:$0xff] %v4758_v50 }
 0x243   : > { %6559 = vst [vmem:[#allocation52_spill] sm:$0xff] %v4726_v18  ;;  %6561 = vst [vmem:[#allocation56_spill] sm:$0xff] %v4730_v3  ;;  %v4762_v43 = vsub.f32 %v6406_v23, %v4294_v0  ;;  %v4782_v23 = vsub.f32 %v4218_v28, %v4294_v0  ;;  %v4802_v28 = vsub.f32 %v4222_v45, %v4294_v0  ;;  %v6587_v45 = vld [vmem:[#allocation82_spill] sm:$0xff] }
 0x244   : > { %6563 = vst [vmem:[#allocation61_spill] sm:$0xff] %v4734_v51  ;;  %6565 = vst [vmem:[#allocation64_spill] sm:$0xff] %v4742_v63  ;;  %v6571_v63 = vld [vmem:[#allocation79_spill] sm:$0xff] }
 0x245   : > { %6566 = vst [vmem:[#allocation63_spill] sm:$0xff] %v4746_v55  ;;  %6567 = vst [vmem:[#allocation86_spill] sm:$0xff] %v4750_v30  ;;  %v4766_v10 = vsub.f32 %v6571_v63, %v4294_v0  ;;  %v6573_v55 = vld [vmem:[#allocation74_spill] sm:$0xff]  ;;  %v4786_v63 = vsub.f32 %v6411_v57, %v4294_v0  ;;  %v4806_v57 = vsub.f32 %v4227_v15, %v4294_v0 }
 0x246   : > { %6568 = vst [vmem:[#allocation87_spill] sm:$0xff] %v4754_v14  ;;  %6570 = vst [vmem:[#allocation89_spill] sm:$0xff] %v4762_v43  ;;  %v4770_v13 = vsub.f32 %v6573_v55, %v4294_v0  ;;  %v6575_v30 = vld [vmem:[#allocation78_spill] sm:$0xff]  ;;  %v6577_v14 = vld [vmem:[#allocation84_spill] sm:$0xff]  ;;  %v4790_v55 = vsub.f32 %v4215_v21, %v4294_v0  ;;  %v1528_v21 = vmul.f32 %v4298_v11, %v4298_v11 }
 0x247   : > { %6572 = vst [vmem:[#allocation79_spill] sm:$0xff] %v4766_v10  ;;  %v4774_v37 = vsub.f32 %v6575_v30, %v4294_v0  ;;  %v4778_v31 = vsub.f32 %v6577_v14, %v4294_v0  ;;  %6579 = vst [vmem:[#allocation90_spill] sm:$0xff] %v4782_v23  ;;  %v4794_v30 = vsub.f32 %v4225_v26, %v4294_v0  ;;  %v6589_v11 = vld [vmem:[#allocation5_spill] sm:$0xff] }
 0x248   : > { %6574 = vst [vmem:[#allocation74_spill] sm:$0xff] %v4770_v13  ;;  %6580 = vst [vmem:[#allocation91_spill] sm:$0xff] %v4786_v63  ;;  %v4798_v14 = vsub.f32 %v4230_v40, %v4294_v0  ;;  %v1530_v26 = vmul.f32 %v4306_v38, %v4306_v38  ;;  %v6586_v40 = vld [vmem:[#allocation76_spill] sm:$0xff]  ;;  %v6588_v0 = vld [vmem:[#allocation3_spill] sm:$0xff] }
 0x249   : > { %6576 = vst [vmem:[#allocation78_spill] sm:$0xff] %v4774_v37  ;;  %6578 = vst [vmem:[#allocation84_spill] sm:$0xff] %v4778_v31  ;;  %v1533_v15 = vmul.f32 %v6588_v0, %v6588_v0  ;;  %v1534_v31 = vmul.f32 %v6589_v11, %v6589_v11  ;;  %v6590_v37 = vld [vmem:[#allocation2_spill] sm:$0xff] }
 0x24a   : > { %6581 = vst [vmem:[#allocation92_spill] sm:$0xff] %v4790_v55  ;;  %6582 = vst [vmem:[#allocation93_spill] sm:$0xff] %v4794_v30  ;;  %v1529_v55 = vmul.f32 %v4302_v27, %v4302_v27  ;;  %v1535_v38 = vmul.f32 %v6590_v37, %v6590_v37 }
 0x24b   : > { %6583 = vst [vmem:[#allocation94_spill] sm:$0xff] %v4798_v14  ;;  %6584 = vst [vmem:[#allocation95_spill] sm:$0xff] %v4802_v28  ;;  %v1531_v14 = vmul.f32 %v6586_v40, %v6586_v40  ;;  %v1532_v28 = vmul.f32 %v6587_v45, %v6587_v45 }
 0x24c   : > { %6585 = vst [vmem:[#allocation96_spill] sm:$0xff] %v4806_v57  ;;  %v1656_v30 = vadd.f32 %v1529_v55, %v1528_v21  ;;  %v6591_v21 = vld [vmem:[#allocation4_spill] sm:$0xff] }
 0x24d   : > { %v1536_v40 = vmul.f32 %v6591_v21, %v6591_v21 }
 0x24e   : > { %v1657_v63 = vadd.f32 %v1656_v30, %v1530_v26  ;;  %v6592_v26 = vld [vmem:[#allocation7_spill] sm:$0xff] }
 0x24f   : > { %v1537_v45 = vmul.f32 %v6592_v26, %v6592_v26 }
 0x250   : > { %v1658_v23 = vadd.f32 %v1657_v63, %v1531_v14  ;;  %v6593_v14 = vld [vmem:[#allocation10_spill] sm:$0xff] }
 0x251   : > { %v1538_v0 = vmul.f32 %v6593_v14, %v6593_v14 }
 0x252   : > { %v1659_v57 = vadd.f32 %v1658_v23, %v1532_v28  ;;  %v6594_v28 = vld [vmem:[#allocation6_spill] sm:$0xff] }
 0x253   : > { %v1539_v11 = vmul.f32 %v6594_v28, %v6594_v28 }
 0x254   : > { %v1660_v27 = vadd.f32 %v1659_v57, %v1533_v15  ;;  %v6595_v15 = vld [vmem:[#allocation8_spill] sm:$0xff] }
 0x255   : > { %v1540_v37 = vmul.f32 %v6595_v15, %v6595_v15 }
 0x256   : > { %v1661_v55 = vadd.f32 %v1660_v27, %v1534_v31  ;;  %v6596_v31 = vld [vmem:[#allocation13_spill] sm:$0xff] }
 0x257   : > { %v1541_v21 = vmul.f32 %v6596_v31, %v6596_v31 }
 0x258   : > { %v1662_v30 = vadd.f32 %v1661_v55, %v1535_v38  ;;  %v6597_v55 = vld [vmem:[#allocation15_spill] sm:$0xff] }
 0x259   : > { %v1542_v26 = vmul.f32 %v6597_v55, %v6597_v55 }
 0x25a   : > { %v1663_v63 = vadd.f32 %v1662_v30, %v1536_v40  ;;  %v6598_v30 = vld [vmem:[#allocation12_spill] sm:$0xff] }
 0x25b   : > { %v1543_v14 = vmul.f32 %v6598_v30, %v6598_v30 }
 0x25c   : > { %v1664_v23 = vadd.f32 %v1663_v63, %v1537_v45  ;;  %v6599_v63 = vld [vmem:[#allocation14_spill] sm:$0xff] }
 0x25d   : > { %v1544_v28 = vmul.f32 %v6599_v63, %v6599_v63 }
 0x25e   : > { %v1665_v57 = vadd.f32 %v1664_v23, %v1538_v0  ;;  %v6600_v23 = vld [vmem:[#allocation17_spill] sm:$0xff] }
 0x25f   : > { %v1545_v15 = vmul.f32 %v6600_v23, %v6600_v23 }
 0x260   : > { %v1666_v27 = vadd.f32 %v1665_v57, %v1539_v11  ;;  %v6601_v57 = vld [vmem:[#allocation19_spill] sm:$0xff] }
 0x261   : > { %v1546_v31 = vmul.f32 %v6601_v57, %v6601_v57 }
 0x262   : > { %v1667_v38 = vadd.f32 %v1666_v27, %v1540_v37  ;;  %v6602_v27 = vld [vmem:[#allocation16_spill] sm:$0xff] }
 0x263   : > { %v1547_v55 = vmul.f32 %v6602_v27, %v6602_v27 }
 0x264   : > { %v1668_v40 = vadd.f32 %v1667_v38, %v1541_v21  ;;  %v6603_v38 = vld [vmem:[#allocation18_spill] sm:$0xff] }
 0x265   : > { %v1548_v30 = vmul.f32 %v6603_v38, %v6603_v38 }
 0x266   : > { %v1669_v45 = vadd.f32 %v1668_v40, %v1542_v26  ;;  %v6604_v40 = vld [vmem:[#allocation21_spill] sm:$0xff] }
 0x267   : > { %v1549_v63 = vmul.f32 %v6604_v40, %v6604_v40 }
 0x268   : > { %v1670_v0 = vadd.f32 %v1669_v45, %v1543_v14  ;;  %v6605_v45 = vld [vmem:[#allocation23_spill] sm:$0xff] }
 0x269   : > { %v1550_v23 = vmul.f32 %v6605_v45, %v6605_v45 }
 0x26a   : > { %v1671_v11 = vadd.f32 %v1670_v0, %v1544_v28  ;;  %v6606_v0 = vld [vmem:[#allocation20_spill] sm:$0xff] }
 0x26b   : > { %v1551_v57 = vmul.f32 %v6606_v0, %v6606_v0 }
 0x26c   : > { %v1672_v37 = vadd.f32 %v1671_v11, %v1545_v15  ;;  %v6607_v11 = vld [vmem:[#allocation22_spill] sm:$0xff] }
 0x26d   : > { %v1552_v27 = vmul.f32 %v6607_v11, %v6607_v11 }
 0x26e   : > { %v1673_v21 = vadd.f32 %v1672_v37, %v1546_v31  ;;  %v6608_v37 = vld [vmem:[#allocation25_spill] sm:$0xff] }
 0x26f   : > { %v1553_v38 = vmul.f32 %v6608_v37, %v6608_v37 }
 0x270   : > { %v1674_v26 = vadd.f32 %v1673_v21, %v1547_v55  ;;  %v6609_v21 = vld [vmem:[#allocation27_spill] sm:$0xff] }
 0x271   : > { %v1554_v40 = vmul.f32 %v6609_v21, %v6609_v21 }
 0x272   : > { %v1675_v14 = vadd.f32 %v1674_v26, %v1548_v30  ;;  %v6610_v26 = vld [vmem:[#allocation24_spill] sm:$0xff] }
 0x273   : > { %v1555_v45 = vmul.f32 %v6610_v26, %v6610_v26 }
 0x274   : > { %v1676_v28 = vadd.f32 %v1675_v14, %v1549_v63  ;;  %v6611_v14 = vld [vmem:[#allocation26_spill] sm:$0xff] }
 0x275   : > { %v1556_v0 = vmul.f32 %v6611_v14, %v6611_v14 }
 0x276   : > { %v1677_v15 = vadd.f32 %v1676_v28, %v1550_v23  ;;  %v6612_v28 = vld [vmem:[#allocation29_spill] sm:$0xff] }
 0x277   : > { %v1557_v11 = vmul.f32 %v6612_v28, %v6612_v28 }
 0x278   : > { %v1678_v31 = vadd.f32 %v1677_v15, %v1551_v57  ;;  %v6613_v15 = vld [vmem:[#allocation31_spill] sm:$0xff] }
 0x279   : > { %v1558_v37 = vmul.f32 %v6613_v15, %v6613_v15 }
 0x27a   : > { %v1679_v55 = vadd.f32 %v1678_v31, %v1552_v27  ;;  %v6614_v31 = vld [vmem:[#allocation28_spill] sm:$0xff] }
 0x27b   : > { %v1559_v21 = vmul.f32 %v6614_v31, %v6614_v31 }
 0x27c   : > { %v1680_v30 = vadd.f32 %v1679_v55, %v1553_v38  ;;  %v6615_v55 = vld [vmem:[#allocation30_spill] sm:$0xff] }
 0x27d   : > { %v1560_v26 = vmul.f32 %v6615_v55, %v6615_v55 }
 0x27e   : > { %v1681_v63 = vadd.f32 %v1680_v30, %v1554_v40  ;;  %v6616_v30 = vld [vmem:[#allocation33_spill] sm:$0xff] }
 0x27f   : > { %v1561_v14 = vmul.f32 %v6616_v30, %v6616_v30 }
 0x280   : > { %v1682_v23 = vadd.f32 %v1681_v63, %v1555_v45  ;;  %v6617_v63 = vld [vmem:[#allocation35_spill] sm:$0xff] }
 0x281   : > { %v1562_v28 = vmul.f32 %v6617_v63, %v6617_v63 }
 0x282   : > { %v1683_v57 = vadd.f32 %v1682_v23, %v1556_v0  ;;  %v6618_v23 = vld [vmem:[#allocation32_spill] sm:$0xff] }
 0x283   : > { %v1563_v15 = vmul.f32 %v6618_v23, %v6618_v23 }
 0x284   : > { %v1684_v27 = vadd.f32 %v1683_v57, %v1557_v11  ;;  %v6619_v57 = vld [vmem:[#allocation34_spill] sm:$0xff] }
 0x285   : > { %v1564_v31 = vmul.f32 %v6619_v57, %v6619_v57 }
 0x286   : > { %v1685_v38 = vadd.f32 %v1684_v27, %v1558_v37  ;;  %v6620_v27 = vld [vmem:[#allocation37_spill] sm:$0xff] }
 0x287   : > { %v1565_v55 = vmul.f32 %v6620_v27, %v6620_v27 }
 0x288   : > { %v1686_v40 = vadd.f32 %v1685_v38, %v1559_v21  ;;  %v6621_v38 = vld [vmem:[#allocation39_spill] sm:$0xff] }
 0x289   : > { %v1566_v30 = vmul.f32 %v6621_v38, %v6621_v38 }
 0x28a   : > { %v1687_v45 = vadd.f32 %v1686_v40, %v1560_v26  ;;  %v6622_v40 = vld [vmem:[#allocation36_spill] sm:$0xff] }
 0x28b   : > { %v1567_v63 = vmul.f32 %v6622_v40, %v6622_v40 }
 0x28c   : > { %v1688_v0 = vadd.f32 %v1687_v45, %v1561_v14  ;;  %v6623_v45 = vld [vmem:[#allocation38_spill] sm:$0xff] }
 0x28d   : > { %v1568_v23 = vmul.f32 %v6623_v45, %v6623_v45 }
 0x28e   : > { %v1689_v11 = vadd.f32 %v1688_v0, %v1562_v28  ;;  %v6624_v0 = vld [vmem:[#allocation41_spill] sm:$0xff] }
 0x28f   : > { %v1569_v57 = vmul.f32 %v6624_v0, %v6624_v0 }
 0x290   : > { %v1690_v37 = vadd.f32 %v1689_v11, %v1563_v15  ;;  %v6625_v11 = vld [vmem:[#allocation43_spill] sm:$0xff] }
 0x291   : > { %v1570_v27 = vmul.f32 %v6625_v11, %v6625_v11 }
 0x292   : > { %v1691_v21 = vadd.f32 %v1690_v37, %v1564_v31  ;;  %v6626_v37 = vld [vmem:[#allocation40_spill] sm:$0xff] }
 0x293   : > { %v1571_v38 = vmul.f32 %v6626_v37, %v6626_v37 }
 0x294   : > { %v1692_v26 = vadd.f32 %v1691_v21, %v1565_v55  ;;  %v6627_v21 = vld [vmem:[#allocation42_spill] sm:$0xff] }
 0x295   : > { %v1572_v40 = vmul.f32 %v6627_v21, %v6627_v21 }
 0x296   : > { %v1693_v14 = vadd.f32 %v1692_v26, %v1566_v30  ;;  %v6628_v26 = vld [vmem:[#allocation45_spill] sm:$0xff] }
 0x297   : > { %v1573_v45 = vmul.f32 %v6628_v26, %v6628_v26 }
 0x298   : > { %v1694_v28 = vadd.f32 %v1693_v14, %v1567_v63  ;;  %v6629_v14 = vld [vmem:[#allocation48_spill] sm:$0xff] }
 0x299   : > { %v1574_v0 = vmul.f32 %v6629_v14, %v6629_v14 }
 0x29a   : > { %v1695_v15 = vadd.f32 %v1694_v28, %v1568_v23  ;;  %v6630_v28 = vld [vmem:[#allocation44_spill] sm:$0xff] }
 0x29b   : > { %v1575_v11 = vmul.f32 %v6630_v28, %v6630_v28 }
 0x29c   : > { %v1696_v31 = vadd.f32 %v1695_v15, %v1569_v57  ;;  %v6631_v15 = vld [vmem:[#allocation47_spill] sm:$0xff] }
 0x29d   : > { %v1576_v37 = vmul.f32 %v6631_v15, %v6631_v15 }
 0x29e   : > { %v1697_v55 = vadd.f32 %v1696_v31, %v1570_v27  ;;  %v6632_v31 = vld [vmem:[#allocation51_spill] sm:$0xff] }
 0x29f   : > { %v1577_v21 = vmul.f32 %v6632_v31, %v6632_v31 }
 0x2a0   : > { %v1698_v30 = vadd.f32 %v1697_v55, %v1571_v38  ;;  %v6633_v55 = vld [vmem:[#allocation55_spill] sm:$0xff] }
 0x2a1   : > { %v1578_v26 = vmul.f32 %v6633_v55, %v6633_v55 }
 0x2a2   : > { %v1699_v63 = vadd.f32 %v1698_v30, %v1572_v40  ;;  %v6634_v30 = vld [vmem:[#allocation50_spill] sm:$0xff] }
 0x2a3   : > { %v1579_v14 = vmul.f32 %v6634_v30, %v6634_v30 }
 0x2a4   : > { %v1700_v23 = vadd.f32 %v1699_v63, %v1573_v45  ;;  %v6635_v63 = vld [vmem:[#allocation53_spill] sm:$0xff] }
 0x2a5   : > { %v1580_v28 = vmul.f32 %v6635_v63, %v6635_v63 }
 0x2a6   : > { %v1701_v57 = vadd.f32 %v1700_v23, %v1574_v0  ;;  %v6636_v23 = vld [vmem:[#allocation59_spill] sm:$0xff] }
 0x2a7   : > { %v1581_v15 = vmul.f32 %v6636_v23, %v6636_v23 }
 0x2a8   : > { %v1702_v27 = vadd.f32 %v1701_v57, %v1575_v11  ;;  %v6637_v57 = vld [vmem:[#allocation62_spill] sm:$0xff] }
 0x2a9   : > { %v1582_v31 = vmul.f32 %v6637_v57, %v6637_v57 }
 0x2aa   : > { %v1703_v38 = vadd.f32 %v1702_v27, %v1576_v37  ;;  %v6638_v27 = vld [vmem:[#allocation58_spill] sm:$0xff] }
 0x2ab   : > { %v1583_v55 = vmul.f32 %v6638_v27, %v6638_v27 }
 0x2ac   : > { %v1704_v40 = vadd.f32 %v1703_v38, %v1577_v21  ;;  %v6639_v38 = vld [vmem:[#allocation60_spill] sm:$0xff] }
 0x2ad   : > { %v1584_v30 = vmul.f32 %v6639_v38, %v6639_v38 }
 0x2ae   : > { %v1705_v45 = vadd.f32 %v1704_v40, %v1578_v26  ;;  %v6640_v40 = vld [vmem:[#allocation66_spill] sm:$0xff] }
 0x2af   : > { %v1585_v63 = vmul.f32 %v6640_v40, %v6640_v40 }
 0x2b0   : > { %v1706_v0 = vadd.f32 %v1705_v45, %v1579_v14  ;;  %v6641_v45 = vld [vmem:[#allocation69_spill] sm:$0xff] }
 0x2b1   : > { %v1586_v23 = vmul.f32 %v6641_v45, %v6641_v45 }
 0x2b2   : > { %v1707_v11 = vadd.f32 %v1706_v0, %v1580_v28  ;;  %v6642_v0 = vld [vmem:[#allocation65_spill] sm:$0xff] }
 0x2b3   : > { %v1587_v57 = vmul.f32 %v6642_v0, %v6642_v0 }
 0x2b4   : > { %v1708_v37 = vadd.f32 %v1707_v11, %v1581_v15  ;;  %v1588_v11 = vmul.f32 %v4538_v16, %v4538_v16 }
 0x2b6   : > { %v1709_v21 = vadd.f32 %v1708_v37, %v1582_v31  ;;  %v1589_v37 = vmul.f32 %v4542_v24, %v4542_v24 }
 0x2b8   : > { %v1710_v26 = vadd.f32 %v1709_v21, %v1583_v55  ;;  %v1590_v21 = vmul.f32 %v4546_v33, %v4546_v33 }
 0x2ba   : > { %v1711_v14 = vadd.f32 %v1710_v26, %v1584_v30  ;;  %v1591_v26 = vmul.f32 %v4550_v62, %v4550_v62 }
 0x2bc   : > { %v1712_v28 = vadd.f32 %v1711_v14, %v1585_v63  ;;  %v1592_v14 = vmul.f32 %v4554_v19, %v4554_v19 }
 0x2be   : > { %v1713_v15 = vadd.f32 %v1712_v28, %v1586_v23  ;;  %v1593_v28 = vmul.f32 %v4558_v20, %v4558_v20 }
 0x2c0   : > { %v1714_v31 = vadd.f32 %v1713_v15, %v1587_v57  ;;  %v1594_v15 = vmul.f32 %v4562_v8, %v4562_v8 }
 0x2c2   : > { %v1715_v55 = vadd.f32 %v1714_v31, %v1588_v11  ;;  %v1595_v31 = vmul.f32 %v4566_v52, %v4566_v52 }
 0x2c4   : > { %v1716_v30 = vadd.f32 %v1715_v55, %v1589_v37  ;;  %v1596_v55 = vmul.f32 %v4570_v49, %v4570_v49 }
 0x2c6   : > { %v1717_v63 = vadd.f32 %v1716_v30, %v1590_v21  ;;  %v1597_v30 = vmul.f32 %v4574_v9, %v4574_v9 }
 0x2c8   : > { %v1718_v23 = vadd.f32 %v1717_v63, %v1591_v26  ;;  %v1598_v63 = vmul.f32 %v4578_v5, %v4578_v5 }
 0x2ca   : > { %v1719_v57 = vadd.f32 %v1718_v23, %v1592_v14  ;;  %v1599_v23 = vmul.f32 %v4582_v17, %v4582_v17 }
 0x2cc   : > { %v1720_v11 = vadd.f32 %v1719_v57, %v1593_v28  ;;  %v1600_v57 = vmul.f32 %v4586_v22, %v4586_v22 }
 0x2ce   : > { %v1721_v37 = vadd.f32 %v1720_v11, %v1594_v15  ;;  %v1601_v11 = vmul.f32 %v4590_v32, %v4590_v32 }
 0x2d0   : > { %v1722_v21 = vadd.f32 %v1721_v37, %v1595_v31  ;;  %v1602_v37 = vmul.f32 %v4594_v36, %v4594_v36 }
 0x2d2   : > { %v1723_v26 = vadd.f32 %v1722_v21, %v1596_v55  ;;  %v1603_v21 = vmul.f32 %v4598_v29, %v4598_v29 }
 0x2d4   : > { %v1724_v14 = vadd.f32 %v1723_v26, %v1597_v30  ;;  %v1604_v26 = vmul.f32 %v4602_v34, %v4602_v34 }
 0x2d6   : > { %v1725_v28 = vadd.f32 %v1724_v14, %v1598_v63  ;;  %v1605_v14 = vmul.f32 %v4606_v44, %v4606_v44 }
 0x2d8   : > { %v1726_v15 = vadd.f32 %v1725_v28, %v1599_v23  ;;  %v1606_v28 = vmul.f32 %v4610_v48, %v4610_v48 }
 0x2da   : > { %v1727_v31 = vadd.f32 %v1726_v15, %v1600_v57  ;;  %v1607_v15 = vmul.f32 %v4614_v41, %v4614_v41 }
 0x2dc   : > { %v1728_v55 = vadd.f32 %v1727_v31, %v1601_v11  ;;  %v1608_v31 = vmul.f32 %v4618_v46, %v4618_v46 }
 0x2de   : > { %v1729_v30 = vadd.f32 %v1728_v55, %v1602_v37  ;;  %v1609_v55 = vmul.f32 %v4622_v56, %v4622_v56 }
 0x2e0   : > { %v1730_v63 = vadd.f32 %v1729_v30, %v1603_v21  ;;  %v1610_v30 = vmul.f32 %v4626_v60, %v4626_v60 }
 0x2e2   : > { %v1731_v23 = vadd.f32 %v1730_v63, %v1604_v26  ;;  %v1611_v63 = vmul.f32 %v4630_v53, %v4630_v53 }
 0x2e4   : > { %v1732_v57 = vadd.f32 %v1731_v23, %v1605_v14  ;;  %v1612_v23 = vmul.f32 %v4634_v58, %v4634_v58 }
 0x2e6   : > { %v1733_v11 = vadd.f32 %v1732_v57, %v1606_v28  ;;  %v1613_v57 = vmul.f32 %v4638_v4, %v4638_v4 }
 0x2e8   : > { %v1734_v37 = vadd.f32 %v1733_v11, %v1607_v15  ;;  %v1614_v11 = vmul.f32 %v4642_v12, %v4642_v12 }
 0x2ea   : > { %v1735_v21 = vadd.f32 %v1734_v37, %v1608_v31  ;;  %v1615_v37 = vmul.f32 %v4646_v1, %v4646_v1 }
 0x2ec   : > { %v1736_v26 = vadd.f32 %v1735_v21, %v1609_v55  ;;  %v1616_v21 = vmul.f32 %v4650_v6, %v4650_v6 }
 0x2ee   : > { %v1737_v14 = vadd.f32 %v1736_v26, %v1610_v30  ;;  %v1617_v26 = vmul.f32 %v4654_v35, %v4654_v35 }
 0x2f0   : > { %v1738_v28 = vadd.f32 %v1737_v14, %v1611_v63  ;;  %v1618_v14 = vmul.f32 %v4658_v47, %v4658_v47 }
 0x2f2   : > { %v1739_v15 = vadd.f32 %v1738_v28, %v1612_v23  ;;  %v1619_v28 = vmul.f32 %v4662_v25, %v4662_v25 }
 0x2f4   : > { %v1740_v31 = vadd.f32 %v1739_v15, %v1613_v57  ;;  %v1620_v15 = vmul.f32 %v4666_v39, %v4666_v39 }
 0x2f6   : > { %v1741_v55 = vadd.f32 %v1740_v31, %v1614_v11  ;;  %v1621_v31 = vmul.f32 %v4670_v7, %v4670_v7 }
 0x2f8   : > { %v1742_v30 = vadd.f32 %v1741_v55, %v1615_v37  ;;  %v1622_v55 = vmul.f32 %v4674_v42, %v4674_v42 }
 0x2fa   : > { %v1743_v63 = vadd.f32 %v1742_v30, %v1616_v21  ;;  %v1623_v30 = vmul.f32 %v4678_v61, %v4678_v61 }
 0x2fc   : > { %v1744_v23 = vadd.f32 %v1743_v63, %v1617_v26  ;;  %v6643_v63 = vld [vmem:[#allocation81_spill] sm:$0xff] }
 0x2fd   : > { %v1624_v25 = vmul.f32 %v6643_v63, %v6643_v63 }
 0x2fe   : > { %v1745_v57 = vadd.f32 %v1744_v23, %v1618_v14  ;;  %v6644_v23 = vld [vmem:[#allocation85_spill] sm:$0xff] }
 0x2ff   : > { %v1625_v39 = vmul.f32 %v6644_v23, %v6644_v23 }
 0x300   : > { %v1746_v11 = vadd.f32 %v1745_v57, %v1619_v28  ;;  %v6645_v57 = vld [vmem:[#allocation80_spill] sm:$0xff] }
 0x301   : > { %v1626_v7 = vmul.f32 %v6645_v57, %v6645_v57 }
 0x302   : > { %v1747_v37 = vadd.f32 %v1746_v11, %v1620_v15  ;;  %v6646_v11 = vld [vmem:[#allocation83_spill] sm:$0xff] }
 0x303   : > { %v1627_v42 = vmul.f32 %v6646_v11, %v6646_v11 }
 0x304   : > { %v1748_v21 = vadd.f32 %v1747_v37, %v1621_v31  ;;  %v6647_v37 = vld [vmem:[#allocation9_spill] sm:$0xff] }
 0x305   : > { %v1628_v61 = vmul.f32 %v6647_v37, %v6647_v37 }
 0x306   : > { %v1749_v26 = vadd.f32 %v1748_v21, %v1622_v55  ;;  %v6648_v21 = vld [vmem:[#allocation11_spill] sm:$0xff] }
 0x307   : > { %v1629_v63 = vmul.f32 %v6648_v21, %v6648_v21 }
 0x308   : > { %v1750_v14 = vadd.f32 %v1749_v26, %v1623_v30  ;;  %v6649_v26 = vld [vmem:[#allocation46_spill] sm:$0xff] }
 0x309   : > { %v1630_v23 = vmul.f32 %v6649_v26, %v6649_v26 }
 0x30a   : > { %v1751_v28 = vadd.f32 %v1750_v14, %v1624_v25  ;;  %v6650_v14 = vld [vmem:[#allocation49_spill] sm:$0xff] }
 0x30b   : > { %v1631_v57 = vmul.f32 %v6650_v14, %v6650_v14 }
 0x30c   : > { %v1752_v15 = vadd.f32 %v1751_v28, %v1625_v39  ;;  %v1632_v28 = vmul.f32 %v4714_v59, %v4714_v59 }
 0x30e   : > { %v1753_v31 = vadd.f32 %v1752_v15, %v1626_v7  ;;  %v6651_v15 = vld [vmem:[#allocation54_spill] sm:$0xff] }
 0x30f   : > { %v1633_v37 = vmul.f32 %v6651_v15, %v6651_v15 }
 0x310   : > { %v1754_v55 = vadd.f32 %v1753_v31, %v1627_v42  ;;  %v1634_v31 = vmul.f32 %v4722_v2, %v4722_v2 }
 0x312   : > { %v1755_v30 = vadd.f32 %v1754_v55, %v1628_v61  ;;  %v1635_v55 = vmul.f32 %v4726_v18, %v4726_v18 }
 0x314   : > { %v1756_v25 = vadd.f32 %v1755_v30, %v1629_v63  ;;  %v1636_v30 = vmul.f32 %v4730_v3, %v4730_v3 }
 0x316   : > { %v1757_v39 = vadd.f32 %v1756_v25, %v1630_v23  ;;  %v1637_v25 = vmul.f32 %v4734_v51, %v4734_v51 }
 0x318   : > { %v1758_v7 = vadd.f32 %v1757_v39, %v1631_v57  ;;  %v1638_v39 = vmul.f32 %v4738_v54, %v4738_v54 }
 0x31a   : > { %v1759_v42 = vadd.f32 %v1758_v7, %v1632_v28  ;;  %v6652_v7 = vld [vmem:[#allocation64_spill] sm:$0xff] }
 0x31b   : > { %v1639_v2 = vmul.f32 %v6652_v7, %v6652_v7 }
 0x31c   : > { %v1760_v61 = vadd.f32 %v1759_v42, %v1633_v37  ;;  %v6653_v42 = vld [vmem:[#allocation63_spill] sm:$0xff] }
 0x31d   : > { %v1640_v18 = vmul.f32 %v6653_v42, %v6653_v42 }
 0x31e   : > { %v1761_v63 = vadd.f32 %v1760_v61, %v1634_v31  ;;  %v6654_v61 = vld [vmem:[#allocation86_spill] sm:$0xff] }
 0x31f   : > { %v1641_v3 = vmul.f32 %v6654_v61, %v6654_v61 }
 0x320   : > { %v1762_v23 = vadd.f32 %v1761_v63, %v1635_v55  ;;  %v6655_v63 = vld [vmem:[#allocation87_spill] sm:$0xff] }
 0x321   : > { %v1642_v51 = vmul.f32 %v6655_v63, %v6655_v63 }
 0x322   : > { %v1763_v57 = vadd.f32 %v1762_v23, %v1636_v30  ;;  %v1643_v23 = vmul.f32 %v4758_v50, %v4758_v50 }
 0x324   : > { %v1764_v28 = vadd.f32 %v1763_v57, %v1637_v25  ;;  %v1644_v57 = vmul.f32 %v4762_v43, %v4762_v43 }
 0x326   : > { %v1765_v37 = vadd.f32 %v1764_v28, %v1638_v39  ;;  %v1645_v28 = vmul.f32 %v4766_v10, %v4766_v10 }
 0x328   : > { %v1766_v31 = vadd.f32 %v1765_v37, %v1639_v2  ;;  %v1646_v37 = vmul.f32 %v4770_v13, %v4770_v13 }
 0x32a   : > { %v1767_v55 = vadd.f32 %v1766_v31, %v1640_v18  ;;  %v6656_v31 = vld [vmem:[#allocation78_spill] sm:$0xff] }
 0x32b   : > { %v1647_v63 = vmul.f32 %v6656_v31, %v6656_v31 }
 0x32c   : > { %v1768_v30 = vadd.f32 %v1767_v55, %v1641_v3  ;;  %v6657_v55 = vld [vmem:[#allocation84_spill] sm:$0xff] }
 0x32d   : > { %v1648_v50 = vmul.f32 %v6657_v55, %v6657_v55 }
 0x32e   : > { %v1769_v25 = vadd.f32 %v1768_v30, %v1642_v51  ;;  %v6658_v30 = vld [vmem:[#allocation90_spill] sm:$0xff] }
 0x32f   : > { %v1649_v43 = vmul.f32 %v6658_v30, %v6658_v30 }
 0x330   : > { %v1770_v39 = vadd.f32 %v1769_v25, %v1643_v23  ;;  %v6659_v25 = vld [vmem:[#allocation91_spill] sm:$0xff] }
 0x331   : > { %v1650_v10 = vmul.f32 %v6659_v25, %v6659_v25 }
 0x332   : > { %v1771_v2 = vadd.f32 %v1770_v39, %v1644_v57  ;;  %v6660_v39 = vld [vmem:[#allocation92_spill] sm:$0xff] }
 0x333   : > { %v1651_v13 = vmul.f32 %v6660_v39, %v6660_v39 }
 0x334   : > { %v1772_v18 = vadd.f32 %v1771_v2, %v1645_v28  ;;  %v6661_v2 = vld [vmem:[#allocation93_spill] sm:$0xff] }
 0x335   : > { %v1652_v31 = vmul.f32 %v6661_v2, %v6661_v2 }
 0x336   : > { %v1773_v3 = vadd.f32 %v1772_v18, %v1646_v37  ;;  %v6662_v18 = vld [vmem:[#allocation94_spill] sm:$0xff] }
 0x337   : > { %v1653_v55 = vmul.f32 %v6662_v18, %v6662_v18 }
 0x338   : > { %v1774_v51 = vadd.f32 %v1773_v3, %v1647_v63  ;;  %v6663_v3 = vld [vmem:[#allocation95_spill] sm:$0xff] }
 0x339   : > { %v1654_v30 = vmul.f32 %v6663_v3, %v6663_v3 }
 0x33a   : > { %v1775_v23 = vadd.f32 %v1774_v51, %v1648_v50  ;;  %v6664_v51 = vld [vmem:[#allocation96_spill] sm:$0xff] }
 0x33b   : > { %v1655_v25 = vmul.f32 %v6664_v51, %v6664_v51 }
 0x33c   : > { %v1776_v57 = vadd.f32 %v1775_v23, %v1649_v43 }
 0x33e   : > { %v1777_v28 = vadd.f32 %v1776_v57, %v1650_v10 }
 0x340   : > { %v1778_v37 = vadd.f32 %v1777_v28, %v1651_v13 }
 0x342   : > { %v1779_v63 = vadd.f32 %v1778_v37, %v1652_v31  ;;  %v6665_v31 = vld [vmem:[#allocation71_spill] sm:$0xff] }
 0x344   : > { %v1780_v50 = vadd.f32 %v1779_v63, %v1653_v55  ;;  %v6667_v55 = vld [vmem:[#allocation67_spill] sm:$0xff] }
 0x346   : > { %v1781_v43 = vadd.f32 %v1780_v50, %v1654_v30  ;;  %v6669_v30 = vld [vmem:[#allocation70_spill] sm:$0xff]  ;;  %v6675_v50 = vld [vmem:[#allocation3_spill] sm:$0xff] }
 0x348   : > { %v1782_v23 = vadd.f32 %v1781_v43, %v1655_v25  ;;  %v6671_v25 = vld [vmem:[#allocation76_spill] sm:$0xff] }
 0x34a   : > { %v1783_v61 = vrot.slane %v1782_v23, 4 }
 0x34c   : > { %v1784_v39 = vadd.f32 %v1783_v61, %v1782_v23  ;;  %v6677_v23 = vld [vmem:[#allocation5_spill] sm:$0xff] }
 0x34e   : > { %v1785_v10 = vrot.slane %v1784_v39, 2 }
 0x350   : > { %v1786_v57 = vadd.f32 %v1785_v10, %v1784_v39  ;;  %v6673_v39 = vld [vmem:[#allocation82_spill] sm:$0xff] }
 0x352   : > { %v1787_v42 = vrot.slane %v1786_v57, 1 }
 0x354   : > { %v1788_v2 = vadd.f32 %v1787_v42, %v1786_v57  ;;  %v6679_v57 = vld [vmem:[#allocation2_spill] sm:$0xff] }
 0x356   : > { %v1789_v13 = vmul.f32 0.0009765625, %v1788_v2 }
 0x358   : > { %v1790_v28 = vadd.f32 1e-05, %v1789_v13 }
 0x35a   : > { %3779 = vrsqrt.f32 %v1790_v28  ;;  %v6681_v28 = vld [vmem:[#allocation4_spill] sm:$0xff] }
 0x364   : > { %v5064_v18 = vpop.eup %3779 }
 0x365   : > { %v5068_v37 = vmul.f32 %v5064_v18, %v6665_v31  ;;  %v5072_v63 = vmul.f32 %v5064_v18, %v6667_v55  ;;  %v5076_v61 = vmul.f32 %v5064_v18, %v6669_v30  ;;  %v5080_v42 = vmul.f32 %v5064_v18, %v6671_v25  ;;  %v6683_v55 = vld [vmem:[#allocation7_spill] sm:$0xff]  ;;  %v6685_v25 = vld [vmem:[#allocation10_spill] sm:$0xff] }
 0x366   : > { %v5084_v2 = vmul.f32 %v5064_v18, %v6673_v39  ;;  %v5088_v43 = vmul.f32 %v5064_v18, %v6675_v50  ;;  %v5092_v10 = vmul.f32 %v5064_v18, %v6677_v23  ;;  %v5096_v13 = vmul.f32 %v5064_v18, %v6679_v57  ;;  %v6687_v50 = vld [vmem:[#allocation6_spill] sm:$0xff] }
 0x367   : > { %6666 = vst [vmem:[#allocation58_spill] sm:$0xff] %v5068_v37  ;;  %6668 = vst [vmem:[#allocation60_spill] sm:$0xff] %v5072_v63  ;;  %v5100_v31 = vmul.f32 %v5064_v18, %v6681_v28  ;;  %v5104_v30 = vmul.f32 %v5064_v18, %v6683_v55  ;;  %v5108_v39 = vmul.f32 %v5064_v18, %v6685_v25 }
 0x368   : > { %6670 = vst [vmem:[#allocation66_spill] sm:$0xff] %v5076_v61  ;;  %6672 = vst [vmem:[#allocation69_spill] sm:$0xff] %v5080_v42  ;;  %v5112_v23 = vmul.f32 %v5064_v18, %v6687_v50 }
 0x369   : > { %6674 = vst [vmem:[#allocation65_spill] sm:$0xff] %v5084_v2  ;;  %6676 = vst [vmem:[#allocation83_spill] sm:$0xff] %v5088_v43 }
 0x36a   : > { %6678 = vst [vmem:[#allocation11_spill] sm:$0xff] %v5092_v10  ;;  %6680 = vst [vmem:[#allocation46_spill] sm:$0xff] %v5096_v13  ;;  %v6689_v10 = vld [vmem:[#allocation8_spill] sm:$0xff]  ;;  %v6691_v13 = vld [vmem:[#allocation13_spill] sm:$0xff] }
 0x36b   : > { %6682 = vst [vmem:[#allocation49_spill] sm:$0xff] %v5100_v31  ;;  %6684 = vst [vmem:[#allocation54_spill] sm:$0xff] %v5104_v30  ;;  %v5116_v57 = vmul.f32 %v5064_v18, %v6689_v10  ;;  %v5120_v28 = vmul.f32 %v5064_v18, %v6691_v13  ;;  %v6693_v31 = vld [vmem:[#allocation15_spill] sm:$0xff]  ;;  %v6695_v30 = vld [vmem:[#allocation12_spill] sm:$0xff] }
 0x36c   : > { %6686 = vst [vmem:[#allocation64_spill] sm:$0xff] %v5108_v39  ;;  %6688 = vst [vmem:[#allocation95_spill] sm:$0xff] %v5112_v23  ;;  %v5124_v55 = vmul.f32 %v5064_v18, %v6693_v31  ;;  %v5128_v25 = vmul.f32 %v5064_v18, %v6695_v30  ;;  %v6697_v39 = vld [vmem:[#allocation14_spill] sm:$0xff]  ;;  %v6699_v23 = vld [vmem:[#allocation17_spill] sm:$0xff] }
 0x36d   : > { %6690 = vst [vmem:[#allocation96_spill] sm:$0xff] %v5116_v57  ;;  %6692 = vst [vmem:[#allocation71_spill] sm:$0xff] %v5120_v28  ;;  %v5132_v50 = vmul.f32 %v5064_v18, %v6697_v39  ;;  %v5136_v10 = vmul.f32 %v5064_v18, %v6699_v23  ;;  %v6701_v57 = vld [vmem:[#allocation19_spill] sm:$0xff]  ;;  %v6703_v28 = vld [vmem:[#allocation16_spill] sm:$0xff] }
 0x36e   : > { %6694 = vst [vmem:[#allocation67_spill] sm:$0xff] %v5124_v55  ;;  %6696 = vst [vmem:[#allocation70_spill] sm:$0xff] %v5128_v25  ;;  %v5140_v13 = vmul.f32 %v5064_v18, %v6701_v57  ;;  %v5144_v31 = vmul.f32 %v5064_v18, %v6703_v28  ;;  %v6705_v55 = vld [vmem:[#allocation18_spill] sm:$0xff]  ;;  %v6707_v25 = vld [vmem:[#allocation21_spill] sm:$0xff] }
 0x36f   : > { %6698 = vst [vmem:[#allocation76_spill] sm:$0xff] %v5132_v50  ;;  %6700 = vst [vmem:[#allocation82_spill] sm:$0xff] %v5136_v10  ;;  %v5148_v30 = vmul.f32 %v5064_v18, %v6705_v55  ;;  %v5152_v39 = vmul.f32 %v5064_v18, %v6707_v25  ;;  %v6709_v50 = vld [vmem:[#allocation23_spill] sm:$0xff]  ;;  %v6711_v10 = vld [vmem:[#allocation20_spill] sm:$0xff] }
 0x370   : > { %6702 = vst [vmem:[#allocation3_spill] sm:$0xff] %v5140_v13  ;;  %6704 = vst [vmem:[#allocation5_spill] sm:$0xff] %v5144_v31  ;;  %v5156_v23 = vmul.f32 %v5064_v18, %v6709_v50  ;;  %v5160_v57 = vmul.f32 %v5064_v18, %v6711_v10  ;;  %v6713_v13 = vld [vmem:[#allocation22_spill] sm:$0xff]  ;;  %v6715_v31 = vld [vmem:[#allocation25_spill] sm:$0xff] }
 0x371   : > { %6706 = vst [vmem:[#allocation2_spill] sm:$0xff] %v5148_v30  ;;  %6708 = vst [vmem:[#allocation4_spill] sm:$0xff] %v5152_v39  ;;  %v5164_v28 = vmul.f32 %v5064_v18, %v6713_v13  ;;  %v5168_v55 = vmul.f32 %v5064_v18, %v6715_v31  ;;  %v6717_v30 = vld [vmem:[#allocation27_spill] sm:$0xff]  ;;  %v6719_v39 = vld [vmem:[#allocation24_spill] sm:$0xff] }
 0x372   : > { %6710 = vst [vmem:[#allocation7_spill] sm:$0xff] %v5156_v23  ;;  %6712 = vst [vmem:[#allocation10_spill] sm:$0xff] %v5160_v57  ;;  %v5172_v25 = vmul.f32 %v5064_v18, %v6717_v30  ;;  %v5176_v50 = vmul.f32 %v5064_v18, %v6719_v39  ;;  %v6721_v23 = vld [vmem:[#allocation26_spill] sm:$0xff]  ;;  %v6723_v57 = vld [vmem:[#allocation29_spill] sm:$0xff] }
 0x373   : > { %6714 = vst [vmem:[#allocation6_spill] sm:$0xff] %v5164_v28  ;;  %6716 = vst [vmem:[#allocation8_spill] sm:$0xff] %v5168_v55  ;;  %v5180_v10 = vmul.f32 %v5064_v18, %v6721_v23  ;;  %v5184_v13 = vmul.f32 %v5064_v18, %v6723_v57  ;;  %v6725_v28 = vld [vmem:[#allocation31_spill] sm:$0xff]  ;;  %v6727_v55 = vld [vmem:[#allocation28_spill] sm:$0xff] }
 0x374   : > { %6718 = vst [vmem:[#allocation13_spill] sm:$0xff] %v5172_v25  ;;  %6720 = vst [vmem:[#allocation15_spill] sm:$0xff] %v5176_v50  ;;  %v5188_v31 = vmul.f32 %v5064_v18, %v6725_v28  ;;  %v5192_v30 = vmul.f32 %v5064_v18, %v6727_v55  ;;  %v6729_v25 = vld [vmem:[#allocation30_spill] sm:$0xff]  ;;  %v6731_v50 = vld [vmem:[#allocation33_spill] sm:$0xff] }
 0x375   : > { %6722 = vst [vmem:[#allocation12_spill] sm:$0xff] %v5180_v10  ;;  %6724 = vst [vmem:[#allocation14_spill] sm:$0xff] %v5184_v13  ;;  %v5196_v39 = vmul.f32 %v5064_v18, %v6729_v25  ;;  %v5200_v23 = vmul.f32 %v5064_v18, %v6731_v50  ;;  %v6733_v10 = vld [vmem:[#allocation35_spill] sm:$0xff]  ;;  %v6735_v13 = vld [vmem:[#allocation32_spill] sm:$0xff] }
 0x376   : > { %6726 = vst [vmem:[#allocation17_spill] sm:$0xff] %v5188_v31  ;;  %6728 = vst [vmem:[#allocation19_spill] sm:$0xff] %v5192_v30  ;;  %v5204_v57 = vmul.f32 %v5064_v18, %v6733_v10  ;;  %v5208_v28 = vmul.f32 %v5064_v18, %v6735_v13  ;;  %v6737_v31 = vld [vmem:[#allocation34_spill] sm:$0xff]  ;;  %v6739_v30 = vld [vmem:[#allocation37_spill] sm:$0xff] }
 0x377   : > { %6730 = vst [vmem:[#allocation16_spill] sm:$0xff] %v5196_v39  ;;  %6732 = vst [vmem:[#allocation18_spill] sm:$0xff] %v5200_v23  ;;  %v5212_v55 = vmul.f32 %v5064_v18, %v6737_v31  ;;  %v5216_v25 = vmul.f32 %v5064_v18, %v6739_v30  ;;  %v6741_v39 = vld [vmem:[#allocation39_spill] sm:$0xff]  ;;  %v6743_v23 = vld [vmem:[#allocation36_spill] sm:$0xff] }
 0x378   : > { %6734 = vst [vmem:[#allocation21_spill] sm:$0xff] %v5204_v57  ;;  %6736 = vst [vmem:[#allocation23_spill] sm:$0xff] %v5208_v28  ;;  %v5220_v50 = vmul.f32 %v5064_v18, %v6741_v39  ;;  %v5224_v10 = vmul.f32 %v5064_v18, %v6743_v23  ;;  %v6745_v57 = vld [vmem:[#allocation38_spill] sm:$0xff]  ;;  %v6747_v28 = vld [vmem:[#allocation41_spill] sm:$0xff] }
 0x379   : > { %6738 = vst [vmem:[#allocation20_spill] sm:$0xff] %v5212_v55  ;;  %6740 = vst [vmem:[#allocation22_spill] sm:$0xff] %v5216_v25  ;;  %v5228_v13 = vmul.f32 %v5064_v18, %v6745_v57  ;;  %v5232_v31 = vmul.f32 %v5064_v18, %v6747_v28  ;;  %v6749_v55 = vld [vmem:[#allocation43_spill] sm:$0xff]  ;;  %v6751_v25 = vld [vmem:[#allocation40_spill] sm:$0xff] }
 0x37a   : > { %6742 = vst [vmem:[#allocation25_spill] sm:$0xff] %v5220_v50  ;;  %6744 = vst [vmem:[#allocation27_spill] sm:$0xff] %v5224_v10  ;;  %v5236_v30 = vmul.f32 %v5064_v18, %v6749_v55  ;;  %v5240_v39 = vmul.f32 %v5064_v18, %v6751_v25  ;;  %v6753_v50 = vld [vmem:[#allocation42_spill] sm:$0xff]  ;;  %v6755_v10 = vld [vmem:[#allocation45_spill] sm:$0xff] }
 0x37b   : > { %6746 = vst [vmem:[#allocation24_spill] sm:$0xff] %v5228_v13  ;;  %6748 = vst [vmem:[#allocation26_spill] sm:$0xff] %v5232_v31  ;;  %v5244_v23 = vmul.f32 %v5064_v18, %v6753_v50  ;;  %v5248_v57 = vmul.f32 %v5064_v18, %v6755_v10  ;;  %v6757_v13 = vld [vmem:[#allocation48_spill] sm:$0xff] }
 0x37c   : > { %6750 = vst [vmem:[#allocation29_spill] sm:$0xff] %v5236_v30  ;;  %6752 = vst [vmem:[#allocation31_spill] sm:$0xff] %v5240_v39  ;;  %v5252_v28 = vmul.f32 %v5064_v18, %v6757_v13  ;;  %v6759_v31 = vld [vmem:[#allocation44_spill] sm:$0xff]  ;;  %v6761_v30 = vld [vmem:[#allocation47_spill] sm:$0xff] }
 0x37d   : > { %6754 = vst [vmem:[#allocation28_spill] sm:$0xff] %v5244_v23  ;;  %6756 = vst [vmem:[#allocation30_spill] sm:$0xff] %v5248_v57  ;;  %v5256_v55 = vmul.f32 %v5064_v18, %v6759_v31  ;;  %v5260_v25 = vmul.f32 %v5064_v18, %v6761_v30  ;;  %v6763_v39 = vld [vmem:[#allocation51_spill] sm:$0xff]  ;;  %v6765_v57 = vld [vmem:[#allocation50_spill] sm:$0xff] }
 0x37e   : > { %6758 = vst [vmem:[#allocation33_spill] sm:$0xff] %v5252_v28  ;;  %v5264_v50 = vmul.f32 %v5064_v18, %v6763_v39  ;;  %v6764_v23 = vld [vmem:[#allocation55_spill] sm:$0xff]  ;;  %v5272_v13 = vmul.f32 %v5064_v18, %v6765_v57  ;;  %v6766_v28 = vld [vmem:[#allocation53_spill] sm:$0xff]  ;;  %v5292_v57 = vmul.f32 %v5064_v18, %v6639_v38  ;;  %v5312_v38 = vmul.f32 %v5064_v18, %v4542_v24 }
 0x37f   : > { %6760 = vst [vmem:[#allocation35_spill] sm:$0xff] %v5256_v55  ;;  %6762 = vst [vmem:[#allocation32_spill] sm:$0xff] %v5260_v25  ;;  %v5268_v10 = vmul.f32 %v5064_v18, %v6764_v23  ;;  %v5276_v31 = vmul.f32 %v5064_v18, %v6766_v28  ;;  %v6767_v55 = vld [vmem:[#allocation59_spill] sm:$0xff]  ;;  %v6768_v25 = vld [vmem:[#allocation62_spill] sm:$0xff]  ;;  %v5288_v23 = vmul.f32 %v5064_v18, %v6638_v27 }
 0x380   : > { %v5280_v30 = vmul.f32 %v5064_v18, %v6767_v55  ;;  %v5284_v39 = vmul.f32 %v5064_v18, %v6768_v25  ;;  %v5296_v28 = vmul.f32 %v5064_v18, %v6640_v40  ;;  %v5300_v55 = vmul.f32 %v5064_v18, %v6641_v45 }
 0x381   : > { %v5304_v25 = vmul.f32 %v5064_v18, %v6642_v0  ;;  %v5308_v27 = vmul.f32 %v5064_v18, %v4538_v16  ;;  %v5316_v40 = vmul.f32 %v5064_v18, %v4546_v33  ;;  %v5320_v45 = vmul.f32 %v5064_v18, %v4550_v62  ;;  %v6880_v43 = vld [vmem:[#allocation25_spill] sm:$0xff] }
 0x382   : > { %v5324_v0 = vmul.f32 %v5064_v18, %v4554_v19  ;;  %v5328_v16 = vmul.f32 %v5064_v18, %v4558_v20  ;;  %v5332_v24 = vmul.f32 %v5064_v18, %v4562_v8  ;;  %v5336_v33 = vmul.f32 %v5064_v18, %v4566_v52 }
 0x383   : > { %v5340_v62 = vmul.f32 %v5064_v18, %v4570_v49  ;;  %v5344_v19 = vmul.f32 %v5064_v18, %v4574_v9  ;;  %v5348_v20 = vmul.f32 %v5064_v18, %v4578_v5  ;;  %v5352_v8 = vmul.f32 %v5064_v18, %v4582_v17 }
 0x384   : > { %v5356_v52 = vmul.f32 %v5064_v18, %v4586_v22  ;;  %v5360_v49 = vmul.f32 %v5064_v18, %v4590_v32  ;;  %v5364_v9 = vmul.f32 %v5064_v18, %v4594_v36  ;;  %v5368_v5 = vmul.f32 %v5064_v18, %v4598_v29  ;;  %v6886_v37 = vld [vmem:[#allocation28_spill] sm:$0xff]  ;;  %v6887_v63 = vld [vmem:[#allocation30_spill] sm:$0xff] }
 0x385   : > { %v5372_v17 = vmul.f32 %v5064_v18, %v4602_v34  ;;  %v5376_v22 = vmul.f32 %v5064_v18, %v4606_v44  ;;  %v5380_v32 = vmul.f32 %v5064_v18, %v4610_v48  ;;  %v5384_v36 = vmul.f32 %v5064_v18, %v4614_v41  ;;  %v6888_v61 = vld [vmem:[#allocation33_spill] sm:$0xff] }
 0x386   : > { %6769 = vst [vmem:[#allocation34_spill] sm:$0xff] %v5364_v9  ;;  %6770 = vst [vmem:[#allocation37_spill] sm:$0xff] %v5368_v5  ;;  %v5388_v29 = vmul.f32 %v5064_v18, %v4618_v46  ;;  %v5392_v34 = vmul.f32 %v5064_v18, %v4622_v56  ;;  %v5396_v44 = vmul.f32 %v5064_v18, %v4626_v60  ;;  %v6889_v42 = vld [vmem:[#allocation35_spill] sm:$0xff]  ;;  %v6890_v2 = vld [vmem:[#allocation32_spill] sm:$0xff] }
 0x387   : > { %6771 = vst [vmem:[#allocation39_spill] sm:$0xff] %v5372_v17  ;;  %6772 = vst [vmem:[#allocation36_spill] sm:$0xff] %v5376_v22  ;;  %v5400_v48 = vmul.f32 %v5064_v18, %v4630_v53  ;;  %v5404_v41 = vmul.f32 %v5064_v18, %v4634_v58  ;;  %v5408_v46 = vmul.f32 %v5064_v18, %v4638_v4  ;;  %v6955_v22 = vld [vmem:[#allocation67_spill] sm:$0xff]  ;;  %v6957_v17 = vld [vmem:[#allocation70_spill] sm:$0xff] }
 0x388   : > { %6773 = vst [vmem:[#allocation38_spill] sm:$0xff] %v5380_v32  ;;  %6774 = vst [vmem:[#allocation41_spill] sm:$0xff] %v5384_v36  ;;  %v5412_v56 = vmul.f32 %v5064_v18, %v4642_v12  ;;  %v5416_v60 = vmul.f32 %v5064_v18, %v4646_v1  ;;  %v5420_v53 = vmul.f32 %v5064_v18, %v4650_v6  ;;  %v6939_v36 = vld [vmem:[#allocation11_spill] sm:$0xff] }
 0x389   : > { %6775 = vst [vmem:[#allocation43_spill] sm:$0xff] %v5388_v29  ;;  %6776 = vst [vmem:[#allocation40_spill] sm:$0xff] %v5392_v34  ;;  %v5424_v58 = vmul.f32 %v5064_v18, %v4654_v35  ;;  %v5428_v4 = vmul.f32 %v5064_v18, %v4658_v47  ;;  %v6941_v29 = vld [vmem:[#allocation46_spill] sm:$0xff] }
 0x38a   : > { %6777 = vst [vmem:[#allocation42_spill] sm:$0xff] %v5400_v48  ;;  %6778 = vst [vmem:[#allocation45_spill] sm:$0xff] %v5408_v46  ;;  %v6784_v46 = vld [vmem:[#allocation68_spill] sm:$0xff]  ;;  %v6942_v48 = vmax.f32 %v6941_v29, 0.0  ;;  %v6956_v29 = vmax.f32 %v6955_v22, 0.0 }
 0x38b   : > { %6779 = vst [vmem:[#allocation48_spill] sm:$0xff] %v5412_v56  ;;  %6780 = vst [vmem:[#allocation44_spill] sm:$0xff] %v5416_v60  ;;  %v5432_v12 = vmul.f32 %v5064_v18, %v6784_v46  ;;  %v6786_v56 = vld [vmem:[#allocation73_spill] sm:$0xff] }
 0x38c   : > { %6781 = vst [vmem:[#allocation47_spill] sm:$0xff] %v5420_v53  ;;  %6782 = vst [vmem:[#allocation51_spill] sm:$0xff] %v5424_v58  ;;  %v5436_v1 = vmul.f32 %v5064_v18, %v6786_v56  ;;  %v6788_v60 = vld [vmem:[#allocation77_spill] sm:$0xff]  ;;  %v6790_v53 = vld [vmem:[#allocation72_spill] sm:$0xff] }
 0x38d   : > { %6783 = vst [vmem:[#allocation55_spill] sm:$0xff] %v5428_v4  ;;  %6785 = vst [vmem:[#allocation50_spill] sm:$0xff] %v5432_v12  ;;  %v5440_v6 = vmul.f32 %v5064_v18, %v6788_v60  ;;  %v5444_v35 = vmul.f32 %v5064_v18, %v6790_v53  ;;  %v6792_v58 = vld [vmem:[#allocation75_spill] sm:$0xff]  ;;  %v6794_v4 = vld [vmem:[#allocation81_spill] sm:$0xff]  ;;  %v5464_v53 = vmul.f32 %v5064_v18, %v6646_v11 }
 0x38e   : > { %6787 = vst [vmem:[#allocation53_spill] sm:$0xff] %v5436_v1  ;;  %v5448_v47 = vmul.f32 %v5064_v18, %v6792_v58  ;;  %v5452_v46 = vmul.f32 %v5064_v18, %v6794_v4  ;;  %v6796_v12 = vld [vmem:[#allocation85_spill] sm:$0xff]  ;;  %v6798_v1 = vld [vmem:[#allocation80_spill] sm:$0xff]  ;;  %v5472_v4 = vmul.f32 %v5064_v18, %v6648_v21  ;;  %v5484_v11 = vmul.f32 %v5064_v18, %v4714_v59 }
 0x38f   : > { %6789 = vst [vmem:[#allocation59_spill] sm:$0xff] %v5440_v6  ;;  %6791 = vst [vmem:[#allocation62_spill] sm:$0xff] %v5444_v35  ;;  %v5456_v56 = vmul.f32 %v5064_v18, %v6796_v12  ;;  %v5460_v60 = vmul.f32 %v5064_v18, %v6798_v1  ;;  %v6801_v35 = vld [vmem:[#allocation9_spill] sm:$0xff]  ;;  %v5476_v12 = vmul.f32 %v5064_v18, %v6649_v26 }
 0x390   : > { %6793 = vst [vmem:[#allocation68_spill] sm:$0xff] %v5448_v47  ;;  %6795 = vst [vmem:[#allocation73_spill] sm:$0xff] %v5452_v46  ;;  %v5468_v58 = vmul.f32 %v5064_v18, %v6801_v35  ;;  %v5480_v1 = vmul.f32 %v5064_v18, %v6650_v14  ;;  %v5488_v35 = vmul.f32 %v5064_v18, %v6651_v15  ;;  %v6940_v46 = vmax.f32 %v6939_v36, 0.0 }
 0x391   : > { %6797 = vst [vmem:[#allocation77_spill] sm:$0xff] %v5456_v56  ;;  %6799 = vst [vmem:[#allocation72_spill] sm:$0xff] %v5460_v60  ;;  %v5508_v15 = vmul.f32 %v5064_v18, %v4738_v54  ;;  %v6891_v9 = vld [vmem:[#allocation45_spill] sm:$0xff]  ;;  %v6931_v60 = vld [vmem:[#allocation66_spill] sm:$0xff] }
 0x392   : > { %6800 = vst [vmem:[#allocation75_spill] sm:$0xff] %v5464_v53  ;;  %6802 = vst [vmem:[#allocation81_spill] sm:$0xff] %v5468_v58  ;;  %v6808_v58 = vld [vmem:[#allocation57_spill] sm:$0xff]  ;;  %v6892_v5 = vld [vmem:[#allocation48_spill] sm:$0xff]  ;;  %v6932_v53 = vmax.f32 %v6931_v60, 0.0 }
 0x393   : > { %6803 = vst [vmem:[#allocation85_spill] sm:$0xff] %v5472_v4  ;;  %6804 = vst [vmem:[#allocation80_spill] sm:$0xff] %v5476_v12  ;;  %v5492_v21 = vmul.f32 %v5064_v18, %v6808_v58  ;;  %v6810_v4 = vld [vmem:[#allocation52_spill] sm:$0xff]  ;;  %v5512_v58 = vmul.f32 %v5064_v18, %v6652_v7 }
 0x394   : > { %6805 = vst [vmem:[#allocation9_spill] sm:$0xff] %v5480_v1  ;;  %6806 = vst [vmem:[#allocation97_spill] sm:$0xff] %v5484_v11  ;;  %v5496_v26 = vmul.f32 %v5064_v18, %v6810_v4  ;;  %v6812_v12 = vld [vmem:[#allocation56_spill] sm:$0xff]  ;;  %v6814_v1 = vld [vmem:[#allocation61_spill] sm:$0xff] }
 0x395   : > { %6807 = vst [vmem:[#allocation98_spill] sm:$0xff] %v5488_v35  ;;  %6809 = vst [vmem:[#allocation57_spill] sm:$0xff] %v5492_v21  ;;  %v5500_v14 = vmul.f32 %v5064_v18, %v6812_v12  ;;  %v5504_v59 = vmul.f32 %v5064_v18, %v6814_v1  ;;  %v6818_v21 = vld [vmem:[#allocation63_spill] sm:$0xff]  ;;  %v6927_v11 = vld [vmem:[#allocation58_spill] sm:$0xff] }
 0x396   : > { %6811 = vst [vmem:[#allocation52_spill] sm:$0xff] %v5496_v26  ;;  %6816 = vst [vmem:[#allocation99_spill] sm:$0xff] %v5508_v15  ;;  %v5516_v4 = vmul.f32 %v5064_v18, %v6818_v21  ;;  %v6820_v26 = vld [vmem:[#allocation86_spill] sm:$0xff]  ;;  %v6826_v15 = vld [vmem:[#allocation89_spill] sm:$0xff]  ;;  %v6928_v34 = vmax.f32 %v6927_v11, 0.0  ;;  %v3102_v11 = vpack.c.bf16 %v6942_v48, %v6940_v46  ;;  %v6958_v48 = vmax.f32 %v6957_v17, 0.0 }
 0x397   : > { %6813 = vst [vmem:[#allocation56_spill] sm:$0xff] %v5500_v14  ;;  %6815 = vst [vmem:[#allocation61_spill] sm:$0xff] %v5504_v59  ;;  %v5520_v12 = vmul.f32 %v5064_v18, %v6820_v26  ;;  %v6822_v14 = vld [vmem:[#allocation87_spill] sm:$0xff]  ;;  %v6824_v59 = vld [vmem:[#allocation88_spill] sm:$0xff]  ;;  %v5532_v7 = vmul.f32 %v5064_v18, %v6826_v15 }
 0x398   : > { %6817 = vst [vmem:[#allocation100_spill] sm:$0xff] %v5512_v58  ;;  %6819 = vst [vmem:[#allocation63_spill] sm:$0xff] %v5516_v4  ;;  %v5524_v1 = vmul.f32 %v5064_v18, %v6822_v14  ;;  %v5528_v54 = vmul.f32 %v5064_v18, %v6824_v59  ;;  %v6828_v58 = vld [vmem:[#allocation79_spill] sm:$0xff]  ;;  %v6830_v4 = vld [vmem:[#allocation74_spill] sm:$0xff]  ;;  %v3122_v46 = vpack.c.bf16 %v6958_v48, %v6956_v29 }
 0x399   : > { %6821 = vst [vmem:[#allocation86_spill] sm:$0xff] %v5520_v12  ;;  %6827 = vst [vmem:[#allocation89_spill] sm:$0xff] %v5532_v7  ;;  %v5536_v21 = vmul.f32 %v5064_v18, %v6828_v58  ;;  %v5540_v26 = vmul.f32 %v5064_v18, %v6830_v4  ;;  %v6832_v12 = vld [vmem:[#allocation78_spill] sm:$0xff]  ;;  %v6838_v7 = vld [vmem:[#allocation91_spill] sm:$0xff] }
 0x39a   : > { %6823 = vst [vmem:[#allocation87_spill] sm:$0xff] %v5524_v1  ;;  %6825 = vst [vmem:[#allocation88_spill] sm:$0xff] %v5528_v54  ;;  %v5544_v14 = vmul.f32 %v5064_v18, %v6832_v12  ;;  %v6834_v1 = vld [vmem:[#allocation84_spill] sm:$0xff]  ;;  %v6836_v54 = vld [vmem:[#allocation90_spill] sm:$0xff]  ;;  %v5556_v58 = vmul.f32 %v5064_v18, %v6838_v7  ;;  %v5576_v7 = vmul.f32 %v5064_v18, %v6664_v51 }
 0x39b   : > { %6829 = vst [vmem:[#allocation79_spill] sm:$0xff] %v5536_v21  ;;  %6831 = vst [vmem:[#allocation74_spill] sm:$0xff] %v5540_v26  ;;  %v5548_v59 = vmul.f32 %v5064_v18, %v6834_v1  ;;  %v5552_v15 = vmul.f32 %v5064_v18, %v6836_v54  ;;  %v6840_v21 = vld [vmem:[#allocation92_spill] sm:$0xff]  ;;  %v6842_v26 = vld [vmem:[#allocation93_spill] sm:$0xff]  ;;  %v5572_v54 = vmul.f32 %v5064_v18, %v6663_v3 }
 0x39c   : > { %6833 = vst [vmem:[#allocation78_spill] sm:$0xff] %v5544_v14  ;;  %6839 = vst [vmem:[#allocation91_spill] sm:$0xff] %v5556_v58  ;;  %v5560_v4 = vmul.f32 %v5064_v18, %v6840_v21  ;;  %v5564_v12 = vmul.f32 %v5064_v18, %v6842_v26  ;;  %v6844_v14 = vld [vmem:[#allocation94_spill] sm:$0xff]  ;;  %v6882_v3 = vld [vmem:[#allocation24_spill] sm:$0xff] }
 0x39d   : > { %6835 = vst [vmem:[#allocation84_spill] sm:$0xff] %v5548_v59  ;;  %6837 = vst [vmem:[#allocation90_spill] sm:$0xff] %v5552_v15  ;;  %v5568_v1 = vmul.f32 %v5064_v18, %v6844_v14  ;;  %v6883_v59 = vld [vmem:[#allocation26_spill] sm:$0xff]  ;;  %v6884_v18 = vld [vmem:[#allocation29_spill] sm:$0xff] }
 0x39e   : > { %6841 = vst [vmem:[#allocation92_spill] sm:$0xff] %v5560_v4  ;;  %6843 = vst [vmem:[#allocation93_spill] sm:$0xff] %v5564_v12  ;;  %v6929_v4 = vld [vmem:[#allocation60_spill] sm:$0xff]  ;;  %v6933_v35 = vld [vmem:[#allocation69_spill] sm:$0xff] }
 0x39f   : > { %6845 = vst [vmem:[#allocation94_spill] sm:$0xff] %v5568_v1  ;;  %6846 = vst [vmem:[#allocation101_spill] sm:$0xff] %v5572_v54  ;;  %v6881_v1 = vld [vmem:[#allocation27_spill] sm:$0xff]  ;;  %v6930_v21 = vmax.f32 %v6929_v4, 0.0  ;;  %v6934_v54 = vmax.f32 %v6933_v35, 0.0  ;;  %v6935_v14 = vld [vmem:[#allocation65_spill] sm:$0xff] }
 0x3a0   : > { %6847 = vst [vmem:[#allocation102_spill] sm:$0xff] %v5576_v7  ;;  %v6885_v7 = vld [vmem:[#allocation31_spill] sm:$0xff]  ;;  %v6936_v12 = vmax.f32 %v6935_v14, 0.0  ;;  %v6943_v4 = vld [vmem:[#allocation49_spill] sm:$0xff]  ;;  %v6947_v56 = vld [vmem:[#allocation64_spill] sm:$0xff] }
 0x3a1   : > { %v3087_v58 = vpack.c.bf16 %v6930_v21, %v6928_v34  ;;  %v3092_v15 = vpack.c.bf16 %v6934_v54, %v6932_v53  ;;  %v6937_v51 = vld [vmem:[#allocation83_spill] sm:$0xff]  ;;  %v6944_v34 = vmax.f32 %v6943_v4, 0.0  ;;  %v6945_v21 = vld [vmem:[#allocation54_spill] sm:$0xff]  ;;  %v6948_v53 = vmax.f32 %v6947_v56, 0.0  ;;  %3406 = vst [vmem:[%s5707_s5 + $0x18] sm:$0xff] %v3102_v11   ;;  %v6959_v56 = vld [vmem:[#allocation76_spill] sm:$0xff] }
 0x3a2   : > { %v6938_v47 = vmax.f32 %v6937_v51, 0.0  ;;  %v6946_v60 = vmax.f32 %v6945_v21, 0.0  ;;  %v6949_v54 = vld [vmem:[#allocation95_spill] sm:$0xff]  ;;  %v6951_v51 = vld [vmem:[#allocation96_spill] sm:$0xff]  ;;  %v6960_v4 = vmax.f32 %v6959_v56, 0.0  ;;  %v6967_v17 = vld [vmem:[#allocation2_spill] sm:$0xff] }
 0x3a3   : > { %v6950_v14 = vmax.f32 %v6949_v54, 0.0  ;;  %v6952_v6 = vmax.f32 %v6951_v51, 0.0  ;;  %3088 = vst [vmem:[%s5707_s5] sm:$0xff] %v3087_v58   ;;  %3404 = vst [vmem:[%s5707_s5 + $0x8] sm:$0xff] %v3092_v15   ;;  %v6965_v54 = vld [vmem:[#allocation5_spill] sm:$0xff]  ;;  %v6968_v51 = vmax.f32 %v6967_v17, 0.0  ;;  %v6969_v58 = vld [vmem:[#allocation4_spill] sm:$0xff] }
 0x3a4   : > { %v3097_v32 = vpack.c.bf16 %v6938_v47, %v6936_v12  ;;  %v3107_v35 = vpack.c.bf16 %v6946_v60, %v6944_v34  ;;  %v6953_v47 = vld [vmem:[#allocation71_spill] sm:$0xff]  ;;  %v6961_v34 = vld [vmem:[#allocation82_spill] sm:$0xff]  ;;  %v6966_v22 = vmax.f32 %v6965_v54, 0.0  ;;  %3410 = vst [vmem:[%s5707_s5 + $0x38] sm:$0xff] %v3122_v46  }
 0x3a5   : > { %v3112_v26 = vpack.c.bf16 %v6950_v14, %v6948_v53  ;;  %v6954_v12 = vmax.f32 %v6953_v47, 0.0  ;;  %v6962_v21 = vmax.f32 %v6961_v34, 0.0  ;;  %v6963_v53 = vld [vmem:[#allocation3_spill] sm:$0xff]  ;;  %v6970_v47 = vmax.f32 %v6969_v58, 0.0  ;;  %v6973_v29 = vld [vmem:[#allocation10_spill] sm:$0xff]  ;;  %v6977_v34 = vld [vmem:[#allocation8_spill] sm:$0xff] }
 0x3a6   : > { %3405 = vst [vmem:[%s5707_s5 + $0x10] sm:$0xff] %v3097_v32   ;;  %v6974_v11 = vmax.f32 %v6973_v29, 0.0  ;;  %3407 = vst [vmem:[%s5707_s5 + $0x20] sm:$0xff] %v3107_v35   ;;  %v6975_v56 = vld [vmem:[#allocation6_spill] sm:$0xff]  ;;  %v6983_v58 = vld [vmem:[#allocation12_spill] sm:$0xff] }
 0x3a7   : > { %v3117_v36 = vpack.c.bf16 %v6954_v12, %v6952_v6  ;;  %v3127_v60 = vpack.c.bf16 %v6962_v21, %v6960_v4  ;;  %v6964_v6 = vmax.f32 %v6963_v53, 0.0  ;;  %v3137_v15 = vpack.c.bf16 %v6970_v47, %v6968_v51  ;;  %v6971_v12 = vld [vmem:[#allocation7_spill] sm:$0xff]  ;;  %3408 = vst [vmem:[%s5707_s5 + $0x28] sm:$0xff] %v3112_v26   ;;  %v6985_v35 = vld [vmem:[#allocation14_spill] sm:$0xff] }
 0x3a8   : > { %v6972_v32 = vmax.f32 %v6971_v12, 0.0  ;;  %v6976_v4 = vmax.f32 %v6975_v56, 0.0  ;;  %v6978_v21 = vmax.f32 %v6977_v34, 0.0  ;;  %v6984_v47 = vmax.f32 %v6983_v58, 0.0  ;;  %v6989_v29 = vld [vmem:[#allocation19_spill] sm:$0xff]  ;;  %v6991_v56 = vld [vmem:[#allocation16_spill] sm:$0xff] }
 0x3a9   : > { %v3132_v14 = vpack.c.bf16 %v6966_v22, %v6964_v6  ;;  %3409 = vst [vmem:[%s5707_s5 + $0x30] sm:$0xff] %v3117_v36   ;;  %v6979_v6 = vld [vmem:[#allocation13_spill] sm:$0xff]  ;;  %v6981_v22 = vld [vmem:[#allocation15_spill] sm:$0xff]  ;;  %v6986_v12 = vmax.f32 %v6985_v35, 0.0  ;;  %v6990_v46 = vmax.f32 %v6989_v29, 0.0  ;;  %3411 = vst [vmem:[%s5707_s5 + $0x40] sm:$0xff] %v3127_v60  }
 0x3aa   : > { %v3142_v48 = vpack.c.bf16 %v6974_v11, %v6972_v32  ;;  %v3147_v53 = vpack.c.bf16 %v6978_v21, %v6976_v4  ;;  %v6980_v54 = vmax.f32 %v6979_v6, 0.0  ;;  %v6982_v17 = vmax.f32 %v6981_v22, 0.0  ;;  %v6987_v32 = vld [vmem:[#allocation17_spill] sm:$0xff]  ;;  %3413 = vst [vmem:[%s5707_s5 + $0x50] sm:$0xff] %v3137_v15   ;;  %v6993_v34 = vld [vmem:[#allocation18_spill] sm:$0xff]  ;;  %v6999_v35 = vld [vmem:[#allocation20_spill] sm:$0xff] }
 0x3ab   : > { %v3157_v26 = vpack.c.bf16 %v6986_v12, %v6984_v47  ;;  %v6988_v36 = vmax.f32 %v6987_v32, 0.0  ;;  %3412 = vst [vmem:[%s5707_s5 + $0x48] sm:$0xff] %v3132_v14   ;;  %v6992_v4 = vmax.f32 %v6991_v56, 0.0  ;;  %v6994_v21 = vmax.f32 %v6993_v34, 0.0  ;;  %v7001_v60 = vld [vmem:[#allocation22_spill] sm:$0xff] }
 0x3ac   : > { %v3152_v51 = vpack.c.bf16 %v6982_v17, %v6980_v54  ;;  %3414 = vst [vmem:[%s5707_s5 + $0x58] sm:$0xff] %v3142_v48   ;;  %v6995_v54 = vld [vmem:[#allocation21_spill] sm:$0xff]  ;;  %v6997_v17 = vld [vmem:[#allocation23_spill] sm:$0xff]  ;;  %v7000_v12 = vmax.f32 %v6999_v35, 0.0  ;;  %v7002_v32 = vmax.f32 %v7001_v60, 0.0  ;;  %v7003_v15 = vmax.f32 %v6880_v43, 0.0 }
 0x3ad   : > { %v3162_v11 = vpack.c.bf16 %v6990_v46, %v6988_v36  ;;  %v3167_v6 = vpack.c.bf16 %v6994_v21, %v6992_v4  ;;  %v6996_v22 = vmax.f32 %v6995_v54, 0.0  ;;  %v6998_v58 = vmax.f32 %v6997_v17, 0.0  ;;  %3415 = vst [vmem:[%s5707_s5 + $0x60] sm:$0xff] %v3147_v53   ;;  %3417 = vst [vmem:[%s5707_s5 + $0x70] sm:$0xff] %v3157_v26  }
 0x3ae   : > { %v3177_v14 = vpack.c.bf16 %v7002_v32, %v7000_v12  ;;  %v7004_v48 = vmax.f32 %v6881_v1, 0.0  ;;  %3416 = vst [vmem:[%s5707_s5 + $0x68] sm:$0xff] %v3152_v51   ;;  %v7005_v29 = vmax.f32 %v6882_v3, 0.0  ;;  %v7006_v46 = vmax.f32 %v6883_v59, 0.0 }
 0x3af   : > { %v3172_v47 = vpack.c.bf16 %v6998_v58, %v6996_v22  ;;  %3418 = vst [vmem:[%s5707_s5 + $0x78] sm:$0xff] %v3162_v11   ;;  %v7007_v4 = vmax.f32 %v6884_v18, 0.0  ;;  %v7008_v43 = vmax.f32 %v6885_v7, 0.0  ;;  %v7009_v1 = vmax.f32 %v6886_v37, 0.0  ;;  %3419 = vst [vmem:[%s5707_s5 + $0x80] sm:$0xff] %v3167_v6  }
 0x3b0   : > { %v3182_v36 = vpack.c.bf16 %v7004_v48, %v7003_v15  ;;  %v3187_v56 = vpack.c.bf16 %v7006_v46, %v7005_v29  ;;  %v7010_v53 = vmax.f32 %v6887_v63, 0.0  ;;  %v7011_v26 = vmax.f32 %v6888_v61, 0.0  ;;  %3421 = vst [vmem:[%s5707_s5 + $0x90] sm:$0xff] %v3177_v14   ;;  %v7045_v29 = vld [vmem:[#allocation36_spill] sm:$0xff] }
 0x3b1   : > { %v3192_v34 = vpack.c.bf16 %v7008_v43, %v7007_v4  ;;  %v7012_v11 = vmax.f32 %v6889_v42, 0.0  ;;  %3420 = vst [vmem:[%s5707_s5 + $0x88] sm:$0xff] %v3172_v47   ;;  %v7013_v59 = vmax.f32 %v6890_v2, 0.0  ;;  %v7014_v7 = vmax.f32 %v5264_v50, 0.0  ;;  %v7047_v4 = vld [vmem:[#allocation38_spill] sm:$0xff] }
 0x3b2   : > { %v3197_v51 = vpack.c.bf16 %v7010_v53, %v7009_v1  ;;  %3422 = vst [vmem:[%s5707_s5 + $0x98] sm:$0xff] %v3182_v36   ;;  %v7015_v63 = vmax.f32 %v5268_v10, 0.0  ;;  %v7016_v61 = vmax.f32 %v5272_v13, 0.0  ;;  %v7017_v42 = vmax.f32 %v5276_v31, 0.0  ;;  %3423 = vst [vmem:[%s5707_s5 + $0xa0] sm:$0xff] %v3187_v56  }
 0x3b3   : > { %v3202_v21 = vpack.c.bf16 %v7012_v11, %v7011_v26  ;;  %v3207_v37 = vpack.c.bf16 %v7014_v7, %v7013_v59  ;;  %v7018_v18 = vmax.f32 %v5280_v30, 0.0  ;;  %v7019_v54 = vmax.f32 %v5284_v39, 0.0  ;;  %3424 = vst [vmem:[%s5707_s5 + $0xa8] sm:$0xff] %v3192_v34   ;;  %v7049_v34 = vld [vmem:[#allocation41_spill] sm:$0xff]  ;;  %v7056_v59 = vld [vmem:[#allocation42_spill] sm:$0xff] }
 0x3b4   : > { %v3212_v3 = vpack.c.bf16 %v7016_v61, %v7015_v63  ;;  %v7020_v22 = vmax.f32 %v5288_v23, 0.0  ;;  %3425 = vst [vmem:[%s5707_s5 + $0xb0] sm:$0xff] %v3197_v51   ;;  %v7021_v2 = vmax.f32 %v5292_v57, 0.0  ;;  %v7022_v50 = vmax.f32 %v5296_v28, 0.0  ;;  %v7053_v51 = vld [vmem:[#allocation40_spill] sm:$0xff] }
 0x3b5   : > { %v3217_v6 = vpack.c.bf16 %v7018_v18, %v7017_v42  ;;  %3426 = vst [vmem:[%s5707_s5 + $0xb8] sm:$0xff] %v3202_v21   ;;  %v7023_v13 = vmax.f32 %v5300_v55, 0.0  ;;  %v7024_v31 = vmax.f32 %v5304_v25, 0.0  ;;  %v7025_v39 = vmax.f32 %v5308_v27, 0.0  ;;  %3427 = vst [vmem:[%s5707_s5 + $0xc0] sm:$0xff] %v3207_v37   ;;  %v7061_v18 = vld [vmem:[#allocation44_spill] sm:$0xff] }
 0x3b6   : > { %v3222_v17 = vpack.c.bf16 %v7020_v22, %v7019_v54  ;;  %v3227_v10 = vpack.c.bf16 %v7022_v50, %v7021_v2  ;;  %v7026_v23 = vmax.f32 %v5312_v38, 0.0  ;;  %v7027_v47 = vmax.f32 %v5316_v40, 0.0  ;;  %3428 = vst [vmem:[%s5707_s5 + $0xc8] sm:$0xff] %v3212_v3  }
 0x3b7   : > { %v3232_v30 = vpack.c.bf16 %v7024_v31, %v7023_v13  ;;  %v7028_v35 = vmax.f32 %v5320_v45, 0.0  ;;  %3429 = vst [vmem:[%s5707_s5 + $0xd0] sm:$0xff] %v3217_v6   ;;  %v7029_v57 = vmax.f32 %v5324_v0, 0.0  ;;  %v7030_v28 = vmax.f32 %v5328_v16, 0.0  ;;  %v7071_v31 = vld [vmem:[#allocation53_spill] sm:$0xff] }
 0x3b8   : > { %v3237_v58 = vpack.c.bf16 %v7026_v23, %v7025_v39  ;;  %3430 = vst [vmem:[%s5707_s5 + $0xd8] sm:$0xff] %v3222_v17   ;;  %v7031_v25 = vmax.f32 %v5332_v24, 0.0  ;;  %v7032_v27 = vmax.f32 %v5336_v33, 0.0  ;;  %v7033_v40 = vmax.f32 %v5340_v62, 0.0  ;;  %3431 = vst [vmem:[%s5707_s5 + $0xe0] sm:$0xff] %v3227_v10   ;;  %v7039_v33 = vld [vmem:[#allocation34_spill] sm:$0xff] }
 0x3b9   : > { %v3242_v12 = vpack.c.bf16 %v7028_v35, %v7027_v47  ;;  %v3247_v55 = vpack.c.bf16 %v7030_v28, %v7029_v57  ;;  %v7034_v45 = vmax.f32 %v5344_v19, 0.0  ;;  %v7035_v32 = vmax.f32 %v5348_v20, 0.0  ;;  %3432 = vst [vmem:[%s5707_s5 + $0xe8] sm:$0xff] %v3232_v30   ;;  %v7041_v19 = vld [vmem:[#allocation37_spill] sm:$0xff]  ;;  %v7065_v17 = vld [vmem:[#allocation51_spill] sm:$0xff]  ;;  %v7069_v10 = vld [vmem:[#allocation50_spill] sm:$0xff] }
 0x3ba   : > { %v3252_v38 = vpack.c.bf16 %v7032_v27, %v7031_v25  ;;  %v7036_v14 = vmax.f32 %v5352_v8, 0.0  ;;  %3433 = vst [vmem:[%s5707_s5 + $0xf0] sm:$0xff] %v3237_v58   ;;  %v7037_v0 = vmax.f32 %v5356_v52, 0.0  ;;  %v7038_v16 = vmax.f32 %v5360_v49, 0.0  ;;  %v7043_v8 = vld [vmem:[#allocation39_spill] sm:$0xff]  ;;  %v7075_v47 = vld [vmem:[#allocation62_spill] sm:$0xff] }
 0x3bb   : > { %v3257_v60 = vpack.c.bf16 %v7034_v45, %v7033_v40  ;;  %3434 = vst [vmem:[%s5707_s5 + $0xf8] sm:$0xff] %v3242_v12   ;;  %v7040_v62 = vmax.f32 %v7039_v33, 0.0  ;;  %v7042_v20 = vmax.f32 %v7041_v19, 0.0  ;;  %v7044_v36 = vmax.f32 %v7043_v8, 0.0  ;;  %3435 = vst [vmem:[%s5707_s5 + $0x100] sm:$0xff] %v3247_v55   ;;  %v7051_v52 = vld [vmem:[#allocation43_spill] sm:$0xff] }
 0x3bc   : > { %v3262_v15 = vpack.c.bf16 %v7036_v14, %v7035_v32  ;;  %v3267_v24 = vpack.c.bf16 %v7038_v16, %v7037_v0  ;;  %v7046_v46 = vmax.f32 %v7045_v29, 0.0  ;;  %v7048_v43 = vmax.f32 %v7047_v4, 0.0  ;;  %3436 = vst [vmem:[%s5707_s5 + $0x108] sm:$0xff] %v3252_v38   ;;  %v7073_v39 = vld [vmem:[#allocation59_spill] sm:$0xff]  ;;  %v7077_v12 = vld [vmem:[#allocation68_spill] sm:$0xff]  ;;  %v7079_v55 = vld [vmem:[#allocation73_spill] sm:$0xff] }
 0x3bd   : > { %v3272_v48 = vpack.c.bf16 %v7042_v20, %v7040_v62  ;;  %v7050_v1 = vmax.f32 %v7049_v34, 0.0  ;;  %3437 = vst [vmem:[%s5707_s5 + $0x110] sm:$0xff] %v3257_v60   ;;  %v7052_v49 = vmax.f32 %v7051_v52, 0.0  ;;  %v7054_v26 = vmax.f32 %v7053_v51, 0.0  ;;  %v7081_v27 = vld [vmem:[#allocation77_spill] sm:$0xff]  ;;  %v7083_v45 = vld [vmem:[#allocation72_spill] sm:$0xff] }
 0x3be   : > { %v3277_v56 = vpack.c.bf16 %v7046_v46, %v7044_v36  ;;  %3438 = vst [vmem:[%s5707_s5 + $0x118] sm:$0xff] %v3262_v15   ;;  %v7055_v21 = vmax.f32 %v5396_v44, 0.0  ;;  %v7057_v7 = vmax.f32 %v7056_v59, 0.0  ;;  %v7058_v63 = vmax.f32 %v5404_v41, 0.0  ;;  %3439 = vst [vmem:[%s5707_s5 + $0x120] sm:$0xff] %v3267_v24   ;;  %v7063_v44 = vld [vmem:[#allocation47_spill] sm:$0xff] }
 0x3bf   : > { %v3282_v53 = vpack.c.bf16 %v7050_v1, %v7048_v43  ;;  %v3287_v11 = vpack.c.bf16 %v7054_v26, %v7052_v49  ;;  %v7059_v61 = vmax.f32 %v6891_v9, 0.0  ;;  %v7060_v42 = vmax.f32 %v6892_v5, 0.0  ;;  %3440 = vst [vmem:[%s5707_s5 + $0x128] sm:$0xff] %v3272_v48   ;;  %v7067_v9 = vld [vmem:[#allocation55_spill] sm:$0xff]  ;;  %v7087_v0 = vld [vmem:[#allocation81_spill] sm:$0xff]  ;;  %v7091_v19 = vld [vmem:[#allocation80_spill] sm:$0xff] }
 0x3c0   : > { %v3292_v37 = vpack.c.bf16 %v7057_v7, %v7055_v21  ;;  %v7062_v6 = vmax.f32 %v7061_v18, 0.0  ;;  %3441 = vst [vmem:[%s5707_s5 + $0x130] sm:$0xff] %v3277_v56   ;;  %v7064_v22 = vmax.f32 %v7063_v44, 0.0  ;;  %v7066_v2 = vmax.f32 %v7065_v17, 0.0  ;;  %v7085_v32 = vld [vmem:[#allocation75_spill] sm:$0xff]  ;;  %v7089_v24 = vld [vmem:[#allocation85_spill] sm:$0xff] }
 0x3c1   : > { %v3297_v3 = vpack.c.bf16 %v7059_v61, %v7058_v63  ;;  %3442 = vst [vmem:[%s5707_s5 + $0x138] sm:$0xff] %v3282_v53   ;;  %v7068_v50 = vmax.f32 %v7067_v9, 0.0  ;;  %v7070_v5 = vmax.f32 %v7069_v10, 0.0  ;;  %v7072_v30 = vmax.f32 %v7071_v31, 0.0  ;;  %3443 = vst [vmem:[%s5707_s5 + $0x140] sm:$0xff] %v3287_v11   ;;  %v7093_v48 = vld [vmem:[#allocation9_spill] sm:$0xff] }
 0x3c2   : > { %v3302_v54 = vpack.c.bf16 %v7062_v6, %v7060_v42  ;;  %v3307_v41 = vpack.c.bf16 %v7066_v2, %v7064_v22  ;;  %v7074_v23 = vmax.f32 %v7073_v39, 0.0  ;;  %v7076_v35 = vmax.f32 %v7075_v47, 0.0  ;;  %3444 = vst [vmem:[%s5707_s5 + $0x148] sm:$0xff] %v3292_v37   ;;  %v7095_v29 = vld [vmem:[#allocation97_spill] sm:$0xff]  ;;  %v7097_v56 = vld [vmem:[#allocation98_spill] sm:$0xff]  ;;  %v7101_v53 = vld [vmem:[#allocation52_spill] sm:$0xff] }
 0x3c3   : > { %v3312_v13 = vpack.c.bf16 %v7070_v5, %v7068_v50  ;;  %v7078_v57 = vmax.f32 %v7077_v12, 0.0  ;;  %3445 = vst [vmem:[%s5707_s5 + $0x150] sm:$0xff] %v3297_v3   ;;  %v7080_v25 = vmax.f32 %v7079_v55, 0.0  ;;  %v7082_v38 = vmax.f32 %v7081_v27, 0.0  ;;  %v7099_v34 = vld [vmem:[#allocation57_spill] sm:$0xff]  ;;  %v7103_v51 = vld [vmem:[#allocation56_spill] sm:$0xff] }
 0x3c4   : > { %v3317_v58 = vpack.c.bf16 %v7074_v23, %v7072_v30  ;;  %3446 = vst [vmem:[%s5707_s5 + $0x158] sm:$0xff] %v3302_v54   ;;  %v7084_v60 = vmax.f32 %v7083_v45, 0.0  ;;  %v7086_v14 = vmax.f32 %v7085_v32, 0.0  ;;  %v7088_v16 = vmax.f32 %v7087_v0, 0.0  ;;  %3447 = vst [vmem:[%s5707_s5 + $0x160] sm:$0xff] %v3307_v41   ;;  %v7105_v11 = vld [vmem:[#allocation61_spill] sm:$0xff] }
 0x3c5   : > { %v3322_v28 = vpack.c.bf16 %v7078_v57, %v7076_v35  ;;  %v3327_v40 = vpack.c.bf16 %v7082_v38, %v7080_v25  ;;  %v7090_v33 = vmax.f32 %v7089_v24, 0.0  ;;  %v7092_v20 = vmax.f32 %v7091_v19, 0.0  ;;  %3448 = vst [vmem:[%s5707_s5 + $0x168] sm:$0xff] %v3312_v13   ;;  %v7107_v7 = vld [vmem:[#allocation99_spill] sm:$0xff]  ;;  %v7109_v63 = vld [vmem:[#allocation100_spill] sm:$0xff]  ;;  %v7113_v6 = vld [vmem:[#allocation86_spill] sm:$0xff] }
 0x3c6   : > { %v3332_v15 = vpack.c.bf16 %v7086_v14, %v7084_v60  ;;  %v7094_v8 = vmax.f32 %v7093_v48, 0.0  ;;  %3449 = vst [vmem:[%s5707_s5 + $0x170] sm:$0xff] %v3317_v58   ;;  %v7096_v46 = vmax.f32 %v7095_v29, 0.0  ;;  %v7098_v4 = vmax.f32 %v7097_v56, 0.0  ;;  %v7111_v42 = vld [vmem:[#allocation63_spill] sm:$0xff]  ;;  %v7117_v2 = vld [vmem:[#allocation88_spill] sm:$0xff] }
 0x3c7   : > { %v3337_v62 = vpack.c.bf16 %v7090_v33, %v7088_v16  ;;  %3450 = vst [vmem:[%s5707_s5 + $0x178] sm:$0xff] %v3322_v28   ;;  %v7100_v1 = vmax.f32 %v7099_v34, 0.0  ;;  %v7102_v52 = vmax.f32 %v7101_v53, 0.0  ;;  %v7104_v26 = vmax.f32 %v7103_v51, 0.0  ;;  %3451 = vst [vmem:[%s5707_s5 + $0x180] sm:$0xff] %v3327_v40   ;;  %v7115_v22 = vld [vmem:[#allocation87_spill] sm:$0xff] }
 0x3c8   : > { %v3342_v36 = vpack.c.bf16 %v7094_v8, %v7092_v20  ;;  %v3347_v43 = vpack.c.bf16 %v7098_v4, %v7096_v46  ;;  %v7106_v21 = vmax.f32 %v7105_v11, 0.0  ;;  %v7108_v37 = vmax.f32 %v7107_v7, 0.0  ;;  %3452 = vst [vmem:[%s5707_s5 + $0x188] sm:$0xff] %v3332_v15   ;;  %v7119_v50 = vld [vmem:[#allocation89_spill] sm:$0xff]  ;;  %v7121_v5 = vld [vmem:[#allocation79_spill] sm:$0xff]  ;;  %v7123_v30 = vld [vmem:[#allocation74_spill] sm:$0xff] }
 0x3c9   : > { %v3352_v49 = vpack.c.bf16 %v7102_v52, %v7100_v1  ;;  %v7110_v61 = vmax.f32 %v7109_v63, 0.0  ;;  %3453 = vst [vmem:[%s5707_s5 + $0x190] sm:$0xff] %v3337_v62   ;;  %v7112_v18 = vmax.f32 %v7111_v42, 0.0  ;;  %v7114_v54 = vmax.f32 %v7113_v6, 0.0  ;;  %v7125_v23 = vld [vmem:[#allocation78_spill] sm:$0xff]  ;;  %v7127_v35 = vld [vmem:[#allocation84_spill] sm:$0xff] }
 0x3ca   : > { %v3357_v59 = vpack.c.bf16 %v7106_v21, %v7104_v26  ;;  %3454 = vst [vmem:[%s5707_s5 + $0x198] sm:$0xff] %v3342_v36   ;;  %v7116_v17 = vmax.f32 %v7115_v22, 0.0  ;;  %v7118_v41 = vmax.f32 %v7117_v2, 0.0  ;;  %v7120_v10 = vmax.f32 %v7119_v50, 0.0  ;;  %3455 = vst [vmem:[%s5707_s5 + $0x1a0] sm:$0xff] %v3347_v43   ;;  %v7129_v57 = vld [vmem:[#allocation90_spill] sm:$0xff] }
 0x3cb   : > { %v3362_v3 = vpack.c.bf16 %v7110_v61, %v7108_v37  ;;  %v3367_v44 = vpack.c.bf16 %v7114_v54, %v7112_v18  ;;  %v7122_v13 = vmax.f32 %v7121_v5, 0.0  ;;  %v7124_v39 = vmax.f32 %v7123_v30, 0.0  ;;  %3456 = vst [vmem:[%s5707_s5 + $0x1a8] sm:$0xff] %v3352_v49   ;;  %v7131_v25 = vld [vmem:[#allocation91_spill] sm:$0xff]  ;;  %v7133_v38 = vld [vmem:[#allocation92_spill] sm:$0xff]  ;;  %v7135_v60 = vld [vmem:[#allocation93_spill] sm:$0xff] }
 0x3cc   : > { %v3372_v9 = vpack.c.bf16 %v7118_v41, %v7116_v17  ;;  %v7126_v58 = vmax.f32 %v7125_v23, 0.0  ;;  %3457 = vst [vmem:[%s5707_s5 + $0x1b0] sm:$0xff] %v3357_v59   ;;  %v7128_v12 = vmax.f32 %v7127_v35, 0.0  ;;  %v7130_v28 = vmax.f32 %v7129_v57, 0.0  ;;  %v7137_v14 = vld [vmem:[#allocation94_spill] sm:$0xff]  ;;  %v7139_v16 = vld [vmem:[#allocation101_spill] sm:$0xff] }
 0x3cd   : > { %v3377_v31 = vpack.c.bf16 %v7122_v13, %v7120_v10  ;;  %3458 = vst [vmem:[%s5707_s5 + $0x1b8] sm:$0xff] %v3362_v3   ;;  %v7132_v27 = vmax.f32 %v7131_v25, 0.0  ;;  %v7134_v40 = vmax.f32 %v7133_v38, 0.0  ;;  %v7136_v32 = vmax.f32 %v7135_v60, 0.0  ;;  %v7141_v33 = vld [vmem:[#allocation102_spill] sm:$0xff]  ;;  %3459 = vst [vmem:[%s5707_s5 + $0x1c0] sm:$0xff] %v3367_v44  }
 0x3ce   : > { %v3382_v47 = vpack.c.bf16 %v7126_v58, %v7124_v39  ;;  %v3387_v55 = vpack.c.bf16 %v7130_v28, %v7128_v12  ;;  %v7138_v15 = vmax.f32 %v7137_v14, 0.0  ;;  %v7140_v24 = vmax.f32 %v7139_v16, 0.0  ;;  %3460 = vst [vmem:[%s5707_s5 + $0x1c8] sm:$0xff] %v3372_v9  }
 0x3cf   : > { %v3392_v45 = vpack.c.bf16 %v7134_v40, %v7132_v27  ;;  %v7142_v62 = vmax.f32 %v7141_v33, 0.0  ;;  %3461 = vst [vmem:[%s5707_s5 + $0x1d0] sm:$0xff] %v3377_v31  }
 0x3d0   : > { %v3397_v0 = vpack.c.bf16 %v7138_v15, %v7136_v32  ;;  %3462 = vst [vmem:[%s5707_s5 + $0x1d8] sm:$0xff] %v3382_v47   ;;  %3463 = vst [vmem:[%s5707_s5 + $0x1e0] sm:$0xff] %v3387_v55  }
 0x3d1   : > { %v3402_v19 = vpack.c.bf16 %v7142_v62, %v7140_v24  ;;  %3464 = vst [vmem:[%s5707_s5 + $0x1e8] sm:$0xff] %v3392_v45  }
 0x3d2   : > { %3465 = vst [vmem:[%s5707_s5 + $0x1f0] sm:$0xff] %v3397_v0  }
 0x3d3   : > { %3466 = vst [vmem:[%s5707_s5 + $0x1f8] sm:$0xff] %v3402_v19  }
 0x3d4 PF: > { %s12_s9 = sadd.s32 1, %s3787_s9  }
 0x3d5   : > { %p9_p4 = scmp.ge.s32.totalorder %s12_s9, 4  }
 0x3d7   :  { %11 = sbr.rel (!%p9_p4) target bundleno = 1 (0x1), region = 58 }

// kernel: rhwf_encoder_forward.22
= control target key start
LH: loop header
LB: loop body
LE: loop exit
PB: predicated region body
PF: predicated region fallthrough
CT: control target
= control target key end

     0   :  { %s1964_s9 = smov 0   ;;  %s2414_s0 = inlined_call_operand.vmem [shape: bf16[2,256,384], index: 0, kind: input, shape index: {}]   ;;  %s2415_s1 = inlined_call_operand.vmem [shape: bf16[384,128], index: 1, kind: input, shape index: {}]   ;;  %s2416_s2 = inlined_call_operand.vmem [shape: bf16[2,256,128], index: 2, kind: output, shape index: {}]  }
   0x1 LB: > { %s1400_s10 = sadd.s32 4294967295, %s1947_s9   ;;  %p1404_p0 = scmp.ge.s32.totalorder %s1947_s9, 1  ;;  %s1947_s9 = sphi %s1964_s9, %s12_s9  }
   0x2   : > { %p112_p1 = scmp.lt.s32.totalorder %s1947_s9, 3 }
   0x4   : > { %p113_p2 = pnand %p1404_p0, %p112_p1 }
   0x5   : > { %v1851_v0 = vld [vmem:[%s2415_s1 + $0x40] sm:$0xff] (!%p113_p2)   ;;  %v1853_v2 = vld [vmem:[%s2415_s1 + $0x48] sm:$0xff] (!%p113_p2)   ;;  %p134_p3 = scmp.lt.s32.totalorder (!%p113_p2), %s1400_s10, 1  ;;  %v1855_v4 = vld [vmem:[%s2415_s1 + $0x50] sm:$0xff] (!%p113_p2)  }
   0x6   : > { %116 = sbr.rel (%p113_p2) target bundleno = 500 (0x1f4), region = 28  ;;  %v1852_v1 = vld [vmem:[%s2415_s1] sm:$0xff] (!%p113_p2)   ;;  %1642 = vmatprep.subr.bf16.mxu0 (!%p113_p2), %v1851_v0  ;;  %1826 = vmatprep.subr.bf16.mxu1 (!%p113_p2), %v1851_v0  ;;  %v1854_v3 = vld [vmem:[%s2415_s1 + $0x8] sm:$0xff] (!%p113_p2)   ;;  %v1856_v5 = vld [vmem:[%s2415_s1 + $0x10] sm:$0xff] (!%p113_p2)  }
   0x7   : > { %1643 = vmatpush3.bf16.msra.mxu0 (!%p113_p2), %v1852_v1  ;;  %1834 = vmatpush3.bf16.msra.mxu1 (!%p113_p2), %v1852_v1  ;;  %v1857_v6 = vld [vmem:[%s2415_s1 + $0x58] sm:$0xff] (!%p113_p2)   ;;  %v1859_v8 = vld [vmem:[%s2415_s1 + $0x60] sm:$0xff] (!%p113_p2)   ;;  %v1861_v10 = vld [vmem:[%s2415_s1 + $0x68] sm:$0xff] (!%p113_p2)  }
   0x8   : > { %1644 = vmatprep.subr.bf16.mxu0 (!%p113_p2), %v1853_v2  ;;  %1827 = vmatprep.subr.bf16.mxu1 (!%p113_p2), %v1853_v2  ;;  %v1858_v7 = vld [vmem:[%s2415_s1 + $0x18] sm:$0xff] (!%p113_p2)   ;;  %v1860_v9 = vld [vmem:[%s2415_s1 + $0x20] sm:$0xff] (!%p113_p2)   ;;  %v1862_v13 = vld [vmem:[%s2415_s1 + $0x28] sm:$0xff] (!%p113_p2)  }
   0x9   : > { %v1863_v14 = vld [vmem:[%s2415_s1 + $0x70] sm:$0xff] (!%p113_p2)   ;;  %v1865_v16 = vld [vmem:[%s2415_s1 + $0x78] sm:$0xff] (!%p113_p2)   ;;  %v1873_v18 = vld [vmem:[%s2415_s1 + $0x80] sm:$0xff] (!%p113_p2)  }
   0xa   : > { %v1864_v15 = vld [vmem:[%s2415_s1 + $0x30] sm:$0xff] (!%p113_p2)   ;;  %v1866_v17 = vld [vmem:[%s2415_s1 + $0x38] sm:$0xff] (!%p113_p2)   ;;  %v1874_v22 = vld [vmem:[%s2415_s1 + $0x88] sm:$0xff] (!%p113_p2)  }
   0xb   : > { %1645 = vmatpush3.bf16.msra.mxu0 (!%p113_p2), %v1854_v3  ;;  %1835 = vmatpush3.bf16.msra.mxu1 (!%p113_p2), %v1854_v3  ;;  %v1881_v25 = vld [vmem:[%s2415_s1 + $0x90] sm:$0xff] (!%p113_p2)   ;;  %v1882_v27 = vld [vmem:[%s2415_s1 + $0x98] sm:$0xff] (!%p113_p2)   ;;  %v1889_v30 = vld [vmem:[%s2415_s1 + $0xa0] sm:$0xff] (!%p113_p2)  }
   0xc   : > { %1646 = vmatprep.subr.bf16.mxu0 (!%p113_p2), %v1855_v4  ;;  %1828 = vmatprep.subr.bf16.mxu1 (!%p113_p2), %v1855_v4  ;;  %v1890_v33 = vld [vmem:[%s2415_s1 + $0xa8] sm:$0xff] (!%p113_p2)   ;;  %v1897_v36 = vld [vmem:[%s2415_s1 + $0xb0] sm:$0xff] (!%p113_p2)   ;;  %v1898_v40 = vld [vmem:[%s2415_s1 + $0xb8] sm:$0xff] (!%p113_p2)  }
   0xd   : > { %s2418_s10 = smov (!%p134_p3, %s1400_s10), 1 }
   0xe   : > { %s1842_s25 = smul.u32 384, %s2418_s10 }
   0xf   : > { %1647 = vmatpush3.bf16.msra.mxu0 %v1856_v5  ;;  %1836 = vmatpush3.bf16.msra.mxu1 %v1856_v5 }
  0x10   : > { %1648 = vmatprep.subr.bf16.mxu0 %v1857_v6  ;;  %1829 = vmatprep.subr.bf16.mxu1 %v1857_v6  ;;  %s2005_s4 = scalar_lea.vmem %s2414_s0, %s1842_s25 }
  0x11   : > { %v1869_v11 = vld [vmem:[%s2005_s4 + $0x4] ss:$12 sps:$4 sm:$0xff]   ;;  %v1867_v19 = vld [vmem:[%s2005_s4] ss:$12 sps:$4 sm:$0xff]   ;;  %v1875_v21 = vld [vmem:[%s2005_s4 + $0x1c] ss:$12 sps:$4 sm:$0xff]  }
  0x12   : > { %v1872_v12 = vld [vmem:[%s2005_s4 + $0x124] ss:$12 sps:$4 sm:$0xff]   ;;  %689 = vmatprep.mubr.bf16.mxu0 %v1869_v11  ;;  %v1870_v20 = vld [vmem:[%s2005_s4 + $0x120] ss:$12 sps:$4 sm:$0xff]   ;;  %v1877_v23 = vld [vmem:[%s2005_s4 + $0x13c] ss:$12 sps:$4 sm:$0xff]  }
  0x13   : > { %1649 = vmatpush3.bf16.msra.mxu0 %v1858_v7  ;;  %1837 = vmatpush3.bf16.msra.mxu1 %v1858_v7  ;;  %v1879_v24 = vld [vmem:[%s2005_s4 + $0x18] ss:$12 sps:$4 sm:$0xff]   ;;  %v1883_v28 = vld [vmem:[%s2005_s4 + $0x34] ss:$12 sps:$4 sm:$0xff]   ;;  %v1887_v31 = vld [vmem:[%s2005_s4 + $0x30] ss:$12 sps:$4 sm:$0xff]  }
  0x14   : > { %1650 = vmatprep.subr.bf16.mxu0 %v1859_v8  ;;  %1830 = vmatprep.subr.bf16.mxu1 %v1859_v8  ;;  %v1880_v26 = vld [vmem:[%s2005_s4 + $0x138] ss:$12 sps:$4 sm:$0xff]   ;;  %v1885_v29 = vld [vmem:[%s2005_s4 + $0x154] ss:$12 sps:$4 sm:$0xff]   ;;  %v1888_v32 = vld [vmem:[%s2005_s4 + $0x150] ss:$12 sps:$4 sm:$0xff]  }
  0x15   : > { %785 = vmatprep.mubr.bf16.mxu1 %v1872_v12  ;;  %v1891_v34 = vld [vmem:[%s2005_s4 + $0x4c] ss:$12 sps:$4 sm:$0xff]   ;;  %v1895_v37 = vld [vmem:[%s2005_s4 + $0x48] ss:$12 sps:$4 sm:$0xff]   ;;  %v1899_v39 = vld [vmem:[%s2005_s4 + $0x64] ss:$12 sps:$4 sm:$0xff]  }
  0x16   : > { %v1893_v35 = vld [vmem:[%s2005_s4 + $0x16c] ss:$12 sps:$4 sm:$0xff]   ;;  %v1896_v38 = vld [vmem:[%s2005_s4 + $0x168] ss:$12 sps:$4 sm:$0xff]   ;;  %v1908_v47 = vld [vmem:[%s2005_s4 + $0x50] ss:$12 sps:$4 sm:$0xff]  }
  0x17   : > { %1651 = vmatpush3.bf16.msra.mxu0 %v1860_v9  ;;  %1838 = vmatpush3.bf16.msra.mxu1 %v1860_v9  ;;  %v1901_v41 = vld [vmem:[%s2005_s4 + $0x8] ss:$12 sps:$4 sm:$0xff]   ;;  %v1902_v42 = vld [vmem:[%s2005_s4 + $0x60] ss:$12 sps:$4 sm:$0xff]   ;;  %v1906_v45 = vld [vmem:[%s2005_s4 + $0x38] ss:$12 sps:$4 sm:$0xff]  }
  0x18   : > { %1652 = vmatprep.subr.bf16.mxu0 %v1861_v10  ;;  %1831 = vmatprep.subr.bf16.mxu1 %v1861_v10  ;;  %v1903_v43 = vld [vmem:[%s2005_s4 + $0x20] ss:$12 sps:$4 sm:$0xff]   ;;  %v1904_v44 = vld [vmem:[%s2005_s4 + $0x7c] ss:$12 sps:$4 sm:$0xff]   ;;  %v1907_v46 = vld [vmem:[%s2005_s4 + $0x78] ss:$12 sps:$4 sm:$0xff]  }
  0x19   : > { %v1909_v48 = vld [vmem:[%s2005_s4 + $0x94] ss:$12 sps:$4 sm:$0xff]   ;;  %v1912_v50 = vld [vmem:[%s2005_s4 + $0x90] ss:$12 sps:$4 sm:$0xff]   ;;  %v1914_v52 = vld [vmem:[%s2005_s4 + $0xac] ss:$12 sps:$4 sm:$0xff]  }
  0x1a   : > { %v1911_v49 = vld [vmem:[%s2005_s4 + $0x68] ss:$12 sps:$4 sm:$0xff]   ;;  %v1913_v51 = vld [vmem:[%s2005_s4 + $0x80] ss:$12 sps:$4 sm:$0xff]   ;;  %v1916_v53 = vld [vmem:[%s2005_s4 + $0x98] ss:$12 sps:$4 sm:$0xff]  }
  0x1b   : > { %1653 = vmatpush3.bf16.msra.mxu0 %v1862_v13  ;;  %1839 = vmatpush3.bf16.msra.mxu1 %v1862_v13  ;;  %v1917_v54 = vld [vmem:[%s2005_s4 + $0xa8] ss:$12 sps:$4 sm:$0xff]   ;;  %v1918_v55 = vld [vmem:[%s2005_s4 + $0xb0] ss:$12 sps:$4 sm:$0xff]   ;;  %v1922_v58 = vld [vmem:[%s2005_s4 + $0xc0] ss:$12 sps:$4 sm:$0xff]  }
  0x1c   : > { %1654 = vmatprep.subr.bf16.mxu0 %v1863_v14  ;;  %1832 = vmatprep.subr.bf16.mxu1 %v1863_v14  ;;  %v1919_v56 = vld [vmem:[%s2005_s4 + $0xc4] ss:$12 sps:$4 sm:$0xff]   ;;  %v1921_v57 = vld [vmem:[%s2005_s4 + $0xc8] ss:$12 sps:$4 sm:$0xff]   ;;  %v1923_v59 = vld [vmem:[%s2005_s4 + $0xe0] ss:$12 sps:$4 sm:$0xff]  }
  0x1d   : > { %v1924_v60 = vld [vmem:[%s2005_s4 + $0xdc] ss:$12 sps:$4 sm:$0xff]   ;;  %v1926_v61 = vld [vmem:[%s2005_s4 + $0xf8] ss:$12 sps:$4 sm:$0xff]   ;;  %v1929_v0 = vld [vmem:[%s2005_s4 + $0xf4] ss:$12 sps:$4 sm:$0xff]  }
  0x1e   : > { %v1927_v62 = vld [vmem:[%s2005_s4 + $0xd8] ss:$12 sps:$4 sm:$0xff]   ;;  %v1928_v63 = vld [vmem:[%s2005_s4 + $0x110] ss:$12 sps:$4 sm:$0xff]   ;;  %v1931_v1 = vld [vmem:[%s2005_s4 + $0x128] ss:$12 sps:$4 sm:$0xff]  }
  0x1f   : > { %1655 = vmatpush3.bf16.msra.mxu0 %v1864_v15  ;;  %1840 = vmatpush3.bf16.msra.mxu1 %v1864_v15  ;;  %v1932_v2 = vld [vmem:[%s2005_s4 + $0xf0] ss:$12 sps:$4 sm:$0xff]   ;;  %v1933_v3 = vld [vmem:[%s2005_s4 + $0x140] ss:$12 sps:$4 sm:$0xff]   ;;  %v1936_v5 = vld [vmem:[%s2005_s4 + $0x158] ss:$12 sps:$4 sm:$0xff]  }
  0x20   : > { %1656 = vmatprep.subr.bf16.mxu0 %v1865_v16  ;;  %1833 = vmatprep.subr.bf16.mxu1 %v1865_v16  ;;  %v1934_v4 = vld [vmem:[%s2005_s4 + $0x10c] ss:$12 sps:$4 sm:$0xff]   ;;  %v1937_v6 = vld [vmem:[%s2005_s4 + $0x108] ss:$12 sps:$4 sm:$0xff]   ;;  %v1938_v7 = vld [vmem:[%s2005_s4 + $0x170] ss:$12 sps:$4 sm:$0xff]  }
  0x21   : > { %s1514_s4 = sshll.u32 %s2418_s10, 7 }
  0x22   : > { %s2393_s14 = scalar_lea.vmem %s2416_s2, %s1514_s4 }
  0x23   : > { %1657 = vmatpush3.bf16.msra.mxu0 %v1866_v17  ;;  %1841 = vmatpush3.bf16.msra.mxu1 %v1866_v17 }
  0x24   : > { %1778 = vmatprep.subr.bf16.mxu1 %v1873_v18 }
  0x26   : > { %690 = vmatmul.mubr.bf16.vlgmr.msra.gmra.mrb[0].mxu0 %v1867_v19  ;;  %786 = vmatmul.mubr.bf16.vlgmr.msra.gmra.mrb[0].mxu1 %v1870_v20 }
  0x27   : > { %1779 = vmatpush3.bf16.msra.mxu1 %v1873_v18  ;;  %697 = vmatprep.mubr.bf16.mxu0 %v1875_v21 }
  0x28   : > { %1780 = vmatprep.subr.bf16.mxu1 %v1874_v22  ;;  %793 = vmatprep.mubr.bf16.mxu1 %v1877_v23 }
  0x2b   : > { %1781 = vmatpush3.bf16.msra.mxu1 %v1874_v22 }
  0x2c   : > { %1782 = vmatprep.subr.bf16.mxu1 %v1881_v25 }
  0x2e   : > { %698 = vmatmul.mubr.bf16.gmra.mrb[4].mxu0 %v1879_v24  ;;  %794 = vmatmul.mubr.bf16.gmra.mrb[4].mxu1 %v1880_v26 }
  0x2f   : > { %1783 = vmatpush3.bf16.msra.mxu1 %v1881_v25  ;;  %705 = vmatprep.mubr.bf16.mxu0 %v1883_v28 }
  0x30   : > { %1784 = vmatprep.subr.bf16.mxu1 %v1882_v27  ;;  %801 = vmatprep.mubr.bf16.mxu1 %v1885_v29 }
  0x33   : > { %1785 = vmatpush3.bf16.msra.mxu1 %v1882_v27 }
  0x34   : > { %1786 = vmatprep.subr.bf16.mxu1 %v1889_v30 }
  0x36   : > { %706 = vmatmul.mubr.bf16.gmra.mrb[8].mxu0 %v1887_v31  ;;  %802 = vmatmul.mubr.bf16.gmra.mrb[8].mxu1 %v1888_v32 }
  0x37   : > { %1787 = vmatpush3.bf16.msra.mxu1 %v1889_v30  ;;  %713 = vmatprep.mubr.bf16.mxu0 %v1891_v34 }
  0x38   : > { %1788 = vmatprep.subr.bf16.mxu1 %v1890_v33  ;;  %809 = vmatprep.mubr.bf16.mxu1 %v1893_v35 }
  0x3b   : > { %1789 = vmatpush3.bf16.msra.mxu1 %v1890_v33 }
  0x3c   : > { %1790 = vmatprep.subr.bf16.mxu1 %v1897_v36 }
  0x3e   : > { %714 = vmatmul.mubr.bf16.gmra.mrb[12].mxu0 %v1895_v37  ;;  %810 = vmatmul.mubr.bf16.gmra.mrb[12].mxu1 %v1896_v38 }
  0x3f   : > { %1791 = vmatpush3.bf16.msra.mxu1 %v1897_v36  ;;  %721 = vmatprep.mubr.bf16.mxu0 %v1899_v39 }
  0x40   : > { %1792 = vmatprep.subr.bf16.mxu1 %v1898_v40  ;;  %1794 = vmatprep.mubr.bf16.mxu1 %v1901_v41 }
  0x43   : > { %1793 = vmatpush3.bf16.msra.mxu1 %v1898_v40 }
  0x46   : > { %722 = vmatmul.mubr.bf16.gmra.mrb[16].mxu0 %v1902_v42  ;;  %1795 = vmatmul.mubr.bf16.vlgmr.msra.gmra.mrb[16].mxu1 %v1903_v43 }
  0x47   : > { %729 = vmatprep.mubr.bf16.mxu0 %v1904_v44  ;;  %1798 = vmatprep.mubr.bf16.mxu1 %v1906_v45 }
  0x4e   : > { %730 = vmatmul.mubr.bf16.gmra.mrb[20].mxu0 %v1907_v46  ;;  %1799 = vmatmul.mubr.bf16.gmra.mrb[20].mxu1 %v1908_v47 }
  0x4f   : > { %737 = vmatprep.mubr.bf16.mxu0 %v1909_v48  ;;  %1802 = vmatprep.mubr.bf16.mxu1 %v1911_v49 }
  0x56   : > { %738 = vmatmul.mubr.bf16.gmra.mrb[24].mxu0 %v1912_v50  ;;  %1803 = vmatmul.mubr.bf16.gmra.mrb[24].mxu1 %v1913_v51 }
  0x57   : > { %745 = vmatprep.mubr.bf16.mxu0 %v1914_v52  ;;  %1806 = vmatprep.mubr.bf16.mxu1 %v1916_v53 }
  0x5e   : > { %746 = vmatmul.mubr.bf16.gmra.mrb[28].mxu0 %v1917_v54  ;;  %1807 = vmatmul.mubr.bf16.gmra.mrb[28].mxu1 %v1918_v55 }
  0x5f   : > { %753 = vmatprep.mubr.bf16.mxu0 %v1919_v56  ;;  %1810 = vmatprep.mubr.bf16.mxu1 %v1921_v57 }
  0x66   : > { %754 = vmatmul.mubr.bf16.gmra.mrb[32].mxu0 %v1922_v58  ;;  %1811 = vmatmul.mubr.bf16.gmra.mrb[32].mxu1 %v1923_v59 }
  0x67   : > { %761 = vmatprep.mubr.bf16.mxu0 %v1924_v60  ;;  %1814 = vmatprep.mubr.bf16.mxu1 %v1926_v61 }
  0x6e   : > { %762 = vmatmul.mubr.bf16.gmra.mrb[36].mxu0 %v1927_v62  ;;  %1815 = vmatmul.mubr.bf16.gmra.mrb[36].mxu1 %v1928_v63 }
  0x6f   : > { %769 = vmatprep.mubr.bf16.mxu0 %v1929_v0  ;;  %1818 = vmatprep.mubr.bf16.mxu1 %v1931_v1 }
  0x76   : > { %770 = vmatmul.mubr.bf16.gmra.mrb[40].mxu0 %v1932_v2  ;;  %1819 = vmatmul.mubr.bf16.gmra.mrb[40].mxu1 %v1933_v3 }
  0x77   : > { %777 = vmatprep.mubr.bf16.mxu0 %v1934_v4  ;;  %1822 = vmatprep.mubr.bf16.mxu1 %v1936_v5 }
  0x7e   : > { %778 = vmatmul.mubr.bf16.gmra.mrb[44].mxu0 %v1937_v6  ;;  %1823 = vmatmul.mubr.bf16.gmra.mrb[44].mxu1 %v1938_v7 }
  0xf9   : > { %v1658_v8 = vpop.f32.mrb[0].mxu0  ;;  %v1730_v9 = vpop.f32.mrb[0].mxu1 }
  0xfa   : > { %v1659_v10 = vpop.f32.mrb[1].mxu0  ;;  %v1731_v11 = vpop.f32.mrb[1].mxu1 }
  0xfb   : > { %v1660_v12 = vadd.f32 %v1659_v10, %v1658_v8  ;;  %v1661_v13 = vpop.f32.mrb[2].mxu0  ;;  %v2100_v14 = vadd.f32 %v1731_v11, %v1730_v9  ;;  %v1733_v15 = vpop.f32.mrb[2].mxu1 }
  0xfc   : > { %v1662_v16 = vpop.f32.mrb[3].mxu0  ;;  %v1734_v17 = vpop.f32.mrb[3].mxu1 }
  0xfd   : > { %v1663_v18 = vadd.f32 %v1662_v16, %v1661_v13  ;;  %v2102_v19 = vadd.f32 %v1734_v17, %v1733_v15 }
 0x101   : > { %v1664_v20 = vpop.f32.mrb[4].mxu0  ;;  %v1736_v21 = vpop.f32.mrb[4].mxu1 }
 0x102   : > { %v1665_v22 = vpop.f32.mrb[5].mxu0  ;;  %v1737_v23 = vpop.f32.mrb[5].mxu1 }
 0x103   : > { %v1666_v24 = vadd.f32 %v1665_v22, %v1664_v20  ;;  %v1667_v25 = vpop.f32.mrb[6].mxu0  ;;  %v2104_v26 = vadd.f32 %v1737_v23, %v1736_v21  ;;  %v1739_v27 = vpop.f32.mrb[6].mxu1 }
 0x104   : > { %v1668_v28 = vpop.f32.mrb[7].mxu0  ;;  %v1740_v29 = vpop.f32.mrb[7].mxu1 }
 0x105   : > { %v1669_v30 = vadd.f32 %v1668_v28, %v1667_v25  ;;  %v2106_v31 = vadd.f32 %v1740_v29, %v1739_v27 }
 0x109   : > { %v1670_v32 = vpop.f32.mrb[8].mxu0  ;;  %v1742_v33 = vpop.f32.mrb[8].mxu1 }
 0x10a   : > { %v1671_v34 = vpop.f32.mrb[9].mxu0  ;;  %v1743_v35 = vpop.f32.mrb[9].mxu1 }
 0x10b   : > { %v1672_v36 = vadd.f32 %v1671_v34, %v1670_v32  ;;  %v1673_v37 = vpop.f32.mrb[10].mxu0  ;;  %v2108_v38 = vadd.f32 %v1743_v35, %v1742_v33  ;;  %v1745_v39 = vpop.f32.mrb[10].mxu1 }
 0x10c   : > { %v1674_v40 = vpop.f32.mrb[11].mxu0  ;;  %v1746_v41 = vpop.f32.mrb[11].mxu1 }
 0x10d   : > { %v1675_v42 = vadd.f32 %v1674_v40, %v1673_v37  ;;  %v2110_v43 = vadd.f32 %v1746_v41, %v1745_v39 }
 0x111   : > { %v1676_v44 = vpop.f32.mrb[12].mxu0  ;;  %v1748_v45 = vpop.f32.mrb[12].mxu1 }
 0x112   : > { %v1677_v46 = vpop.f32.mrb[13].mxu0  ;;  %v1749_v47 = vpop.f32.mrb[13].mxu1 }
 0x113   : > { %v1678_v48 = vadd.f32 %v1677_v46, %v1676_v44  ;;  %v1679_v49 = vpop.f32.mrb[14].mxu0  ;;  %v2112_v50 = vadd.f32 %v1749_v47, %v1748_v45  ;;  %v1751_v51 = vpop.f32.mrb[14].mxu1 }
 0x114   : > { %v1680_v52 = vpop.f32.mrb[15].mxu0  ;;  %v1752_v53 = vpop.f32.mrb[15].mxu1 }
 0x115   : > { %v1681_v54 = vadd.f32 %v1680_v52, %v1679_v49  ;;  %v2114_v55 = vadd.f32 %v1752_v53, %v1751_v51 }
 0x119   : > { %v1682_v56 = vpop.f32.mrb[16].mxu0  ;;  %v1796_v57 = vpop.f32.mrb[16].mxu1 }
 0x11a   : > { %v2116_v58 = vadd.f32 %v1796_v57, %v1666_v24  ;;  %v1683_v59 = vpop.f32.mrb[17].mxu0  ;;  %v852_v60 = vpop.f32.mrb[17].mxu1 }
 0x11b   : > { %v1684_v61 = vadd.f32 %v1683_v59, %v1682_v56  ;;  %v2118_v62 = vadd.f32 %v1660_v12, %v852_v60  ;;  %v1685_v63 = vpop.f32.mrb[18].mxu0  ;;  %v1797_v0 = vpop.f32.mrb[18].mxu1 }
 0x11c   : > { %v2120_v1 = vadd.f32 %v1797_v0, %v1669_v30  ;;  %v1686_v2 = vpop.f32.mrb[19].mxu0  ;;  %v855_v3 = vpop.f32.mrb[19].mxu1 }
 0x11d   : > { %v1687_v4 = vadd.f32 %v1686_v2, %v1685_v63  ;;  %v2122_v5 = vadd.f32 %v1663_v18, %v855_v3 }
 0x11f   : > { %v979_v6 = vadd.f32 %v2122_v5, %v2118_v62 }
 0x121   : > { %v980_v7 = vadd.f32 %v979_v6, %v2116_v58  ;;  %v1688_v8 = vpop.f32.mrb[20].mxu0  ;;  %v1800_v9 = vpop.f32.mrb[20].mxu1 }
 0x122   : > { %v2127_v10 = vadd.f32 %v1800_v9, %v1678_v48  ;;  %v1689_v11 = vpop.f32.mrb[21].mxu0  ;;  %v868_v12 = vpop.f32.mrb[21].mxu1 }
 0x123   : > { %v1690_v13 = vadd.f32 %v1689_v11, %v1688_v8  ;;  %v2129_v15 = vadd.f32 %v1672_v36, %v868_v12  ;;  %v981_v16 = vadd.f32 %v980_v7, %v2120_v1  ;;  %v1691_v17 = vpop.f32.mrb[22].mxu0  ;;  %v1801_v20 = vpop.f32.mrb[22].mxu1 }
 0x124   : > { %v2132_v18 = vadd.f32 %v1801_v20, %v1681_v54  ;;  %v1692_v21 = vpop.f32.mrb[23].mxu0  ;;  %v871_v22 = vpop.f32.mrb[23].mxu1 }
 0x125   : > { %v982_v23 = vadd.f32 %v981_v16, %v2129_v15  ;;  %v1693_v24 = vadd.f32 %v1692_v21, %v1691_v17  ;;  %v2135_v25 = vadd.f32 %v1675_v42, %v871_v22 }
 0x127   : > { %v983_v27 = vadd.f32 %v982_v23, %v2135_v25 }
 0x129   : > { %v984_v28 = vadd.f32 %v983_v27, %v2127_v10  ;;  %v1694_v29 = vpop.f32.mrb[24].mxu0  ;;  %v1804_v30 = vpop.f32.mrb[24].mxu1 }
 0x12a   : > { %v2139_v32 = vadd.f32 %v1804_v30, %v1690_v13  ;;  %v1695_v33 = vpop.f32.mrb[25].mxu0  ;;  %v884_v34 = vpop.f32.mrb[25].mxu1 }
 0x12b   : > { %v1696_v35 = vadd.f32 %v1695_v33, %v1694_v29  ;;  %v2141_v36 = vadd.f32 %v1684_v61, %v884_v34  ;;  %v985_v37 = vadd.f32 %v984_v28, %v2132_v18  ;;  %v1697_v39 = vpop.f32.mrb[26].mxu0  ;;  %v1805_v40 = vpop.f32.mrb[26].mxu1 }
 0x12c   : > { %v2144_v41 = vadd.f32 %v1805_v40, %v1693_v24  ;;  %v1698_v42 = vpop.f32.mrb[27].mxu0  ;;  %v887_v44 = vpop.f32.mrb[27].mxu1 }
 0x12d   : > { %v986_v45 = vadd.f32 %v985_v37, %v2141_v36  ;;  %v1699_v46 = vadd.f32 %v1698_v42, %v1697_v39  ;;  %v2147_v47 = vadd.f32 %v1687_v4, %v887_v44 }
 0x12f   : > { %v987_v48 = vadd.f32 %v986_v45, %v2147_v47 }
 0x131   : > { %v988_v49 = vadd.f32 %v987_v48, %v2139_v32  ;;  %v1700_v51 = vpop.f32.mrb[28].mxu0  ;;  %v1808_v52 = vpop.f32.mrb[28].mxu1 }
 0x132   : > { %v1701_v53 = vpop.f32.mrb[29].mxu0  ;;  %v900_v54 = vpop.f32.mrb[29].mxu1 }
 0x133   : > { %v1702_v56 = vadd.f32 %v1701_v53, %v1700_v51  ;;  %v2151_v57 = vadd.f32 %v1696_v35, %v900_v54  ;;  %v989_v59 = vadd.f32 %v988_v49, %v2144_v41  ;;  %v1703_v60 = vpop.f32.mrb[30].mxu0  ;;  %v1809_v61 = vpop.f32.mrb[30].mxu1 }
 0x134   : > { %v1704_v63 = vpop.f32.mrb[31].mxu0  ;;  %v903_v0 = vpop.f32.mrb[31].mxu1 }
 0x135   : > { %v2154_v2 = vadd.f32 %v1808_v52, %v1702_v56  ;;  %v990_v3 = vadd.f32 %v989_v59, %v2151_v57  ;;  %v1705_v4 = vadd.f32 %v1704_v63, %v1703_v60  ;;  %v2157_v6 = vadd.f32 %v1699_v46, %v903_v0 }
 0x137   : > { %v2159_v7 = vadd.f32 %v1809_v61, %v1705_v4  ;;  %v991_v8 = vadd.f32 %v990_v3, %v2157_v6 }
 0x139   : > { %v992_v9 = vadd.f32 %v991_v8, %v2154_v2  ;;  %v1706_v11 = vpop.f32.mrb[32].mxu0  ;;  %v1812_v12 = vpop.f32.mrb[32].mxu1 }
 0x13a   : > { %v1707_v13 = vpop.f32.mrb[33].mxu0  ;;  %v916_v16 = vpop.f32.mrb[33].mxu1 }
 0x13b   : > { %v1708_v17 = vadd.f32 %v1707_v13, %v1706_v11  ;;  %v1709_v20 = vpop.f32.mrb[34].mxu0  ;;  %v1813_v21 = vpop.f32.mrb[34].mxu1  ;;  %v993_v28 = vadd.f32 %v992_v9, %v2159_v7 }
 0x13c   : > { %v1710_v22 = vpop.f32.mrb[35].mxu0  ;;  %v919_v23 = vpop.f32.mrb[35].mxu1 }
 0x13d   : > { %v1711_v24 = vadd.f32 %v1710_v22, %v1709_v20  ;;  %v2163_v27 = vadd.f32 %v1708_v17, %v916_v16 }
 0x13f   : > { %v994_v29 = vadd.f32 %v993_v28, %v2163_v27  ;;  %v2167_v30 = vadd.f32 %v1711_v24, %v919_v23 }
 0x141   : > { %v995_v33 = vadd.f32 %v994_v29, %v2167_v30  ;;  %v1712_v34 = vpop.f32.mrb[36].mxu0  ;;  %v1816_v35 = vpop.f32.mrb[36].mxu1 }
 0x142   : > { %v1713_v37 = vpop.f32.mrb[37].mxu0  ;;  %v932_v39 = vpop.f32.mrb[37].mxu1 }
 0x143   : > { %v1714_v40 = vadd.f32 %v1713_v37, %v1712_v34  ;;  %v1715_v42 = vpop.f32.mrb[38].mxu0  ;;  %v1817_v44 = vpop.f32.mrb[38].mxu1 }
 0x144   : > { %v1716_v45 = vpop.f32.mrb[39].mxu0  ;;  %v935_v46 = vpop.f32.mrb[39].mxu1 }
 0x145   : > { %v925_v48 = vadd.f32 %v1812_v12, %v1714_v40  ;;  %v1717_v49 = vadd.f32 %v1716_v45, %v1715_v42 }
 0x147   : > { %v996_v51 = vadd.f32 %v995_v33, %v925_v48  ;;  %v928_v52 = vadd.f32 %v1813_v21, %v1717_v49 }
 0x149   : > { %v997_v53 = vadd.f32 %v996_v51, %v928_v52  ;;  %v1718_v54 = vpop.f32.mrb[40].mxu0  ;;  %v1820_v56 = vpop.f32.mrb[40].mxu1 }
 0x14a   : > { %v957_v59 = vadd.f32 %v1820_v56, %v2104_v26  ;;  %v1719_v60 = vpop.f32.mrb[41].mxu0  ;;  %v948_v61 = vpop.f32.mrb[41].mxu1 }
 0x14b   : > { %v1720_v63 = vadd.f32 %v1719_v60, %v1718_v54  ;;  %v949_v0 = vadd.f32 %v2100_v14, %v948_v61  ;;  %v1721_v3 = vpop.f32.mrb[42].mxu0  ;;  %v1821_v4 = vpop.f32.mrb[42].mxu1 }
 0x14c   : > { %v960_v8 = vadd.f32 %v1821_v4, %v2106_v31  ;;  %v1722_v9 = vpop.f32.mrb[43].mxu0  ;;  %v951_v11 = vpop.f32.mrb[43].mxu1 }
 0x14d   : > { %v933_v12 = vadd.f32 %v1720_v63, %v932_v39  ;;  %v1723_v13 = vadd.f32 %v1722_v9, %v1721_v3  ;;  %v952_v16 = vadd.f32 %v2102_v19, %v951_v11 }
 0x14f   : > { %v998_v17 = vadd.f32 %v997_v53, %v933_v12  ;;  %v936_v20 = vadd.f32 %v1723_v13, %v935_v46 }
 0x151   : > { %v999_v21 = vadd.f32 %v998_v17, %v936_v20  ;;  %v1724_v22 = vpop.f32.mrb[44].mxu0  ;;  %v1824_v26 = vpop.f32.mrb[44].mxu1 }
 0x152   : > { %v973_v23 = vadd.f32 %v1824_v26, %v2112_v50  ;;  %v1725_v24 = vpop.f32.mrb[45].mxu0  ;;  %v964_v28 = vpop.f32.mrb[45].mxu1 }
 0x153   : > { %v1726_v14 = vadd.f32 %v1725_v24, %v1724_v22  ;;  %v965_v29 = vadd.f32 %v2108_v38, %v964_v28  ;;  %v1727_v33 = vpop.f32.mrb[46].mxu0  ;;  %v1825_v31 = vpop.f32.mrb[46].mxu1 }
 0x154   : > { %v976_v34 = vadd.f32 %v1825_v31, %v2114_v55  ;;  %v1728_v37 = vpop.f32.mrb[47].mxu0  ;;  %v967_v39 = vpop.f32.mrb[47].mxu1 }
 0x155   : > { %v941_v40 = vadd.f32 %v1816_v35, %v1726_v14  ;;  %v1729_v19 = vadd.f32 %v1728_v37, %v1727_v33  ;;  %v968_v42 = vadd.f32 %v2110_v43, %v967_v39 }
 0x157   : > { %v1000_v45 = vadd.f32 %v999_v21, %v941_v40  ;;  %v944_v46 = vadd.f32 %v1817_v44, %v1729_v19 }
 0x159   : > { %v1001_v49 = vadd.f32 %v1000_v45, %v944_v46 }
 0x15b   : > { %v1002_v51 = vadd.f32 %v1001_v49, %v949_v0 }
 0x15d   : > { %v1003_v50 = vadd.f32 %v1002_v51, %v952_v16 }
 0x15f   : > { %v1004_v53 = vadd.f32 %v1003_v50, %v957_v59 }
 0x161   : > { %v1005_v54 = vadd.f32 %v1004_v53, %v960_v8 }
 0x163   : > { %v1006_v56 = vadd.f32 %v1005_v54, %v965_v29 }
 0x165   : > { %v1007_v60 = vadd.f32 %v1006_v56, %v968_v42 }
 0x167   : > { %v1008_v38 = vadd.f32 %v1007_v60, %v973_v23 }
 0x169   : > { %v1009_v61 = vadd.f32 %v1008_v38, %v976_v34 }
 0x16b   : > { %v1010_v63 = vrot.slane %v1009_v61, 4 }
 0x16d   : > { %v1011_v3 = vadd.f32 %v1010_v63, %v1009_v61 }
 0x16f   : > { %v1012_v55 = vrot.slane %v1011_v3, 2 }
 0x171   : > { %v1013_v4 = vadd.f32 %v1012_v55, %v1011_v3 }
 0x173   : > { %v1014_v9 = vrot.slane %v1013_v4, 1 }
 0x175   : > { %v1015_v35 = vadd.f32 %v1014_v9, %v1013_v4 }
 0x177   : > { %v1016_v11 = vmul.f32 0.00390625, %v1015_v35 }
 0x179   : > { %v2179_v43 = vsub.f32 %v2163_v27, %v1016_v11  ;;  %v2182_v44 = vsub.f32 %v2167_v30, %v1016_v11  ;;  %v2184_v13 = vsub.f32 %v925_v48, %v1016_v11  ;;  %v2186_v17 = vsub.f32 %v928_v52, %v1016_v11 }
 0x17a   : > { %v2188_v21 = vsub.f32 %v933_v12, %v1016_v11  ;;  %v2190_v22 = vsub.f32 %v936_v20, %v1016_v11  ;;  %v2192_v26 = vsub.f32 %v941_v40, %v1016_v11  ;;  %v2194_v24 = vsub.f32 %v944_v46, %v1016_v11 }
 0x17b   : > { %v2196_v28 = vsub.f32 %v949_v0, %v1016_v11  ;;  %v2198_v14 = vsub.f32 %v952_v16, %v1016_v11  ;;  %v2200_v27 = vsub.f32 %v957_v59, %v1016_v11  ;;  %v2202_v30 = vsub.f32 %v960_v8, %v1016_v11 }
 0x17c   : > { %v2204_v48 = vsub.f32 %v965_v29, %v1016_v11  ;;  %v2206_v52 = vsub.f32 %v968_v42, %v1016_v11  ;;  %v2208_v12 = vsub.f32 %v973_v23, %v1016_v11  ;;  %v2210_v20 = vsub.f32 %v976_v34, %v1016_v11 }
 0x17d   : > { %v2213_v33 = vsub.f32 %v2118_v62, %v1016_v11  ;;  %v2216_v0 = vsub.f32 %v2122_v5, %v1016_v11  ;;  %v2219_v16 = vsub.f32 %v2116_v58, %v1016_v11  ;;  %v2226_v23 = vsub.f32 %v2120_v1, %v1016_v11 }
 0x17e   : > { %v2229_v29 = vsub.f32 %v2129_v15, %v1016_v11  ;;  %v2234_v31 = vsub.f32 %v2135_v25, %v1016_v11  ;;  %v2239_v37 = vsub.f32 %v2127_v10, %v1016_v11  ;;  %v2244_v15 = vsub.f32 %v2132_v18, %v1016_v11 }
 0x17f   : > { %v1049_v59 = vmul.f32 %v2213_v33, %v2213_v33  ;;  %v1050_v8 = vmul.f32 %v2216_v0, %v2216_v0  ;;  %v1051_v62 = vmul.f32 %v2219_v16, %v2219_v16  ;;  %v1052_v58 = vmul.f32 %v2226_v23, %v2226_v23 }
 0x180   : > { %v1053_v1 = vmul.f32 %v2229_v29, %v2229_v29  ;;  %v1054_v40 = vmul.f32 %v2234_v31, %v2234_v31  ;;  %v2249_v25 = vsub.f32 %v2141_v36, %v1016_v11  ;;  %v1055_v42 = vmul.f32 %v2239_v37, %v2239_v37 }
 0x181   : > { %v1081_v5 = vadd.f32 %v1050_v8, %v1049_v59  ;;  %v2254_v10 = vsub.f32 %v2147_v47, %v1016_v11  ;;  %v1056_v46 = vmul.f32 %v2244_v15, %v2244_v15  ;;  %v2259_v18 = vsub.f32 %v2139_v32, %v1016_v11 }
 0x182   : > { %v1057_v51 = vmul.f32 %v2249_v25, %v2249_v25  ;;  %v2264_v36 = vsub.f32 %v2144_v41, %v1016_v11  ;;  %v2269_v47 = vsub.f32 %v2151_v57, %v1016_v11  ;;  %v2274_v32 = vsub.f32 %v2157_v6, %v1016_v11 }
 0x183   : > { %v1082_v34 = vadd.f32 %v1081_v5, %v1051_v62  ;;  %v1058_v53 = vmul.f32 %v2254_v10, %v2254_v10  ;;  %v1059_v56 = vmul.f32 %v2259_v18, %v2259_v18  ;;  %v2279_v41 = vsub.f32 %v2154_v2, %v1016_v11 }
 0x184   : > { %v1060_v38 = vmul.f32 %v2264_v36, %v2264_v36  ;;  %v1061_v63 = vmul.f32 %v2269_v47, %v2269_v47  ;;  %v2284_v57 = vsub.f32 %v2159_v7, %v1016_v11  ;;  %v1062_v55 = vmul.f32 %v2274_v32, %v2274_v32 }
 0x185   : > { %v1083_v39 = vadd.f32 %v1082_v34, %v1052_v58  ;;  %v1063_v6 = vmul.f32 %v2279_v41, %v2279_v41  ;;  %v1065_v59 = vmul.f32 %v2179_v43, %v2179_v43  ;;  %v1066_v7 = vmul.f32 %v2182_v44, %v2182_v44 }
 0x186   : > { %v1064_v35 = vmul.f32 %v2284_v57, %v2284_v57  ;;  %v1067_v62 = vmul.f32 %v2184_v13, %v2184_v13  ;;  %v1068_v58 = vmul.f32 %v2186_v17, %v2186_v17 }
 0x187   : > { %v1084_v19 = vadd.f32 %v1083_v39, %v1053_v1  ;;  %v1069_v1 = vmul.f32 %v2188_v21, %v2188_v21 }
 0x189   : > { %v1085_v45 = vadd.f32 %v1084_v19, %v1054_v40  ;;  %v1070_v40 = vmul.f32 %v2190_v22, %v2190_v22 }
 0x18b   : > { %v1086_v49 = vadd.f32 %v1085_v45, %v1055_v42  ;;  %v1071_v42 = vmul.f32 %v2192_v26, %v2192_v26 }
 0x18d   : > { %v1087_v50 = vadd.f32 %v1086_v49, %v1056_v46  ;;  %v1072_v46 = vmul.f32 %v2194_v24, %v2194_v24 }
 0x18f   : > { %v1088_v54 = vadd.f32 %v1087_v50, %v1057_v51  ;;  %v1073_v51 = vmul.f32 %v2196_v28, %v2196_v28 }
 0x191   : > { %v1089_v60 = vadd.f32 %v1088_v54, %v1058_v53  ;;  %v1074_v53 = vmul.f32 %v2198_v14, %v2198_v14 }
 0x193   : > { %v1090_v61 = vadd.f32 %v1089_v60, %v1059_v56  ;;  %v1075_v56 = vmul.f32 %v2200_v27, %v2200_v27 }
 0x195   : > { %v1091_v3 = vadd.f32 %v1090_v61, %v1060_v38  ;;  %v1076_v38 = vmul.f32 %v2202_v30, %v2202_v30 }
 0x197   : > { %v1092_v4 = vadd.f32 %v1091_v3, %v1061_v63  ;;  %v1077_v63 = vmul.f32 %v2204_v48, %v2204_v48 }
 0x199   : > { %v1093_v9 = vadd.f32 %v1092_v4, %v1062_v55  ;;  %v1078_v55 = vmul.f32 %v2206_v52, %v2206_v52 }
 0x19b   : > { %v1094_v2 = vadd.f32 %v1093_v9, %v1063_v6  ;;  %v1079_v6 = vmul.f32 %v2208_v12, %v2208_v12 }
 0x19d   : > { %v1095_v8 = vadd.f32 %v1094_v2, %v1064_v35  ;;  %v1080_v35 = vmul.f32 %v2210_v20, %v2210_v20 }
 0x19f   : > { %v1096_v11 = vadd.f32 %v1095_v8, %v1065_v59 }
 0x1a1   : > { %v1097_v5 = vadd.f32 %v1096_v11, %v1066_v7 }
 0x1a3   : > { %v1098_v34 = vadd.f32 %v1097_v5, %v1067_v62 }
 0x1a5   : > { %v1099_v39 = vadd.f32 %v1098_v34, %v1068_v58 }
 0x1a7   : > { %v1100_v19 = vadd.f32 %v1099_v39, %v1069_v1 }
 0x1a9   : > { %v1101_v45 = vadd.f32 %v1100_v19, %v1070_v40 }
 0x1ab   : > { %v1102_v49 = vadd.f32 %v1101_v45, %v1071_v42 }
 0x1ad   : > { %v1103_v50 = vadd.f32 %v1102_v49, %v1072_v46 }
 0x1af   : > { %v1104_v54 = vadd.f32 %v1103_v50, %v1073_v51 }
 0x1b1   : > { %v1105_v60 = vadd.f32 %v1104_v54, %v1074_v53 }
 0x1b3   : > { %v1106_v61 = vadd.f32 %v1105_v60, %v1075_v56 }
 0x1b5   : > { %v1107_v3 = vadd.f32 %v1106_v61, %v1076_v38 }
 0x1b7   : > { %v1108_v4 = vadd.f32 %v1107_v3, %v1077_v63 }
 0x1b9   : > { %v1109_v9 = vadd.f32 %v1108_v4, %v1078_v55 }
 0x1bb   : > { %v1110_v2 = vadd.f32 %v1109_v9, %v1079_v6 }
 0x1bd   : > { %v1111_v59 = vadd.f32 %v1110_v2, %v1080_v35 }
 0x1bf   : > { %v1112_v8 = vrot.slane %v1111_v59, 4 }
 0x1c1   : > { %v1113_v7 = vadd.f32 %v1112_v8, %v1111_v59 }
 0x1c3   : > { %v1114_v11 = vrot.slane %v1113_v7, 2 }
 0x1c5   : > { %v1115_v62 = vadd.f32 %v1114_v11, %v1113_v7 }
 0x1c7   : > { %v1116_v5 = vrot.slane %v1115_v62, 1 }
 0x1c9   : > { %v1117_v58 = vadd.f32 %v1116_v5, %v1115_v62 }
 0x1cb   : > { %v1118_v34 = vmul.f32 0.00390625, %v1117_v58 }
 0x1cd   : > { %v1119_v1 = vadd.f32 1e-05, %v1118_v34 }
 0x1cf   : > { %1939 = vrsqrt.f32 %v1119_v1 }
 0x1d9   : > { %v1940_v39 = vpop.eup %1939 }
 0x1da   : > { %v2325_v40 = vmul.f32 %v1940_v39, %v2213_v33  ;;  %v2328_v19 = vmul.f32 %v1940_v39, %v2216_v0  ;;  %v2331_v42 = vmul.f32 %v1940_v39, %v2219_v16  ;;  %v2334_v45 = vmul.f32 %v1940_v39, %v2226_v23 }
 0x1db   : > { %v2337_v46 = vmul.f32 %v1940_v39, %v2229_v29  ;;  %v2340_v49 = vmul.f32 %v1940_v39, %v2234_v31  ;;  %v2343_v51 = vmul.f32 %v1940_v39, %v2239_v37  ;;  %v2346_v33 = vmul.f32 %v1940_v39, %v2244_v15 }
 0x1dc   : > { %v2349_v0 = vmul.f32 %v1940_v39, %v2249_v25  ;;  %v1130_v16 = vmul.f32 %v1940_v39, %v2254_v10  ;;  %v1131_v23 = vmul.f32 %v1940_v39, %v2259_v18  ;;  %v1132_v50 = vmul.f32 %v1940_v39, %v2264_v36 }
 0x1dd   : > { %v1133_v29 = vmul.f32 %v1940_v39, %v2269_v47  ;;  %v1134_v31 = vmul.f32 %v1940_v39, %v2274_v32  ;;  %v1135_v53 = vmul.f32 %v1940_v39, %v2279_v41  ;;  %v1136_v37 = vmul.f32 %v1940_v39, %v2284_v57 }
 0x1de   : > { %v2359_v15 = vmul.f32 %v1940_v39, %v2179_v43  ;;  %v1138_v25 = vmul.f32 %v1940_v39, %v2182_v44  ;;  %v1139_v54 = vmul.f32 %v1940_v39, %v2184_v13  ;;  %v1140_v10 = vmul.f32 %v1940_v39, %v2186_v17 }
 0x1df   : > { %v1141_v18 = vmul.f32 %v1940_v39, %v2188_v21  ;;  %v1142_v36 = vmul.f32 %v1940_v39, %v2190_v22  ;;  %v1143_v47 = vmul.f32 %v1940_v39, %v2192_v26  ;;  %v1144_v32 = vmul.f32 %v1940_v39, %v2194_v24 }
 0x1e0   : > { %v2369_v41 = vmul.f32 %v1940_v39, %v2196_v28  ;;  %v1146_v43 = vmul.f32 %v1940_v39, %v2198_v14  ;;  %v1147_v57 = vmul.f32 %v1940_v39, %v2200_v27  ;;  %v1148_v44 = vmul.f32 %v1940_v39, %v2202_v30 }
 0x1e1   : > { %v1149_v13 = vmul.f32 %v1940_v39, %v2204_v48  ;;  %v1150_v17 = vmul.f32 %v1940_v39, %v2206_v52  ;;  %v1151_v21 = vmul.f32 %v1940_v39, %v2208_v12  ;;  %v1152_v22 = vmul.f32 %v1940_v39, %v2210_v20 }
 0x1e2   : > { %v1153_v26 = vmax.f32 %v2325_v40, 0.0  ;;  %v1154_v24 = vmax.f32 %v2328_v19, 0.0  ;;  %v1155_v28 = vmax.f32 %v2331_v42, 0.0  ;;  %v1156_v14 = vmax.f32 %v2334_v45, 0.0 }
 0x1e3   : > { %v1157_v27 = vmax.f32 %v2337_v46, 0.0  ;;  %v1158_v30 = vmax.f32 %v2340_v49, 0.0  ;;  %v1159_v48 = vmax.f32 %v2343_v51, 0.0  ;;  %v1160_v52 = vmax.f32 %v2346_v33, 0.0 }
 0x1e4   : > { %v1161_v12 = vmax.f32 %v2349_v0, 0.0  ;;  %v1162_v20 = vmax.f32 %v1130_v16, 0.0  ;;  %v1163_v56 = vmax.f32 %v1131_v23, 0.0  ;;  %v1164_v60 = vmax.f32 %v1132_v50, 0.0 }
 0x1e5   : > { %v1165_v38 = vmax.f32 %v1133_v29, 0.0  ;;  %v1166_v61 = vmax.f32 %v1134_v31, 0.0  ;;  %v1167_v63 = vmax.f32 %v1135_v53, 0.0  ;;  %v1168_v3 = vmax.f32 %v1136_v37, 0.0 }
 0x1e6   : > { %v1169_v55 = vmax.f32 %v2359_v15, 0.0  ;;  %v1170_v4 = vmax.f32 %v1138_v25, 0.0  ;;  %v1171_v6 = vmax.f32 %v1139_v54, 0.0  ;;  %v1172_v9 = vmax.f32 %v1140_v10, 0.0 }
 0x1e7   : > { %v1173_v35 = vmax.f32 %v1141_v18, 0.0  ;;  %v1174_v2 = vmax.f32 %v1142_v36, 0.0  ;;  %v1175_v59 = vmax.f32 %v1143_v47, 0.0  ;;  %v1176_v8 = vmax.f32 %v1144_v32, 0.0 }
 0x1e8   : > { %v1177_v7 = vmax.f32 %v2369_v41, 0.0  ;;  %v1178_v11 = vmax.f32 %v1146_v43, 0.0  ;;  %v1179_v62 = vmax.f32 %v1147_v57, 0.0  ;;  %v1180_v5 = vmax.f32 %v1148_v44, 0.0 }
 0x1e9   : > { %v1181_v58 = vmax.f32 %v1149_v13, 0.0  ;;  %v1182_v34 = vmax.f32 %v1150_v17, 0.0  ;;  %v1183_v1 = vmax.f32 %v1151_v21, 0.0  ;;  %v1184_v39 = vmax.f32 %v1152_v22, 0.0 }
 0x1ea   : > { %v1550_v40 = vpack.c.bf16 %v1154_v24, %v1153_v26  ;;  %v1555_v19 = vpack.c.bf16 %v1156_v14, %v1155_v28  ;;  %v1560_v42 = vpack.c.bf16 %v1158_v30, %v1157_v27  ;;  %v1565_v45 = vpack.c.bf16 %v1160_v52, %v1159_v48 }
 0x1eb   : > { %v1570_v46 = vpack.c.bf16 %v1162_v20, %v1161_v12  ;;  %v1575_v49 = vpack.c.bf16 %v1164_v60, %v1163_v56  ;;  %v1580_v51 = vpack.c.bf16 %v1166_v61, %v1165_v38  ;;  %v1585_v33 = vpack.c.bf16 %v1168_v3, %v1167_v63 }
 0x1ec   : > { %1551 = vst [vmem:[%s2393_s14] sm:$0xff] %v1550_v40   ;;  %1627 = vst [vmem:[%s2393_s14 + $0x8] sm:$0xff] %v1555_v19   ;;  %v1590_v0 = vpack.c.bf16 %v1170_v4, %v1169_v55  ;;  %v1595_v16 = vpack.c.bf16 %v1172_v9, %v1171_v6  ;;  %v1600_v23 = vpack.c.bf16 %v1174_v2, %v1173_v35 }
 0x1ed   : > { %1628 = vst [vmem:[%s2393_s14 + $0x10] sm:$0xff] %v1560_v42   ;;  %1629 = vst [vmem:[%s2393_s14 + $0x18] sm:$0xff] %v1565_v45   ;;  %v1605_v50 = vpack.c.bf16 %v1176_v8, %v1175_v59  ;;  %v1610_v29 = vpack.c.bf16 %v1178_v11, %v1177_v7  ;;  %v1615_v31 = vpack.c.bf16 %v1180_v5, %v1179_v62 }
 0x1ee   : > { %1630 = vst [vmem:[%s2393_s14 + $0x20] sm:$0xff] %v1570_v46   ;;  %1631 = vst [vmem:[%s2393_s14 + $0x28] sm:$0xff] %v1575_v49   ;;  %v1620_v53 = vpack.c.bf16 %v1182_v34, %v1181_v58  ;;  %v1625_v37 = vpack.c.bf16 %v1184_v39, %v1183_v1 }
 0x1ef   : > { %1632 = vst [vmem:[%s2393_s14 + $0x30] sm:$0xff] %v1580_v51   ;;  %1633 = vst [vmem:[%s2393_s14 + $0x38] sm:$0xff] %v1585_v33  }
 0x1f0   : > { %1634 = vst [vmem:[%s2393_s14 + $0x40] sm:$0xff] %v1590_v0   ;;  %1635 = vst [vmem:[%s2393_s14 + $0x48] sm:$0xff] %v1595_v16  }
 0x1f1   : > { %1636 = vst [vmem:[%s2393_s14 + $0x50] sm:$0xff] %v1600_v23   ;;  %1637 = vst [vmem:[%s2393_s14 + $0x58] sm:$0xff] %v1605_v50  }
 0x1f2   : > { %1638 = vst [vmem:[%s2393_s14 + $0x60] sm:$0xff] %v1610_v29   ;;  %1639 = vst [vmem:[%s2393_s14 + $0x68] sm:$0xff] %v1615_v31  }
 0x1f3   : > { %1640 = vst [vmem:[%s2393_s14 + $0x70] sm:$0xff] %v1620_v53   ;;  %1641 = vst [vmem:[%s2393_s14 + $0x78] sm:$0xff] %v1625_v37  }
 0x1f4 PF: > { %s12_s9 = sadd.s32 1, %s1947_s9  }
 0x1f5   : > { %p9_p4 = scmp.ge.s32.totalorder %s12_s9, 4  }
 0x1f7   :  { %11 = sbr.rel (!%p9_p4) target bundleno = 1 (0x1), region = 58 }

// kernel: rhwf_encoder_forward.23
= control target key start
LH: loop header
LB: loop body
LE: loop exit
PB: predicated region body
PF: predicated region fallthrough
CT: control target
= control target key end

     0   :  { %s1894_s9 = smov 0   ;;  %s2440_s0 = inlined_call_operand.vmem [shape: bf16[2,256,512], index: 0, kind: input, shape index: {}]   ;;  %s2441_s1 = inlined_call_operand.vmem [shape: bf16[512,128], index: 1, kind: input, shape index: {}]   ;;  %s2442_s2 = inlined_call_operand.vmem [shape: f32[2,256,128], index: 2, kind: output, shape index: {}]  }
   0x1 LB: > { %s1400_s10 = sadd.s32 4294967295, %s1877_s9   ;;  %p1404_p0 = scmp.ge.s32.totalorder %s1877_s9, 1  ;;  %s1877_s9 = sphi %s1894_s9, %s12_s9  }
   0x2   : > { %p112_p1 = scmp.lt.s32.totalorder %s1877_s9, 3 }
   0x4   : > { %p113_p2 = pnand %p1404_p0, %p112_p1 }
   0x5   : > { %v1741_v0 = vld [vmem:[%s2441_s1 + $0x40] sm:$0xff] (!%p113_p2)   ;;  %v1745_v4 = vld [vmem:[%s2441_s1 + $0x48] sm:$0xff] (!%p113_p2)   ;;  %v1749_v8 = vld [vmem:[%s2441_s1 + $0x50] sm:$0xff] (!%p113_p2)   ;;  %p134_p3 = scmp.lt.s32.totalorder (!%p113_p2), %s1400_s10, 1 }
   0x6   : > { %116 = sbr.rel (%p113_p2) target bundleno = 517 (0x205), region = 28  ;;  %v1742_v1 = vld [vmem:[%s2441_s1 + $0xc0] sm:$0xff] (!%p113_p2)   ;;  %1509 = vmatprep.subr.bf16.mxu0 (!%p113_p2), %v1741_v0  ;;  %v1746_v5 = vld [vmem:[%s2441_s1 + $0xc8] sm:$0xff] (!%p113_p2)   ;;  %v1750_v9 = vld [vmem:[%s2441_s1 + $0xd0] sm:$0xff] (!%p113_p2)  }
   0x7   : > { %v1743_v2 = vld [vmem:[%s2441_s1] sm:$0xff] (!%p113_p2)   ;;  %1621 = vmatprep.subr.bf16.mxu1 (!%p113_p2), %v1742_v1  ;;  %v1747_v6 = vld [vmem:[%s2441_s1 + $0x8] sm:$0xff] (!%p113_p2)   ;;  %v1751_v10 = vld [vmem:[%s2441_s1 + $0x10] sm:$0xff] (!%p113_p2)  }
   0x8   : > { %v1744_v3 = vld [vmem:[%s2441_s1 + $0x80] sm:$0xff] (!%p113_p2)   ;;  %1510 = vmatpush3.bf16.msra.mxu0 (!%p113_p2), %v1743_v2  ;;  %v1748_v7 = vld [vmem:[%s2441_s1 + $0x88] sm:$0xff] (!%p113_p2)   ;;  %v1752_v11 = vld [vmem:[%s2441_s1 + $0x90] sm:$0xff] (!%p113_p2)  }
   0x9   : > { %1622 = vmatpush3.bf16.msra.mxu1 (!%p113_p2), %v1744_v3  ;;  %1511 = vmatprep.subr.bf16.mxu0 (!%p113_p2), %v1745_v4  ;;  %v1753_v12 = vld [vmem:[%s2441_s1 + $0x58] sm:$0xff] (!%p113_p2)   ;;  %v1757_v16 = vld [vmem:[%s2441_s1 + $0x60] sm:$0xff] (!%p113_p2)   ;;  %v1761_v20 = vld [vmem:[%s2441_s1 + $0x68] sm:$0xff] (!%p113_p2)  }
   0xa   : > { %1623 = vmatprep.subr.bf16.mxu1 (!%p113_p2), %v1746_v5  ;;  %v1754_v13 = vld [vmem:[%s2441_s1 + $0xd8] sm:$0xff] (!%p113_p2)   ;;  %v1758_v17 = vld [vmem:[%s2441_s1 + $0xe0] sm:$0xff] (!%p113_p2)   ;;  %v1762_v21 = vld [vmem:[%s2441_s1 + $0xe8] sm:$0xff] (!%p113_p2)  }
   0xb   : > { %v1755_v14 = vld [vmem:[%s2441_s1 + $0x18] sm:$0xff] (!%p113_p2)   ;;  %v1759_v18 = vld [vmem:[%s2441_s1 + $0x20] sm:$0xff] (!%p113_p2)   ;;  %v1763_v22 = vld [vmem:[%s2441_s1 + $0x28] sm:$0xff] (!%p113_p2)  }
   0xc   : > { %1512 = vmatpush3.bf16.msra.mxu0 (!%p113_p2), %v1747_v6  ;;  %v1756_v15 = vld [vmem:[%s2441_s1 + $0x98] sm:$0xff] (!%p113_p2)   ;;  %v1760_v19 = vld [vmem:[%s2441_s1 + $0xa0] sm:$0xff] (!%p113_p2)   ;;  %v1764_v23 = vld [vmem:[%s2441_s1 + $0xa8] sm:$0xff] (!%p113_p2)  }
   0xd   : > { %1624 = vmatpush3.bf16.msra.mxu1 %v1748_v7  ;;  %1513 = vmatprep.subr.bf16.mxu0 %v1749_v8  ;;  %s2444_s10 = smov (!%p134_p3, %s1400_s10), 1  ;;  %v1765_v24 = vld [vmem:[%s2441_s1 + $0x70] sm:$0xff]   ;;  %v1769_v28 = vld [vmem:[%s2441_s1 + $0x78] sm:$0xff]  }
   0xe   : > { %1625 = vmatprep.subr.bf16.mxu1 %v1750_v9  ;;  %v1766_v25 = vld [vmem:[%s2441_s1 + $0xf0] sm:$0xff]   ;;  %s1507_s13 = sshll.u32 %s2444_s10, 9  ;;  %v1770_v29 = vld [vmem:[%s2441_s1 + $0xf8] sm:$0xff]   ;;  %s1508_s27 = sshll.u32 %s2444_s10, 8 }
   0xf   : > { %v1767_v26 = vld [vmem:[%s2441_s1 + $0x30] sm:$0xff]   ;;  %s2002_s22 = scalar_lea.vmem %s2440_s0, %s1507_s13  ;;  %v1771_v30 = vld [vmem:[%s2441_s1 + $0x38] sm:$0xff]   ;;  %s2379_s29 = scalar_lea.vmem %s2442_s2, %s1508_s27 }
  0x10   : > { %1514 = vmatpush3.bf16.msra.mxu0 %v1751_v10  ;;  %v1768_v27 = vld [vmem:[%s2441_s1 + $0xb0] sm:$0xff]   ;;  %v1772_v31 = vld [vmem:[%s2441_s1 + $0xb8] sm:$0xff]  }
  0x11   : > { %1626 = vmatpush3.bf16.msra.mxu1 %v1752_v11  ;;  %1515 = vmatprep.subr.bf16.mxu0 %v1753_v12  ;;  %v1773_v32 = vld [vmem:[%s2002_s22] ss:$16 sps:$4 sm:$0xff]   ;;  %v1775_v33 = vld [vmem:[%s2002_s22 + $0x4] ss:$16 sps:$4 sm:$0xff]   ;;  %v1776_v34 = vld [vmem:[%s2002_s22 + $0x8] ss:$16 sps:$4 sm:$0xff]  }
  0x12   : > { %1627 = vmatprep.subr.bf16.mxu1 %v1754_v13  ;;  %v1778_v35 = vld [vmem:[%s2002_s22 + $0xc] ss:$16 sps:$4 sm:$0xff]   ;;  %817 = vmatprep.mubr.bf16.mxu0 %v1775_v33  ;;  %v1779_v36 = vld [vmem:[%s2002_s22 + $0x24] ss:$16 sps:$4 sm:$0xff]   ;;  %v1783_v38 = vld [vmem:[%s2002_s22 + $0x20] ss:$16 sps:$4 sm:$0xff]  }
  0x13   : > { %978 = vmatprep.mubr.bf16.mxu1 %v1778_v35  ;;  %v1781_v37 = vld [vmem:[%s2002_s22 + $0x2c] ss:$16 sps:$4 sm:$0xff]   ;;  %v1784_v39 = vld [vmem:[%s2002_s22 + $0x28] ss:$16 sps:$4 sm:$0xff]   ;;  %v1785_v40 = vld [vmem:[%s2002_s22 + $0x44] ss:$16 sps:$4 sm:$0xff]  }
  0x14   : > { %1516 = vmatpush3.bf16.msra.mxu0 %v1755_v14  ;;  %v1787_v41 = vld [vmem:[%s2002_s22 + $0x4c] ss:$16 sps:$4 sm:$0xff]   ;;  %v1789_v42 = vld [vmem:[%s2002_s22 + $0x40] ss:$16 sps:$4 sm:$0xff]   ;;  %v1790_v43 = vld [vmem:[%s2002_s22 + $0x48] ss:$16 sps:$4 sm:$0xff]  }
  0x15   : > { %1628 = vmatpush3.bf16.msra.mxu1 %v1756_v15  ;;  %1517 = vmatprep.subr.bf16.mxu0 %v1757_v16  ;;  %v1791_v44 = vld [vmem:[%s2002_s22 + $0x64] ss:$16 sps:$4 sm:$0xff]   ;;  %v1793_v45 = vld [vmem:[%s2002_s22 + $0x6c] ss:$16 sps:$4 sm:$0xff]   ;;  %v1795_v46 = vld [vmem:[%s2002_s22 + $0x60] ss:$16 sps:$4 sm:$0xff]  }
  0x16   : > { %1629 = vmatprep.subr.bf16.mxu1 %v1758_v17  ;;  %v1796_v47 = vld [vmem:[%s2002_s22 + $0x68] ss:$16 sps:$4 sm:$0xff]   ;;  %v1797_v48 = vld [vmem:[%s2002_s22 + $0x84] ss:$16 sps:$4 sm:$0xff]   ;;  %v1799_v49 = vld [vmem:[%s2002_s22 + $0x8c] ss:$16 sps:$4 sm:$0xff]  }
  0x17   : > { %v1801_v50 = vld [vmem:[%s2002_s22 + $0x80] ss:$16 sps:$4 sm:$0xff]   ;;  %v1802_v51 = vld [vmem:[%s2002_s22 + $0x88] ss:$16 sps:$4 sm:$0xff]   ;;  %v1803_v52 = vld [vmem:[%s2002_s22 + $0xa4] ss:$16 sps:$4 sm:$0xff]  }
  0x18   : > { %1518 = vmatpush3.bf16.msra.mxu0 %v1759_v18  ;;  %v1805_v53 = vld [vmem:[%s2002_s22 + $0xac] ss:$16 sps:$4 sm:$0xff]   ;;  %v1807_v54 = vld [vmem:[%s2002_s22 + $0xa0] ss:$16 sps:$4 sm:$0xff]   ;;  %v1808_v55 = vld [vmem:[%s2002_s22 + $0xa8] ss:$16 sps:$4 sm:$0xff]  }
  0x19   : > { %1630 = vmatpush3.bf16.msra.mxu1 %v1760_v19  ;;  %1519 = vmatprep.subr.bf16.mxu0 %v1761_v20  ;;  %v1809_v56 = vld [vmem:[%s2002_s22 + $0xc4] ss:$16 sps:$4 sm:$0xff]   ;;  %v1811_v57 = vld [vmem:[%s2002_s22 + $0xcc] ss:$16 sps:$4 sm:$0xff]   ;;  %v1813_v58 = vld [vmem:[%s2002_s22 + $0xc0] ss:$16 sps:$4 sm:$0xff]  }
  0x1a   : > { %1631 = vmatprep.subr.bf16.mxu1 %v1762_v21  ;;  %v1814_v59 = vld [vmem:[%s2002_s22 + $0xc8] ss:$16 sps:$4 sm:$0xff]   ;;  %v1815_v60 = vld [vmem:[%s2002_s22 + $0xe4] ss:$16 sps:$4 sm:$0xff]   ;;  %v1817_v61 = vld [vmem:[%s2002_s22 + $0xec] ss:$16 sps:$4 sm:$0xff]  }
  0x1b   : > { %v1819_v62 = vld [vmem:[%s2002_s22 + $0xe0] ss:$16 sps:$4 sm:$0xff]   ;;  %v1820_v63 = vld [vmem:[%s2002_s22 + $0xe8] ss:$16 sps:$4 sm:$0xff]   ;;  %v1821_v0 = vld [vmem:[%s2002_s22 + $0x104] ss:$16 sps:$4 sm:$0xff]  }
  0x1c   : > { %1520 = vmatpush3.bf16.msra.mxu0 %v1763_v22  ;;  %v1823_v1 = vld [vmem:[%s2002_s22 + $0x10c] ss:$16 sps:$4 sm:$0xff]   ;;  %v1825_v2 = vld [vmem:[%s2002_s22 + $0x100] ss:$16 sps:$4 sm:$0xff]   ;;  %v1826_v3 = vld [vmem:[%s2002_s22 + $0x108] ss:$16 sps:$4 sm:$0xff]  }
  0x1d   : > { %1632 = vmatpush3.bf16.msra.mxu1 %v1764_v23  ;;  %1521 = vmatprep.subr.bf16.mxu0 %v1765_v24  ;;  %v1827_v4 = vld [vmem:[%s2002_s22 + $0x124] ss:$16 sps:$4 sm:$0xff]   ;;  %v1829_v5 = vld [vmem:[%s2002_s22 + $0x12c] ss:$16 sps:$4 sm:$0xff]   ;;  %v1831_v6 = vld [vmem:[%s2002_s22 + $0x120] ss:$16 sps:$4 sm:$0xff]  }
  0x1e   : > { %1633 = vmatprep.subr.bf16.mxu1 %v1766_v25  ;;  %v1832_v7 = vld [vmem:[%s2002_s22 + $0x128] ss:$16 sps:$4 sm:$0xff]   ;;  %v1833_v8 = vld [vmem:[%s2002_s22 + $0x144] ss:$16 sps:$4 sm:$0xff]   ;;  %v1835_v9 = vld [vmem:[%s2002_s22 + $0x14c] ss:$16 sps:$4 sm:$0xff]  }
  0x1f   : > { %v1837_v10 = vld [vmem:[%s2002_s22 + $0x140] ss:$16 sps:$4 sm:$0xff]   ;;  %v1838_v11 = vld [vmem:[%s2002_s22 + $0x148] ss:$16 sps:$4 sm:$0xff]   ;;  %v1839_v12 = vld [vmem:[%s2002_s22 + $0x164] ss:$16 sps:$4 sm:$0xff]  }
  0x20   : > { %1522 = vmatpush3.bf16.msra.mxu0 %v1767_v26  ;;  %v1841_v13 = vld [vmem:[%s2002_s22 + $0x16c] ss:$16 sps:$4 sm:$0xff]   ;;  %v1843_v14 = vld [vmem:[%s2002_s22 + $0x160] ss:$16 sps:$4 sm:$0xff]   ;;  %v1844_v15 = vld [vmem:[%s2002_s22 + $0x168] ss:$16 sps:$4 sm:$0xff]  }
  0x21   : > { %1634 = vmatpush3.bf16.msra.mxu1 %v1768_v27  ;;  %1523 = vmatprep.subr.bf16.mxu0 %v1769_v28  ;;  %v1845_v16 = vld [vmem:[%s2002_s22 + $0x184] ss:$16 sps:$4 sm:$0xff]   ;;  %v1847_v17 = vld [vmem:[%s2002_s22 + $0x18c] ss:$16 sps:$4 sm:$0xff]   ;;  %v1849_v18 = vld [vmem:[%s2002_s22 + $0x180] ss:$16 sps:$4 sm:$0xff]  }
  0x22   : > { %1635 = vmatprep.subr.bf16.mxu1 %v1770_v29  ;;  %v1850_v19 = vld [vmem:[%s2002_s22 + $0x188] ss:$16 sps:$4 sm:$0xff]   ;;  %v1851_v20 = vld [vmem:[%s2002_s22 + $0x1a4] ss:$16 sps:$4 sm:$0xff]   ;;  %v1853_v21 = vld [vmem:[%s2002_s22 + $0x1ac] ss:$16 sps:$4 sm:$0xff]  }
  0x23   : > { %v1855_v22 = vld [vmem:[%s2002_s22 + $0x1a0] ss:$16 sps:$4 sm:$0xff]   ;;  %v1856_v23 = vld [vmem:[%s2002_s22 + $0x1a8] ss:$16 sps:$4 sm:$0xff]   ;;  %v1857_v24 = vld [vmem:[%s2002_s22 + $0x1c4] ss:$16 sps:$4 sm:$0xff]  }
  0x24   : > { %1524 = vmatpush3.bf16.msra.mxu0 %v1771_v30  ;;  %v1859_v25 = vld [vmem:[%s2002_s22 + $0x1cc] ss:$16 sps:$4 sm:$0xff]   ;;  %v1861_v26 = vld [vmem:[%s2002_s22 + $0x1c0] ss:$16 sps:$4 sm:$0xff]   ;;  %v1862_v27 = vld [vmem:[%s2002_s22 + $0x1c8] ss:$16 sps:$4 sm:$0xff]  }
  0x25   : > { %1636 = vmatpush3.bf16.msra.mxu1 %v1772_v31  ;;  %v1863_v28 = vld [vmem:[%s2002_s22 + $0x1e4] ss:$16 sps:$4 sm:$0xff]   ;;  %v1865_v29 = vld [vmem:[%s2002_s22 + $0x1ec] ss:$16 sps:$4 sm:$0xff]   ;;  %v1867_v30 = vld [vmem:[%s2002_s22 + $0x1e0] ss:$16 sps:$4 sm:$0xff]  }
  0x26   : > { %v1868_v31 = vld [vmem:[%s2002_s22 + $0x1e8] ss:$16 sps:$4 sm:$0xff]  }
  0x27   : > { %818 = vmatmul.mubr.bf16.vlgmr.msra.gmra.mrb[0].mxu0 %v1773_v32 }
  0x28   : > { %979 = vmatmul.mubr.bf16.vlgmr.msra.gmra.mrb[0].mxu1 %v1776_v34  ;;  %825 = vmatprep.mubr.bf16.mxu0 %v1779_v36 }
  0x29   : > { %986 = vmatprep.mubr.bf16.mxu1 %v1781_v37 }
  0x2f   : > { %826 = vmatmul.mubr.bf16.gmra.mrb[4].mxu0 %v1783_v38 }
  0x30   : > { %987 = vmatmul.mubr.bf16.gmra.mrb[4].mxu1 %v1784_v39  ;;  %833 = vmatprep.mubr.bf16.mxu0 %v1785_v40 }
  0x31   : > { %994 = vmatprep.mubr.bf16.mxu1 %v1787_v41 }
  0x37   : > { %834 = vmatmul.mubr.bf16.gmra.mrb[8].mxu0 %v1789_v42 }
  0x38   : > { %995 = vmatmul.mubr.bf16.gmra.mrb[8].mxu1 %v1790_v43  ;;  %841 = vmatprep.mubr.bf16.mxu0 %v1791_v44 }
  0x39   : > { %1002 = vmatprep.mubr.bf16.mxu1 %v1793_v45 }
  0x3f   : > { %842 = vmatmul.mubr.bf16.gmra.mrb[12].mxu0 %v1795_v46 }
  0x40   : > { %1003 = vmatmul.mubr.bf16.gmra.mrb[12].mxu1 %v1796_v47  ;;  %849 = vmatprep.mubr.bf16.mxu0 %v1797_v48 }
  0x41   : > { %1010 = vmatprep.mubr.bf16.mxu1 %v1799_v49 }
  0x47   : > { %850 = vmatmul.mubr.bf16.gmra.mrb[16].mxu0 %v1801_v50 }
  0x48   : > { %1011 = vmatmul.mubr.bf16.gmra.mrb[16].mxu1 %v1802_v51  ;;  %857 = vmatprep.mubr.bf16.mxu0 %v1803_v52 }
  0x49   : > { %1018 = vmatprep.mubr.bf16.mxu1 %v1805_v53 }
  0x4f   : > { %858 = vmatmul.mubr.bf16.gmra.mrb[20].mxu0 %v1807_v54 }
  0x50   : > { %1019 = vmatmul.mubr.bf16.gmra.mrb[20].mxu1 %v1808_v55  ;;  %865 = vmatprep.mubr.bf16.mxu0 %v1809_v56 }
  0x51   : > { %1026 = vmatprep.mubr.bf16.mxu1 %v1811_v57 }
  0x57   : > { %866 = vmatmul.mubr.bf16.gmra.mrb[24].mxu0 %v1813_v58 }
  0x58   : > { %1027 = vmatmul.mubr.bf16.gmra.mrb[24].mxu1 %v1814_v59  ;;  %873 = vmatprep.mubr.bf16.mxu0 %v1815_v60 }
  0x59   : > { %1034 = vmatprep.mubr.bf16.mxu1 %v1817_v61 }
  0x5f   : > { %874 = vmatmul.mubr.bf16.gmra.mrb[28].mxu0 %v1819_v62 }
  0x60   : > { %1035 = vmatmul.mubr.bf16.gmra.mrb[28].mxu1 %v1820_v63  ;;  %881 = vmatprep.mubr.bf16.mxu0 %v1821_v0 }
  0x61   : > { %1042 = vmatprep.mubr.bf16.mxu1 %v1823_v1 }
  0x67   : > { %882 = vmatmul.mubr.bf16.gmra.mrb[32].mxu0 %v1825_v2 }
  0x68   : > { %1043 = vmatmul.mubr.bf16.gmra.mrb[32].mxu1 %v1826_v3  ;;  %889 = vmatprep.mubr.bf16.mxu0 %v1827_v4 }
  0x69   : > { %1050 = vmatprep.mubr.bf16.mxu1 %v1829_v5 }
  0x6f   : > { %890 = vmatmul.mubr.bf16.gmra.mrb[36].mxu0 %v1831_v6 }
  0x70   : > { %1051 = vmatmul.mubr.bf16.gmra.mrb[36].mxu1 %v1832_v7  ;;  %897 = vmatprep.mubr.bf16.mxu0 %v1833_v8 }
  0x71   : > { %1058 = vmatprep.mubr.bf16.mxu1 %v1835_v9 }
  0x77   : > { %898 = vmatmul.mubr.bf16.gmra.mrb[40].mxu0 %v1837_v10 }
  0x78   : > { %1059 = vmatmul.mubr.bf16.gmra.mrb[40].mxu1 %v1838_v11  ;;  %905 = vmatprep.mubr.bf16.mxu0 %v1839_v12 }
  0x79   : > { %1066 = vmatprep.mubr.bf16.mxu1 %v1841_v13 }
  0x7f   : > { %906 = vmatmul.mubr.bf16.gmra.mrb[44].mxu0 %v1843_v14 }
  0x80   : > { %1067 = vmatmul.mubr.bf16.gmra.mrb[44].mxu1 %v1844_v15  ;;  %913 = vmatprep.mubr.bf16.mxu0 %v1845_v16 }
  0x81   : > { %1074 = vmatprep.mubr.bf16.mxu1 %v1847_v17 }
  0x87   : > { %914 = vmatmul.mubr.bf16.gmra.mrb[48].mxu0 %v1849_v18 }
  0x88   : > { %1075 = vmatmul.mubr.bf16.gmra.mrb[48].mxu1 %v1850_v19  ;;  %921 = vmatprep.mubr.bf16.mxu0 %v1851_v20 }
  0x89   : > { %1082 = vmatprep.mubr.bf16.mxu1 %v1853_v21 }
  0x8f   : > { %922 = vmatmul.mubr.bf16.gmra.mrb[52].mxu0 %v1855_v22 }
  0x90   : > { %1083 = vmatmul.mubr.bf16.gmra.mrb[52].mxu1 %v1856_v23  ;;  %929 = vmatprep.mubr.bf16.mxu0 %v1857_v24 }
  0x91   : > { %1090 = vmatprep.mubr.bf16.mxu1 %v1859_v25 }
  0x97   : > { %930 = vmatmul.mubr.bf16.gmra.mrb[56].mxu0 %v1861_v26 }
  0x98   : > { %1091 = vmatmul.mubr.bf16.gmra.mrb[56].mxu1 %v1862_v27  ;;  %937 = vmatprep.mubr.bf16.mxu0 %v1863_v28 }
  0x99   : > { %1098 = vmatprep.mubr.bf16.mxu1 %v1865_v29 }
  0x9f   : > { %938 = vmatmul.mubr.bf16.gmra.mrb[60].mxu0 %v1867_v30 }
  0xa0   : > { %1099 = vmatmul.mubr.bf16.gmra.mrb[60].mxu1 %v1868_v31 }
  0xfa   : > { %v1525_v32 = vpop.f32.mrb[0].mxu0 }
  0xfb   : > { %v1637_v33 = vpop.f32.mrb[0].mxu1  ;;  %v1526_v34 = vpop.f32.mrb[1].mxu0 }
  0xfc   : > { %v1527_v35 = vadd.f32 %v1526_v34, %v1525_v32  ;;  %v1638_v36 = vpop.f32.mrb[1].mxu1  ;;  %v1528_v37 = vpop.f32.mrb[2].mxu0 }
  0xfd   : > { %v1639_v38 = vadd.f32 %v1638_v36, %v1637_v33  ;;  %v1640_v39 = vpop.f32.mrb[2].mxu1  ;;  %v1529_v40 = vpop.f32.mrb[3].mxu0 }
  0xfe   : > { %v1530_v41 = vadd.f32 %v1529_v40, %v1528_v37  ;;  %v1641_v42 = vpop.f32.mrb[3].mxu1 }
  0xff   : > { %v2074_v43 = vadd.f32 %v1639_v38, %v1527_v35  ;;  %v1642_v44 = vadd.f32 %v1641_v42, %v1640_v39 }
 0x101   : > { %v2076_v45 = vadd.f32 %v1642_v44, %v1530_v41 }
 0x102   : > { %v1531_v46 = vpop.f32.mrb[4].mxu0 }
 0x103   : > { %v1643_v47 = vpop.f32.mrb[4].mxu1  ;;  %v1532_v48 = vpop.f32.mrb[5].mxu0  ;;  %v1107_v23 = vadd.f32 %v2076_v45, %v2074_v43 }
 0x104   : > { %v1533_v49 = vadd.f32 %v1532_v48, %v1531_v46  ;;  %v1644_v50 = vpop.f32.mrb[5].mxu1  ;;  %v1534_v51 = vpop.f32.mrb[6].mxu0 }
 0x105   : > { %v1645_v52 = vadd.f32 %v1644_v50, %v1643_v47  ;;  %v1646_v53 = vpop.f32.mrb[6].mxu1  ;;  %v1535_v54 = vpop.f32.mrb[7].mxu0 }
 0x106   : > { %v1536_v55 = vadd.f32 %v1535_v54, %v1534_v51  ;;  %v1647_v56 = vpop.f32.mrb[7].mxu1 }
 0x107   : > { %v2078_v57 = vadd.f32 %v1645_v52, %v1533_v49  ;;  %v1648_v58 = vadd.f32 %v1647_v56, %v1646_v53 }
 0x109   : > { %v2080_v59 = vadd.f32 %v1648_v58, %v1536_v55  ;;  %v1108_v26 = vadd.f32 %v1107_v23, %v2078_v57 }
 0x10a   : > { %v1537_v60 = vpop.f32.mrb[8].mxu0 }
 0x10b   : > { %v1649_v61 = vpop.f32.mrb[8].mxu1  ;;  %v1538_v62 = vpop.f32.mrb[9].mxu0  ;;  %v1109_v37 = vadd.f32 %v1108_v26, %v2080_v59 }
 0x10c   : > { %v1539_v63 = vadd.f32 %v1538_v62, %v1537_v60  ;;  %v1650_v0 = vpop.f32.mrb[9].mxu1  ;;  %v1540_v1 = vpop.f32.mrb[10].mxu0 }
 0x10d   : > { %v1651_v2 = vadd.f32 %v1650_v0, %v1649_v61  ;;  %v1652_v3 = vpop.f32.mrb[10].mxu1  ;;  %v1541_v4 = vpop.f32.mrb[11].mxu0 }
 0x10e   : > { %v1542_v5 = vadd.f32 %v1541_v4, %v1540_v1  ;;  %v1653_v6 = vpop.f32.mrb[11].mxu1 }
 0x10f   : > { %v2082_v7 = vadd.f32 %v1651_v2, %v1539_v63  ;;  %v1654_v8 = vadd.f32 %v1653_v6, %v1652_v3 }
 0x111   : > { %v2084_v9 = vadd.f32 %v1654_v8, %v1542_v5  ;;  %v1110_v40 = vadd.f32 %v1109_v37, %v2082_v7 }
 0x112   : > { %v1543_v10 = vpop.f32.mrb[12].mxu0 }
 0x113   : > { %v1655_v11 = vpop.f32.mrb[12].mxu1  ;;  %v1544_v12 = vpop.f32.mrb[13].mxu0  ;;  %v1111_v50 = vadd.f32 %v1110_v40, %v2084_v9 }
 0x114   : > { %v1545_v13 = vadd.f32 %v1544_v12, %v1543_v10  ;;  %v1656_v14 = vpop.f32.mrb[13].mxu1  ;;  %v1546_v15 = vpop.f32.mrb[14].mxu0 }
 0x115   : > { %v1657_v16 = vadd.f32 %v1656_v14, %v1655_v11  ;;  %v1658_v17 = vpop.f32.mrb[14].mxu1  ;;  %v1547_v18 = vpop.f32.mrb[15].mxu0 }
 0x116   : > { %v1548_v19 = vadd.f32 %v1547_v18, %v1546_v15  ;;  %v1659_v20 = vpop.f32.mrb[15].mxu1 }
 0x117   : > { %v2086_v21 = vadd.f32 %v1657_v16, %v1545_v13  ;;  %v1660_v22 = vadd.f32 %v1659_v20, %v1658_v17 }
 0x119   : > { %v2090_v24 = vadd.f32 %v1660_v22, %v1548_v19  ;;  %v1112_v56 = vadd.f32 %v1111_v50, %v2086_v21 }
 0x11a   : > { %v1549_v25 = vpop.f32.mrb[16].mxu0 }
 0x11b   : > { %v1661_v27 = vpop.f32.mrb[16].mxu1  ;;  %v1550_v28 = vpop.f32.mrb[17].mxu0  ;;  %v1113_v63 = vadd.f32 %v1112_v56, %v2090_v24 }
 0x11c   : > { %v1551_v29 = vadd.f32 %v1550_v28, %v1549_v25  ;;  %v1662_v30 = vpop.f32.mrb[17].mxu1  ;;  %v1552_v31 = vpop.f32.mrb[18].mxu0 }
 0x11d   : > { %v1663_v32 = vadd.f32 %v1662_v30, %v1661_v27  ;;  %v1664_v33 = vpop.f32.mrb[18].mxu1  ;;  %v1553_v34 = vpop.f32.mrb[19].mxu0 }
 0x11e   : > { %v1554_v35 = vadd.f32 %v1553_v34, %v1552_v31  ;;  %v1665_v36 = vpop.f32.mrb[19].mxu1 }
 0x11f   : > { %v2094_v38 = vadd.f32 %v1663_v32, %v1551_v29  ;;  %v1666_v39 = vadd.f32 %v1665_v36, %v1664_v33 }
 0x121   : > { %v2097_v41 = vadd.f32 %v1666_v39, %v1554_v35  ;;  %v1114_v5 = vadd.f32 %v1113_v63, %v2094_v38 }
 0x122   : > { %v1555_v42 = vpop.f32.mrb[20].mxu0 }
 0x123   : > { %v1667_v44 = vpop.f32.mrb[20].mxu1  ;;  %v1556_v46 = vpop.f32.mrb[21].mxu0  ;;  %v1115_v15 = vadd.f32 %v1114_v5, %v2097_v41 }
 0x124   : > { %v1557_v47 = vadd.f32 %v1556_v46, %v1555_v42  ;;  %v1668_v48 = vpop.f32.mrb[21].mxu1  ;;  %v1558_v49 = vpop.f32.mrb[22].mxu0 }
 0x125   : > { %v1669_v51 = vadd.f32 %v1668_v48, %v1667_v44  ;;  %v1670_v52 = vpop.f32.mrb[22].mxu1  ;;  %v1559_v53 = vpop.f32.mrb[23].mxu0 }
 0x126   : > { %v1560_v54 = vadd.f32 %v1559_v53, %v1558_v49  ;;  %v1671_v55 = vpop.f32.mrb[23].mxu1 }
 0x127   : > { %v2101_v58 = vadd.f32 %v1669_v51, %v1557_v47  ;;  %v1672_v60 = vadd.f32 %v1671_v55, %v1670_v52 }
 0x129   : > { %v2103_v61 = vadd.f32 %v1672_v60, %v1560_v54  ;;  %v1116_v18 = vadd.f32 %v1115_v15, %v2101_v58 }
 0x12a   : > { %v1561_v62 = vpop.f32.mrb[24].mxu0 }
 0x12b   : > { %v1673_v0 = vpop.f32.mrb[24].mxu1  ;;  %v1562_v1 = vpop.f32.mrb[25].mxu0  ;;  %v1117_v31 = vadd.f32 %v1116_v18, %v2103_v61 }
 0x12c   : > { %v1563_v2 = vadd.f32 %v1562_v1, %v1561_v62  ;;  %v1674_v3 = vpop.f32.mrb[25].mxu1  ;;  %v1564_v4 = vpop.f32.mrb[26].mxu0 }
 0x12d   : > { %v1675_v6 = vadd.f32 %v1674_v3, %v1673_v0  ;;  %v1676_v8 = vpop.f32.mrb[26].mxu1  ;;  %v1565_v10 = vpop.f32.mrb[27].mxu0 }
 0x12e   : > { %v1566_v11 = vadd.f32 %v1565_v10, %v1564_v4  ;;  %v1677_v12 = vpop.f32.mrb[27].mxu1 }
 0x12f   : > { %v2107_v13 = vadd.f32 %v1675_v6, %v1563_v2  ;;  %v1678_v14 = vadd.f32 %v1677_v12, %v1676_v8 }
 0x131   : > { %v2110_v16 = vadd.f32 %v1678_v14, %v1566_v11  ;;  %v1118_v34 = vadd.f32 %v1117_v31, %v2107_v13 }
 0x132   : > { %v1567_v17 = vpop.f32.mrb[28].mxu0 }
 0x133   : > { %v1679_v19 = vpop.f32.mrb[28].mxu1  ;;  %v1568_v20 = vpop.f32.mrb[29].mxu0  ;;  %v1119_v46 = vadd.f32 %v1118_v34, %v2110_v16 }
 0x134   : > { %v1569_v22 = vadd.f32 %v1568_v20, %v1567_v17  ;;  %v1680_v23 = vpop.f32.mrb[29].mxu1  ;;  %v1570_v25 = vpop.f32.mrb[30].mxu0 }
 0x135   : > { %v1681_v26 = vadd.f32 %v1680_v23, %v1679_v19  ;;  %v1682_v27 = vpop.f32.mrb[30].mxu1  ;;  %v1571_v28 = vpop.f32.mrb[31].mxu0 }
 0x136   : > { %v1572_v29 = vadd.f32 %v1571_v28, %v1570_v25  ;;  %v1683_v30 = vpop.f32.mrb[31].mxu1 }
 0x137   : > { %v2114_v32 = vadd.f32 %v1681_v26, %v1569_v22  ;;  %v1684_v33 = vadd.f32 %v1683_v30, %v1682_v27 }
 0x139   : > { %v2117_v35 = vadd.f32 %v1684_v33, %v1572_v29  ;;  %v1120_v52 = vadd.f32 %v1119_v46, %v2114_v32 }
 0x13a   : > { %v1573_v36 = vpop.f32.mrb[32].mxu0 }
 0x13b   : > { %v1685_v37 = vpop.f32.mrb[32].mxu1  ;;  %v1574_v39 = vpop.f32.mrb[33].mxu0  ;;  %v1121_v60 = vadd.f32 %v1120_v52, %v2117_v35 }
 0x13c   : > { %v1575_v40 = vadd.f32 %v1574_v39, %v1573_v36  ;;  %v1686_v42 = vpop.f32.mrb[33].mxu1  ;;  %v1576_v44 = vpop.f32.mrb[34].mxu0 }
 0x13d   : > { %v1687_v47 = vadd.f32 %v1686_v42, %v1685_v37  ;;  %v1688_v48 = vpop.f32.mrb[34].mxu1  ;;  %v1577_v49 = vpop.f32.mrb[35].mxu0 }
 0x13e   : > { %v1578_v50 = vadd.f32 %v1577_v49, %v1576_v44  ;;  %v1689_v51 = vpop.f32.mrb[35].mxu1 }
 0x13f   : > { %v2121_v53 = vadd.f32 %v1687_v47, %v1575_v40  ;;  %v1690_v54 = vadd.f32 %v1689_v51, %v1688_v48 }
 0x141   : > { %v2123_v55 = vadd.f32 %v1690_v54, %v1578_v50  ;;  %v1122_v3 = vadd.f32 %v1121_v60, %v2121_v53 }
 0x142   : > { %v1579_v56 = vpop.f32.mrb[36].mxu0 }
 0x143   : > { %v1691_v62 = vpop.f32.mrb[36].mxu1  ;;  %v1580_v63 = vpop.f32.mrb[37].mxu0  ;;  %v1123_v14 = vadd.f32 %v1122_v3, %v2123_v55 }
 0x144   : > { %v1581_v0 = vadd.f32 %v1580_v63, %v1579_v56  ;;  %v1692_v1 = vpop.f32.mrb[37].mxu1  ;;  %v1582_v2 = vpop.f32.mrb[38].mxu0 }
 0x145   : > { %v1693_v4 = vadd.f32 %v1692_v1, %v1691_v62  ;;  %v1694_v5 = vpop.f32.mrb[38].mxu1  ;;  %v1583_v6 = vpop.f32.mrb[39].mxu0 }
 0x146   : > { %v1584_v8 = vadd.f32 %v1583_v6, %v1582_v2  ;;  %v1695_v10 = vpop.f32.mrb[39].mxu1 }
 0x147   : > { %v2127_v11 = vadd.f32 %v1693_v4, %v1581_v0  ;;  %v1696_v12 = vadd.f32 %v1695_v10, %v1694_v5 }
 0x149   : > { %v2130_v15 = vadd.f32 %v1696_v12, %v1584_v8  ;;  %v1124_v18 = vadd.f32 %v1123_v14, %v2127_v11 }
 0x14a   : > { %v1585_v17 = vpop.f32.mrb[40].mxu0 }
 0x14b   : > { %v1697_v19 = vpop.f32.mrb[40].mxu1  ;;  %v1586_v20 = vpop.f32.mrb[41].mxu0  ;;  %v1125_v31 = vadd.f32 %v1124_v18, %v2130_v15 }
 0x14c   : > { %v1587_v22 = vadd.f32 %v1586_v20, %v1585_v17  ;;  %v1698_v23 = vpop.f32.mrb[41].mxu1  ;;  %v1588_v25 = vpop.f32.mrb[42].mxu0 }
 0x14d   : > { %v1699_v26 = vadd.f32 %v1698_v23, %v1697_v19  ;;  %v1700_v27 = vpop.f32.mrb[42].mxu1  ;;  %v1589_v28 = vpop.f32.mrb[43].mxu0 }
 0x14e   : > { %v1590_v29 = vadd.f32 %v1589_v28, %v1588_v25  ;;  %v1701_v30 = vpop.f32.mrb[43].mxu1 }
 0x14f   : > { %v2134_v33 = vadd.f32 %v1699_v26, %v1587_v22  ;;  %v1702_v34 = vadd.f32 %v1701_v30, %v1700_v27 }
 0x151   : > { %v1126_v36 = vadd.f32 %v1125_v31, %v2134_v33  ;;  %v2137_v37 = vadd.f32 %v1702_v34, %v1590_v29 }
 0x152   : > { %v1591_v39 = vpop.f32.mrb[44].mxu0 }
 0x153   : > { %v1127_v40 = vadd.f32 %v1126_v36, %v2137_v37  ;;  %v1703_v42 = vpop.f32.mrb[44].mxu1  ;;  %v1592_v44 = vpop.f32.mrb[45].mxu0 }
 0x154   : > { %v1593_v46 = vadd.f32 %v1592_v44, %v1591_v39  ;;  %v1704_v47 = vpop.f32.mrb[45].mxu1  ;;  %v1594_v48 = vpop.f32.mrb[46].mxu0 }
 0x155   : > { %v1705_v49 = vadd.f32 %v1704_v47, %v1703_v42  ;;  %v1706_v50 = vpop.f32.mrb[46].mxu1  ;;  %v1595_v51 = vpop.f32.mrb[47].mxu0 }
 0x156   : > { %v1596_v52 = vadd.f32 %v1595_v51, %v1594_v48  ;;  %v1707_v54 = vpop.f32.mrb[47].mxu1 }
 0x157   : > { %v2140_v56 = vadd.f32 %v1705_v49, %v1593_v46  ;;  %v1708_v60 = vadd.f32 %v1707_v54, %v1706_v50 }
 0x159   : > { %v1128_v62 = vadd.f32 %v1127_v40, %v2140_v56  ;;  %v2143_v63 = vadd.f32 %v1708_v60, %v1596_v52 }
 0x15a   : > { %v1597_v0 = vpop.f32.mrb[48].mxu0 }
 0x15b   : > { %v1129_v1 = vadd.f32 %v1128_v62, %v2143_v63  ;;  %v1709_v2 = vpop.f32.mrb[48].mxu1  ;;  %v1598_v3 = vpop.f32.mrb[49].mxu0 }
 0x15c   : > { %v1599_v4 = vadd.f32 %v1598_v3, %v1597_v0  ;;  %v1710_v5 = vpop.f32.mrb[49].mxu1  ;;  %v1600_v6 = vpop.f32.mrb[50].mxu0 }
 0x15d   : > { %v1711_v8 = vadd.f32 %v1710_v5, %v1709_v2  ;;  %v1712_v10 = vpop.f32.mrb[50].mxu1  ;;  %v1601_v12 = vpop.f32.mrb[51].mxu0 }
 0x15e   : > { %v1602_v14 = vadd.f32 %v1601_v12, %v1600_v6  ;;  %v1713_v17 = vpop.f32.mrb[51].mxu1 }
 0x15f   : > { %v2146_v18 = vadd.f32 %v1711_v8, %v1599_v4  ;;  %v1714_v19 = vadd.f32 %v1713_v17, %v1712_v10 }
 0x161   : > { %v1130_v20 = vadd.f32 %v1129_v1, %v2146_v18  ;;  %v1080_v22 = vadd.f32 %v1714_v19, %v1602_v14 }
 0x162   : > { %v1603_v23 = vpop.f32.mrb[52].mxu0 }
 0x163   : > { %v1131_v25 = vadd.f32 %v1130_v20, %v1080_v22  ;;  %v1715_v26 = vpop.f32.mrb[52].mxu1  ;;  %v1604_v27 = vpop.f32.mrb[53].mxu0 }
 0x164   : > { %v1605_v28 = vadd.f32 %v1604_v27, %v1603_v23  ;;  %v1716_v29 = vpop.f32.mrb[53].mxu1  ;;  %v1606_v30 = vpop.f32.mrb[54].mxu0 }
 0x165   : > { %v1717_v31 = vadd.f32 %v1716_v29, %v1715_v26  ;;  %v1718_v34 = vpop.f32.mrb[54].mxu1  ;;  %v1607_v36 = vpop.f32.mrb[55].mxu0 }
 0x166   : > { %v1608_v39 = vadd.f32 %v1607_v36, %v1606_v30  ;;  %v1719_v40 = vpop.f32.mrb[55].mxu1 }
 0x167   : > { %v1085_v42 = vadd.f32 %v1717_v31, %v1605_v28  ;;  %v1720_v44 = vadd.f32 %v1719_v40, %v1718_v34 }
 0x169   : > { %v1132_v46 = vadd.f32 %v1131_v25, %v1085_v42  ;;  %v1088_v47 = vadd.f32 %v1720_v44, %v1608_v39 }
 0x16a   : > { %v1609_v48 = vpop.f32.mrb[56].mxu0 }
 0x16b   : > { %v1133_v49 = vadd.f32 %v1132_v46, %v1088_v47  ;;  %v1721_v50 = vpop.f32.mrb[56].mxu1  ;;  %v1610_v51 = vpop.f32.mrb[57].mxu0 }
 0x16c   : > { %v1611_v52 = vadd.f32 %v1610_v51, %v1609_v48  ;;  %v1722_v54 = vpop.f32.mrb[57].mxu1  ;;  %v1612_v60 = vpop.f32.mrb[58].mxu0 }
 0x16d   : > { %v1723_v62 = vadd.f32 %v1722_v54, %v1721_v50  ;;  %v1724_v0 = vpop.f32.mrb[58].mxu1  ;;  %v1613_v1 = vpop.f32.mrb[59].mxu0 }
 0x16e   : > { %v1614_v2 = vadd.f32 %v1613_v1, %v1612_v60  ;;  %v1725_v3 = vpop.f32.mrb[59].mxu1 }
 0x16f   : > { %v1093_v4 = vadd.f32 %v1723_v62, %v1611_v52  ;;  %v1726_v5 = vadd.f32 %v1725_v3, %v1724_v0 }
 0x171   : > { %v1134_v6 = vadd.f32 %v1133_v49, %v1093_v4  ;;  %v1096_v8 = vadd.f32 %v1726_v5, %v1614_v2 }
 0x172   : > { %v1615_v10 = vpop.f32.mrb[60].mxu0 }
 0x173   : > { %v1135_v12 = vadd.f32 %v1134_v6, %v1096_v8  ;;  %v1727_v14 = vpop.f32.mrb[60].mxu1  ;;  %v1616_v17 = vpop.f32.mrb[61].mxu0 }
 0x174   : > { %v1617_v19 = vadd.f32 %v1616_v17, %v1615_v10  ;;  %v1728_v20 = vpop.f32.mrb[61].mxu1  ;;  %v1618_v23 = vpop.f32.mrb[62].mxu0 }
 0x175   : > { %v1729_v25 = vadd.f32 %v1728_v20, %v1727_v14  ;;  %v1730_v26 = vpop.f32.mrb[62].mxu1  ;;  %v1619_v27 = vpop.f32.mrb[63].mxu0 }
 0x176   : > { %v1620_v28 = vadd.f32 %v1619_v27, %v1618_v23  ;;  %v1731_v29 = vpop.f32.mrb[63].mxu1 }
 0x177   : > { %v1101_v30 = vadd.f32 %v1729_v25, %v1617_v19  ;;  %v1732_v31 = vadd.f32 %v1731_v29, %v1730_v26 }
 0x179   : > { %v1136_v34 = vadd.f32 %v1135_v12, %v1101_v30  ;;  %v1104_v36 = vadd.f32 %v1732_v31, %v1620_v28 }
 0x17b   : > { %v1137_v39 = vadd.f32 %v1136_v34, %v1104_v36 }
 0x17d   : > { %v1138_v40 = vrot.slane %v1137_v39, 4 }
 0x17f   : > { %v1139_v44 = vadd.f32 %v1138_v40, %v1137_v39 }
 0x181   : > { %v1140_v46 = vrot.slane %v1139_v44, 2 }
 0x183   : > { %v1141_v48 = vadd.f32 %v1140_v46, %v1139_v44 }
 0x185   : > { %v1142_v49 = vrot.slane %v1141_v48, 1 }
 0x187   : > { %v1143_v50 = vadd.f32 %v1142_v49, %v1141_v48 }
 0x189   : > { %v2149_v51 = vmul.f32 0.00390625, %v1143_v50 }
 0x18b   : > { %v2153_v52 = vsub.f32 %v2134_v33, %v2149_v51  ;;  %v2157_v54 = vsub.f32 %v2137_v37, %v2149_v51  ;;  %v2161_v60 = vsub.f32 %v2140_v56, %v2149_v51  ;;  %v2165_v62 = vsub.f32 %v2143_v63, %v2149_v51 }
 0x18c   : > { %v2169_v0 = vsub.f32 %v2146_v18, %v2149_v51  ;;  %v2172_v1 = vsub.f32 %v1080_v22, %v2149_v51  ;;  %v2175_v33 = vsub.f32 %v1085_v42, %v2149_v51  ;;  %v2178_v37 = vsub.f32 %v1088_v47, %v2149_v51 }
 0x18d   : > { %v2181_v56 = vsub.f32 %v1093_v4, %v2149_v51  ;;  %v2184_v2 = vsub.f32 %v1096_v8, %v2149_v51  ;;  %v2187_v63 = vsub.f32 %v1101_v30, %v2149_v51  ;;  %v2190_v18 = vsub.f32 %v1104_v36, %v2149_v51 }
 0x18e   : > { %v2194_v22 = vsub.f32 %v2074_v43, %v2149_v51  ;;  %v2198_v42 = vsub.f32 %v2076_v45, %v2149_v51  ;;  %v2202_v47 = vsub.f32 %v2078_v57, %v2149_v51  ;;  %v2210_v5 = vsub.f32 %v2080_v59, %v2149_v51 }
 0x18f   : > { %v2214_v43 = vsub.f32 %v2082_v7, %v2149_v51  ;;  %v2220_v57 = vsub.f32 %v2084_v9, %v2149_v51  ;;  %v2226_v59 = vsub.f32 %v2086_v21, %v2149_v51  ;;  %v2232_v14 = vsub.f32 %v2090_v24, %v2149_v51 }
 0x190   : > { %v1177_v3 = vmul.f32 %v2194_v22, %v2194_v22  ;;  %v1178_v4 = vmul.f32 %v2198_v42, %v2198_v42  ;;  %v1179_v45 = vmul.f32 %v2202_v47, %v2202_v47  ;;  %v1180_v8 = vmul.f32 %v2210_v5, %v2210_v5 }
 0x191   : > { %v1181_v7 = vmul.f32 %v2214_v43, %v2214_v43  ;;  %v1182_v9 = vmul.f32 %v2220_v57, %v2220_v57  ;;  %v2238_v19 = vsub.f32 %v2094_v38, %v2149_v51  ;;  %v1183_v21 = vmul.f32 %v2226_v59, %v2226_v59 }
 0x192   : > { %v1209_v6 = vadd.f32 %v1178_v4, %v1177_v3  ;;  %v2244_v23 = vsub.f32 %v2097_v41, %v2149_v51  ;;  %v1184_v24 = vmul.f32 %v2232_v14, %v2232_v14  ;;  %v2250_v26 = vsub.f32 %v2101_v58, %v2149_v51 }
 0x193   : > { %v1185_v38 = vmul.f32 %v2238_v19, %v2238_v19  ;;  %v2256_v28 = vsub.f32 %v2103_v61, %v2149_v51  ;;  %v2262_v30 = vsub.f32 %v2107_v13, %v2149_v51  ;;  %v2268_v34 = vsub.f32 %v2110_v16, %v2149_v51 }
 0x194   : > { %v1210_v10 = vadd.f32 %v1209_v6, %v1179_v45  ;;  %v1186_v41 = vmul.f32 %v2244_v23, %v2244_v23  ;;  %v1187_v58 = vmul.f32 %v2250_v26, %v2250_v26  ;;  %v2274_v39 = vsub.f32 %v2114_v32, %v2149_v51 }
 0x195   : > { %v1188_v61 = vmul.f32 %v2256_v28, %v2256_v28  ;;  %v1189_v13 = vmul.f32 %v2262_v30, %v2262_v30  ;;  %v2280_v44 = vsub.f32 %v2117_v35, %v2149_v51  ;;  %v1190_v16 = vmul.f32 %v2268_v34, %v2268_v34 }
 0x196   : > { %v1211_v12 = vadd.f32 %v1210_v10, %v1180_v8  ;;  %v2286_v48 = vsub.f32 %v2121_v53, %v2149_v51  ;;  %v1191_v32 = vmul.f32 %v2274_v39, %v2274_v39  ;;  %v2292_v50 = vsub.f32 %v2123_v55, %v2149_v51 }
 0x197   : > { %v1192_v35 = vmul.f32 %v2280_v44, %v2280_v44  ;;  %v2298_v4 = vsub.f32 %v2127_v11, %v2149_v51  ;;  %v1164_v6 = vsub.f32 %v2130_v15, %v2149_v51  ;;  %v1197_v11 = vmul.f32 %v2153_v52, %v2153_v52 }
 0x198   : > { %v1212_v17 = vadd.f32 %v1211_v12, %v1181_v7  ;;  %v1193_v53 = vmul.f32 %v2286_v48, %v2286_v48  ;;  %v1194_v8 = vmul.f32 %v2292_v50, %v2292_v50  ;;  %v1199_v15 = vmul.f32 %v2161_v60, %v2161_v60 }
 0x199   : > { %v1195_v10 = vmul.f32 %v2298_v4, %v2298_v4  ;;  %v1196_v12 = vmul.f32 %v1164_v6, %v1164_v6 }
 0x19a   : > { %v1213_v20 = vadd.f32 %v1212_v17, %v1182_v9 }
 0x19c   : > { %v1214_v25 = vadd.f32 %v1213_v20, %v1183_v21  ;;  %v1198_v21 = vmul.f32 %v2157_v54, %v2157_v54 }
 0x19e   : > { %v1215_v27 = vadd.f32 %v1214_v25, %v1184_v24  ;;  %v1200_v24 = vmul.f32 %v2165_v62, %v2165_v62 }
 0x1a0   : > { %v1216_v29 = vadd.f32 %v1215_v27, %v1185_v38  ;;  %v1201_v38 = vmul.f32 %v2169_v0, %v2169_v0 }
 0x1a2   : > { %v1217_v31 = vadd.f32 %v1216_v29, %v1186_v41  ;;  %v1202_v41 = vmul.f32 %v2172_v1, %v2172_v1 }
 0x1a4   : > { %v1218_v36 = vadd.f32 %v1217_v31, %v1187_v58  ;;  %v1203_v58 = vmul.f32 %v2175_v33, %v2175_v33 }
 0x1a6   : > { %v1219_v40 = vadd.f32 %v1218_v36, %v1188_v61  ;;  %v1204_v61 = vmul.f32 %v2178_v37, %v2178_v37 }
 0x1a8   : > { %v1220_v46 = vadd.f32 %v1219_v40, %v1189_v13  ;;  %v1205_v13 = vmul.f32 %v2181_v56, %v2181_v56 }
 0x1aa   : > { %v1221_v49 = vadd.f32 %v1220_v46, %v1190_v16  ;;  %v1206_v16 = vmul.f32 %v2184_v2, %v2184_v2 }
 0x1ac   : > { %v1222_v3 = vadd.f32 %v1221_v49, %v1191_v32  ;;  %v1207_v32 = vmul.f32 %v2187_v63, %v2187_v63 }
 0x1ae   : > { %v1223_v45 = vadd.f32 %v1222_v3, %v1192_v35  ;;  %v1208_v35 = vmul.f32 %v2190_v18, %v2190_v18 }
 0x1b0   : > { %v1224_v55 = vadd.f32 %v1223_v45, %v1193_v53 }
 0x1b2   : > { %v1225_v7 = vadd.f32 %v1224_v55, %v1194_v8 }
 0x1b4   : > { %v1226_v9 = vadd.f32 %v1225_v7, %v1195_v10 }
 0x1b6   : > { %v1227_v17 = vadd.f32 %v1226_v9, %v1196_v12 }
 0x1b8   : > { %v1228_v20 = vadd.f32 %v1227_v17, %v1197_v11 }
 0x1ba   : > { %v1229_v51 = vadd.f32 %v1228_v20, %v1198_v21 }
 0x1bc   : > { %v1230_v25 = vadd.f32 %v1229_v51, %v1199_v15 }
 0x1be   : > { %v1231_v27 = vadd.f32 %v1230_v25, %v1200_v24 }
 0x1c0   : > { %v1232_v29 = vadd.f32 %v1231_v27, %v1201_v38 }
 0x1c2   : > { %v1233_v31 = vadd.f32 %v1232_v29, %v1202_v41 }
 0x1c4   : > { %v1234_v36 = vadd.f32 %v1233_v31, %v1203_v58 }
 0x1c6   : > { %v1235_v40 = vadd.f32 %v1234_v36, %v1204_v61 }
 0x1c8   : > { %v1236_v46 = vadd.f32 %v1235_v40, %v1205_v13 }
 0x1ca   : > { %v1237_v49 = vadd.f32 %v1236_v46, %v1206_v16 }
 0x1cc   : > { %v1238_v3 = vadd.f32 %v1237_v49, %v1207_v32 }
 0x1ce   : > { %v1239_v53 = vadd.f32 %v1238_v3, %v1208_v35 }
 0x1d0   : > { %v1240_v45 = vrot.slane %v1239_v53, 4 }
 0x1d2   : > { %v1241_v8 = vadd.f32 %v1240_v45, %v1239_v53 }
 0x1d4   : > { %v1242_v55 = vrot.slane %v1241_v8, 2 }
 0x1d6   : > { %v1243_v10 = vadd.f32 %v1242_v55, %v1241_v8 }
 0x1d8   : > { %v1244_v7 = vrot.slane %v1243_v10, 1 }
 0x1da   : > { %v1245_v12 = vadd.f32 %v1244_v7, %v1243_v10 }
 0x1dc   : > { %v1246_v9 = vmul.f32 0.00390625, %v1245_v12 }
 0x1de   : > { %v1247_v11 = vadd.f32 1e-05, %v1246_v9 }
 0x1e0   : > { %1869 = vrsqrt.f32 %v1247_v11 }
 0x1ea   : > { %v1870_v17 = vpop.eup %1869 }
 0x1eb   : > { %v1249_v21 = vmul.f32 %v1870_v17, %v2194_v22  ;;  %v1250_v20 = vmul.f32 %v1870_v17, %v2198_v42  ;;  %v1251_v15 = vmul.f32 %v1870_v17, %v2202_v47  ;;  %v1252_v51 = vmul.f32 %v1870_v17, %v2210_v5 }
 0x1ec   : > { %v1253_v24 = vmul.f32 %v1870_v17, %v2214_v43  ;;  %v1254_v25 = vmul.f32 %v1870_v17, %v2220_v57  ;;  %v1255_v38 = vmul.f32 %v1870_v17, %v2226_v59  ;;  %v1256_v27 = vmul.f32 %v1870_v17, %v2232_v14 }
 0x1ed   : > { %v1257_v41 = vmul.f32 %v1870_v17, %v2238_v19  ;;  %v1258_v29 = vmul.f32 %v1870_v17, %v2244_v23  ;;  %v1259_v22 = vmul.f32 %v1870_v17, %v2250_v26  ;;  %v1260_v42 = vmul.f32 %v1870_v17, %v2256_v28 }
 0x1ee   : > { %v1261_v47 = vmul.f32 %v1870_v17, %v2262_v30  ;;  %v1262_v5 = vmul.f32 %v1870_v17, %v2268_v34  ;;  %v1263_v43 = vmul.f32 %v1870_v17, %v2274_v39  ;;  %v1264_v57 = vmul.f32 %v1870_v17, %v2280_v44 }
 0x1ef   : > { %v1265_v59 = vmul.f32 %v1870_v17, %v2286_v48  ;;  %v1266_v14 = vmul.f32 %v1870_v17, %v2292_v50  ;;  %v1267_v19 = vmul.f32 %v1870_v17, %v2298_v4  ;;  %v1268_v23 = vmul.f32 %v1870_v17, %v1164_v6 }
 0x1f0   : > { %v2353_v26 = vmul.f32 %v1870_v17, %v2153_v52  ;;  %v2356_v28 = vmul.f32 %v1870_v17, %v2157_v54  ;;  %v2359_v30 = vmul.f32 %v1870_v17, %v2161_v60  ;;  %v2362_v34 = vmul.f32 %v1870_v17, %v2165_v62 }
 0x1f1   : > { %v2365_v39 = vmul.f32 %v1870_v17, %v2169_v0  ;;  %v2368_v44 = vmul.f32 %v1870_v17, %v2172_v1  ;;  %v2371_v48 = vmul.f32 %v1870_v17, %v2175_v33  ;;  %v2374_v52 = vmul.f32 %v1870_v17, %v2178_v37 }
 0x1f2   : > { %v2382_v54 = vmul.f32 %v1870_v17, %v2181_v56  ;;  %v2385_v60 = vmul.f32 %v1870_v17, %v2184_v2  ;;  %v2388_v62 = vmul.f32 %v1870_v17, %v2187_v63  ;;  %v2391_v0 = vmul.f32 %v1870_v17, %v2190_v18 }
 0x1f3   : > { %v1281_v1 = vmax.f32 %v1249_v21, 0.0  ;;  %v1282_v33 = vmax.f32 %v1250_v20, 0.0  ;;  %v1283_v37 = vmax.f32 %v1251_v15, 0.0  ;;  %v1284_v50 = vmax.f32 %v1252_v51, 0.0 }
 0x1f4   : > { %v1285_v4 = vmax.f32 %v1253_v24, 0.0  ;;  %v1286_v56 = vmax.f32 %v1254_v25, 0.0  ;;  %v1287_v6 = vmax.f32 %v1255_v38, 0.0  ;;  %v1288_v2 = vmax.f32 %v1256_v27, 0.0 }
 0x1f5   : > { %v1289_v58 = vmax.f32 %v1257_v41, 0.0  ;;  %v1290_v63 = vmax.f32 %v1258_v29, 0.0  ;;  %v1291_v31 = vmax.f32 %v1259_v22, 0.0  ;;  %v1292_v61 = vmax.f32 %v1260_v42, 0.0  ;;  %1313 = vst [vmem:[%s2379_s29] sm:$0xff] %v1281_v1  ;;  %1314 = vst [vmem:[%s2379_s29 + $0x8] sm:$0xff] %v1282_v33 }
 0x1f6   : > { %1315 = vst [vmem:[%s2379_s29 + $0x10] sm:$0xff] %v1283_v37  ;;  %1316 = vst [vmem:[%s2379_s29 + $0x18] sm:$0xff] %v1284_v50  ;;  %v1293_v18 = vmax.f32 %v1261_v47, 0.0  ;;  %v1294_v36 = vmax.f32 %v1262_v5, 0.0  ;;  %v1295_v13 = vmax.f32 %v1263_v43, 0.0  ;;  %v1296_v40 = vmax.f32 %v1264_v57, 0.0 }
 0x1f7   : > { %1317 = vst [vmem:[%s2379_s29 + $0x20] sm:$0xff] %v1285_v4  ;;  %1318 = vst [vmem:[%s2379_s29 + $0x28] sm:$0xff] %v1286_v56  ;;  %v1297_v16 = vmax.f32 %v1265_v59, 0.0  ;;  %v1298_v46 = vmax.f32 %v1266_v14, 0.0  ;;  %v1299_v32 = vmax.f32 %v1267_v19, 0.0  ;;  %v1300_v49 = vmax.f32 %v1268_v23, 0.0 }
 0x1f8   : > { %1319 = vst [vmem:[%s2379_s29 + $0x30] sm:$0xff] %v1287_v6  ;;  %1320 = vst [vmem:[%s2379_s29 + $0x38] sm:$0xff] %v1288_v2  ;;  %v1301_v35 = vmax.f32 %v2353_v26, 0.0  ;;  %v1302_v3 = vmax.f32 %v2356_v28, 0.0  ;;  %v1303_v53 = vmax.f32 %v2359_v30, 0.0  ;;  %v1304_v45 = vmax.f32 %v2362_v34, 0.0 }
 0x1f9   : > { %1321 = vst [vmem:[%s2379_s29 + $0x40] sm:$0xff] %v1289_v58  ;;  %1322 = vst [vmem:[%s2379_s29 + $0x48] sm:$0xff] %v1290_v63  ;;  %v1305_v8 = vmax.f32 %v2365_v39, 0.0  ;;  %v1306_v55 = vmax.f32 %v2368_v44, 0.0  ;;  %v1307_v10 = vmax.f32 %v2371_v48, 0.0  ;;  %v1308_v7 = vmax.f32 %v2374_v52, 0.0 }
 0x1fa   : > { %1323 = vst [vmem:[%s2379_s29 + $0x50] sm:$0xff] %v1291_v31  ;;  %1324 = vst [vmem:[%s2379_s29 + $0x58] sm:$0xff] %v1292_v61  ;;  %v1309_v12 = vmax.f32 %v2382_v54, 0.0  ;;  %v1310_v9 = vmax.f32 %v2385_v60, 0.0  ;;  %v1311_v11 = vmax.f32 %v2388_v62, 0.0  ;;  %v1312_v17 = vmax.f32 %v2391_v0, 0.0 }
 0x1fb   : > { %1325 = vst [vmem:[%s2379_s29 + $0x60] sm:$0xff] %v1293_v18  ;;  %1326 = vst [vmem:[%s2379_s29 + $0x68] sm:$0xff] %v1294_v36 }
 0x1fc   : > { %1327 = vst [vmem:[%s2379_s29 + $0x70] sm:$0xff] %v1295_v13  ;;  %1328 = vst [vmem:[%s2379_s29 + $0x78] sm:$0xff] %v1296_v40 }
 0x1fd   : > { %1329 = vst [vmem:[%s2379_s29 + $0x80] sm:$0xff] %v1297_v16  ;;  %1330 = vst [vmem:[%s2379_s29 + $0x88] sm:$0xff] %v1298_v46 }
 0x1fe   : > { %1331 = vst [vmem:[%s2379_s29 + $0x90] sm:$0xff] %v1299_v32  ;;  %1332 = vst [vmem:[%s2379_s29 + $0x98] sm:$0xff] %v1300_v49 }
 0x1ff   : > { %1333 = vst [vmem:[%s2379_s29 + $0xa0] sm:$0xff] %v1301_v35  ;;  %1334 = vst [vmem:[%s2379_s29 + $0xa8] sm:$0xff] %v1302_v3 }
 0x200   : > { %1335 = vst [vmem:[%s2379_s29 + $0xb0] sm:$0xff] %v1303_v53  ;;  %1336 = vst [vmem:[%s2379_s29 + $0xb8] sm:$0xff] %v1304_v45 }
 0x201   : > { %1337 = vst [vmem:[%s2379_s29 + $0xc0] sm:$0xff] %v1305_v8  ;;  %1338 = vst [vmem:[%s2379_s29 + $0xc8] sm:$0xff] %v1306_v55 }
 0x202   : > { %1339 = vst [vmem:[%s2379_s29 + $0xd0] sm:$0xff] %v1307_v10  ;;  %1340 = vst [vmem:[%s2379_s29 + $0xd8] sm:$0xff] %v1308_v7 }
 0x203   : > { %1341 = vst [vmem:[%s2379_s29 + $0xe0] sm:$0xff] %v1309_v12  ;;  %1342 = vst [vmem:[%s2379_s29 + $0xe8] sm:$0xff] %v1310_v9 }
 0x204   : > { %1343 = vst [vmem:[%s2379_s29 + $0xf0] sm:$0xff] %v1311_v11  ;;  %1344 = vst [vmem:[%s2379_s29 + $0xf8] sm:$0xff] %v1312_v17 }
 0x205 PF: > { %s12_s9 = sadd.s32 1, %s1877_s9  }
 0x206   : > { %p9_p4 = scmp.ge.s32.totalorder %s12_s9, 4  }
 0x208   :  { %11 = sbr.rel (!%p9_p4) target bundleno = 1 (0x1), region = 58 }

// kernel: rhwf_encoder_forward.24
= control target key start
LH: loop header
LB: loop body
LE: loop exit
PB: predicated region body
PF: predicated region fallthrough
CT: control target
= control target key end

     0   :  { %s1391_s12 = smov 0   ;;  %s1784_s0 = inlined_call_operand.vmem [shape: bf16[2,256,128], index: 0, kind: input, shape index: {}]   ;;  %s1785_s1 = inlined_call_operand.vmem [shape: bf16[128,128], index: 1, kind: input, shape index: {}]   ;;  %s1786_s2 = inlined_call_operand.vmem [shape: f32[2,256,128], index: 2, kind: input, shape index: {}]   ;;  %s1787_s3 = inlined_call_operand.vmem [shape: bf16[2,256,128], index: 3, kind: output, shape index: {}]  }
   0x1 LB: > { %s1042_s13 = sadd.s32 4294967295, %s1369_s12   ;;  %p1046_p0 = scmp.ge.s32.totalorder %s1369_s12, 1  ;;  %s1369_s12 = sphi %s1391_s12, %s13_s12  }
   0x2   : > { %p147_p1 = scmp.lt.s32.totalorder %s1369_s12, 3 }
   0x4   : > { %p148_p2 = pnand %p1046_p0, %p147_p1 }
   0x6   : > { %151 = sbr.rel (%p148_p2) target bundleno = 470 (0x1d6), region = 32 }
   0xd   : > { %v1337_v0 = vld [vmem:[%s1785_s1] sm:$0xff]   ;;  %p176_p3 = scmp.lt.s32.totalorder %s1042_s13, 1  ;;  %v1338_v1 = vld [vmem:[%s1785_s1 + $0x8] sm:$0xff]   ;;  %v1339_v2 = vld [vmem:[%s1785_s1 + $0x10] sm:$0xff]  }
   0xe   : > { %1265 = vmatprep.subr.bf16.mxu0 %v1337_v0  ;;  %1313 = vmatprep.subr.bf16.mxu1 %v1337_v0  ;;  %v1340_v3 = vld [vmem:[%s1785_s1 + $0x18] sm:$0xff]   ;;  %v1341_v5 = vld [vmem:[%s1785_s1 + $0x20] sm:$0xff]   ;;  %v1342_v6 = vld [vmem:[%s1785_s1 + $0x28] sm:$0xff]  }
   0xf   : > { %s1797_s13 = smov (!%p176_p3, %s1042_s13), 1  ;;  %1266 = vmatpush3.bf16.msra.mxu0 %v1337_v0  ;;  %1321 = vmatpush3.bf16.msra.mxu1 %v1337_v0  ;;  %v1343_v8 = vld [vmem:[%s1785_s1 + $0x30] sm:$0xff]   ;;  %v1344_v9 = vld [vmem:[%s1785_s1 + $0x38] sm:$0xff]  }
  0x10   : > { %1267 = vmatprep.subr.bf16.mxu0 %v1338_v1  ;;  %s1111_s20 = sshll.u32 %s1797_s13, 7  ;;  %1314 = vmatprep.subr.bf16.mxu1 %v1338_v1  ;;  %s1112_s7 = sshll.u32 %s1797_s13, 8 }
  0x11   : > { %s1416_s23 = scalar_lea.vmem %s1784_s0, %s1111_s20  ;;  %s1653_s10 = scalar_lea.vmem %s1786_s2, %s1112_s7 }
  0x12   : > { %v1345_v4 = vld [vmem:[%s1416_s23] sm:$0xff]   ;;  %v1346_v10 = vld [vmem:[%s1416_s23 + $0x8] sm:$0xff]   ;;  %v1347_v12 = vld [vmem:[%s1416_s23 + $0x10] sm:$0xff]   ;;  %s1763_s15 = scalar_lea.vmem %s1787_s3, %s1111_s20 }
  0x13   : > { %1268 = vmatpush3.bf16.msra.mxu0 %v1338_v1  ;;  %1322 = vmatpush3.bf16.msra.mxu1 %v1338_v1  ;;  %v1353_v7 = vld [vmem:[%s1416_s23 + $0x40] sm:$0xff]   ;;  %v1354_v11 = vld [vmem:[%s1416_s23 + $0x48] sm:$0xff]   ;;  %v1355_v13 = vld [vmem:[%s1416_s23 + $0x50] sm:$0xff]  }
  0x14   : > { %1269 = vmatprep.subr.bf16.mxu0 %v1339_v2  ;;  %1315 = vmatprep.subr.bf16.mxu1 %v1339_v2  ;;  %v1348_v14 = vld [vmem:[%s1416_s23 + $0x18] sm:$0xff]   ;;  %v1349_v16 = vld [vmem:[%s1416_s23 + $0x20] sm:$0xff]   ;;  %v1350_v18 = vld [vmem:[%s1416_s23 + $0x28] sm:$0xff]  }
  0x15   : > { %1281 = vmatprep.mubr.bf16.mxu0 %v1345_v4  ;;  %1297 = vmatprep.mubr.bf16.mxu1 %v1353_v7  ;;  %v1356_v15 = vld [vmem:[%s1416_s23 + $0x58] sm:$0xff]   ;;  %v1357_v17 = vld [vmem:[%s1416_s23 + $0x60] sm:$0xff]   ;;  %v1358_v19 = vld [vmem:[%s1416_s23 + $0x68] sm:$0xff]  }
  0x16   : > { %v1351_v20 = vld [vmem:[%s1416_s23 + $0x30] sm:$0xff]   ;;  %v1352_v22 = vld [vmem:[%s1416_s23 + $0x38] sm:$0xff]  }
  0x17   : > { %1270 = vmatpush3.bf16.msra.mxu0 %v1339_v2  ;;  %1323 = vmatpush3.bf16.msra.mxu1 %v1339_v2  ;;  %v1359_v21 = vld [vmem:[%s1416_s23 + $0x70] sm:$0xff]   ;;  %v1360_v23 = vld [vmem:[%s1416_s23 + $0x78] sm:$0xff]  }
  0x18   : > { %1271 = vmatprep.subr.bf16.mxu0 %v1340_v3  ;;  %1316 = vmatprep.subr.bf16.mxu1 %v1340_v3 }
  0x1b   : > { %1272 = vmatpush3.bf16.msra.mxu0 %v1340_v3  ;;  %1324 = vmatpush3.bf16.msra.mxu1 %v1340_v3 }
  0x1c   : > { %1273 = vmatprep.subr.bf16.mxu0 %v1341_v5  ;;  %1317 = vmatprep.subr.bf16.mxu1 %v1341_v5 }
  0x1f   : > { %1274 = vmatpush3.bf16.msra.mxu0 %v1341_v5  ;;  %1325 = vmatpush3.bf16.msra.mxu1 %v1341_v5 }
  0x20   : > { %1275 = vmatprep.subr.bf16.mxu0 %v1342_v6  ;;  %1318 = vmatprep.subr.bf16.mxu1 %v1342_v6 }
  0x23   : > { %1276 = vmatpush3.bf16.msra.mxu0 %v1342_v6  ;;  %1326 = vmatpush3.bf16.msra.mxu1 %v1342_v6 }
  0x24   : > { %1277 = vmatprep.subr.bf16.mxu0 %v1343_v8  ;;  %1319 = vmatprep.subr.bf16.mxu1 %v1343_v8 }
  0x27   : > { %1278 = vmatpush3.bf16.msra.mxu0 %v1343_v8  ;;  %1327 = vmatpush3.bf16.msra.mxu1 %v1343_v8 }
  0x28   : > { %1279 = vmatprep.subr.bf16.mxu0 %v1344_v9  ;;  %1320 = vmatprep.subr.bf16.mxu1 %v1344_v9 }
  0x2b   : > { %1280 = vmatpush3.bf16.msra.mxu0 %v1344_v9  ;;  %1328 = vmatpush3.bf16.msra.mxu1 %v1344_v9 }
  0x2e   : > { %1282 = vmatmul.mubr.bf16.vlgmr.msra.gmra.mrb[0].mxu0 %v1346_v10  ;;  %1298 = vmatmul.mubr.bf16.vlgmr.msra.gmra.mrb[0].mxu1 %v1354_v11 }
  0x2f   : > { %1285 = vmatprep.mubr.bf16.mxu0 %v1347_v12  ;;  %1301 = vmatprep.mubr.bf16.mxu1 %v1355_v13 }
  0x36   : > { %1286 = vmatmul.mubr.bf16.gmra.mrb[4].mxu0 %v1348_v14  ;;  %1302 = vmatmul.mubr.bf16.gmra.mrb[4].mxu1 %v1356_v15 }
  0x37   : > { %1289 = vmatprep.mubr.bf16.mxu0 %v1349_v16  ;;  %1305 = vmatprep.mubr.bf16.mxu1 %v1357_v17 }
  0x3e   : > { %1290 = vmatmul.mubr.bf16.gmra.mrb[8].mxu0 %v1350_v18  ;;  %1306 = vmatmul.mubr.bf16.gmra.mrb[8].mxu1 %v1358_v19 }
  0x3f   : > { %1293 = vmatprep.mubr.bf16.mxu0 %v1351_v20  ;;  %1309 = vmatprep.mubr.bf16.mxu1 %v1359_v21 }
  0x46   : > { %1294 = vmatmul.mubr.bf16.gmra.mrb[12].mxu0 %v1352_v22  ;;  %1310 = vmatmul.mubr.bf16.gmra.mrb[12].mxu1 %v1360_v23 }
 0x101   : > { %v1449_v24 = vpop.f32.mrb[0].mxu0  ;;  %v1451_v25 = vpop.f32.mrb[0].mxu1 }
 0x102   : > { %v1453_v26 = vpop.f32.mrb[1].mxu0  ;;  %v1455_v27 = vpop.f32.mrb[1].mxu1 }
 0x103   : > { %v1457_v28 = vpop.f32.mrb[2].mxu0  ;;  %v1459_v29 = vpop.f32.mrb[2].mxu1 }
 0x104   : > { %v1461_v30 = vpop.f32.mrb[3].mxu0  ;;  %v1463_v31 = vpop.f32.mrb[3].mxu1 }
 0x105   : > { %v545_v32 = vadd.f32 %v1461_v30, %v1453_v26 }
 0x107   : > { %v546_v33 = vadd.f32 %v1449_v24, %v545_v32 }
 0x109   : > { %v1468_v34 = vpop.f32.mrb[4].mxu0  ;;  %v547_v35 = vadd.f32 %v1457_v28, %v546_v33  ;;  %v1471_v36 = vpop.f32.mrb[4].mxu1 }
 0x10a   : > { %v434_v37 = vpop.f32.mrb[5].mxu0  ;;  %v1473_v38 = vpop.f32.mrb[5].mxu1 }
 0x10b   : > { %v548_v39 = vadd.f32 %v547_v35, %v434_v37  ;;  %v1288_v40 = vpop.f32.mrb[6].mxu0  ;;  %v1475_v41 = vpop.f32.mrb[6].mxu1 }
 0x10c   : > { %v437_v42 = vpop.f32.mrb[7].mxu0  ;;  %v1477_v43 = vpop.f32.mrb[7].mxu1 }
 0x10d   : > { %v549_v44 = vadd.f32 %v548_v39, %v437_v42 }
 0x10f   : > { %v550_v45 = vadd.f32 %v1468_v34, %v549_v44 }
 0x111   : > { %v1291_v46 = vpop.f32.mrb[8].mxu0  ;;  %v551_v47 = vadd.f32 %v1288_v40, %v550_v45  ;;  %v1480_v48 = vpop.f32.mrb[8].mxu1 }
 0x112   : > { %v450_v49 = vpop.f32.mrb[9].mxu0  ;;  %v1482_v50 = vpop.f32.mrb[9].mxu1 }
 0x113   : > { %v552_v51 = vadd.f32 %v551_v47, %v450_v49  ;;  %v1292_v52 = vpop.f32.mrb[10].mxu0  ;;  %v1484_v53 = vpop.f32.mrb[10].mxu1 }
 0x114   : > { %v453_v54 = vpop.f32.mrb[11].mxu0  ;;  %v1486_v55 = vpop.f32.mrb[11].mxu1 }
 0x115   : > { %v553_v56 = vadd.f32 %v552_v51, %v453_v54 }
 0x117   : > { %v554_v57 = vadd.f32 %v1291_v46, %v553_v56 }
 0x119   : > { %v1295_v58 = vpop.f32.mrb[12].mxu0  ;;  %v555_v59 = vadd.f32 %v1292_v52, %v554_v57  ;;  %v1488_v60 = vpop.f32.mrb[12].mxu1 }
 0x11a   : > { %v466_v61 = vpop.f32.mrb[13].mxu0  ;;  %v530_v62 = vpop.f32.mrb[13].mxu1 }
 0x11b   : > { %v556_v63 = vadd.f32 %v555_v59, %v466_v61  ;;  %v1296_v0 = vpop.f32.mrb[14].mxu0  ;;  %v1312_v1 = vpop.f32.mrb[14].mxu1 }
 0x11c   : > { %v469_v2 = vpop.f32.mrb[15].mxu0  ;;  %v533_v3 = vpop.f32.mrb[15].mxu1 }
 0x11d   : > { %v557_v4 = vadd.f32 %v556_v63, %v469_v2 }
 0x11f   : > { %v558_v5 = vadd.f32 %v1295_v58, %v557_v4 }
 0x121   : > { %v559_v6 = vadd.f32 %v1296_v0, %v558_v5 }
 0x123   : > { %v560_v7 = vadd.f32 %v559_v6, %v1455_v27 }
 0x125   : > { %v561_v8 = vadd.f32 %v560_v7, %v1463_v31 }
 0x127   : > { %v562_v9 = vadd.f32 %v1451_v25, %v561_v8 }
 0x129   : > { %v563_v10 = vadd.f32 %v1459_v29, %v562_v9 }
 0x12b   : > { %v564_v11 = vadd.f32 %v563_v10, %v1473_v38 }
 0x12d   : > { %v565_v12 = vadd.f32 %v564_v11, %v1477_v43 }
 0x12f   : > { %v566_v13 = vadd.f32 %v1471_v36, %v565_v12 }
 0x131   : > { %v567_v14 = vadd.f32 %v1475_v41, %v566_v13 }
 0x133   : > { %v568_v15 = vadd.f32 %v567_v14, %v1482_v50 }
 0x135   : > { %v569_v16 = vadd.f32 %v568_v15, %v1486_v55 }
 0x137   : > { %v570_v17 = vadd.f32 %v1480_v48, %v569_v16 }
 0x139   : > { %v571_v18 = vadd.f32 %v1484_v53, %v570_v17 }
 0x13b   : > { %v572_v19 = vadd.f32 %v571_v18, %v530_v62 }
 0x13d   : > { %v573_v20 = vadd.f32 %v572_v19, %v533_v3 }
 0x13f   : > { %v574_v21 = vadd.f32 %v1488_v60, %v573_v20 }
 0x141   : > { %v575_v22 = vadd.f32 %v1312_v1, %v574_v21 }
 0x143   : > { %v576_v23 = vrot.slane %v575_v22, 4 }
 0x145   : > { %v577_v32 = vadd.f32 %v576_v23, %v575_v22 }
 0x147   : > { %v578_v33 = vrot.slane %v577_v32, 2 }
 0x149   : > { %v579_v35 = vadd.f32 %v578_v33, %v577_v32 }
 0x14b   : > { %v580_v39 = vrot.slane %v579_v35, 1 }
 0x14d   : > { %v581_v44 = vadd.f32 %v580_v39, %v579_v35 }
 0x14f   : > { %v582_v45 = vmul.f32 0.00390625, %v581_v44 }
 0x151   : > { %v1504_v47 = vsub.f32 %v1453_v26, %v582_v45  ;;  %v1507_v51 = vsub.f32 %v1461_v30, %v582_v45  ;;  %v1510_v56 = vsub.f32 %v1449_v24, %v582_v45  ;;  %v1513_v57 = vsub.f32 %v1457_v28, %v582_v45 }
 0x152   : > { %v1515_v59 = vsub.f32 %v434_v37, %v582_v45  ;;  %v1517_v63 = vsub.f32 %v437_v42, %v582_v45  ;;  %v1520_v4 = vsub.f32 %v1468_v34, %v582_v45  ;;  %v1522_v5 = vsub.f32 %v1288_v40, %v582_v45 }
 0x153   : > { %v1524_v26 = vsub.f32 %v450_v49, %v582_v45  ;;  %v1526_v6 = vsub.f32 %v453_v54, %v582_v45  ;;  %v1528_v30 = vsub.f32 %v1291_v46, %v582_v45  ;;  %v1530_v24 = vsub.f32 %v1292_v52, %v582_v45 }
 0x154   : > { %v1532_v7 = vsub.f32 %v466_v61, %v582_v45  ;;  %v1534_v28 = vsub.f32 %v469_v2, %v582_v45  ;;  %v1536_v37 = vsub.f32 %v1295_v58, %v582_v45  ;;  %v1538_v42 = vsub.f32 %v1296_v0, %v582_v45 }
 0x155   : > { %v1541_v34 = vsub.f32 %v1455_v27, %v582_v45  ;;  %v1544_v40 = vsub.f32 %v1463_v31, %v582_v45  ;;  %v1547_v49 = vsub.f32 %v1451_v25, %v582_v45  ;;  %v1550_v46 = vsub.f32 %v1459_v29, %v582_v45 }
 0x156   : > { %v1553_v52 = vsub.f32 %v1473_v38, %v582_v45  ;;  %v1556_v54 = vsub.f32 %v1477_v43, %v582_v45  ;;  %v1559_v58 = vsub.f32 %v1471_v36, %v582_v45  ;;  %v1562_v27 = vsub.f32 %v1475_v41, %v582_v45 }
 0x157   : > { %v1565_v31 = vsub.f32 %v1482_v50, %v582_v45  ;;  %v1568_v25 = vsub.f32 %v1486_v55, %v582_v45  ;;  %v1571_v29 = vsub.f32 %v1480_v48, %v582_v45  ;;  %v1574_v38 = vsub.f32 %v1484_v53, %v582_v45 }
 0x158   : > { %v1576_v43 = vsub.f32 %v530_v62, %v582_v45  ;;  %v1578_v61 = vsub.f32 %v533_v3, %v582_v45  ;;  %v1581_v36 = vsub.f32 %v1488_v60, %v582_v45  ;;  %v1583_v41 = vsub.f32 %v1312_v1, %v582_v45 }
 0x159   : > { %v615_v50 = vmul.f32 %v1504_v47, %v1504_v47  ;;  %v616_v55 = vmul.f32 %v1507_v51, %v1507_v51  ;;  %v617_v48 = vmul.f32 %v1510_v56, %v1510_v56  ;;  %v618_v62 = vmul.f32 %v1513_v57, %v1513_v57 }
 0x15a   : > { %v619_v60 = vmul.f32 %v1515_v59, %v1515_v59  ;;  %v620_v1 = vmul.f32 %v1517_v63, %v1517_v63  ;;  %v621_v8 = vmul.f32 %v1520_v4, %v1520_v4  ;;  %v622_v10 = vmul.f32 %v1522_v5, %v1522_v5 }
 0x15b   : > { %v647_v53 = vadd.f32 %v616_v55, %v615_v50  ;;  %v623_v12 = vmul.f32 %v1524_v26, %v1524_v26  ;;  %v624_v14 = vmul.f32 %v1526_v6, %v1526_v6  ;;  %v625_v16 = vmul.f32 %v1528_v30, %v1528_v30 }
 0x15c   : > { %v626_v18 = vmul.f32 %v1530_v24, %v1530_v24  ;;  %v627_v20 = vmul.f32 %v1532_v7, %v1532_v7  ;;  %v628_v22 = vmul.f32 %v1534_v28, %v1534_v28  ;;  %v629_v32 = vmul.f32 %v1536_v37, %v1536_v37 }
 0x15d   : > { %v648_v0 = vadd.f32 %v647_v53, %v617_v48  ;;  %v630_v35 = vmul.f32 %v1538_v42, %v1538_v42  ;;  %v631_v44 = vmul.f32 %v1541_v34, %v1541_v34  ;;  %v632_v50 = vmul.f32 %v1544_v40, %v1544_v40 }
 0x15e   : > { %v633_v48 = vmul.f32 %v1547_v49, %v1547_v49 }
 0x15f   : > { %v649_v2 = vadd.f32 %v648_v0, %v618_v62  ;;  %v634_v62 = vmul.f32 %v1550_v46, %v1550_v46 }
 0x161   : > { %v650_v3 = vadd.f32 %v649_v2, %v619_v60  ;;  %v635_v60 = vmul.f32 %v1553_v52, %v1553_v52 }
 0x163   : > { %v651_v9 = vadd.f32 %v650_v3, %v620_v1  ;;  %v636_v1 = vmul.f32 %v1556_v54, %v1556_v54 }
 0x165   : > { %v652_v11 = vadd.f32 %v651_v9, %v621_v8  ;;  %v637_v8 = vmul.f32 %v1559_v58, %v1559_v58 }
 0x167   : > { %v653_v13 = vadd.f32 %v652_v11, %v622_v10  ;;  %v638_v10 = vmul.f32 %v1562_v27, %v1562_v27 }
 0x169   : > { %v654_v15 = vadd.f32 %v653_v13, %v623_v12  ;;  %v639_v12 = vmul.f32 %v1565_v31, %v1565_v31 }
 0x16b   : > { %v655_v17 = vadd.f32 %v654_v15, %v624_v14  ;;  %v640_v14 = vmul.f32 %v1568_v25, %v1568_v25 }
 0x16d   : > { %v656_v19 = vadd.f32 %v655_v17, %v625_v16  ;;  %v641_v16 = vmul.f32 %v1571_v29, %v1571_v29 }
 0x16f   : > { %v657_v21 = vadd.f32 %v656_v19, %v626_v18  ;;  %v642_v18 = vmul.f32 %v1574_v38, %v1574_v38 }
 0x171   : > { %v658_v23 = vadd.f32 %v657_v21, %v627_v20  ;;  %v643_v20 = vmul.f32 %v1576_v43, %v1576_v43 }
 0x173   : > { %v659_v33 = vadd.f32 %v658_v23, %v628_v22  ;;  %v644_v22 = vmul.f32 %v1578_v61, %v1578_v61 }
 0x175   : > { %v660_v39 = vadd.f32 %v659_v33, %v629_v32  ;;  %v645_v32 = vmul.f32 %v1581_v36, %v1581_v36 }
 0x177   : > { %v661_v45 = vadd.f32 %v660_v39, %v630_v35  ;;  %v646_v35 = vmul.f32 %v1583_v41, %v1583_v41 }
 0x179   : > { %v662_v55 = vadd.f32 %v661_v45, %v631_v44 }
 0x17b   : > { %v663_v53 = vadd.f32 %v662_v55, %v632_v50 }
 0x17d   : > { %v664_v0 = vadd.f32 %v663_v53, %v633_v48 }
 0x17f   : > { %v665_v2 = vadd.f32 %v664_v0, %v634_v62 }
 0x181   : > { %v666_v3 = vadd.f32 %v665_v2, %v635_v60 }
 0x183   : > { %v667_v9 = vadd.f32 %v666_v3, %v636_v1 }
 0x185   : > { %v668_v11 = vadd.f32 %v667_v9, %v637_v8 }
 0x187   : > { %v669_v13 = vadd.f32 %v668_v11, %v638_v10 }
 0x189   : > { %v670_v15 = vadd.f32 %v669_v13, %v639_v12 }
 0x18b   : > { %v671_v17 = vadd.f32 %v670_v15, %v640_v14  ;;  %v719_v14 = vld [vmem:[%s1653_s10] sm:$0xff]  ;;  %v722_v15 = vld [vmem:[%s1653_s10 + $0x18] sm:$0xff] }
 0x18d   : > { %v672_v19 = vadd.f32 %v671_v17, %v641_v16  ;;  %v726_v17 = vld [vmem:[%s1653_s10 + $0x38] sm:$0xff] }
 0x18f   : > { %v673_v21 = vadd.f32 %v672_v19, %v642_v18 }
 0x191   : > { %v674_v23 = vadd.f32 %v673_v21, %v643_v20 }
 0x193   : > { %v675_v33 = vadd.f32 %v674_v23, %v644_v22  ;;  %v731_v23 = vld [vmem:[%s1653_s10 + $0x60] sm:$0xff] }
 0x195   : > { %v676_v39 = vadd.f32 %v675_v33, %v645_v32 }
 0x197   : > { %v677_v44 = vadd.f32 %v676_v39, %v646_v35  ;;  %v733_v39 = vld [vmem:[%s1653_s10 + $0x70] sm:$0xff] }
 0x199   : > { %v678_v45 = vrot.slane %v677_v44, 4 }
 0x19b   : > { %v679_v50 = vadd.f32 %v678_v45, %v677_v44  ;;  %v737_v44 = vld [vmem:[%s1653_s10 + $0x90] sm:$0xff]  ;;  %v738_v45 = vld [vmem:[%s1653_s10 + $0x98] sm:$0xff] }
 0x19d   : > { %v680_v55 = vrot.slane %v679_v50, 2 }
 0x19f   : > { %v681_v48 = vadd.f32 %v680_v55, %v679_v50 }
 0x1a1   : > { %v682_v53 = vrot.slane %v681_v48, 1 }
 0x1a3   : > { %v683_v62 = vadd.f32 %v682_v53, %v681_v48  ;;  %v741_v48 = vld [vmem:[%s1653_s10 + $0xb0] sm:$0xff] }
 0x1a5   : > { %v684_v0 = vmul.f32 0.00390625, %v683_v62 }
 0x1a7   : > { %v685_v60 = vadd.f32 1e-05, %v684_v0 }
 0x1a9   : > { %1361 = vrsqrt.f32 %v685_v60 }
 0x1b3   : > { %v1362_v2 = vpop.eup %1361 }
 0x1b4   : > { %v687_v1 = vmul.f32 %v1362_v2, %v1504_v47  ;;  %v688_v3 = vmul.f32 %v1362_v2, %v1507_v51  ;;  %v689_v8 = vmul.f32 %v1362_v2, %v1510_v56  ;;  %v690_v9 = vmul.f32 %v1362_v2, %v1513_v57 }
 0x1b5   : > { %v691_v10 = vmul.f32 %v1362_v2, %v1515_v59  ;;  %v692_v11 = vmul.f32 %v1362_v2, %v1517_v63  ;;  %v693_v12 = vmul.f32 %v1362_v2, %v1520_v4  ;;  %v694_v13 = vmul.f32 %v1362_v2, %v1522_v5 }
 0x1b6   : > { %v695_v47 = vmul.f32 %v1362_v2, %v1524_v26  ;;  %v696_v51 = vmul.f32 %v1362_v2, %v1526_v6  ;;  %v697_v56 = vmul.f32 %v1362_v2, %v1528_v30  ;;  %v698_v57 = vmul.f32 %v1362_v2, %v1530_v24  ;;  %v720_v26 = vld [vmem:[%s1653_s10 + $0x8] sm:$0xff]  ;;  %v721_v6 = vld [vmem:[%s1653_s10 + $0x10] sm:$0xff] }
 0x1b7   : > { %v699_v59 = vmul.f32 %v1362_v2, %v1532_v7  ;;  %v700_v63 = vmul.f32 %v1362_v2, %v1534_v28  ;;  %v701_v4 = vmul.f32 %v1362_v2, %v1536_v37  ;;  %v702_v5 = vmul.f32 %v1362_v2, %v1538_v42  ;;  %v723_v28 = vld [vmem:[%s1653_s10 + $0x20] sm:$0xff]  ;;  %v724_v37 = vld [vmem:[%s1653_s10 + $0x28] sm:$0xff]  ;;  %v725_v42 = vld [vmem:[%s1653_s10 + $0x30] sm:$0xff] }
 0x1b8   : > { %v703_v30 = vmul.f32 %v1362_v2, %v1541_v34  ;;  %v704_v24 = vmul.f32 %v1362_v2, %v1544_v40  ;;  %v705_v16 = vmul.f32 %v1362_v2, %v1547_v49  ;;  %v706_v7 = vmul.f32 %v1362_v2, %v1550_v46  ;;  %v727_v40 = vld [vmem:[%s1653_s10 + $0x40] sm:$0xff]  ;;  %v728_v49 = vld [vmem:[%s1653_s10 + $0x48] sm:$0xff]  ;;  %v729_v46 = vld [vmem:[%s1653_s10 + $0x50] sm:$0xff] }
 0x1b9   : > { %v707_v18 = vmul.f32 %v1362_v2, %v1553_v52  ;;  %v708_v19 = vmul.f32 %v1362_v2, %v1556_v54  ;;  %v709_v20 = vmul.f32 %v1362_v2, %v1559_v58  ;;  %v710_v34 = vmul.f32 %v1362_v2, %v1562_v27  ;;  %v730_v58 = vld [vmem:[%s1653_s10 + $0x58] sm:$0xff]  ;;  %v732_v27 = vld [vmem:[%s1653_s10 + $0x68] sm:$0xff] }
 0x1ba   : > { %v711_v21 = vmul.f32 %v1362_v2, %v1565_v31  ;;  %v712_v22 = vmul.f32 %v1362_v2, %v1568_v25  ;;  %v713_v52 = vmul.f32 %v1362_v2, %v1571_v29  ;;  %v714_v54 = vmul.f32 %v1362_v2, %v1574_v38  ;;  %v734_v25 = vld [vmem:[%s1653_s10 + $0x78] sm:$0xff]  ;;  %v735_v29 = vld [vmem:[%s1653_s10 + $0x80] sm:$0xff]  ;;  %v736_v38 = vld [vmem:[%s1653_s10 + $0x88] sm:$0xff] }
 0x1bb   : > { %v715_v32 = vmul.f32 %v1362_v2, %v1576_v43  ;;  %v716_v33 = vmul.f32 %v1362_v2, %v1578_v61  ;;  %v717_v35 = vmul.f32 %v1362_v2, %v1581_v36  ;;  %v718_v31 = vmul.f32 %v1362_v2, %v1583_v41  ;;  %v739_v36 = vld [vmem:[%s1653_s10 + $0xa0] sm:$0xff]  ;;  %v740_v41 = vld [vmem:[%s1653_s10 + $0xa8] sm:$0xff]  ;;  %v742_v2 = vld [vmem:[%s1653_s10 + $0xb8] sm:$0xff] }
 0x1bc   : > { %v1707_v50 = vadd.f32 %v719_v14, %v687_v1  ;;  %v1709_v55 = vadd.f32 %v720_v26, %v688_v3  ;;  %v1711_v43 = vadd.f32 %v721_v6, %v689_v8  ;;  %v1713_v61 = vadd.f32 %v722_v15, %v690_v9  ;;  %v743_v1 = vld [vmem:[%s1653_s10 + $0xc0] sm:$0xff]  ;;  %v744_v3 = vld [vmem:[%s1653_s10 + $0xc8] sm:$0xff]  ;;  %v746_v26 = vld [vmem:[%s1653_s10 + $0xd8] sm:$0xff] }
 0x1bd   : > { %v1718_v53 = vadd.f32 %v723_v28, %v691_v10  ;;  %v1720_v62 = vadd.f32 %v724_v37, %v692_v11  ;;  %v1722_v0 = vadd.f32 %v725_v42, %v693_v12  ;;  %v1724_v60 = vadd.f32 %v726_v17, %v694_v13  ;;  %v745_v11 = vld [vmem:[%s1653_s10 + $0xd0] sm:$0xff]  ;;  %v747_v12 = vld [vmem:[%s1653_s10 + $0xe0] sm:$0xff]  ;;  %v748_v37 = vld [vmem:[%s1653_s10 + $0xe8] sm:$0xff] }
 0x1be   : > { %v1729_v8 = vadd.f32 %v727_v40, %v695_v47  ;;  %v1731_v9 = vadd.f32 %v728_v49, %v696_v51  ;;  %v1733_v14 = vadd.f32 %v729_v46, %v697_v56  ;;  %v1735_v10 = vadd.f32 %v730_v58, %v698_v57  ;;  %v749_v42 = vld [vmem:[%s1653_s10 + $0xf0] sm:$0xff]  ;;  %v750_v17 = vld [vmem:[%s1653_s10 + $0xf8] sm:$0xff] }
 0x1bf   : > { %1788 = vst [vmem:[#allocation2_spill] sm:$0xff] %v1724_v60  ;;  %v1740_v6 = vadd.f32 %v731_v23, %v699_v59  ;;  %v764_v13 = vadd.f32 %v732_v27, %v700_v63  ;;  %v765_v15 = vadd.f32 %v733_v39, %v701_v4  ;;  %v766_v28 = vadd.f32 %v734_v25, %v702_v5 }
 0x1c0   : > { %1789 = vst [vmem:[#allocation3_spill] sm:$0xff] %v1731_v9  ;;  %1790 = vst [vmem:[#allocation4_spill] sm:$0xff] %v1733_v14  ;;  %v767_v60 = vadd.f32 %v735_v29, %v703_v30  ;;  %v768_v47 = vadd.f32 %v736_v38, %v704_v24  ;;  %v769_v40 = vadd.f32 %v737_v44, %v705_v16  ;;  %v783_v5 = vmax.f32 %v1707_v50, 0.0 }
 0x1c1   : > { %1791 = vst [vmem:[#allocation5_spill] sm:$0xff] %v1735_v10  ;;  %v770_v51 = vadd.f32 %v738_v45, %v706_v7  ;;  %v771_v49 = vadd.f32 %v739_v36, %v707_v18  ;;  %v772_v56 = vadd.f32 %v740_v41, %v708_v19  ;;  %v773_v46 = vadd.f32 %v741_v48, %v709_v20 }
 0x1c2   : > { %v774_v57 = vadd.f32 %v742_v2, %v710_v34  ;;  %v775_v58 = vadd.f32 %v743_v1, %v711_v21  ;;  %v776_v10 = vadd.f32 %v744_v3, %v712_v22  ;;  %v777_v14 = vadd.f32 %v745_v11, %v713_v52 }
 0x1c3   : > { %v778_v9 = vadd.f32 %v746_v26, %v714_v54  ;;  %v779_v59 = vadd.f32 %v747_v12, %v715_v32  ;;  %v780_v23 = vadd.f32 %v748_v37, %v716_v33  ;;  %v781_v63 = vadd.f32 %v749_v42, %v717_v35 }
 0x1c4   : > { %v782_v4 = vadd.f32 %v750_v17, %v718_v31  ;;  %v784_v27 = vmax.f32 %v1709_v55, 0.0  ;;  %v785_v30 = vmax.f32 %v1711_v43, 0.0  ;;  %v786_v24 = vmax.f32 %v1713_v61, 0.0 }
 0x1c5   : > { %v787_v16 = vmax.f32 %v1718_v53, 0.0  ;;  %v788_v7 = vmax.f32 %v1720_v62, 0.0  ;;  %v789_v18 = vmax.f32 %v1722_v0, 0.0  ;;  %v791_v34 = vmax.f32 %v1729_v8, 0.0 }
 0x1c6   : > { %v1792_v19 = vld [vmem:[#allocation2_spill] sm:$0xff]  ;;  %v795_v35 = vmax.f32 %v1740_v6, 0.0  ;;  %v796_v31 = vmax.f32 %v764_v13, 0.0  ;;  %v797_v39 = vmax.f32 %v765_v15, 0.0  ;;  %v798_v25 = vmax.f32 %v766_v28, 0.0 }
 0x1c7   : > { %v790_v20 = vmax.f32 %v1792_v19, 0.0  ;;  %v1793_v21 = vld [vmem:[#allocation3_spill] sm:$0xff]  ;;  %v1794_v52 = vld [vmem:[#allocation4_spill] sm:$0xff]  ;;  %v799_v29 = vmax.f32 %v767_v60, 0.0  ;;  %v800_v38 = vmax.f32 %v768_v47, 0.0  ;;  %v801_v44 = vmax.f32 %v769_v40, 0.0 }
 0x1c8   : > { %v792_v22 = vmax.f32 %v1793_v21, 0.0  ;;  %v793_v54 = vmax.f32 %v1794_v52, 0.0  ;;  %v1795_v32 = vld [vmem:[#allocation5_spill] sm:$0xff]  ;;  %v802_v45 = vmax.f32 %v770_v51, 0.0  ;;  %v803_v50 = vmax.f32 %v771_v49, 0.0 }
 0x1c9   : > { %v794_v33 = vmax.f32 %v1795_v32, 0.0  ;;  %v804_v55 = vmax.f32 %v772_v56, 0.0  ;;  %v805_v43 = vmax.f32 %v773_v46, 0.0  ;;  %v806_v61 = vmax.f32 %v774_v57, 0.0 }
 0x1ca   : > { %v807_v36 = vmax.f32 %v775_v58, 0.0  ;;  %v808_v41 = vmax.f32 %v776_v10, 0.0  ;;  %v809_v48 = vmax.f32 %v777_v14, 0.0  ;;  %v810_v53 = vmax.f32 %v778_v9, 0.0 }
 0x1cb   : > { %v811_v62 = vmax.f32 %v779_v59, 0.0  ;;  %v812_v0 = vmax.f32 %v780_v23, 0.0  ;;  %v813_v60 = vmax.f32 %v781_v63, 0.0  ;;  %v814_v2 = vmax.f32 %v782_v4, 0.0 }
 0x1cc   : > { %v1149_v1 = vpack.c.bf16 %v784_v27, %v783_v5  ;;  %v1154_v3 = vpack.c.bf16 %v786_v24, %v785_v30  ;;  %v1159_v8 = vpack.c.bf16 %v788_v7, %v787_v16  ;;  %v1164_v9 = vpack.c.bf16 %v790_v20, %v789_v18 }
 0x1cd   : > { %v1169_v14 = vpack.c.bf16 %v792_v22, %v791_v34  ;;  %v1174_v10 = vpack.c.bf16 %v794_v33, %v793_v54  ;;  %v1179_v11 = vpack.c.bf16 %v796_v31, %v795_v35  ;;  %v1184_v26 = vpack.c.bf16 %v798_v25, %v797_v39 }
 0x1ce   : > { %1150 = vst [vmem:[%s1763_s15] sm:$0xff] %v1149_v1   ;;  %1226 = vst [vmem:[%s1763_s15 + $0x8] sm:$0xff] %v1154_v3   ;;  %v1189_v12 = vpack.c.bf16 %v800_v38, %v799_v29  ;;  %v1194_v6 = vpack.c.bf16 %v802_v45, %v801_v44  ;;  %v1199_v13 = vpack.c.bf16 %v804_v55, %v803_v50 }
 0x1cf   : > { %1227 = vst [vmem:[%s1763_s15 + $0x10] sm:$0xff] %v1159_v8   ;;  %1228 = vst [vmem:[%s1763_s15 + $0x18] sm:$0xff] %v1164_v9   ;;  %v1204_v15 = vpack.c.bf16 %v806_v61, %v805_v43  ;;  %v1209_v28 = vpack.c.bf16 %v808_v41, %v807_v36  ;;  %v1214_v37 = vpack.c.bf16 %v810_v53, %v809_v48 }
 0x1d0   : > { %1229 = vst [vmem:[%s1763_s15 + $0x20] sm:$0xff] %v1169_v14   ;;  %1230 = vst [vmem:[%s1763_s15 + $0x28] sm:$0xff] %v1174_v10   ;;  %v1219_v42 = vpack.c.bf16 %v812_v0, %v811_v62  ;;  %v1224_v17 = vpack.c.bf16 %v814_v2, %v813_v60 }
 0x1d1   : > { %1231 = vst [vmem:[%s1763_s15 + $0x30] sm:$0xff] %v1179_v11   ;;  %1232 = vst [vmem:[%s1763_s15 + $0x38] sm:$0xff] %v1184_v26  }
 0x1d2   : > { %1233 = vst [vmem:[%s1763_s15 + $0x40] sm:$0xff] %v1189_v12   ;;  %1234 = vst [vmem:[%s1763_s15 + $0x48] sm:$0xff] %v1194_v6  }
 0x1d3   : > { %1235 = vst [vmem:[%s1763_s15 + $0x50] sm:$0xff] %v1199_v13   ;;  %1236 = vst [vmem:[%s1763_s15 + $0x58] sm:$0xff] %v1204_v15  }
 0x1d4   : > { %1237 = vst [vmem:[%s1763_s15 + $0x60] sm:$0xff] %v1209_v28   ;;  %1238 = vst [vmem:[%s1763_s15 + $0x68] sm:$0xff] %v1214_v37  }
 0x1d5   : > { %1239 = vst [vmem:[%s1763_s15 + $0x70] sm:$0xff] %v1219_v42   ;;  %1240 = vst [vmem:[%s1763_s15 + $0x78] sm:$0xff] %v1224_v17  }
 0x1d6 PF: > { %s13_s12 = sadd.s32 1, %s1369_s12  }
 0x1d7   : > { %p10_p4 = scmp.ge.s32.totalorder %s13_s12, 4  }
 0x1d9   :  { %12 = sbr.rel (!%p10_p4) target bundleno = 1 (0x1), region = 65 }

// kernel: rhwf_encoder_forward.25
= control target key start
LH: loop header
LB: loop body
LE: loop exit
PB: predicated region body
PF: predicated region fallthrough
CT: control target
= control target key end

     0   :  { %s2181_s9 = smov 0   ;;  %s2708_s0 = inlined_call_operand.vmem [shape: bf16[2,256,512], index: 0, kind: input, shape index: {}]   ;;  %s2709_s1 = inlined_call_operand.vmem [shape: bf16[512,128], index: 1, kind: input, shape index: {}]   ;;  %s2710_s2 = inlined_call_operand.vmem [shape: bf16[2,256,128], index: 2, kind: output, shape index: {}]  }
   0x1 LB: > { %s1528_s10 = sadd.s32 4294967295, %s2164_s9   ;;  %p1532_p0 = scmp.ge.s32.totalorder %s2164_s9, 1  ;;  %s2164_s9 = sphi %s2181_s9, %s12_s9  }
   0x2   : > { %p112_p1 = scmp.lt.s32.totalorder %s2164_s9, 3 }
   0x4   : > { %p113_p2 = pnand %p1532_p0, %p112_p1 }
   0x5   : > { %v2028_v0 = vld [vmem:[%s2709_s1 + $0x40] sm:$0xff] (!%p113_p2)   ;;  %v2032_v4 = vld [vmem:[%s2709_s1 + $0x48] sm:$0xff] (!%p113_p2)   ;;  %v2036_v8 = vld [vmem:[%s2709_s1 + $0x50] sm:$0xff] (!%p113_p2)   ;;  %p134_p3 = scmp.lt.s32.totalorder (!%p113_p2), %s1528_s10, 1 }
   0x6   : > { %116 = sbr.rel (%p113_p2) target bundleno = 517 (0x205), region = 28  ;;  %v2029_v1 = vld [vmem:[%s2709_s1 + $0xc0] sm:$0xff] (!%p113_p2)   ;;  %1796 = vmatprep.subr.bf16.mxu0 (!%p113_p2), %v2028_v0  ;;  %v2033_v5 = vld [vmem:[%s2709_s1 + $0xc8] sm:$0xff] (!%p113_p2)   ;;  %v2037_v9 = vld [vmem:[%s2709_s1 + $0xd0] sm:$0xff] (!%p113_p2)  }
   0x7   : > { %v2030_v2 = vld [vmem:[%s2709_s1] sm:$0xff] (!%p113_p2)   ;;  %1908 = vmatprep.subr.bf16.mxu1 (!%p113_p2), %v2029_v1  ;;  %v2034_v6 = vld [vmem:[%s2709_s1 + $0x8] sm:$0xff] (!%p113_p2)   ;;  %v2038_v10 = vld [vmem:[%s2709_s1 + $0x10] sm:$0xff] (!%p113_p2)  }
   0x8   : > { %v2031_v3 = vld [vmem:[%s2709_s1 + $0x80] sm:$0xff] (!%p113_p2)   ;;  %1797 = vmatpush3.bf16.msra.mxu0 (!%p113_p2), %v2030_v2  ;;  %v2035_v7 = vld [vmem:[%s2709_s1 + $0x88] sm:$0xff] (!%p113_p2)   ;;  %v2039_v11 = vld [vmem:[%s2709_s1 + $0x90] sm:$0xff] (!%p113_p2)  }
   0x9   : > { %1909 = vmatpush3.bf16.msra.mxu1 (!%p113_p2), %v2031_v3  ;;  %1798 = vmatprep.subr.bf16.mxu0 (!%p113_p2), %v2032_v4  ;;  %v2040_v12 = vld [vmem:[%s2709_s1 + $0x58] sm:$0xff] (!%p113_p2)   ;;  %v2044_v16 = vld [vmem:[%s2709_s1 + $0x60] sm:$0xff] (!%p113_p2)   ;;  %v2048_v20 = vld [vmem:[%s2709_s1 + $0x68] sm:$0xff] (!%p113_p2)  }
   0xa   : > { %1910 = vmatprep.subr.bf16.mxu1 (!%p113_p2), %v2033_v5  ;;  %v2041_v13 = vld [vmem:[%s2709_s1 + $0xd8] sm:$0xff] (!%p113_p2)   ;;  %v2045_v17 = vld [vmem:[%s2709_s1 + $0xe0] sm:$0xff] (!%p113_p2)   ;;  %v2049_v21 = vld [vmem:[%s2709_s1 + $0xe8] sm:$0xff] (!%p113_p2)  }
   0xb   : > { %v2042_v14 = vld [vmem:[%s2709_s1 + $0x18] sm:$0xff] (!%p113_p2)   ;;  %v2046_v18 = vld [vmem:[%s2709_s1 + $0x20] sm:$0xff] (!%p113_p2)   ;;  %v2050_v22 = vld [vmem:[%s2709_s1 + $0x28] sm:$0xff] (!%p113_p2)  }
   0xc   : > { %1799 = vmatpush3.bf16.msra.mxu0 (!%p113_p2), %v2034_v6  ;;  %v2043_v15 = vld [vmem:[%s2709_s1 + $0x98] sm:$0xff] (!%p113_p2)   ;;  %v2047_v19 = vld [vmem:[%s2709_s1 + $0xa0] sm:$0xff] (!%p113_p2)   ;;  %v2051_v23 = vld [vmem:[%s2709_s1 + $0xa8] sm:$0xff] (!%p113_p2)  }
   0xd   : > { %1911 = vmatpush3.bf16.msra.mxu1 %v2035_v7  ;;  %1800 = vmatprep.subr.bf16.mxu0 %v2036_v8  ;;  %s2712_s10 = smov (!%p134_p3, %s1528_s10), 1  ;;  %v2052_v24 = vld [vmem:[%s2709_s1 + $0x70] sm:$0xff]   ;;  %v2056_v28 = vld [vmem:[%s2709_s1 + $0x78] sm:$0xff]  }
   0xe   : > { %1912 = vmatprep.subr.bf16.mxu1 %v2037_v9  ;;  %v2053_v25 = vld [vmem:[%s2709_s1 + $0xf0] sm:$0xff]   ;;  %s1667_s13 = sshll.u32 %s2712_s10, 9  ;;  %v2057_v29 = vld [vmem:[%s2709_s1 + $0xf8] sm:$0xff]   ;;  %s1668_s27 = sshll.u32 %s2712_s10, 7 }
   0xf   : > { %v2054_v26 = vld [vmem:[%s2709_s1 + $0x30] sm:$0xff]   ;;  %s2289_s22 = scalar_lea.vmem %s2708_s0, %s1667_s13  ;;  %v2058_v30 = vld [vmem:[%s2709_s1 + $0x38] sm:$0xff]   ;;  %s2687_s30 = scalar_lea.vmem %s2710_s2, %s1668_s27 }
  0x10   : > { %1801 = vmatpush3.bf16.msra.mxu0 %v2038_v10  ;;  %v2055_v27 = vld [vmem:[%s2709_s1 + $0xb0] sm:$0xff]   ;;  %v2059_v31 = vld [vmem:[%s2709_s1 + $0xb8] sm:$0xff]  }
  0x11   : > { %1913 = vmatpush3.bf16.msra.mxu1 %v2039_v11  ;;  %1802 = vmatprep.subr.bf16.mxu0 %v2040_v12  ;;  %v2060_v32 = vld [vmem:[%s2289_s22] ss:$16 sps:$4 sm:$0xff]   ;;  %v2062_v33 = vld [vmem:[%s2289_s22 + $0x4] ss:$16 sps:$4 sm:$0xff]   ;;  %v2063_v34 = vld [vmem:[%s2289_s22 + $0x8] ss:$16 sps:$4 sm:$0xff]  }
  0x12   : > { %1914 = vmatprep.subr.bf16.mxu1 %v2041_v13  ;;  %v2065_v35 = vld [vmem:[%s2289_s22 + $0xc] ss:$16 sps:$4 sm:$0xff]   ;;  %817 = vmatprep.mubr.bf16.mxu0 %v2062_v33  ;;  %v2066_v36 = vld [vmem:[%s2289_s22 + $0x24] ss:$16 sps:$4 sm:$0xff]   ;;  %v2070_v38 = vld [vmem:[%s2289_s22 + $0x20] ss:$16 sps:$4 sm:$0xff]  }
  0x13   : > { %978 = vmatprep.mubr.bf16.mxu1 %v2065_v35  ;;  %v2068_v37 = vld [vmem:[%s2289_s22 + $0x2c] ss:$16 sps:$4 sm:$0xff]   ;;  %v2071_v39 = vld [vmem:[%s2289_s22 + $0x28] ss:$16 sps:$4 sm:$0xff]   ;;  %v2072_v40 = vld [vmem:[%s2289_s22 + $0x44] ss:$16 sps:$4 sm:$0xff]  }
  0x14   : > { %1803 = vmatpush3.bf16.msra.mxu0 %v2042_v14  ;;  %v2074_v41 = vld [vmem:[%s2289_s22 + $0x4c] ss:$16 sps:$4 sm:$0xff]   ;;  %v2076_v42 = vld [vmem:[%s2289_s22 + $0x40] ss:$16 sps:$4 sm:$0xff]   ;;  %v2077_v43 = vld [vmem:[%s2289_s22 + $0x48] ss:$16 sps:$4 sm:$0xff]  }
  0x15   : > { %1915 = vmatpush3.bf16.msra.mxu1 %v2043_v15  ;;  %1804 = vmatprep.subr.bf16.mxu0 %v2044_v16  ;;  %v2078_v44 = vld [vmem:[%s2289_s22 + $0x64] ss:$16 sps:$4 sm:$0xff]   ;;  %v2080_v45 = vld [vmem:[%s2289_s22 + $0x6c] ss:$16 sps:$4 sm:$0xff]   ;;  %v2082_v46 = vld [vmem:[%s2289_s22 + $0x60] ss:$16 sps:$4 sm:$0xff]  }
  0x16   : > { %1916 = vmatprep.subr.bf16.mxu1 %v2045_v17  ;;  %v2083_v47 = vld [vmem:[%s2289_s22 + $0x68] ss:$16 sps:$4 sm:$0xff]   ;;  %v2084_v48 = vld [vmem:[%s2289_s22 + $0x84] ss:$16 sps:$4 sm:$0xff]   ;;  %v2086_v49 = vld [vmem:[%s2289_s22 + $0x8c] ss:$16 sps:$4 sm:$0xff]  }
  0x17   : > { %v2088_v50 = vld [vmem:[%s2289_s22 + $0x80] ss:$16 sps:$4 sm:$0xff]   ;;  %v2089_v51 = vld [vmem:[%s2289_s22 + $0x88] ss:$16 sps:$4 sm:$0xff]   ;;  %v2090_v52 = vld [vmem:[%s2289_s22 + $0xa4] ss:$16 sps:$4 sm:$0xff]  }
  0x18   : > { %1805 = vmatpush3.bf16.msra.mxu0 %v2046_v18  ;;  %v2092_v53 = vld [vmem:[%s2289_s22 + $0xac] ss:$16 sps:$4 sm:$0xff]   ;;  %v2094_v54 = vld [vmem:[%s2289_s22 + $0xa0] ss:$16 sps:$4 sm:$0xff]   ;;  %v2095_v55 = vld [vmem:[%s2289_s22 + $0xa8] ss:$16 sps:$4 sm:$0xff]  }
  0x19   : > { %1917 = vmatpush3.bf16.msra.mxu1 %v2047_v19  ;;  %1806 = vmatprep.subr.bf16.mxu0 %v2048_v20  ;;  %v2096_v56 = vld [vmem:[%s2289_s22 + $0xc4] ss:$16 sps:$4 sm:$0xff]   ;;  %v2098_v57 = vld [vmem:[%s2289_s22 + $0xcc] ss:$16 sps:$4 sm:$0xff]   ;;  %v2100_v58 = vld [vmem:[%s2289_s22 + $0xc0] ss:$16 sps:$4 sm:$0xff]  }
  0x1a   : > { %1918 = vmatprep.subr.bf16.mxu1 %v2049_v21  ;;  %v2101_v59 = vld [vmem:[%s2289_s22 + $0xc8] ss:$16 sps:$4 sm:$0xff]   ;;  %v2102_v60 = vld [vmem:[%s2289_s22 + $0xe4] ss:$16 sps:$4 sm:$0xff]   ;;  %v2104_v61 = vld [vmem:[%s2289_s22 + $0xec] ss:$16 sps:$4 sm:$0xff]  }
  0x1b   : > { %v2106_v62 = vld [vmem:[%s2289_s22 + $0xe0] ss:$16 sps:$4 sm:$0xff]   ;;  %v2107_v63 = vld [vmem:[%s2289_s22 + $0xe8] ss:$16 sps:$4 sm:$0xff]   ;;  %v2108_v0 = vld [vmem:[%s2289_s22 + $0x104] ss:$16 sps:$4 sm:$0xff]  }
  0x1c   : > { %1807 = vmatpush3.bf16.msra.mxu0 %v2050_v22  ;;  %v2110_v1 = vld [vmem:[%s2289_s22 + $0x10c] ss:$16 sps:$4 sm:$0xff]   ;;  %v2112_v2 = vld [vmem:[%s2289_s22 + $0x100] ss:$16 sps:$4 sm:$0xff]   ;;  %v2113_v3 = vld [vmem:[%s2289_s22 + $0x108] ss:$16 sps:$4 sm:$0xff]  }
  0x1d   : > { %1919 = vmatpush3.bf16.msra.mxu1 %v2051_v23  ;;  %1808 = vmatprep.subr.bf16.mxu0 %v2052_v24  ;;  %v2114_v4 = vld [vmem:[%s2289_s22 + $0x124] ss:$16 sps:$4 sm:$0xff]   ;;  %v2116_v5 = vld [vmem:[%s2289_s22 + $0x12c] ss:$16 sps:$4 sm:$0xff]   ;;  %v2118_v6 = vld [vmem:[%s2289_s22 + $0x120] ss:$16 sps:$4 sm:$0xff]  }
  0x1e   : > { %1920 = vmatprep.subr.bf16.mxu1 %v2053_v25  ;;  %v2119_v7 = vld [vmem:[%s2289_s22 + $0x128] ss:$16 sps:$4 sm:$0xff]   ;;  %v2120_v8 = vld [vmem:[%s2289_s22 + $0x144] ss:$16 sps:$4 sm:$0xff]   ;;  %v2122_v9 = vld [vmem:[%s2289_s22 + $0x14c] ss:$16 sps:$4 sm:$0xff]  }
  0x1f   : > { %v2124_v10 = vld [vmem:[%s2289_s22 + $0x140] ss:$16 sps:$4 sm:$0xff]   ;;  %v2125_v11 = vld [vmem:[%s2289_s22 + $0x148] ss:$16 sps:$4 sm:$0xff]   ;;  %v2126_v12 = vld [vmem:[%s2289_s22 + $0x164] ss:$16 sps:$4 sm:$0xff]  }
  0x20   : > { %1809 = vmatpush3.bf16.msra.mxu0 %v2054_v26  ;;  %v2128_v13 = vld [vmem:[%s2289_s22 + $0x16c] ss:$16 sps:$4 sm:$0xff]   ;;  %v2130_v14 = vld [vmem:[%s2289_s22 + $0x160] ss:$16 sps:$4 sm:$0xff]   ;;  %v2131_v15 = vld [vmem:[%s2289_s22 + $0x168] ss:$16 sps:$4 sm:$0xff]  }
  0x21   : > { %1921 = vmatpush3.bf16.msra.mxu1 %v2055_v27  ;;  %1810 = vmatprep.subr.bf16.mxu0 %v2056_v28  ;;  %v2132_v16 = vld [vmem:[%s2289_s22 + $0x184] ss:$16 sps:$4 sm:$0xff]   ;;  %v2134_v17 = vld [vmem:[%s2289_s22 + $0x18c] ss:$16 sps:$4 sm:$0xff]   ;;  %v2136_v18 = vld [vmem:[%s2289_s22 + $0x180] ss:$16 sps:$4 sm:$0xff]  }
  0x22   : > { %1922 = vmatprep.subr.bf16.mxu1 %v2057_v29  ;;  %v2137_v19 = vld [vmem:[%s2289_s22 + $0x188] ss:$16 sps:$4 sm:$0xff]   ;;  %v2138_v20 = vld [vmem:[%s2289_s22 + $0x1a4] ss:$16 sps:$4 sm:$0xff]   ;;  %v2140_v21 = vld [vmem:[%s2289_s22 + $0x1ac] ss:$16 sps:$4 sm:$0xff]  }
  0x23   : > { %v2142_v22 = vld [vmem:[%s2289_s22 + $0x1a0] ss:$16 sps:$4 sm:$0xff]   ;;  %v2143_v23 = vld [vmem:[%s2289_s22 + $0x1a8] ss:$16 sps:$4 sm:$0xff]   ;;  %v2144_v24 = vld [vmem:[%s2289_s22 + $0x1c4] ss:$16 sps:$4 sm:$0xff]  }
  0x24   : > { %1811 = vmatpush3.bf16.msra.mxu0 %v2058_v30  ;;  %v2146_v25 = vld [vmem:[%s2289_s22 + $0x1cc] ss:$16 sps:$4 sm:$0xff]   ;;  %v2148_v26 = vld [vmem:[%s2289_s22 + $0x1c0] ss:$16 sps:$4 sm:$0xff]   ;;  %v2149_v27 = vld [vmem:[%s2289_s22 + $0x1c8] ss:$16 sps:$4 sm:$0xff]  }
  0x25   : > { %1923 = vmatpush3.bf16.msra.mxu1 %v2059_v31  ;;  %v2150_v28 = vld [vmem:[%s2289_s22 + $0x1e4] ss:$16 sps:$4 sm:$0xff]   ;;  %v2152_v29 = vld [vmem:[%s2289_s22 + $0x1ec] ss:$16 sps:$4 sm:$0xff]   ;;  %v2154_v30 = vld [vmem:[%s2289_s22 + $0x1e0] ss:$16 sps:$4 sm:$0xff]  }
  0x26   : > { %v2155_v31 = vld [vmem:[%s2289_s22 + $0x1e8] ss:$16 sps:$4 sm:$0xff]  }
  0x27   : > { %818 = vmatmul.mubr.bf16.vlgmr.msra.gmra.mrb[0].mxu0 %v2060_v32 }
  0x28   : > { %979 = vmatmul.mubr.bf16.vlgmr.msra.gmra.mrb[0].mxu1 %v2063_v34  ;;  %825 = vmatprep.mubr.bf16.mxu0 %v2066_v36 }
  0x29   : > { %986 = vmatprep.mubr.bf16.mxu1 %v2068_v37 }
  0x2f   : > { %826 = vmatmul.mubr.bf16.gmra.mrb[4].mxu0 %v2070_v38 }
  0x30   : > { %987 = vmatmul.mubr.bf16.gmra.mrb[4].mxu1 %v2071_v39  ;;  %833 = vmatprep.mubr.bf16.mxu0 %v2072_v40 }
  0x31   : > { %994 = vmatprep.mubr.bf16.mxu1 %v2074_v41 }
  0x37   : > { %834 = vmatmul.mubr.bf16.gmra.mrb[8].mxu0 %v2076_v42 }
  0x38   : > { %995 = vmatmul.mubr.bf16.gmra.mrb[8].mxu1 %v2077_v43  ;;  %841 = vmatprep.mubr.bf16.mxu0 %v2078_v44 }
  0x39   : > { %1002 = vmatprep.mubr.bf16.mxu1 %v2080_v45 }
  0x3f   : > { %842 = vmatmul.mubr.bf16.gmra.mrb[12].mxu0 %v2082_v46 }
  0x40   : > { %1003 = vmatmul.mubr.bf16.gmra.mrb[12].mxu1 %v2083_v47  ;;  %849 = vmatprep.mubr.bf16.mxu0 %v2084_v48 }
  0x41   : > { %1010 = vmatprep.mubr.bf16.mxu1 %v2086_v49 }
  0x47   : > { %850 = vmatmul.mubr.bf16.gmra.mrb[16].mxu0 %v2088_v50 }
  0x48   : > { %1011 = vmatmul.mubr.bf16.gmra.mrb[16].mxu1 %v2089_v51  ;;  %857 = vmatprep.mubr.bf16.mxu0 %v2090_v52 }
  0x49   : > { %1018 = vmatprep.mubr.bf16.mxu1 %v2092_v53 }
  0x4f   : > { %858 = vmatmul.mubr.bf16.gmra.mrb[20].mxu0 %v2094_v54 }
  0x50   : > { %1019 = vmatmul.mubr.bf16.gmra.mrb[20].mxu1 %v2095_v55  ;;  %865 = vmatprep.mubr.bf16.mxu0 %v2096_v56 }
  0x51   : > { %1026 = vmatprep.mubr.bf16.mxu1 %v2098_v57 }
  0x57   : > { %866 = vmatmul.mubr.bf16.gmra.mrb[24].mxu0 %v2100_v58 }
  0x58   : > { %1027 = vmatmul.mubr.bf16.gmra.mrb[24].mxu1 %v2101_v59  ;;  %873 = vmatprep.mubr.bf16.mxu0 %v2102_v60 }
  0x59   : > { %1034 = vmatprep.mubr.bf16.mxu1 %v2104_v61 }
  0x5f   : > { %874 = vmatmul.mubr.bf16.gmra.mrb[28].mxu0 %v2106_v62 }
  0x60   : > { %1035 = vmatmul.mubr.bf16.gmra.mrb[28].mxu1 %v2107_v63  ;;  %881 = vmatprep.mubr.bf16.mxu0 %v2108_v0 }
  0x61   : > { %1042 = vmatprep.mubr.bf16.mxu1 %v2110_v1 }
  0x67   : > { %882 = vmatmul.mubr.bf16.gmra.mrb[32].mxu0 %v2112_v2 }
  0x68   : > { %1043 = vmatmul.mubr.bf16.gmra.mrb[32].mxu1 %v2113_v3  ;;  %889 = vmatprep.mubr.bf16.mxu0 %v2114_v4 }
  0x69   : > { %1050 = vmatprep.mubr.bf16.mxu1 %v2116_v5 }
  0x6f   : > { %890 = vmatmul.mubr.bf16.gmra.mrb[36].mxu0 %v2118_v6 }
  0x70   : > { %1051 = vmatmul.mubr.bf16.gmra.mrb[36].mxu1 %v2119_v7  ;;  %897 = vmatprep.mubr.bf16.mxu0 %v2120_v8 }
  0x71   : > { %1058 = vmatprep.mubr.bf16.mxu1 %v2122_v9 }
  0x77   : > { %898 = vmatmul.mubr.bf16.gmra.mrb[40].mxu0 %v2124_v10 }
  0x78   : > { %1059 = vmatmul.mubr.bf16.gmra.mrb[40].mxu1 %v2125_v11  ;;  %905 = vmatprep.mubr.bf16.mxu0 %v2126_v12 }
  0x79   : > { %1066 = vmatprep.mubr.bf16.mxu1 %v2128_v13 }
  0x7f   : > { %906 = vmatmul.mubr.bf16.gmra.mrb[44].mxu0 %v2130_v14 }
  0x80   : > { %1067 = vmatmul.mubr.bf16.gmra.mrb[44].mxu1 %v2131_v15  ;;  %913 = vmatprep.mubr.bf16.mxu0 %v2132_v16 }
  0x81   : > { %1074 = vmatprep.mubr.bf16.mxu1 %v2134_v17 }
  0x87   : > { %914 = vmatmul.mubr.bf16.gmra.mrb[48].mxu0 %v2136_v18 }
  0x88   : > { %1075 = vmatmul.mubr.bf16.gmra.mrb[48].mxu1 %v2137_v19  ;;  %921 = vmatprep.mubr.bf16.mxu0 %v2138_v20 }
  0x89   : > { %1082 = vmatprep.mubr.bf16.mxu1 %v2140_v21 }
  0x8f   : > { %922 = vmatmul.mubr.bf16.gmra.mrb[52].mxu0 %v2142_v22 }
  0x90   : > { %1083 = vmatmul.mubr.bf16.gmra.mrb[52].mxu1 %v2143_v23  ;;  %929 = vmatprep.mubr.bf16.mxu0 %v2144_v24 }
  0x91   : > { %1090 = vmatprep.mubr.bf16.mxu1 %v2146_v25 }
  0x97   : > { %930 = vmatmul.mubr.bf16.gmra.mrb[56].mxu0 %v2148_v26 }
  0x98   : > { %1091 = vmatmul.mubr.bf16.gmra.mrb[56].mxu1 %v2149_v27  ;;  %937 = vmatprep.mubr.bf16.mxu0 %v2150_v28 }
  0x99   : > { %1098 = vmatprep.mubr.bf16.mxu1 %v2152_v29 }
  0x9f   : > { %938 = vmatmul.mubr.bf16.gmra.mrb[60].mxu0 %v2154_v30 }
  0xa0   : > { %1099 = vmatmul.mubr.bf16.gmra.mrb[60].mxu1 %v2155_v31 }
  0xfa   : > { %v1812_v32 = vpop.f32.mrb[0].mxu0 }
  0xfb   : > { %v1924_v33 = vpop.f32.mrb[0].mxu1  ;;  %v1813_v34 = vpop.f32.mrb[1].mxu0 }
  0xfc   : > { %v1814_v35 = vadd.f32 %v1813_v34, %v1812_v32  ;;  %v1925_v36 = vpop.f32.mrb[1].mxu1  ;;  %v1815_v37 = vpop.f32.mrb[2].mxu0 }
  0xfd   : > { %v1926_v38 = vadd.f32 %v1925_v36, %v1924_v33  ;;  %v1927_v39 = vpop.f32.mrb[2].mxu1  ;;  %v1816_v40 = vpop.f32.mrb[3].mxu0 }
  0xfe   : > { %v1817_v41 = vadd.f32 %v1816_v40, %v1815_v37  ;;  %v1928_v42 = vpop.f32.mrb[3].mxu1 }
  0xff   : > { %v2361_v43 = vadd.f32 %v1926_v38, %v1814_v35  ;;  %v1929_v44 = vadd.f32 %v1928_v42, %v1927_v39 }
 0x101   : > { %v2363_v45 = vadd.f32 %v1929_v44, %v1817_v41 }
 0x102   : > { %v1818_v46 = vpop.f32.mrb[4].mxu0 }
 0x103   : > { %v1930_v47 = vpop.f32.mrb[4].mxu1  ;;  %v1819_v48 = vpop.f32.mrb[5].mxu0  ;;  %v1107_v23 = vadd.f32 %v2363_v45, %v2361_v43 }
 0x104   : > { %v1820_v49 = vadd.f32 %v1819_v48, %v1818_v46  ;;  %v1931_v50 = vpop.f32.mrb[5].mxu1  ;;  %v1821_v51 = vpop.f32.mrb[6].mxu0 }
 0x105   : > { %v1932_v52 = vadd.f32 %v1931_v50, %v1930_v47  ;;  %v1933_v53 = vpop.f32.mrb[6].mxu1  ;;  %v1822_v54 = vpop.f32.mrb[7].mxu0 }
 0x106   : > { %v1823_v55 = vadd.f32 %v1822_v54, %v1821_v51  ;;  %v1934_v56 = vpop.f32.mrb[7].mxu1 }
 0x107   : > { %v2365_v57 = vadd.f32 %v1932_v52, %v1820_v49  ;;  %v1935_v58 = vadd.f32 %v1934_v56, %v1933_v53 }
 0x109   : > { %v2367_v59 = vadd.f32 %v1935_v58, %v1823_v55  ;;  %v1108_v26 = vadd.f32 %v1107_v23, %v2365_v57 }
 0x10a   : > { %v1824_v60 = vpop.f32.mrb[8].mxu0 }
 0x10b   : > { %v1936_v61 = vpop.f32.mrb[8].mxu1  ;;  %v1825_v62 = vpop.f32.mrb[9].mxu0  ;;  %v1109_v37 = vadd.f32 %v1108_v26, %v2367_v59 }
 0x10c   : > { %v1826_v63 = vadd.f32 %v1825_v62, %v1824_v60  ;;  %v1937_v0 = vpop.f32.mrb[9].mxu1  ;;  %v1827_v1 = vpop.f32.mrb[10].mxu0 }
 0x10d   : > { %v1938_v2 = vadd.f32 %v1937_v0, %v1936_v61  ;;  %v1939_v3 = vpop.f32.mrb[10].mxu1  ;;  %v1828_v4 = vpop.f32.mrb[11].mxu0 }
 0x10e   : > { %v1829_v5 = vadd.f32 %v1828_v4, %v1827_v1  ;;  %v1940_v6 = vpop.f32.mrb[11].mxu1 }
 0x10f   : > { %v2369_v7 = vadd.f32 %v1938_v2, %v1826_v63  ;;  %v1941_v8 = vadd.f32 %v1940_v6, %v1939_v3 }
 0x111   : > { %v2371_v9 = vadd.f32 %v1941_v8, %v1829_v5  ;;  %v1110_v40 = vadd.f32 %v1109_v37, %v2369_v7 }
 0x112   : > { %v1830_v10 = vpop.f32.mrb[12].mxu0 }
 0x113   : > { %v1942_v11 = vpop.f32.mrb[12].mxu1  ;;  %v1831_v12 = vpop.f32.mrb[13].mxu0  ;;  %v1111_v50 = vadd.f32 %v1110_v40, %v2371_v9 }
 0x114   : > { %v1832_v13 = vadd.f32 %v1831_v12, %v1830_v10  ;;  %v1943_v14 = vpop.f32.mrb[13].mxu1  ;;  %v1833_v15 = vpop.f32.mrb[14].mxu0 }
 0x115   : > { %v1944_v16 = vadd.f32 %v1943_v14, %v1942_v11  ;;  %v1945_v17 = vpop.f32.mrb[14].mxu1  ;;  %v1834_v18 = vpop.f32.mrb[15].mxu0 }
 0x116   : > { %v1835_v19 = vadd.f32 %v1834_v18, %v1833_v15  ;;  %v1946_v20 = vpop.f32.mrb[15].mxu1 }
 0x117   : > { %v2373_v21 = vadd.f32 %v1944_v16, %v1832_v13  ;;  %v1947_v22 = vadd.f32 %v1946_v20, %v1945_v17 }
 0x119   : > { %v2377_v24 = vadd.f32 %v1947_v22, %v1835_v19  ;;  %v1112_v56 = vadd.f32 %v1111_v50, %v2373_v21 }
 0x11a   : > { %v1836_v25 = vpop.f32.mrb[16].mxu0 }
 0x11b   : > { %v1948_v27 = vpop.f32.mrb[16].mxu1  ;;  %v1837_v28 = vpop.f32.mrb[17].mxu0  ;;  %v1113_v63 = vadd.f32 %v1112_v56, %v2377_v24 }
 0x11c   : > { %v1838_v29 = vadd.f32 %v1837_v28, %v1836_v25  ;;  %v1949_v30 = vpop.f32.mrb[17].mxu1  ;;  %v1839_v31 = vpop.f32.mrb[18].mxu0 }
 0x11d   : > { %v1950_v32 = vadd.f32 %v1949_v30, %v1948_v27  ;;  %v1951_v33 = vpop.f32.mrb[18].mxu1  ;;  %v1840_v34 = vpop.f32.mrb[19].mxu0 }
 0x11e   : > { %v1841_v35 = vadd.f32 %v1840_v34, %v1839_v31  ;;  %v1952_v36 = vpop.f32.mrb[19].mxu1 }
 0x11f   : > { %v2381_v38 = vadd.f32 %v1950_v32, %v1838_v29  ;;  %v1953_v39 = vadd.f32 %v1952_v36, %v1951_v33 }
 0x121   : > { %v2384_v41 = vadd.f32 %v1953_v39, %v1841_v35  ;;  %v1114_v5 = vadd.f32 %v1113_v63, %v2381_v38 }
 0x122   : > { %v1842_v42 = vpop.f32.mrb[20].mxu0 }
 0x123   : > { %v1954_v44 = vpop.f32.mrb[20].mxu1  ;;  %v1843_v46 = vpop.f32.mrb[21].mxu0  ;;  %v1115_v15 = vadd.f32 %v1114_v5, %v2384_v41 }
 0x124   : > { %v1844_v47 = vadd.f32 %v1843_v46, %v1842_v42  ;;  %v1955_v48 = vpop.f32.mrb[21].mxu1  ;;  %v1845_v49 = vpop.f32.mrb[22].mxu0 }
 0x125   : > { %v1956_v51 = vadd.f32 %v1955_v48, %v1954_v44  ;;  %v1957_v52 = vpop.f32.mrb[22].mxu1  ;;  %v1846_v53 = vpop.f32.mrb[23].mxu0 }
 0x126   : > { %v1847_v54 = vadd.f32 %v1846_v53, %v1845_v49  ;;  %v1958_v55 = vpop.f32.mrb[23].mxu1 }
 0x127   : > { %v2388_v58 = vadd.f32 %v1956_v51, %v1844_v47  ;;  %v1959_v60 = vadd.f32 %v1958_v55, %v1957_v52 }
 0x129   : > { %v2390_v61 = vadd.f32 %v1959_v60, %v1847_v54  ;;  %v1116_v18 = vadd.f32 %v1115_v15, %v2388_v58 }
 0x12a   : > { %v1848_v62 = vpop.f32.mrb[24].mxu0 }
 0x12b   : > { %v1960_v0 = vpop.f32.mrb[24].mxu1  ;;  %v1849_v1 = vpop.f32.mrb[25].mxu0  ;;  %v1117_v31 = vadd.f32 %v1116_v18, %v2390_v61 }
 0x12c   : > { %v1850_v2 = vadd.f32 %v1849_v1, %v1848_v62  ;;  %v1961_v3 = vpop.f32.mrb[25].mxu1  ;;  %v1851_v4 = vpop.f32.mrb[26].mxu0 }
 0x12d   : > { %v1962_v6 = vadd.f32 %v1961_v3, %v1960_v0  ;;  %v1963_v8 = vpop.f32.mrb[26].mxu1  ;;  %v1852_v10 = vpop.f32.mrb[27].mxu0 }
 0x12e   : > { %v1853_v11 = vadd.f32 %v1852_v10, %v1851_v4  ;;  %v1964_v12 = vpop.f32.mrb[27].mxu1 }
 0x12f   : > { %v2394_v13 = vadd.f32 %v1962_v6, %v1850_v2  ;;  %v1965_v14 = vadd.f32 %v1964_v12, %v1963_v8 }
 0x131   : > { %v2397_v16 = vadd.f32 %v1965_v14, %v1853_v11  ;;  %v1118_v34 = vadd.f32 %v1117_v31, %v2394_v13 }
 0x132   : > { %v1854_v17 = vpop.f32.mrb[28].mxu0 }
 0x133   : > { %v1966_v19 = vpop.f32.mrb[28].mxu1  ;;  %v1855_v20 = vpop.f32.mrb[29].mxu0  ;;  %v1119_v46 = vadd.f32 %v1118_v34, %v2397_v16 }
 0x134   : > { %v1856_v22 = vadd.f32 %v1855_v20, %v1854_v17  ;;  %v1967_v23 = vpop.f32.mrb[29].mxu1  ;;  %v1857_v25 = vpop.f32.mrb[30].mxu0 }
 0x135   : > { %v1968_v26 = vadd.f32 %v1967_v23, %v1966_v19  ;;  %v1969_v27 = vpop.f32.mrb[30].mxu1  ;;  %v1858_v28 = vpop.f32.mrb[31].mxu0 }
 0x136   : > { %v1859_v29 = vadd.f32 %v1858_v28, %v1857_v25  ;;  %v1970_v30 = vpop.f32.mrb[31].mxu1 }
 0x137   : > { %v2401_v32 = vadd.f32 %v1968_v26, %v1856_v22  ;;  %v1971_v33 = vadd.f32 %v1970_v30, %v1969_v27 }
 0x139   : > { %v2404_v35 = vadd.f32 %v1971_v33, %v1859_v29  ;;  %v1120_v52 = vadd.f32 %v1119_v46, %v2401_v32 }
 0x13a   : > { %v1860_v36 = vpop.f32.mrb[32].mxu0 }
 0x13b   : > { %v1972_v37 = vpop.f32.mrb[32].mxu1  ;;  %v1861_v39 = vpop.f32.mrb[33].mxu0  ;;  %v1121_v60 = vadd.f32 %v1120_v52, %v2404_v35 }
 0x13c   : > { %v1862_v40 = vadd.f32 %v1861_v39, %v1860_v36  ;;  %v1973_v42 = vpop.f32.mrb[33].mxu1  ;;  %v1863_v44 = vpop.f32.mrb[34].mxu0 }
 0x13d   : > { %v1974_v47 = vadd.f32 %v1973_v42, %v1972_v37  ;;  %v1975_v48 = vpop.f32.mrb[34].mxu1  ;;  %v1864_v49 = vpop.f32.mrb[35].mxu0 }
 0x13e   : > { %v1865_v50 = vadd.f32 %v1864_v49, %v1863_v44  ;;  %v1976_v51 = vpop.f32.mrb[35].mxu1 }
 0x13f   : > { %v2408_v53 = vadd.f32 %v1974_v47, %v1862_v40  ;;  %v1977_v54 = vadd.f32 %v1976_v51, %v1975_v48 }
 0x141   : > { %v2410_v55 = vadd.f32 %v1977_v54, %v1865_v50  ;;  %v1122_v3 = vadd.f32 %v1121_v60, %v2408_v53 }
 0x142   : > { %v1866_v56 = vpop.f32.mrb[36].mxu0 }
 0x143   : > { %v1978_v62 = vpop.f32.mrb[36].mxu1  ;;  %v1867_v63 = vpop.f32.mrb[37].mxu0  ;;  %v1123_v14 = vadd.f32 %v1122_v3, %v2410_v55 }
 0x144   : > { %v1868_v0 = vadd.f32 %v1867_v63, %v1866_v56  ;;  %v1979_v1 = vpop.f32.mrb[37].mxu1  ;;  %v1869_v2 = vpop.f32.mrb[38].mxu0 }
 0x145   : > { %v1980_v4 = vadd.f32 %v1979_v1, %v1978_v62  ;;  %v1981_v5 = vpop.f32.mrb[38].mxu1  ;;  %v1870_v6 = vpop.f32.mrb[39].mxu0 }
 0x146   : > { %v1871_v8 = vadd.f32 %v1870_v6, %v1869_v2  ;;  %v1982_v10 = vpop.f32.mrb[39].mxu1 }
 0x147   : > { %v2414_v11 = vadd.f32 %v1980_v4, %v1868_v0  ;;  %v1983_v12 = vadd.f32 %v1982_v10, %v1981_v5 }
 0x149   : > { %v2417_v15 = vadd.f32 %v1983_v12, %v1871_v8  ;;  %v1124_v18 = vadd.f32 %v1123_v14, %v2414_v11 }
 0x14a   : > { %v1872_v17 = vpop.f32.mrb[40].mxu0 }
 0x14b   : > { %v1984_v19 = vpop.f32.mrb[40].mxu1  ;;  %v1873_v20 = vpop.f32.mrb[41].mxu0  ;;  %v1125_v31 = vadd.f32 %v1124_v18, %v2417_v15 }
 0x14c   : > { %v1874_v22 = vadd.f32 %v1873_v20, %v1872_v17  ;;  %v1985_v23 = vpop.f32.mrb[41].mxu1  ;;  %v1875_v25 = vpop.f32.mrb[42].mxu0 }
 0x14d   : > { %v1986_v26 = vadd.f32 %v1985_v23, %v1984_v19  ;;  %v1987_v27 = vpop.f32.mrb[42].mxu1  ;;  %v1876_v28 = vpop.f32.mrb[43].mxu0 }
 0x14e   : > { %v1877_v29 = vadd.f32 %v1876_v28, %v1875_v25  ;;  %v1988_v30 = vpop.f32.mrb[43].mxu1 }
 0x14f   : > { %v2421_v33 = vadd.f32 %v1986_v26, %v1874_v22  ;;  %v1989_v34 = vadd.f32 %v1988_v30, %v1987_v27 }
 0x151   : > { %v1126_v36 = vadd.f32 %v1125_v31, %v2421_v33  ;;  %v2424_v37 = vadd.f32 %v1989_v34, %v1877_v29 }
 0x152   : > { %v1878_v39 = vpop.f32.mrb[44].mxu0 }
 0x153   : > { %v1127_v40 = vadd.f32 %v1126_v36, %v2424_v37  ;;  %v1990_v42 = vpop.f32.mrb[44].mxu1  ;;  %v1879_v44 = vpop.f32.mrb[45].mxu0 }
 0x154   : > { %v1880_v46 = vadd.f32 %v1879_v44, %v1878_v39  ;;  %v1991_v47 = vpop.f32.mrb[45].mxu1  ;;  %v1881_v48 = vpop.f32.mrb[46].mxu0 }
 0x155   : > { %v1992_v49 = vadd.f32 %v1991_v47, %v1990_v42  ;;  %v1993_v50 = vpop.f32.mrb[46].mxu1  ;;  %v1882_v51 = vpop.f32.mrb[47].mxu0 }
 0x156   : > { %v1883_v52 = vadd.f32 %v1882_v51, %v1881_v48  ;;  %v1994_v54 = vpop.f32.mrb[47].mxu1 }
 0x157   : > { %v2427_v56 = vadd.f32 %v1992_v49, %v1880_v46  ;;  %v1995_v60 = vadd.f32 %v1994_v54, %v1993_v50 }
 0x159   : > { %v1128_v62 = vadd.f32 %v1127_v40, %v2427_v56  ;;  %v2430_v63 = vadd.f32 %v1995_v60, %v1883_v52 }
 0x15a   : > { %v1884_v0 = vpop.f32.mrb[48].mxu0 }
 0x15b   : > { %v1129_v1 = vadd.f32 %v1128_v62, %v2430_v63  ;;  %v1996_v2 = vpop.f32.mrb[48].mxu1  ;;  %v1885_v3 = vpop.f32.mrb[49].mxu0 }
 0x15c   : > { %v1886_v4 = vadd.f32 %v1885_v3, %v1884_v0  ;;  %v1997_v5 = vpop.f32.mrb[49].mxu1  ;;  %v1887_v6 = vpop.f32.mrb[50].mxu0 }
 0x15d   : > { %v1998_v8 = vadd.f32 %v1997_v5, %v1996_v2  ;;  %v1999_v10 = vpop.f32.mrb[50].mxu1  ;;  %v1888_v12 = vpop.f32.mrb[51].mxu0 }
 0x15e   : > { %v1889_v14 = vadd.f32 %v1888_v12, %v1887_v6  ;;  %v2000_v17 = vpop.f32.mrb[51].mxu1 }
 0x15f   : > { %v2433_v18 = vadd.f32 %v1998_v8, %v1886_v4  ;;  %v2001_v19 = vadd.f32 %v2000_v17, %v1999_v10 }
 0x161   : > { %v1130_v20 = vadd.f32 %v1129_v1, %v2433_v18  ;;  %v1080_v22 = vadd.f32 %v2001_v19, %v1889_v14 }
 0x162   : > { %v1890_v23 = vpop.f32.mrb[52].mxu0 }
 0x163   : > { %v1131_v25 = vadd.f32 %v1130_v20, %v1080_v22  ;;  %v2002_v26 = vpop.f32.mrb[52].mxu1  ;;  %v1891_v27 = vpop.f32.mrb[53].mxu0 }
 0x164   : > { %v1892_v28 = vadd.f32 %v1891_v27, %v1890_v23  ;;  %v2003_v29 = vpop.f32.mrb[53].mxu1  ;;  %v1893_v30 = vpop.f32.mrb[54].mxu0 }
 0x165   : > { %v2004_v31 = vadd.f32 %v2003_v29, %v2002_v26  ;;  %v2005_v34 = vpop.f32.mrb[54].mxu1  ;;  %v1894_v36 = vpop.f32.mrb[55].mxu0 }
 0x166   : > { %v1895_v39 = vadd.f32 %v1894_v36, %v1893_v30  ;;  %v2006_v40 = vpop.f32.mrb[55].mxu1 }
 0x167   : > { %v1085_v42 = vadd.f32 %v2004_v31, %v1892_v28  ;;  %v2007_v44 = vadd.f32 %v2006_v40, %v2005_v34 }
 0x169   : > { %v1132_v46 = vadd.f32 %v1131_v25, %v1085_v42  ;;  %v1088_v47 = vadd.f32 %v2007_v44, %v1895_v39 }
 0x16a   : > { %v1896_v48 = vpop.f32.mrb[56].mxu0 }
 0x16b   : > { %v1133_v49 = vadd.f32 %v1132_v46, %v1088_v47  ;;  %v2008_v50 = vpop.f32.mrb[56].mxu1  ;;  %v1897_v51 = vpop.f32.mrb[57].mxu0 }
 0x16c   : > { %v1898_v52 = vadd.f32 %v1897_v51, %v1896_v48  ;;  %v2009_v54 = vpop.f32.mrb[57].mxu1  ;;  %v1899_v60 = vpop.f32.mrb[58].mxu0 }
 0x16d   : > { %v2010_v62 = vadd.f32 %v2009_v54, %v2008_v50  ;;  %v2011_v0 = vpop.f32.mrb[58].mxu1  ;;  %v1900_v1 = vpop.f32.mrb[59].mxu0 }
 0x16e   : > { %v1901_v2 = vadd.f32 %v1900_v1, %v1899_v60  ;;  %v2012_v3 = vpop.f32.mrb[59].mxu1 }
 0x16f   : > { %v1093_v4 = vadd.f32 %v2010_v62, %v1898_v52  ;;  %v2013_v5 = vadd.f32 %v2012_v3, %v2011_v0 }
 0x171   : > { %v1134_v6 = vadd.f32 %v1133_v49, %v1093_v4  ;;  %v1096_v8 = vadd.f32 %v2013_v5, %v1901_v2 }
 0x172   : > { %v1902_v10 = vpop.f32.mrb[60].mxu0 }
 0x173   : > { %v1135_v12 = vadd.f32 %v1134_v6, %v1096_v8  ;;  %v2014_v14 = vpop.f32.mrb[60].mxu1  ;;  %v1903_v17 = vpop.f32.mrb[61].mxu0 }
 0x174   : > { %v1904_v19 = vadd.f32 %v1903_v17, %v1902_v10  ;;  %v2015_v20 = vpop.f32.mrb[61].mxu1  ;;  %v1905_v23 = vpop.f32.mrb[62].mxu0 }
 0x175   : > { %v2016_v25 = vadd.f32 %v2015_v20, %v2014_v14  ;;  %v2017_v26 = vpop.f32.mrb[62].mxu1  ;;  %v1906_v27 = vpop.f32.mrb[63].mxu0 }
 0x176   : > { %v1907_v28 = vadd.f32 %v1906_v27, %v1905_v23  ;;  %v2018_v29 = vpop.f32.mrb[63].mxu1 }
 0x177   : > { %v1101_v30 = vadd.f32 %v2016_v25, %v1904_v19  ;;  %v2019_v31 = vadd.f32 %v2018_v29, %v2017_v26 }
 0x179   : > { %v1136_v34 = vadd.f32 %v1135_v12, %v1101_v30  ;;  %v1104_v36 = vadd.f32 %v2019_v31, %v1907_v28 }
 0x17b   : > { %v1137_v39 = vadd.f32 %v1136_v34, %v1104_v36 }
 0x17d   : > { %v1138_v40 = vrot.slane %v1137_v39, 4 }
 0x17f   : > { %v1139_v44 = vadd.f32 %v1138_v40, %v1137_v39 }
 0x181   : > { %v1140_v46 = vrot.slane %v1139_v44, 2 }
 0x183   : > { %v1141_v48 = vadd.f32 %v1140_v46, %v1139_v44 }
 0x185   : > { %v1142_v49 = vrot.slane %v1141_v48, 1 }
 0x187   : > { %v1143_v50 = vadd.f32 %v1142_v49, %v1141_v48 }
 0x189   : > { %v2436_v51 = vmul.f32 0.00390625, %v1143_v50 }
 0x18b   : > { %v2440_v52 = vsub.f32 %v2421_v33, %v2436_v51  ;;  %v2444_v54 = vsub.f32 %v2424_v37, %v2436_v51  ;;  %v2448_v60 = vsub.f32 %v2427_v56, %v2436_v51  ;;  %v2452_v62 = vsub.f32 %v2430_v63, %v2436_v51 }
 0x18c   : > { %v2456_v0 = vsub.f32 %v2433_v18, %v2436_v51  ;;  %v2459_v1 = vsub.f32 %v1080_v22, %v2436_v51  ;;  %v2462_v33 = vsub.f32 %v1085_v42, %v2436_v51  ;;  %v2465_v37 = vsub.f32 %v1088_v47, %v2436_v51 }
 0x18d   : > { %v2468_v56 = vsub.f32 %v1093_v4, %v2436_v51  ;;  %v2471_v2 = vsub.f32 %v1096_v8, %v2436_v51  ;;  %v2474_v63 = vsub.f32 %v1101_v30, %v2436_v51  ;;  %v2477_v18 = vsub.f32 %v1104_v36, %v2436_v51 }
 0x18e   : > { %v2481_v22 = vsub.f32 %v2361_v43, %v2436_v51  ;;  %v2485_v42 = vsub.f32 %v2363_v45, %v2436_v51  ;;  %v2489_v47 = vsub.f32 %v2365_v57, %v2436_v51  ;;  %v2497_v5 = vsub.f32 %v2367_v59, %v2436_v51 }
 0x18f   : > { %v2501_v43 = vsub.f32 %v2369_v7, %v2436_v51  ;;  %v2507_v57 = vsub.f32 %v2371_v9, %v2436_v51  ;;  %v2513_v59 = vsub.f32 %v2373_v21, %v2436_v51  ;;  %v2519_v14 = vsub.f32 %v2377_v24, %v2436_v51 }
 0x190   : > { %v1177_v3 = vmul.f32 %v2481_v22, %v2481_v22  ;;  %v1178_v4 = vmul.f32 %v2485_v42, %v2485_v42  ;;  %v1179_v45 = vmul.f32 %v2489_v47, %v2489_v47  ;;  %v1180_v8 = vmul.f32 %v2497_v5, %v2497_v5 }
 0x191   : > { %v1181_v7 = vmul.f32 %v2501_v43, %v2501_v43  ;;  %v1182_v9 = vmul.f32 %v2507_v57, %v2507_v57  ;;  %v2525_v19 = vsub.f32 %v2381_v38, %v2436_v51  ;;  %v1183_v21 = vmul.f32 %v2513_v59, %v2513_v59 }
 0x192   : > { %v1209_v6 = vadd.f32 %v1178_v4, %v1177_v3  ;;  %v2531_v23 = vsub.f32 %v2384_v41, %v2436_v51  ;;  %v1184_v24 = vmul.f32 %v2519_v14, %v2519_v14  ;;  %v2537_v26 = vsub.f32 %v2388_v58, %v2436_v51 }
 0x193   : > { %v1185_v38 = vmul.f32 %v2525_v19, %v2525_v19  ;;  %v2543_v28 = vsub.f32 %v2390_v61, %v2436_v51  ;;  %v2549_v30 = vsub.f32 %v2394_v13, %v2436_v51  ;;  %v2555_v34 = vsub.f32 %v2397_v16, %v2436_v51 }
 0x194   : > { %v1210_v10 = vadd.f32 %v1209_v6, %v1179_v45  ;;  %v1186_v41 = vmul.f32 %v2531_v23, %v2531_v23  ;;  %v1187_v58 = vmul.f32 %v2537_v26, %v2537_v26  ;;  %v2561_v39 = vsub.f32 %v2401_v32, %v2436_v51 }
 0x195   : > { %v1188_v61 = vmul.f32 %v2543_v28, %v2543_v28  ;;  %v1189_v13 = vmul.f32 %v2549_v30, %v2549_v30  ;;  %v2567_v44 = vsub.f32 %v2404_v35, %v2436_v51  ;;  %v1190_v16 = vmul.f32 %v2555_v34, %v2555_v34 }
 0x196   : > { %v1211_v12 = vadd.f32 %v1210_v10, %v1180_v8  ;;  %v2573_v48 = vsub.f32 %v2408_v53, %v2436_v51  ;;  %v1191_v32 = vmul.f32 %v2561_v39, %v2561_v39  ;;  %v2579_v50 = vsub.f32 %v2410_v55, %v2436_v51 }
 0x197   : > { %v1192_v35 = vmul.f32 %v2567_v44, %v2567_v44  ;;  %v2585_v4 = vsub.f32 %v2414_v11, %v2436_v51  ;;  %v1164_v6 = vsub.f32 %v2417_v15, %v2436_v51  ;;  %v1197_v11 = vmul.f32 %v2440_v52, %v2440_v52 }
 0x198   : > { %v1212_v17 = vadd.f32 %v1211_v12, %v1181_v7  ;;  %v1193_v53 = vmul.f32 %v2573_v48, %v2573_v48  ;;  %v1194_v8 = vmul.f32 %v2579_v50, %v2579_v50  ;;  %v1199_v15 = vmul.f32 %v2448_v60, %v2448_v60 }
 0x199   : > { %v1195_v10 = vmul.f32 %v2585_v4, %v2585_v4  ;;  %v1196_v12 = vmul.f32 %v1164_v6, %v1164_v6 }
 0x19a   : > { %v1213_v20 = vadd.f32 %v1212_v17, %v1182_v9 }
 0x19c   : > { %v1214_v25 = vadd.f32 %v1213_v20, %v1183_v21  ;;  %v1198_v21 = vmul.f32 %v2444_v54, %v2444_v54 }
 0x19e   : > { %v1215_v27 = vadd.f32 %v1214_v25, %v1184_v24  ;;  %v1200_v24 = vmul.f32 %v2452_v62, %v2452_v62 }
 0x1a0   : > { %v1216_v29 = vadd.f32 %v1215_v27, %v1185_v38  ;;  %v1201_v38 = vmul.f32 %v2456_v0, %v2456_v0 }
 0x1a2   : > { %v1217_v31 = vadd.f32 %v1216_v29, %v1186_v41  ;;  %v1202_v41 = vmul.f32 %v2459_v1, %v2459_v1 }
 0x1a4   : > { %v1218_v36 = vadd.f32 %v1217_v31, %v1187_v58  ;;  %v1203_v58 = vmul.f32 %v2462_v33, %v2462_v33 }
 0x1a6   : > { %v1219_v40 = vadd.f32 %v1218_v36, %v1188_v61  ;;  %v1204_v61 = vmul.f32 %v2465_v37, %v2465_v37 }
 0x1a8   : > { %v1220_v46 = vadd.f32 %v1219_v40, %v1189_v13  ;;  %v1205_v13 = vmul.f32 %v2468_v56, %v2468_v56 }
 0x1aa   : > { %v1221_v49 = vadd.f32 %v1220_v46, %v1190_v16  ;;  %v1206_v16 = vmul.f32 %v2471_v2, %v2471_v2 }
 0x1ac   : > { %v1222_v3 = vadd.f32 %v1221_v49, %v1191_v32  ;;  %v1207_v32 = vmul.f32 %v2474_v63, %v2474_v63 }
 0x1ae   : > { %v1223_v45 = vadd.f32 %v1222_v3, %v1192_v35  ;;  %v1208_v35 = vmul.f32 %v2477_v18, %v2477_v18 }
 0x1b0   : > { %v1224_v55 = vadd.f32 %v1223_v45, %v1193_v53 }
 0x1b2   : > { %v1225_v7 = vadd.f32 %v1224_v55, %v1194_v8 }
 0x1b4   : > { %v1226_v9 = vadd.f32 %v1225_v7, %v1195_v10 }
 0x1b6   : > { %v1227_v17 = vadd.f32 %v1226_v9, %v1196_v12 }
 0x1b8   : > { %v1228_v20 = vadd.f32 %v1227_v17, %v1197_v11 }
 0x1ba   : > { %v1229_v51 = vadd.f32 %v1228_v20, %v1198_v21 }
 0x1bc   : > { %v1230_v25 = vadd.f32 %v1229_v51, %v1199_v15 }
 0x1be   : > { %v1231_v27 = vadd.f32 %v1230_v25, %v1200_v24 }
 0x1c0   : > { %v1232_v29 = vadd.f32 %v1231_v27, %v1201_v38 }
 0x1c2   : > { %v1233_v31 = vadd.f32 %v1232_v29, %v1202_v41 }
 0x1c4   : > { %v1234_v36 = vadd.f32 %v1233_v31, %v1203_v58 }
 0x1c6   : > { %v1235_v40 = vadd.f32 %v1234_v36, %v1204_v61 }
 0x1c8   : > { %v1236_v46 = vadd.f32 %v1235_v40, %v1205_v13 }
 0x1ca   : > { %v1237_v49 = vadd.f32 %v1236_v46, %v1206_v16 }
 0x1cc   : > { %v1238_v3 = vadd.f32 %v1237_v49, %v1207_v32 }
 0x1ce   : > { %v1239_v53 = vadd.f32 %v1238_v3, %v1208_v35 }
 0x1d0   : > { %v1240_v45 = vrot.slane %v1239_v53, 4 }
 0x1d2   : > { %v1241_v8 = vadd.f32 %v1240_v45, %v1239_v53 }
 0x1d4   : > { %v1242_v55 = vrot.slane %v1241_v8, 2 }
 0x1d6   : > { %v1243_v10 = vadd.f32 %v1242_v55, %v1241_v8 }
 0x1d8   : > { %v1244_v7 = vrot.slane %v1243_v10, 1 }
 0x1da   : > { %v1245_v12 = vadd.f32 %v1244_v7, %v1243_v10 }
 0x1dc   : > { %v1246_v9 = vmul.f32 0.00390625, %v1245_v12 }
 0x1de   : > { %v1247_v11 = vadd.f32 1e-05, %v1246_v9 }
 0x1e0   : > { %2156 = vrsqrt.f32 %v1247_v11 }
 0x1ea   : > { %v2157_v17 = vpop.eup %2156 }
 0x1eb   : > { %v2620_v21 = vmul.f32 %v2157_v17, %v2481_v22  ;;  %v2623_v20 = vmul.f32 %v2157_v17, %v2485_v42  ;;  %v2626_v15 = vmul.f32 %v2157_v17, %v2489_v47  ;;  %v2629_v51 = vmul.f32 %v2157_v17, %v2497_v5 }
 0x1ec   : > { %v2632_v24 = vmul.f32 %v2157_v17, %v2501_v43  ;;  %v2635_v25 = vmul.f32 %v2157_v17, %v2507_v57  ;;  %v2638_v38 = vmul.f32 %v2157_v17, %v2513_v59  ;;  %v2641_v22 = vmul.f32 %v2157_v17, %v2519_v14 }
 0x1ed   : > { %v2644_v42 = vmul.f32 %v2157_v17, %v2525_v19  ;;  %v1258_v47 = vmul.f32 %v2157_v17, %v2531_v23  ;;  %v1259_v5 = vmul.f32 %v2157_v17, %v2537_v26  ;;  %v1260_v27 = vmul.f32 %v2157_v17, %v2543_v28 }
 0x1ee   : > { %v1261_v43 = vmul.f32 %v2157_v17, %v2549_v30  ;;  %v1262_v57 = vmul.f32 %v2157_v17, %v2555_v34  ;;  %v1263_v41 = vmul.f32 %v2157_v17, %v2561_v39  ;;  %v1264_v59 = vmul.f32 %v2157_v17, %v2567_v44 }
 0x1ef   : > { %v2654_v14 = vmul.f32 %v2157_v17, %v2573_v48  ;;  %v1266_v19 = vmul.f32 %v2157_v17, %v2579_v50  ;;  %v1267_v29 = vmul.f32 %v2157_v17, %v2585_v4  ;;  %v1268_v23 = vmul.f32 %v2157_v17, %v1164_v6 }
 0x1f0   : > { %v1269_v26 = vmul.f32 %v2157_v17, %v2440_v52  ;;  %v1270_v28 = vmul.f32 %v2157_v17, %v2444_v54  ;;  %v1271_v30 = vmul.f32 %v2157_v17, %v2448_v60  ;;  %v1272_v34 = vmul.f32 %v2157_v17, %v2452_v62 }
 0x1f1   : > { %v2663_v39 = vmul.f32 %v2157_v17, %v2456_v0  ;;  %v1274_v44 = vmul.f32 %v2157_v17, %v2459_v1  ;;  %v1275_v48 = vmul.f32 %v2157_v17, %v2462_v33  ;;  %v1276_v50 = vmul.f32 %v2157_v17, %v2465_v37 }
 0x1f2   : > { %v1277_v4 = vmul.f32 %v2157_v17, %v2468_v56  ;;  %v1278_v6 = vmul.f32 %v2157_v17, %v2471_v2  ;;  %v1279_v52 = vmul.f32 %v2157_v17, %v2474_v63  ;;  %v1280_v54 = vmul.f32 %v2157_v17, %v2477_v18 }
 0x1f3   : > { %v1281_v60 = vmax.f32 %v2620_v21, 0.0  ;;  %v1282_v62 = vmax.f32 %v2623_v20, 0.0  ;;  %v1283_v0 = vmax.f32 %v2626_v15, 0.0  ;;  %v1284_v1 = vmax.f32 %v2629_v51, 0.0 }
 0x1f4   : > { %v1285_v33 = vmax.f32 %v2632_v24, 0.0  ;;  %v1286_v37 = vmax.f32 %v2635_v25, 0.0  ;;  %v1287_v56 = vmax.f32 %v2638_v38, 0.0  ;;  %v1288_v2 = vmax.f32 %v2641_v22, 0.0 }
 0x1f5   : > { %v1289_v63 = vmax.f32 %v2644_v42, 0.0  ;;  %v1290_v18 = vmax.f32 %v1258_v47, 0.0  ;;  %v1291_v58 = vmax.f32 %v1259_v5, 0.0  ;;  %v1292_v31 = vmax.f32 %v1260_v27, 0.0 }
 0x1f6   : > { %v1293_v61 = vmax.f32 %v1261_v43, 0.0  ;;  %v1294_v36 = vmax.f32 %v1262_v57, 0.0  ;;  %v1295_v13 = vmax.f32 %v1263_v41, 0.0  ;;  %v1296_v40 = vmax.f32 %v1264_v59, 0.0 }
 0x1f7   : > { %v1297_v16 = vmax.f32 %v2654_v14, 0.0  ;;  %v1298_v46 = vmax.f32 %v1266_v19, 0.0  ;;  %v1299_v32 = vmax.f32 %v1267_v29, 0.0  ;;  %v1300_v49 = vmax.f32 %v1268_v23, 0.0 }
 0x1f8   : > { %v1301_v35 = vmax.f32 %v1269_v26, 0.0  ;;  %v1302_v3 = vmax.f32 %v1270_v28, 0.0  ;;  %v1303_v53 = vmax.f32 %v1271_v30, 0.0  ;;  %v1304_v45 = vmax.f32 %v1272_v34, 0.0 }
 0x1f9   : > { %v1305_v8 = vmax.f32 %v2663_v39, 0.0  ;;  %v1306_v55 = vmax.f32 %v1274_v44, 0.0  ;;  %v1307_v10 = vmax.f32 %v1275_v48, 0.0  ;;  %v1308_v7 = vmax.f32 %v1276_v50, 0.0 }
 0x1fa   : > { %v1309_v12 = vmax.f32 %v1277_v4, 0.0  ;;  %v1310_v9 = vmax.f32 %v1278_v6, 0.0  ;;  %v1311_v11 = vmax.f32 %v1279_v52, 0.0  ;;  %v1312_v17 = vmax.f32 %v1280_v54, 0.0 }
 0x1fb   : > { %v1704_v21 = vpack.c.bf16 %v1282_v62, %v1281_v60  ;;  %v1709_v20 = vpack.c.bf16 %v1284_v1, %v1283_v0  ;;  %v1714_v15 = vpack.c.bf16 %v1286_v37, %v1285_v33  ;;  %v1719_v51 = vpack.c.bf16 %v1288_v2, %v1287_v56 }
 0x1fc   : > { %v1724_v24 = vpack.c.bf16 %v1290_v18, %v1289_v63  ;;  %v1729_v25 = vpack.c.bf16 %v1292_v31, %v1291_v58  ;;  %v1734_v38 = vpack.c.bf16 %v1294_v36, %v1293_v61  ;;  %v1739_v22 = vpack.c.bf16 %v1296_v40, %v1295_v13 }
 0x1fd   : > { %1705 = vst [vmem:[%s2687_s30] sm:$0xff] %v1704_v21   ;;  %1781 = vst [vmem:[%s2687_s30 + $0x8] sm:$0xff] %v1709_v20   ;;  %v1744_v42 = vpack.c.bf16 %v1298_v46, %v1297_v16  ;;  %v1749_v47 = vpack.c.bf16 %v1300_v49, %v1299_v32  ;;  %v1754_v5 = vpack.c.bf16 %v1302_v3, %v1301_v35 }
 0x1fe   : > { %1782 = vst [vmem:[%s2687_s30 + $0x10] sm:$0xff] %v1714_v15   ;;  %1783 = vst [vmem:[%s2687_s30 + $0x18] sm:$0xff] %v1719_v51   ;;  %v1759_v27 = vpack.c.bf16 %v1304_v45, %v1303_v53  ;;  %v1764_v43 = vpack.c.bf16 %v1306_v55, %v1305_v8  ;;  %v1769_v57 = vpack.c.bf16 %v1308_v7, %v1307_v10 }
 0x1ff   : > { %1784 = vst [vmem:[%s2687_s30 + $0x20] sm:$0xff] %v1724_v24   ;;  %1785 = vst [vmem:[%s2687_s30 + $0x28] sm:$0xff] %v1729_v25   ;;  %v1774_v41 = vpack.c.bf16 %v1310_v9, %v1309_v12  ;;  %v1779_v59 = vpack.c.bf16 %v1312_v17, %v1311_v11 }
 0x200   : > { %1786 = vst [vmem:[%s2687_s30 + $0x30] sm:$0xff] %v1734_v38   ;;  %1787 = vst [vmem:[%s2687_s30 + $0x38] sm:$0xff] %v1739_v22  }
 0x201   : > { %1788 = vst [vmem:[%s2687_s30 + $0x40] sm:$0xff] %v1744_v42   ;;  %1789 = vst [vmem:[%s2687_s30 + $0x48] sm:$0xff] %v1749_v47  }
 0x202   : > { %1790 = vst [vmem:[%s2687_s30 + $0x50] sm:$0xff] %v1754_v5   ;;  %1791 = vst [vmem:[%s2687_s30 + $0x58] sm:$0xff] %v1759_v27  }
 0x203   : > { %1792 = vst [vmem:[%s2687_s30 + $0x60] sm:$0xff] %v1764_v43   ;;  %1793 = vst [vmem:[%s2687_s30 + $0x68] sm:$0xff] %v1769_v57  }
 0x204   : > { %1794 = vst [vmem:[%s2687_s30 + $0x70] sm:$0xff] %v1774_v41   ;;  %1795 = vst [vmem:[%s2687_s30 + $0x78] sm:$0xff] %v1779_v59  }
 0x205 PF: > { %s12_s9 = sadd.s32 1, %s2164_s9  }
 0x206   : > { %p9_p4 = scmp.ge.s32.totalorder %s12_s9, 4  }
 0x208   :  { %11 = sbr.rel (!%p9_p4) target bundleno = 1 (0x1), region = 58 }

// kernel: rhwf_encoder_forward.28
= control target key start
LH: loop header
LB: loop body
LE: loop exit
PB: predicated region body
PF: predicated region fallthrough
CT: control target
= control target key end

     0   :  { %s1053_s9 = smov 0   ;;  %s1192_s0 = inlined_call_operand.vmem [shape: bf16[2,64,512], index: 0, kind: input, shape index: {}]   ;;  %s1193_s1 = inlined_call_operand.vmem [shape: bf16[512,128], index: 1, kind: input, shape index: {}]   ;;  %s1194_s2 = inlined_call_operand.vmem [shape: bf16[2,64,128], index: 2, kind: output, shape index: {}]  }
   0x1 LB: > { %s784_s10 = sadd.s32 4294967295, %s1036_s9   ;;  %p788_p0 = scmp.ge.s32.totalorder %s1036_s9, 1  ;;  %s1036_s9 = sphi %s1053_s9, %s12_s9  }
   0x2   : > { %p112_p1 = scmp.lt.s32.totalorder %s1036_s9, 3 }
   0x4   : > { %p113_p2 = pnand %p788_p0, %p112_p1 }
   0x5   : > { %v972_v0 = vld [vmem:[%s1193_s1 + $0x40] sm:$0xff] (!%p113_p2)   ;;  %v976_v4 = vld [vmem:[%s1193_s1 + $0x48] sm:$0xff] (!%p113_p2)   ;;  %v980_v8 = vld [vmem:[%s1193_s1 + $0x50] sm:$0xff] (!%p113_p2)   ;;  %p134_p3 = scmp.lt.s32.totalorder (!%p113_p2), %s784_s10, 1 }
   0x6   : > { %116 = sbr.rel (%p113_p2) target bundleno = 352 (0x160), region = 28  ;;  %v973_v1 = vld [vmem:[%s1193_s1 + $0xc0] sm:$0xff] (!%p113_p2)   ;;  %884 = vmatprep.subr.bf16.mxu0 (!%p113_p2), %v972_v0  ;;  %v977_v5 = vld [vmem:[%s1193_s1 + $0xc8] sm:$0xff] (!%p113_p2)   ;;  %v981_v9 = vld [vmem:[%s1193_s1 + $0xd0] sm:$0xff] (!%p113_p2)  }
   0x7   : > { %v974_v2 = vld [vmem:[%s1193_s1] sm:$0xff] (!%p113_p2)   ;;  %924 = vmatprep.subr.bf16.mxu1 (!%p113_p2), %v973_v1  ;;  %v978_v6 = vld [vmem:[%s1193_s1 + $0x8] sm:$0xff] (!%p113_p2)   ;;  %v982_v10 = vld [vmem:[%s1193_s1 + $0x10] sm:$0xff] (!%p113_p2)  }
   0x8   : > { %v975_v3 = vld [vmem:[%s1193_s1 + $0x80] sm:$0xff] (!%p113_p2)   ;;  %885 = vmatpush3.bf16.msra.mxu0 (!%p113_p2), %v974_v2  ;;  %v979_v7 = vld [vmem:[%s1193_s1 + $0x88] sm:$0xff] (!%p113_p2)   ;;  %v983_v11 = vld [vmem:[%s1193_s1 + $0x90] sm:$0xff] (!%p113_p2)  }
   0x9   : > { %925 = vmatpush3.bf16.msra.mxu1 (!%p113_p2), %v975_v3  ;;  %886 = vmatprep.subr.bf16.mxu0 (!%p113_p2), %v976_v4  ;;  %v984_v12 = vld [vmem:[%s1193_s1 + $0x58] sm:$0xff] (!%p113_p2)   ;;  %v988_v16 = vld [vmem:[%s1193_s1 + $0x60] sm:$0xff] (!%p113_p2)   ;;  %v992_v20 = vld [vmem:[%s1193_s1 + $0x68] sm:$0xff] (!%p113_p2)  }
   0xa   : > { %926 = vmatprep.subr.bf16.mxu1 (!%p113_p2), %v977_v5  ;;  %v985_v13 = vld [vmem:[%s1193_s1 + $0xd8] sm:$0xff] (!%p113_p2)   ;;  %v989_v17 = vld [vmem:[%s1193_s1 + $0xe0] sm:$0xff] (!%p113_p2)   ;;  %v993_v21 = vld [vmem:[%s1193_s1 + $0xe8] sm:$0xff] (!%p113_p2)  }
   0xb   : > { %v986_v14 = vld [vmem:[%s1193_s1 + $0x18] sm:$0xff] (!%p113_p2)   ;;  %v990_v18 = vld [vmem:[%s1193_s1 + $0x20] sm:$0xff] (!%p113_p2)   ;;  %v994_v22 = vld [vmem:[%s1193_s1 + $0x28] sm:$0xff] (!%p113_p2)  }
   0xc   : > { %887 = vmatpush3.bf16.msra.mxu0 (!%p113_p2), %v978_v6  ;;  %v987_v15 = vld [vmem:[%s1193_s1 + $0x98] sm:$0xff] (!%p113_p2)   ;;  %v991_v19 = vld [vmem:[%s1193_s1 + $0xa0] sm:$0xff] (!%p113_p2)   ;;  %v995_v23 = vld [vmem:[%s1193_s1 + $0xa8] sm:$0xff] (!%p113_p2)  }
   0xd   : > { %927 = vmatpush3.bf16.msra.mxu1 %v979_v7  ;;  %888 = vmatprep.subr.bf16.mxu0 %v980_v8  ;;  %s1196_s10 = smov (!%p134_p3, %s784_s10), 1  ;;  %v996_v24 = vld [vmem:[%s1193_s1 + $0x70] sm:$0xff]   ;;  %v1000_v28 = vld [vmem:[%s1193_s1 + $0x78] sm:$0xff]  }
   0xe   : > { %928 = vmatprep.subr.bf16.mxu1 %v981_v9  ;;  %v997_v25 = vld [vmem:[%s1193_s1 + $0xf0] sm:$0xff]   ;;  %s851_s13 = sshll.u32 %s1196_s10, 7  ;;  %v1001_v29 = vld [vmem:[%s1193_s1 + $0xf8] sm:$0xff]   ;;  %s852_s27 = sshll.u32 %s1196_s10, 5 }
   0xf   : > { %v998_v26 = vld [vmem:[%s1193_s1 + $0x30] sm:$0xff]   ;;  %s1161_s22 = scalar_lea.vmem %s1192_s0, %s851_s13  ;;  %v1002_v30 = vld [vmem:[%s1193_s1 + $0x38] sm:$0xff]   ;;  %s143_s30 = scalar_lea.vmem %s1194_s2, %s852_s27 }
  0x10   : > { %889 = vmatpush3.bf16.msra.mxu0 %v982_v10  ;;  %v999_v27 = vld [vmem:[%s1193_s1 + $0xb0] sm:$0xff]   ;;  %v1003_v31 = vld [vmem:[%s1193_s1 + $0xb8] sm:$0xff]  }
  0x11   : > { %929 = vmatpush3.bf16.msra.mxu1 %v983_v11  ;;  %890 = vmatprep.subr.bf16.mxu0 %v984_v12  ;;  %v1004_v32 = vld [vmem:[%s1161_s22] ss:$16 sps:$4 sm:$0xff]   ;;  %v1006_v33 = vld [vmem:[%s1161_s22 + $0x4] ss:$16 sps:$4 sm:$0xff]   ;;  %v1007_v34 = vld [vmem:[%s1161_s22 + $0x8] ss:$16 sps:$4 sm:$0xff]  }
  0x12   : > { %930 = vmatprep.subr.bf16.mxu1 %v985_v13  ;;  %v1009_v35 = vld [vmem:[%s1161_s22 + $0xc] ss:$16 sps:$4 sm:$0xff]   ;;  %529 = vmatprep.mubr.bf16.mxu0 %v1006_v33  ;;  %v1010_v36 = vld [vmem:[%s1161_s22 + $0x24] ss:$16 sps:$4 sm:$0xff]   ;;  %v1014_v38 = vld [vmem:[%s1161_s22 + $0x20] ss:$16 sps:$4 sm:$0xff]  }
  0x13   : > { %594 = vmatprep.mubr.bf16.mxu1 %v1009_v35  ;;  %v1012_v37 = vld [vmem:[%s1161_s22 + $0x2c] ss:$16 sps:$4 sm:$0xff]   ;;  %v1015_v39 = vld [vmem:[%s1161_s22 + $0x28] ss:$16 sps:$4 sm:$0xff]   ;;  %v1016_v40 = vld [vmem:[%s1161_s22 + $0x44] ss:$16 sps:$4 sm:$0xff]  }
  0x14   : > { %891 = vmatpush3.bf16.msra.mxu0 %v986_v14  ;;  %v1018_v41 = vld [vmem:[%s1161_s22 + $0x4c] ss:$16 sps:$4 sm:$0xff]   ;;  %v1020_v42 = vld [vmem:[%s1161_s22 + $0x40] ss:$16 sps:$4 sm:$0xff]   ;;  %v1021_v43 = vld [vmem:[%s1161_s22 + $0x48] ss:$16 sps:$4 sm:$0xff]  }
  0x15   : > { %931 = vmatpush3.bf16.msra.mxu1 %v987_v15  ;;  %892 = vmatprep.subr.bf16.mxu0 %v988_v16  ;;  %v1022_v44 = vld [vmem:[%s1161_s22 + $0x64] ss:$16 sps:$4 sm:$0xff]   ;;  %v1024_v45 = vld [vmem:[%s1161_s22 + $0x6c] ss:$16 sps:$4 sm:$0xff]   ;;  %v1026_v46 = vld [vmem:[%s1161_s22 + $0x60] ss:$16 sps:$4 sm:$0xff]  }
  0x16   : > { %932 = vmatprep.subr.bf16.mxu1 %v989_v17  ;;  %v1027_v47 = vld [vmem:[%s1161_s22 + $0x68] ss:$16 sps:$4 sm:$0xff]  }
  0x18   : > { %893 = vmatpush3.bf16.msra.mxu0 %v990_v18 }
  0x19   : > { %933 = vmatpush3.bf16.msra.mxu1 %v991_v19  ;;  %894 = vmatprep.subr.bf16.mxu0 %v992_v20 }
  0x1a   : > { %934 = vmatprep.subr.bf16.mxu1 %v993_v21 }
  0x1c   : > { %895 = vmatpush3.bf16.msra.mxu0 %v994_v22 }
  0x1d   : > { %935 = vmatpush3.bf16.msra.mxu1 %v995_v23  ;;  %896 = vmatprep.subr.bf16.mxu0 %v996_v24 }
  0x1e   : > { %936 = vmatprep.subr.bf16.mxu1 %v997_v25 }
  0x20   : > { %897 = vmatpush3.bf16.msra.mxu0 %v998_v26 }
  0x21   : > { %937 = vmatpush3.bf16.msra.mxu1 %v999_v27  ;;  %898 = vmatprep.subr.bf16.mxu0 %v1000_v28 }
  0x22   : > { %938 = vmatprep.subr.bf16.mxu1 %v1001_v29 }
  0x24   : > { %899 = vmatpush3.bf16.msra.mxu0 %v1002_v30 }
  0x25   : > { %939 = vmatpush3.bf16.msra.mxu1 %v1003_v31 }
  0x27   : > { %530 = vmatmul.mubr.bf16.vlgmr.msra.gmra.mrb[0].mxu0 %v1004_v32 }
  0x28   : > { %595 = vmatmul.mubr.bf16.vlgmr.msra.gmra.mrb[0].mxu1 %v1007_v34  ;;  %537 = vmatprep.mubr.bf16.mxu0 %v1010_v36 }
  0x29   : > { %602 = vmatprep.mubr.bf16.mxu1 %v1012_v37 }
  0x2f   : > { %538 = vmatmul.mubr.bf16.gmra.mrb[4].mxu0 %v1014_v38 }
  0x30   : > { %603 = vmatmul.mubr.bf16.gmra.mrb[4].mxu1 %v1015_v39  ;;  %545 = vmatprep.mubr.bf16.mxu0 %v1016_v40 }
  0x31   : > { %610 = vmatprep.mubr.bf16.mxu1 %v1018_v41 }
  0x37   : > { %546 = vmatmul.mubr.bf16.gmra.mrb[8].mxu0 %v1020_v42 }
  0x38   : > { %611 = vmatmul.mubr.bf16.gmra.mrb[8].mxu1 %v1021_v43  ;;  %553 = vmatprep.mubr.bf16.mxu0 %v1022_v44 }
  0x39   : > { %618 = vmatprep.mubr.bf16.mxu1 %v1024_v45 }
  0x3f   : > { %554 = vmatmul.mubr.bf16.gmra.mrb[12].mxu0 %v1026_v46 }
  0x40   : > { %619 = vmatmul.mubr.bf16.gmra.mrb[12].mxu1 %v1027_v47 }
  0xfa   : > { %v900_v48 = vpop.f32.mrb[0].mxu0 }
  0xfb   : > { %v940_v49 = vpop.f32.mrb[0].mxu1  ;;  %v901_v50 = vpop.f32.mrb[1].mxu0 }
  0xfc   : > { %v902_v51 = vadd.f32 %v901_v50, %v900_v48  ;;  %v941_v52 = vpop.f32.mrb[1].mxu1  ;;  %v903_v53 = vpop.f32.mrb[2].mxu0 }
  0xfd   : > { %v942_v54 = vadd.f32 %v941_v52, %v940_v49  ;;  %v943_v55 = vpop.f32.mrb[2].mxu1  ;;  %v904_v56 = vpop.f32.mrb[3].mxu0 }
  0xfe   : > { %v905_v57 = vadd.f32 %v904_v56, %v903_v53  ;;  %v944_v58 = vpop.f32.mrb[3].mxu1 }
  0xff   : > { %v597_v59 = vadd.f32 %v942_v54, %v902_v51  ;;  %v945_v60 = vadd.f32 %v944_v58, %v943_v55 }
 0x101   : > { %v600_v61 = vadd.f32 %v945_v60, %v905_v57 }
 0x102   : > { %v906_v62 = vpop.f32.mrb[4].mxu0 }
 0x103   : > { %v627_v63 = vadd.f32 %v600_v61, %v597_v59  ;;  %v946_v0 = vpop.f32.mrb[4].mxu1  ;;  %v907_v1 = vpop.f32.mrb[5].mxu0 }
 0x104   : > { %v908_v2 = vadd.f32 %v907_v1, %v906_v62  ;;  %v947_v3 = vpop.f32.mrb[5].mxu1  ;;  %v909_v4 = vpop.f32.mrb[6].mxu0 }
 0x105   : > { %v948_v5 = vadd.f32 %v947_v3, %v946_v0  ;;  %v949_v6 = vpop.f32.mrb[6].mxu1  ;;  %v910_v7 = vpop.f32.mrb[7].mxu0 }
 0x106   : > { %v911_v8 = vadd.f32 %v910_v7, %v909_v4  ;;  %v950_v9 = vpop.f32.mrb[7].mxu1 }
 0x107   : > { %v605_v10 = vadd.f32 %v948_v5, %v908_v2  ;;  %v951_v11 = vadd.f32 %v950_v9, %v949_v6 }
 0x109   : > { %v628_v12 = vadd.f32 %v627_v63, %v605_v10  ;;  %v608_v13 = vadd.f32 %v951_v11, %v911_v8 }
 0x10a   : > { %v912_v14 = vpop.f32.mrb[8].mxu0 }
 0x10b   : > { %v629_v15 = vadd.f32 %v628_v12, %v608_v13  ;;  %v952_v16 = vpop.f32.mrb[8].mxu1  ;;  %v913_v17 = vpop.f32.mrb[9].mxu0 }
 0x10c   : > { %v914_v18 = vadd.f32 %v913_v17, %v912_v14  ;;  %v953_v19 = vpop.f32.mrb[9].mxu1  ;;  %v915_v20 = vpop.f32.mrb[10].mxu0 }
 0x10d   : > { %v954_v21 = vadd.f32 %v953_v19, %v952_v16  ;;  %v955_v22 = vpop.f32.mrb[10].mxu1  ;;  %v916_v23 = vpop.f32.mrb[11].mxu0 }
 0x10e   : > { %v917_v24 = vadd.f32 %v916_v23, %v915_v20  ;;  %v956_v25 = vpop.f32.mrb[11].mxu1 }
 0x10f   : > { %v613_v26 = vadd.f32 %v954_v21, %v914_v18  ;;  %v957_v27 = vadd.f32 %v956_v25, %v955_v22 }
 0x111   : > { %v630_v28 = vadd.f32 %v629_v15, %v613_v26  ;;  %v616_v29 = vadd.f32 %v957_v27, %v917_v24 }
 0x112   : > { %v918_v30 = vpop.f32.mrb[12].mxu0 }
 0x113   : > { %v631_v31 = vadd.f32 %v630_v28, %v616_v29  ;;  %v958_v32 = vpop.f32.mrb[12].mxu1  ;;  %v919_v33 = vpop.f32.mrb[13].mxu0 }
 0x114   : > { %v920_v34 = vadd.f32 %v919_v33, %v918_v30  ;;  %v959_v35 = vpop.f32.mrb[13].mxu1  ;;  %v921_v36 = vpop.f32.mrb[14].mxu0 }
 0x115   : > { %v960_v37 = vadd.f32 %v959_v35, %v958_v32  ;;  %v961_v38 = vpop.f32.mrb[14].mxu1  ;;  %v922_v39 = vpop.f32.mrb[15].mxu0 }
 0x116   : > { %v923_v40 = vadd.f32 %v922_v39, %v921_v36  ;;  %v962_v41 = vpop.f32.mrb[15].mxu1 }
 0x117   : > { %v621_v42 = vadd.f32 %v960_v37, %v920_v34  ;;  %v963_v43 = vadd.f32 %v962_v41, %v961_v38 }
 0x119   : > { %v632_v44 = vadd.f32 %v631_v31, %v621_v42  ;;  %v624_v45 = vadd.f32 %v963_v43, %v923_v40 }
 0x11b   : > { %v633_v46 = vadd.f32 %v632_v44, %v624_v45 }
 0x11d   : > { %v634_v47 = vrot.slane %v633_v46, 4 }
 0x11f   : > { %v635_v48 = vadd.f32 %v634_v47, %v633_v46 }
 0x121   : > { %v636_v49 = vrot.slane %v635_v48, 2 }
 0x123   : > { %v637_v50 = vadd.f32 %v636_v49, %v635_v48 }
 0x125   : > { %v638_v51 = vrot.slane %v637_v50, 1 }
 0x127   : > { %v639_v52 = vadd.f32 %v638_v51, %v637_v50 }
 0x129   : > { %v640_v53 = vmul.f32 0.015625, %v639_v52 }
 0x12b   : > { %v641_v54 = vsub.f32 %v597_v59, %v640_v53  ;;  %v642_v55 = vsub.f32 %v600_v61, %v640_v53  ;;  %v643_v56 = vsub.f32 %v605_v10, %v640_v53  ;;  %v644_v57 = vsub.f32 %v608_v13, %v640_v53 }
 0x12c   : > { %v645_v58 = vsub.f32 %v613_v26, %v640_v53  ;;  %v646_v60 = vsub.f32 %v616_v29, %v640_v53  ;;  %v647_v62 = vsub.f32 %v621_v42, %v640_v53  ;;  %v648_v63 = vsub.f32 %v624_v45, %v640_v53 }
 0x12d   : > { %v649_v0 = vmul.f32 %v641_v54, %v641_v54  ;;  %v650_v1 = vmul.f32 %v642_v55, %v642_v55  ;;  %v651_v2 = vmul.f32 %v643_v56, %v643_v56  ;;  %v652_v4 = vmul.f32 %v644_v57, %v644_v57 }
 0x12e   : > { %v653_v6 = vmul.f32 %v645_v58, %v645_v58  ;;  %v654_v8 = vmul.f32 %v646_v60, %v646_v60  ;;  %v655_v11 = vmul.f32 %v647_v62, %v647_v62  ;;  %v656_v61 = vmul.f32 %v648_v63, %v648_v63 }
 0x12f   : > { %v657_v3 = vadd.f32 %v650_v1, %v649_v0 }
 0x131   : > { %v658_v5 = vadd.f32 %v657_v3, %v651_v2 }
 0x133   : > { %v659_v7 = vadd.f32 %v658_v5, %v652_v4 }
 0x135   : > { %v660_v9 = vadd.f32 %v659_v7, %v653_v6 }
 0x137   : > { %v661_v59 = vadd.f32 %v660_v9, %v654_v8 }
 0x139   : > { %v662_v10 = vadd.f32 %v661_v59, %v655_v11 }
 0x13b   : > { %v663_v12 = vadd.f32 %v662_v10, %v656_v61 }
 0x13d   : > { %v664_v13 = vrot.slane %v663_v12, 4 }
 0x13f   : > { %v665_v14 = vadd.f32 %v664_v13, %v663_v12 }
 0x141   : > { %v666_v15 = vrot.slane %v665_v14, 2 }
 0x143   : > { %v667_v16 = vadd.f32 %v666_v15, %v665_v14 }
 0x145   : > { %v668_v17 = vrot.slane %v667_v16, 1 }
 0x147   : > { %v669_v18 = vadd.f32 %v668_v17, %v667_v16 }
 0x149   : > { %v670_v19 = vmul.f32 0.015625, %v669_v18 }
 0x14b   : > { %v671_v20 = vadd.f32 1e-05, %v670_v19 }
 0x14d   : > { %1028 = vrsqrt.f32 %v671_v20 }
 0x157   : > { %v1029_v21 = vpop.eup %1028 }
 0x158   : > { %v673_v22 = vmul.f32 %v1029_v21, %v641_v54  ;;  %v674_v23 = vmul.f32 %v1029_v21, %v642_v55  ;;  %v675_v24 = vmul.f32 %v1029_v21, %v643_v56  ;;  %v676_v25 = vmul.f32 %v1029_v21, %v644_v57 }
 0x159   : > { %v677_v26 = vmul.f32 %v1029_v21, %v645_v58  ;;  %v678_v27 = vmul.f32 %v1029_v21, %v646_v60  ;;  %v679_v28 = vmul.f32 %v1029_v21, %v647_v62  ;;  %v680_v29 = vmul.f32 %v1029_v21, %v648_v63 }
 0x15a   : > { %v681_v30 = vmax.f32 %v673_v22, 0.0  ;;  %v682_v31 = vmax.f32 %v674_v23, 0.0  ;;  %v683_v32 = vmax.f32 %v675_v24, 0.0  ;;  %v684_v33 = vmax.f32 %v676_v25, 0.0 }
 0x15b   : > { %v685_v34 = vmax.f32 %v677_v26, 0.0  ;;  %v686_v35 = vmax.f32 %v678_v27, 0.0  ;;  %v687_v36 = vmax.f32 %v679_v28, 0.0  ;;  %v688_v37 = vmax.f32 %v680_v29, 0.0 }
 0x15c   : > { %v864_v38 = vpack.c.bf16 %v682_v31, %v681_v30  ;;  %v869_v39 = vpack.c.bf16 %v684_v33, %v683_v32 }
 0x15d   : > { %v874_v40 = vpack.c.bf16 %v686_v35, %v685_v34  ;;  %v879_v41 = vpack.c.bf16 %v688_v37, %v687_v36 }
 0x15e   : > { %865 = vst [vmem:[%s143_s30] sm:$0xff] %v864_v38   ;;  %881 = vst [vmem:[%s143_s30 + $0x8] sm:$0xff] %v869_v39  }
 0x15f   : > { %882 = vst [vmem:[%s143_s30 + $0x10] sm:$0xff] %v874_v40   ;;  %883 = vst [vmem:[%s143_s30 + $0x18] sm:$0xff] %v879_v41  }
 0x160 PF: > { %s12_s9 = sadd.s32 1, %s1036_s9  }
 0x161   : > { %p9_p4 = scmp.ge.s32.totalorder %s12_s9, 4  }
 0x163   :  { %11 = sbr.rel (!%p9_p4) target bundleno = 1 (0x1), region = 58 }

// kernel: rhwf_encoder_forward.30
= control target key start
LH: loop header
LB: loop body
LE: loop exit
PB: predicated region body
PF: predicated region fallthrough
CT: control target
= control target key end

     0   :  { %s707_s12 = smov 0   ;;  %s765_s0 = inlined_call_operand.vmem [shape: bf16[2,64,128], index: 0, kind: input, shape index: {}]   ;;  %s766_s1 = inlined_call_operand.vmem [shape: bf16[128,128], index: 1, kind: input, shape index: {}]   ;;  %s767_s2 = inlined_call_operand.vmem [shape: f32[2,64,128], index: 2, kind: input, shape index: {}]   ;;  %s768_s3 = inlined_call_operand.vmem [shape: bf16[2,64,128], index: 3, kind: output, shape index: {}]  }
   0x1 LB: > { %s538_s13 = sadd.s32 4294967295, %s685_s12   ;;  %p542_p0 = scmp.ge.s32.totalorder %s685_s12, 1  ;;  %s685_s12 = sphi %s707_s12, %s13_s12  }
   0x2   : > { %p147_p1 = scmp.lt.s32.totalorder %s685_s12, 3 }
   0x4   : > { %p148_p2 = pnand %p542_p0, %p147_p1 }
   0x5   : > { %v665_v0 = vld [vmem:[%s766_s1] sm:$0xff] (!%p148_p2)   ;;  %p176_p3 = scmp.lt.s32.totalorder (!%p148_p2), %s538_s13, 1  ;;  %v666_v1 = vld [vmem:[%s766_s1 + $0x8] sm:$0xff] (!%p148_p2)   ;;  %v667_v2 = vld [vmem:[%s766_s1 + $0x10] sm:$0xff] (!%p148_p2)  }
   0x6   : > { %151 = sbr.rel (%p148_p2) target bundleno = 336 (0x150), region = 32  ;;  %617 = vmatprep.subr.bf16.mxu0 (!%p148_p2), %v665_v0  ;;  %641 = vmatprep.subr.bf16.mxu1 (!%p148_p2), %v665_v0  ;;  %v668_v3 = vld [vmem:[%s766_s1 + $0x18] sm:$0xff] (!%p148_p2)   ;;  %v669_v6 = vld [vmem:[%s766_s1 + $0x20] sm:$0xff] (!%p148_p2)   ;;  %v670_v7 = vld [vmem:[%s766_s1 + $0x28] sm:$0xff] (!%p148_p2)  }
   0x7   : > { %618 = vmatpush3.bf16.msra.mxu0 (!%p148_p2), %v665_v0  ;;  %649 = vmatpush3.bf16.msra.mxu1 (!%p148_p2), %v665_v0  ;;  %v671_v8 = vld [vmem:[%s766_s1 + $0x30] sm:$0xff] (!%p148_p2)   ;;  %v672_v9 = vld [vmem:[%s766_s1 + $0x38] sm:$0xff] (!%p148_p2)  }
   0x8   : > { %619 = vmatprep.subr.bf16.mxu0 (!%p148_p2), %v666_v1  ;;  %642 = vmatprep.subr.bf16.mxu1 (!%p148_p2), %v666_v1 }
   0xb   : > { %620 = vmatpush3.bf16.msra.mxu0 (!%p148_p2), %v666_v1  ;;  %650 = vmatpush3.bf16.msra.mxu1 (!%p148_p2), %v666_v1 }
   0xc   : > { %621 = vmatprep.subr.bf16.mxu0 (!%p148_p2), %v667_v2  ;;  %643 = vmatprep.subr.bf16.mxu1 (!%p148_p2), %v667_v2 }
   0xd   : > { %s770_s13 = smov (!%p176_p3, %s538_s13), 1 }
   0xe   : > { %s571_s20 = sshll.u32 %s770_s13, 5  ;;  %s572_s7 = sshll.u32 %s770_s13, 6 }
   0xf   : > { %s732_s23 = scalar_lea.vmem %s765_s0, %s571_s20  ;;  %622 = vmatpush3.bf16.msra.mxu0 %v667_v2  ;;  %651 = vmatpush3.bf16.msra.mxu1 %v667_v2  ;;  %s185_s10 = scalar_lea.vmem %s767_s2, %s572_s7 }
  0x10   : > { %v673_v4 = vld [vmem:[%s732_s23] sm:$0xff]   ;;  %v675_v5 = vld [vmem:[%s732_s23 + $0x10] sm:$0xff]   ;;  %623 = vmatprep.subr.bf16.mxu0 %v668_v3  ;;  %644 = vmatprep.subr.bf16.mxu1 %v668_v3  ;;  %v674_v10 = vld [vmem:[%s732_s23 + $0x8] sm:$0xff]   ;;  %s190_s15 = scalar_lea.vmem %s768_s3, %s571_s20 }
  0x11   : > { %633 = vmatprep.mubr.bf16.mxu0 %v673_v4  ;;  %637 = vmatprep.mubr.bf16.mxu1 %v675_v5  ;;  %v676_v11 = vld [vmem:[%s732_s23 + $0x18] sm:$0xff]   ;;  %v407_v1 = vld [vmem:[%s185_s10] sm:$0xff]  ;;  %v408_v2 = vld [vmem:[%s185_s10 + $0x8] sm:$0xff] }
  0x12   : > { %v409_v4 = vld [vmem:[%s185_s10 + $0x10] sm:$0xff]  ;;  %v410_v5 = vld [vmem:[%s185_s10 + $0x18] sm:$0xff] }
  0x13   : > { %624 = vmatpush3.bf16.msra.mxu0 %v668_v3  ;;  %652 = vmatpush3.bf16.msra.mxu1 %v668_v3 }
  0x14   : > { %625 = vmatprep.subr.bf16.mxu0 %v669_v6  ;;  %645 = vmatprep.subr.bf16.mxu1 %v669_v6 }
  0x17   : > { %626 = vmatpush3.bf16.msra.mxu0 %v669_v6  ;;  %653 = vmatpush3.bf16.msra.mxu1 %v669_v6  ;;  %v411_v6 = vld [vmem:[%s185_s10 + $0x20] sm:$0xff] }
  0x18   : > { %627 = vmatprep.subr.bf16.mxu0 %v670_v7  ;;  %646 = vmatprep.subr.bf16.mxu1 %v670_v7 }
  0x1b   : > { %628 = vmatpush3.bf16.msra.mxu0 %v670_v7  ;;  %654 = vmatpush3.bf16.msra.mxu1 %v670_v7 }
  0x1c   : > { %629 = vmatprep.subr.bf16.mxu0 %v671_v8  ;;  %647 = vmatprep.subr.bf16.mxu1 %v671_v8 }
  0x1f   : > { %630 = vmatpush3.bf16.msra.mxu0 %v671_v8  ;;  %655 = vmatpush3.bf16.msra.mxu1 %v671_v8 }
  0x20   : > { %631 = vmatprep.subr.bf16.mxu0 %v672_v9  ;;  %648 = vmatprep.subr.bf16.mxu1 %v672_v9 }
  0x23   : > { %632 = vmatpush3.bf16.msra.mxu0 %v672_v9  ;;  %656 = vmatpush3.bf16.msra.mxu1 %v672_v9 }
  0x26   : > { %634 = vmatmul.mubr.bf16.vlgmr.msra.gmra.mrb[0].mxu0 %v674_v10  ;;  %638 = vmatmul.mubr.bf16.vlgmr.msra.gmra.mrb[0].mxu1 %v676_v11  ;;  %v412_v11 = vld [vmem:[%s185_s10 + $0x28] sm:$0xff] }
  0xf9   : > { %v635_v12 = vpop.f32.mrb[0].mxu0  ;;  %v639_v13 = vpop.f32.mrb[0].mxu1 }
  0xfa   : > { %v322_v14 = vpop.f32.mrb[1].mxu0  ;;  %v338_v15 = vpop.f32.mrb[1].mxu1 }
  0xfb   : > { %v636_v16 = vpop.f32.mrb[2].mxu0  ;;  %v640_v17 = vpop.f32.mrb[2].mxu1 }
  0xfc   : > { %v325_v18 = vpop.f32.mrb[3].mxu0  ;;  %v341_v19 = vpop.f32.mrb[3].mxu1 }
  0xfd   : > { %v353_v20 = vadd.f32 %v325_v18, %v322_v14 }
  0xff   : > { %v354_v21 = vadd.f32 %v635_v12, %v353_v20 }
 0x101   : > { %v355_v22 = vadd.f32 %v636_v16, %v354_v21 }
 0x103   : > { %v356_v23 = vadd.f32 %v355_v22, %v338_v15 }
 0x105   : > { %v357_v24 = vadd.f32 %v356_v23, %v341_v19 }
 0x107   : > { %v358_v25 = vadd.f32 %v639_v13, %v357_v24 }
 0x109   : > { %v359_v26 = vadd.f32 %v640_v17, %v358_v25 }
 0x10b   : > { %v360_v27 = vrot.slane %v359_v26, 4 }
 0x10d   : > { %v361_v28 = vadd.f32 %v360_v27, %v359_v26 }
 0x10f   : > { %v362_v29 = vrot.slane %v361_v28, 2 }
 0x111   : > { %v363_v30 = vadd.f32 %v362_v29, %v361_v28 }
 0x113   : > { %v364_v31 = vrot.slane %v363_v30, 1 }
 0x115   : > { %v365_v32 = vadd.f32 %v364_v31, %v363_v30 }
 0x117   : > { %v366_v33 = vmul.f32 0.015625, %v365_v32 }
 0x119   : > { %v367_v34 = vsub.f32 %v322_v14, %v366_v33  ;;  %v368_v35 = vsub.f32 %v325_v18, %v366_v33  ;;  %v369_v36 = vsub.f32 %v635_v12, %v366_v33  ;;  %v370_v37 = vsub.f32 %v636_v16, %v366_v33  ;;  %v413_v12 = vld [vmem:[%s185_s10 + $0x30] sm:$0xff] }
 0x11a   : > { %v371_v38 = vsub.f32 %v338_v15, %v366_v33  ;;  %v372_v39 = vsub.f32 %v341_v19, %v366_v33  ;;  %v373_v40 = vsub.f32 %v639_v13, %v366_v33  ;;  %v374_v41 = vsub.f32 %v640_v17, %v366_v33  ;;  %v414_v13 = vld [vmem:[%s185_s10 + $0x38] sm:$0xff] }
 0x11b   : > { %v375_v42 = vmul.f32 %v367_v34, %v367_v34  ;;  %v376_v43 = vmul.f32 %v368_v35, %v368_v35  ;;  %v377_v44 = vmul.f32 %v369_v36, %v369_v36  ;;  %v378_v46 = vmul.f32 %v370_v37, %v370_v37 }
 0x11c   : > { %v379_v48 = vmul.f32 %v371_v38, %v371_v38  ;;  %v380_v50 = vmul.f32 %v372_v39, %v372_v39  ;;  %v381_v52 = vmul.f32 %v373_v40, %v373_v40  ;;  %v382_v54 = vmul.f32 %v374_v41, %v374_v41 }
 0x11d   : > { %v383_v45 = vadd.f32 %v376_v43, %v375_v42 }
 0x11f   : > { %v384_v47 = vadd.f32 %v383_v45, %v377_v44 }
 0x121   : > { %v385_v49 = vadd.f32 %v384_v47, %v378_v46 }
 0x123   : > { %v386_v51 = vadd.f32 %v385_v49, %v379_v48 }
 0x125   : > { %v387_v53 = vadd.f32 %v386_v51, %v380_v50 }
 0x127   : > { %v388_v55 = vadd.f32 %v387_v53, %v381_v52 }
 0x129   : > { %v389_v56 = vadd.f32 %v388_v55, %v382_v54 }
 0x12b   : > { %v390_v57 = vrot.slane %v389_v56, 4 }
 0x12d   : > { %v391_v58 = vadd.f32 %v390_v57, %v389_v56 }
 0x12f   : > { %v392_v59 = vrot.slane %v391_v58, 2 }
 0x131   : > { %v393_v60 = vadd.f32 %v392_v59, %v391_v58 }
 0x133   : > { %v394_v61 = vrot.slane %v393_v60, 1 }
 0x135   : > { %v395_v62 = vadd.f32 %v394_v61, %v393_v60 }
 0x137   : > { %v396_v63 = vmul.f32 0.015625, %v395_v62 }
 0x139   : > { %v397_v0 = vadd.f32 1e-05, %v396_v63 }
 0x13b   : > { %677 = vrsqrt.f32 %v397_v0 }
 0x145   : > { %v678_v3 = vpop.eup %677 }
 0x146   : > { %v399_v7 = vmul.f32 %v678_v3, %v367_v34  ;;  %v400_v8 = vmul.f32 %v678_v3, %v368_v35  ;;  %v401_v9 = vmul.f32 %v678_v3, %v369_v36  ;;  %v402_v10 = vmul.f32 %v678_v3, %v370_v37 }
 0x147   : > { %v403_v14 = vmul.f32 %v678_v3, %v371_v38  ;;  %v404_v15 = vmul.f32 %v678_v3, %v372_v39  ;;  %v405_v16 = vmul.f32 %v678_v3, %v373_v40  ;;  %v406_v17 = vmul.f32 %v678_v3, %v374_v41 }
 0x148   : > { %v415_v18 = vadd.f32 %v407_v1, %v399_v7  ;;  %v416_v19 = vadd.f32 %v408_v2, %v400_v8  ;;  %v417_v20 = vadd.f32 %v409_v4, %v401_v9  ;;  %v418_v21 = vadd.f32 %v410_v5, %v402_v10 }
 0x149   : > { %v419_v22 = vadd.f32 %v411_v6, %v403_v14  ;;  %v420_v23 = vadd.f32 %v412_v11, %v404_v15  ;;  %v421_v24 = vadd.f32 %v413_v12, %v405_v16  ;;  %v422_v25 = vadd.f32 %v414_v13, %v406_v17 }
 0x14a   : > { %v423_v26 = vmax.f32 %v415_v18, 0.0  ;;  %v424_v27 = vmax.f32 %v416_v19, 0.0  ;;  %v425_v28 = vmax.f32 %v417_v20, 0.0  ;;  %v426_v29 = vmax.f32 %v418_v21, 0.0 }
 0x14b   : > { %v427_v30 = vmax.f32 %v419_v22, 0.0  ;;  %v428_v31 = vmax.f32 %v420_v23, 0.0  ;;  %v429_v32 = vmax.f32 %v421_v24, 0.0  ;;  %v430_v33 = vmax.f32 %v422_v25, 0.0 }
 0x14c   : > { %v585_v34 = vpack.c.bf16 %v424_v27, %v423_v26  ;;  %v590_v35 = vpack.c.bf16 %v426_v29, %v425_v28 }
 0x14d   : > { %v595_v36 = vpack.c.bf16 %v428_v31, %v427_v30  ;;  %v600_v37 = vpack.c.bf16 %v430_v33, %v429_v32 }
 0x14e   : > { %586 = vst [vmem:[%s190_s15] sm:$0xff] %v585_v34   ;;  %602 = vst [vmem:[%s190_s15 + $0x8] sm:$0xff] %v590_v35  }
 0x14f   : > { %603 = vst [vmem:[%s190_s15 + $0x10] sm:$0xff] %v595_v36   ;;  %604 = vst [vmem:[%s190_s15 + $0x18] sm:$0xff] %v600_v37  }
 0x150 PF: > { %s13_s12 = sadd.s32 1, %s685_s12  }
 0x151   : > { %p10_p4 = scmp.ge.s32.totalorder %s13_s12, 4  }
 0x153   :  { %12 = sbr.rel (!%p10_p4) target bundleno = 1 (0x1), region = 65 }

// kernel: rhwf_encoder_forward.29
= control target key start
LH: loop header
LB: loop body
LE: loop exit
PB: predicated region body
PF: predicated region fallthrough
CT: control target
= control target key end

     0   :  { %s1330_s9 = smov 0   ;;  %s1525_s0 = inlined_call_operand.vmem [shape: bf16[2,64,768], index: 0, kind: input, shape index: {}]   ;;  %s1526_s1 = inlined_call_operand.vmem [shape: bf16[768,128], index: 1, kind: input, shape index: {}]   ;;  %s1527_s2 = inlined_call_operand.vmem [shape: f32[2,64,128], index: 2, kind: output, shape index: {}]  }
   0x1 LB: > { %s993_s10 = sadd.s32 4294967295, %s1313_s9   ;;  %p997_p0 = scmp.ge.s32.totalorder %s1313_s9, 1  ;;  %s1313_s9 = sphi %s1330_s9, %s12_s9  }
   0x2   : > { %p112_p1 = scmp.lt.s32.totalorder %s1313_s9, 3 }
   0x4   : > { %p113_p2 = pnand %p997_p0, %p112_p1 }
   0x5   : > { %v1221_v0 = vld [vmem:[%s1526_s1 + $0x40] sm:$0xff] (!%p113_p2)   ;;  %v1225_v4 = vld [vmem:[%s1526_s1 + $0x48] sm:$0xff] (!%p113_p2)   ;;  %v1229_v8 = vld [vmem:[%s1526_s1 + $0x50] sm:$0xff] (!%p113_p2)   ;;  %p134_p3 = scmp.lt.s32.totalorder (!%p113_p2), %s993_s10, 1 }
   0x6   : > { %116 = sbr.rel (%p113_p2) target bundleno = 376 (0x178), region = 28  ;;  %v1222_v1 = vld [vmem:[%s1526_s1 + $0xc0] sm:$0xff] (!%p113_p2)   ;;  %1076 = vmatprep.subr.bf16.mxu0 (!%p113_p2), %v1221_v0  ;;  %v1226_v5 = vld [vmem:[%s1526_s1 + $0xc8] sm:$0xff] (!%p113_p2)   ;;  %v1230_v9 = vld [vmem:[%s1526_s1 + $0xd0] sm:$0xff] (!%p113_p2)  }
   0x7   : > { %v1223_v2 = vld [vmem:[%s1526_s1] sm:$0xff] (!%p113_p2)   ;;  %1116 = vmatprep.subr.bf16.mxu1 (!%p113_p2), %v1222_v1  ;;  %v1227_v6 = vld [vmem:[%s1526_s1 + $0x8] sm:$0xff] (!%p113_p2)   ;;  %v1231_v10 = vld [vmem:[%s1526_s1 + $0x10] sm:$0xff] (!%p113_p2)  }
   0x8   : > { %v1224_v3 = vld [vmem:[%s1526_s1 + $0x80] sm:$0xff] (!%p113_p2)   ;;  %1077 = vmatpush3.bf16.msra.mxu0 (!%p113_p2), %v1223_v2  ;;  %v1228_v7 = vld [vmem:[%s1526_s1 + $0x88] sm:$0xff] (!%p113_p2)   ;;  %v1232_v11 = vld [vmem:[%s1526_s1 + $0x90] sm:$0xff] (!%p113_p2)  }
   0x9   : > { %1117 = vmatpush3.bf16.msra.mxu1 (!%p113_p2), %v1224_v3  ;;  %1078 = vmatprep.subr.bf16.mxu0 (!%p113_p2), %v1225_v4  ;;  %v1233_v12 = vld [vmem:[%s1526_s1 + $0x58] sm:$0xff] (!%p113_p2)   ;;  %v1237_v16 = vld [vmem:[%s1526_s1 + $0x60] sm:$0xff] (!%p113_p2)   ;;  %v1241_v20 = vld [vmem:[%s1526_s1 + $0x68] sm:$0xff] (!%p113_p2)  }
   0xa   : > { %1118 = vmatprep.subr.bf16.mxu1 (!%p113_p2), %v1226_v5  ;;  %v1234_v13 = vld [vmem:[%s1526_s1 + $0xd8] sm:$0xff] (!%p113_p2)   ;;  %v1238_v17 = vld [vmem:[%s1526_s1 + $0xe0] sm:$0xff] (!%p113_p2)   ;;  %v1242_v21 = vld [vmem:[%s1526_s1 + $0xe8] sm:$0xff] (!%p113_p2)  }
   0xb   : > { %v1235_v14 = vld [vmem:[%s1526_s1 + $0x18] sm:$0xff] (!%p113_p2)   ;;  %v1239_v18 = vld [vmem:[%s1526_s1 + $0x20] sm:$0xff] (!%p113_p2)   ;;  %v1243_v22 = vld [vmem:[%s1526_s1 + $0x28] sm:$0xff] (!%p113_p2)  }
   0xc   : > { %1079 = vmatpush3.bf16.msra.mxu0 (!%p113_p2), %v1227_v6  ;;  %v1236_v15 = vld [vmem:[%s1526_s1 + $0x98] sm:$0xff] (!%p113_p2)   ;;  %v1240_v19 = vld [vmem:[%s1526_s1 + $0xa0] sm:$0xff] (!%p113_p2)   ;;  %v1244_v23 = vld [vmem:[%s1526_s1 + $0xa8] sm:$0xff] (!%p113_p2)  }
   0xd   : > { %1119 = vmatpush3.bf16.msra.mxu1 %v1228_v7  ;;  %1080 = vmatprep.subr.bf16.mxu0 %v1229_v8  ;;  %s1529_s10 = smov (!%p134_p3, %s993_s10), 1  ;;  %v1245_v24 = vld [vmem:[%s1526_s1 + $0x70] sm:$0xff]   ;;  %v1249_v28 = vld [vmem:[%s1526_s1 + $0x78] sm:$0xff]   ;;  %v1259_v36 = vld [vmem:[%s1526_s1 + $0x140] sm:$0xff]  }
   0xe   : > { %1120 = vmatprep.subr.bf16.mxu1 %v1230_v9  ;;  %v1246_v25 = vld [vmem:[%s1526_s1 + $0xf0] sm:$0xff]   ;;  %s1212_s11 = smul.u32 192, %s1529_s10  ;;  %v1250_v29 = vld [vmem:[%s1526_s1 + $0xf8] sm:$0xff]   ;;  %v1260_v37 = vld [vmem:[%s1526_s1 + $0x100] sm:$0xff]  }
   0xf   : > { %v1247_v26 = vld [vmem:[%s1526_s1 + $0x30] sm:$0xff]   ;;  %v1251_v30 = vld [vmem:[%s1526_s1 + $0x38] sm:$0xff]   ;;  %v1261_v38 = vld [vmem:[%s1526_s1 + $0x148] sm:$0xff]  }
  0x10   : > { %1081 = vmatpush3.bf16.msra.mxu0 %v1231_v10  ;;  %v1248_v27 = vld [vmem:[%s1526_s1 + $0xb0] sm:$0xff]   ;;  %s1438_s22 = scalar_lea.vmem %s1525_s0, %s1212_s11  ;;  %v1252_v31 = vld [vmem:[%s1526_s1 + $0xb8] sm:$0xff]   ;;  %v1262_v39 = vld [vmem:[%s1526_s1 + $0x108] sm:$0xff]  }
  0x11   : > { %1121 = vmatpush3.bf16.msra.mxu1 %v1232_v11  ;;  %1082 = vmatprep.subr.bf16.mxu0 %v1233_v12  ;;  %v1253_v32 = vld [vmem:[%s1438_s22] ss:$24 sps:$4 sm:$0xff]   ;;  %v1255_v33 = vld [vmem:[%s1438_s22 + $0x4] ss:$24 sps:$4 sm:$0xff]   ;;  %v1263_v40 = vld [vmem:[%s1438_s22 + $0x34] ss:$24 sps:$4 sm:$0xff]  }
  0x12   : > { %1122 = vmatprep.subr.bf16.mxu1 %v1234_v13  ;;  %v1256_v34 = vld [vmem:[%s1438_s22 + $0x8] ss:$24 sps:$4 sm:$0xff]   ;;  %v1258_v35 = vld [vmem:[%s1438_s22 + $0xc] ss:$24 sps:$4 sm:$0xff]   ;;  %705 = vmatprep.mubr.bf16.mxu0 %v1255_v33  ;;  %v1265_v41 = vld [vmem:[%s1438_s22 + $0x3c] ss:$24 sps:$4 sm:$0xff]  }
  0x13   : > { %770 = vmatprep.mubr.bf16.mxu1 %v1258_v35  ;;  %v1267_v42 = vld [vmem:[%s1438_s22 + $0x30] ss:$24 sps:$4 sm:$0xff]   ;;  %v1271_v46 = vld [vmem:[%s1526_s1 + $0x158] sm:$0xff]   ;;  %v1275_v49 = vld [vmem:[%s1438_s22 + $0x6c] ss:$24 sps:$4 sm:$0xff]  }
  0x14   : > { %1083 = vmatpush3.bf16.msra.mxu0 %v1235_v14  ;;  %v1268_v43 = vld [vmem:[%s1438_s22 + $0x38] ss:$24 sps:$4 sm:$0xff]   ;;  %v1273_v48 = vld [vmem:[%s1438_s22 + $0x64] ss:$24 sps:$4 sm:$0xff]   ;;  %v1278_v52 = vld [vmem:[%s1438_s22 + $0x68] ss:$24 sps:$4 sm:$0xff]  }
  0x15   : > { %1123 = vmatpush3.bf16.msra.mxu1 %v1236_v15  ;;  %1084 = vmatprep.subr.bf16.mxu0 %v1237_v16  ;;  %v1269_v44 = vld [vmem:[%s1526_s1 + $0x150] sm:$0xff]   ;;  %v1272_v47 = vld [vmem:[%s1526_s1 + $0x118] sm:$0xff]   ;;  %v1279_v51 = vld [vmem:[%s1526_s1 + $0x160] sm:$0xff]  }
  0x16   : > { %1124 = vmatprep.subr.bf16.mxu1 %v1238_v17  ;;  %v1270_v45 = vld [vmem:[%s1526_s1 + $0x110] sm:$0xff]   ;;  %v1277_v50 = vld [vmem:[%s1438_s22 + $0x60] ss:$24 sps:$4 sm:$0xff]   ;;  %v1281_v54 = vld [vmem:[%s1526_s1 + $0x168] sm:$0xff]  }
  0x17   : > { %v1280_v53 = vld [vmem:[%s1526_s1 + $0x120] sm:$0xff]   ;;  %v1283_v55 = vld [vmem:[%s1438_s22 + $0x94] ss:$24 sps:$4 sm:$0xff]   ;;  %v1287_v59 = vld [vmem:[%s1438_s22 + $0x90] ss:$24 sps:$4 sm:$0xff]  }
  0x18   : > { %1085 = vmatpush3.bf16.msra.mxu0 %v1239_v18  ;;  %v1285_v56 = vld [vmem:[%s1438_s22 + $0x9c] ss:$24 sps:$4 sm:$0xff]   ;;  %v1282_v57 = vld [vmem:[%s1526_s1 + $0x128] sm:$0xff]   ;;  %v1288_v60 = vld [vmem:[%s1438_s22 + $0x98] ss:$24 sps:$4 sm:$0xff]  }
  0x19   : > { %1125 = vmatpush3.bf16.msra.mxu1 %v1240_v19  ;;  %1086 = vmatprep.subr.bf16.mxu0 %v1241_v20  ;;  %v1289_v58 = vld [vmem:[%s1526_s1 + $0x170] sm:$0xff]   ;;  %v1291_v62 = vld [vmem:[%s1526_s1 + $0x178] sm:$0xff]  }
  0x1a   : > { %1126 = vmatprep.subr.bf16.mxu1 %v1242_v21  ;;  %v1290_v61 = vld [vmem:[%s1526_s1 + $0x130] sm:$0xff]   ;;  %v1292_v1 = vld [vmem:[%s1526_s1 + $0x138] sm:$0xff]  }
  0x1b   : > { %v1295_v63 = vld [vmem:[%s1438_s22 + $0x14] ss:$24 sps:$4 sm:$0xff]   ;;  %v1293_v2 = vld [vmem:[%s1438_s22 + $0x10] ss:$24 sps:$4 sm:$0xff]   ;;  %v1299_v4 = vld [vmem:[%s1438_s22 + $0x44] ss:$24 sps:$4 sm:$0xff]  }
  0x1c   : > { %1087 = vmatpush3.bf16.msra.mxu0 %v1243_v22  ;;  %v1298_v0 = vld [vmem:[%s1438_s22 + $0x74] ss:$24 sps:$4 sm:$0xff]   ;;  %v1296_v3 = vld [vmem:[%s1438_s22 + $0x70] ss:$24 sps:$4 sm:$0xff]   ;;  %v1301_v5 = vld [vmem:[%s1438_s22 + $0xa4] ss:$24 sps:$4 sm:$0xff]  }
  0x1d   : > { %1127 = vmatpush3.bf16.msra.mxu1 %v1244_v23  ;;  %1088 = vmatprep.subr.bf16.mxu0 %v1245_v24  ;;  %v1303_v6 = vld [vmem:[%s1438_s22 + $0x40] ss:$24 sps:$4 sm:$0xff]  }
  0x1e   : > { %1128 = vmatprep.subr.bf16.mxu1 %v1246_v25  ;;  %v1304_v7 = vld [vmem:[%s1438_s22 + $0xa0] ss:$24 sps:$4 sm:$0xff]   ;;  %s1075_s22 = sshll.u32 %s1529_s10, 6 }
  0x1f   : > { %s143_s8 = scalar_lea.vmem %s1527_s2, %s1075_s22 }
  0x20   : > { %1089 = vmatpush3.bf16.msra.mxu0 %v1247_v26 }
  0x21   : > { %1129 = vmatpush3.bf16.msra.mxu1 %v1248_v27  ;;  %1090 = vmatprep.subr.bf16.mxu0 %v1249_v28 }
  0x22   : > { %1130 = vmatprep.subr.bf16.mxu1 %v1250_v29 }
  0x24   : > { %1091 = vmatpush3.bf16.msra.mxu0 %v1251_v30 }
  0x25   : > { %1131 = vmatpush3.bf16.msra.mxu1 %v1252_v31  ;;  %1156 = vmatprep.subr.bf16.mxu0 %v1259_v36 }
  0x26   : > { %1196 = vmatprep.subr.bf16.mxu1 %v1259_v36 }
  0x27   : > { %706 = vmatmul.mubr.bf16.vlgmr.msra.gmra.mrb[0].mxu0 %v1253_v32 }
  0x28   : > { %771 = vmatmul.mubr.bf16.vlgmr.msra.gmra.mrb[0].mxu1 %v1256_v34  ;;  %1157 = vmatpush3.bf16.msra.mxu0 %v1260_v37 }
  0x29   : > { %1204 = vmatpush3.bf16.msra.mxu1 %v1260_v37  ;;  %1158 = vmatprep.subr.bf16.mxu0 %v1261_v38 }
  0x2a   : > { %1197 = vmatprep.subr.bf16.mxu1 %v1261_v38  ;;  %713 = vmatprep.mubr.bf16.mxu0 %v1263_v40 }
  0x2b   : > { %778 = vmatprep.mubr.bf16.mxu1 %v1265_v41 }
  0x2c   : > { %1159 = vmatpush3.bf16.msra.mxu0 %v1262_v39 }
  0x2d   : > { %1205 = vmatpush3.bf16.msra.mxu1 %v1262_v39  ;;  %1160 = vmatprep.subr.bf16.mxu0 %v1269_v44 }
  0x2e   : > { %1198 = vmatprep.subr.bf16.mxu1 %v1269_v44 }
  0x2f   : > { %714 = vmatmul.mubr.bf16.gmra.mrb[4].mxu0 %v1267_v42 }
  0x30   : > { %779 = vmatmul.mubr.bf16.gmra.mrb[4].mxu1 %v1268_v43  ;;  %1161 = vmatpush3.bf16.msra.mxu0 %v1270_v45 }
  0x31   : > { %1206 = vmatpush3.bf16.msra.mxu1 %v1270_v45  ;;  %1162 = vmatprep.subr.bf16.mxu0 %v1271_v46 }
  0x32   : > { %1199 = vmatprep.subr.bf16.mxu1 %v1271_v46  ;;  %721 = vmatprep.mubr.bf16.mxu0 %v1273_v48 }
  0x33   : > { %786 = vmatprep.mubr.bf16.mxu1 %v1275_v49 }
  0x34   : > { %1163 = vmatpush3.bf16.msra.mxu0 %v1272_v47 }
  0x35   : > { %1207 = vmatpush3.bf16.msra.mxu1 %v1272_v47  ;;  %1164 = vmatprep.subr.bf16.mxu0 %v1279_v51 }
  0x36   : > { %1200 = vmatprep.subr.bf16.mxu1 %v1279_v51 }
  0x37   : > { %722 = vmatmul.mubr.bf16.gmra.mrb[8].mxu0 %v1277_v50 }
  0x38   : > { %787 = vmatmul.mubr.bf16.gmra.mrb[8].mxu1 %v1278_v52  ;;  %1165 = vmatpush3.bf16.msra.mxu0 %v1280_v53 }
  0x39   : > { %729 = vmatprep.mubr.bf16.mxu0 %v1283_v55  ;;  %1208 = vmatpush3.bf16.msra.mxu1 %v1280_v53 }
  0x3a   : > { %1166 = vmatprep.subr.bf16.mxu0 %v1281_v54  ;;  %1201 = vmatprep.subr.bf16.mxu1 %v1281_v54 }
  0x3b   : > { %794 = vmatprep.mubr.bf16.mxu1 %v1285_v56 }
  0x3c   : > { %1167 = vmatpush3.bf16.msra.mxu0 %v1282_v57 }
  0x3d   : > { %1209 = vmatpush3.bf16.msra.mxu1 %v1282_v57  ;;  %1168 = vmatprep.subr.bf16.mxu0 %v1289_v58 }
  0x3e   : > { %1202 = vmatprep.subr.bf16.mxu1 %v1289_v58 }
  0x3f   : > { %730 = vmatmul.mubr.bf16.gmra.mrb[12].mxu0 %v1287_v59 }
  0x40   : > { %795 = vmatmul.mubr.bf16.gmra.mrb[12].mxu1 %v1288_v60  ;;  %835 = vmatprep.mubr.bf16.mxu0 %v1295_v63 }
  0x41   : > { %1169 = vmatpush3.bf16.msra.mxu0 %v1290_v61  ;;  %1210 = vmatpush3.bf16.msra.mxu1 %v1290_v61 }
  0x42   : > { %1170 = vmatprep.subr.bf16.mxu0 %v1291_v62  ;;  %1203 = vmatprep.subr.bf16.mxu1 %v1291_v62 }
  0x43   : > { %851 = vmatprep.mubr.bf16.mxu1 %v1298_v0 }
  0x45   : > { %1171 = vmatpush3.bf16.msra.mxu0 %v1292_v1  ;;  %1211 = vmatpush3.bf16.msra.mxu1 %v1292_v1 }
  0x48   : > { %836 = vmatmul.mubr.bf16.vlgmr.msra.gmra.mrb[16].mxu0 %v1293_v2  ;;  %852 = vmatmul.mubr.bf16.vlgmr.msra.gmra.mrb[16].mxu1 %v1296_v3 }
  0x49   : > { %843 = vmatprep.mubr.bf16.mxu0 %v1299_v4  ;;  %859 = vmatprep.mubr.bf16.mxu1 %v1301_v5 }
  0x50   : > { %844 = vmatmul.mubr.bf16.gmra.mrb[20].mxu0 %v1303_v6  ;;  %860 = vmatmul.mubr.bf16.gmra.mrb[20].mxu1 %v1304_v7 }
  0xfa   : > { %v1092_v8 = vpop.f32.mrb[0].mxu0 }
  0xfb   : > { %v1132_v9 = vpop.f32.mrb[0].mxu1  ;;  %v1093_v10 = vpop.f32.mrb[1].mxu0 }
  0xfc   : > { %v1094_v11 = vadd.f32 %v1093_v10, %v1092_v8  ;;  %v1133_v12 = vpop.f32.mrb[1].mxu1  ;;  %v1095_v13 = vpop.f32.mrb[2].mxu0 }
  0xfd   : > { %v1134_v14 = vadd.f32 %v1133_v12, %v1132_v9  ;;  %v1135_v15 = vpop.f32.mrb[2].mxu1  ;;  %v1096_v16 = vpop.f32.mrb[3].mxu0 }
  0xfe   : > { %v1097_v17 = vadd.f32 %v1096_v16, %v1095_v13  ;;  %v1136_v18 = vpop.f32.mrb[3].mxu1 }
  0xff   : > { %v773_v19 = vadd.f32 %v1134_v14, %v1094_v11  ;;  %v1137_v20 = vadd.f32 %v1136_v18, %v1135_v15 }
 0x101   : > { %v776_v21 = vadd.f32 %v1137_v20, %v1097_v17 }
 0x102   : > { %v1098_v22 = vpop.f32.mrb[4].mxu0 }
 0x103   : > { %v1138_v23 = vpop.f32.mrb[4].mxu1  ;;  %v1099_v24 = vpop.f32.mrb[5].mxu0 }
 0x104   : > { %v1100_v25 = vadd.f32 %v1099_v24, %v1098_v22  ;;  %v1139_v26 = vpop.f32.mrb[5].mxu1  ;;  %v1101_v27 = vpop.f32.mrb[6].mxu0 }
 0x105   : > { %v1140_v28 = vadd.f32 %v1139_v26, %v1138_v23  ;;  %v1141_v29 = vpop.f32.mrb[6].mxu1  ;;  %v1102_v30 = vpop.f32.mrb[7].mxu0 }
 0x106   : > { %v1103_v31 = vadd.f32 %v1102_v30, %v1101_v27  ;;  %v1142_v32 = vpop.f32.mrb[7].mxu1 }
 0x107   : > { %v781_v33 = vadd.f32 %v1140_v28, %v1100_v25  ;;  %v1143_v34 = vadd.f32 %v1142_v32, %v1141_v29 }
 0x109   : > { %v784_v35 = vadd.f32 %v1143_v34, %v1103_v31 }
 0x10a   : > { %v1104_v36 = vpop.f32.mrb[8].mxu0 }
 0x10b   : > { %v1144_v37 = vpop.f32.mrb[8].mxu1  ;;  %v1105_v38 = vpop.f32.mrb[9].mxu0 }
 0x10c   : > { %v1106_v39 = vadd.f32 %v1105_v38, %v1104_v36  ;;  %v1145_v40 = vpop.f32.mrb[9].mxu1  ;;  %v1107_v41 = vpop.f32.mrb[10].mxu0 }
 0x10d   : > { %v1146_v42 = vadd.f32 %v1145_v40, %v1144_v37  ;;  %v1147_v43 = vpop.f32.mrb[10].mxu1  ;;  %v1108_v44 = vpop.f32.mrb[11].mxu0 }
 0x10e   : > { %v1109_v45 = vadd.f32 %v1108_v44, %v1107_v41  ;;  %v1148_v46 = vpop.f32.mrb[11].mxu1 }
 0x10f   : > { %v789_v47 = vadd.f32 %v1146_v42, %v1106_v39  ;;  %v1149_v48 = vadd.f32 %v1148_v46, %v1147_v43 }
 0x111   : > { %v792_v49 = vadd.f32 %v1149_v48, %v1109_v45 }
 0x112   : > { %v1110_v50 = vpop.f32.mrb[12].mxu0 }
 0x113   : > { %v1150_v51 = vpop.f32.mrb[12].mxu1  ;;  %v1111_v52 = vpop.f32.mrb[13].mxu0 }
 0x114   : > { %v1112_v53 = vadd.f32 %v1111_v52, %v1110_v50  ;;  %v1151_v54 = vpop.f32.mrb[13].mxu1  ;;  %v1113_v55 = vpop.f32.mrb[14].mxu0 }
 0x115   : > { %v1152_v56 = vadd.f32 %v1151_v54, %v1150_v51  ;;  %v1153_v57 = vpop.f32.mrb[14].mxu1  ;;  %v1114_v58 = vpop.f32.mrb[15].mxu0 }
 0x116   : > { %v1115_v59 = vadd.f32 %v1114_v58, %v1113_v55  ;;  %v1154_v60 = vpop.f32.mrb[15].mxu1 }
 0x117   : > { %v797_v61 = vadd.f32 %v1152_v56, %v1112_v53  ;;  %v1155_v62 = vadd.f32 %v1154_v60, %v1153_v57 }
 0x119   : > { %v800_v63 = vadd.f32 %v1155_v62, %v1115_v59 }
 0x11b   : > { %v1172_v0 = vpop.f32.mrb[16].mxu0  ;;  %v1184_v1 = vpop.f32.mrb[16].mxu1 }
 0x11c   : > { %v1173_v2 = vpop.f32.mrb[17].mxu0  ;;  %v1185_v4 = vpop.f32.mrb[17].mxu1 }
 0x11d   : > { %v1174_v3 = vadd.f32 %v1173_v2, %v1172_v0  ;;  %v1175_v5 = vpop.f32.mrb[18].mxu0  ;;  %v1186_v6 = vadd.f32 %v1185_v4, %v1184_v1  ;;  %v1187_v7 = vpop.f32.mrb[18].mxu1 }
 0x11e   : > { %v1176_v8 = vpop.f32.mrb[19].mxu0  ;;  %v1188_v11 = vpop.f32.mrb[19].mxu1 }
 0x11f   : > { %v838_v9 = vadd.f32 %v1174_v3, %v773_v19  ;;  %v1177_v10 = vadd.f32 %v1176_v8, %v1175_v5  ;;  %v854_v12 = vadd.f32 %v1186_v6, %v789_v47  ;;  %v1189_v13 = vadd.f32 %v1188_v11, %v1187_v7 }
 0x121   : > { %v841_v14 = vadd.f32 %v1177_v10, %v776_v21  ;;  %v857_v15 = vadd.f32 %v1189_v13, %v792_v49 }
 0x123   : > { %v868_v16 = vadd.f32 %v841_v14, %v838_v9  ;;  %v1178_v17 = vpop.f32.mrb[20].mxu0  ;;  %v1190_v18 = vpop.f32.mrb[20].mxu1 }
 0x124   : > { %v1179_v20 = vpop.f32.mrb[21].mxu0  ;;  %v1191_v23 = vpop.f32.mrb[21].mxu1 }
 0x125   : > { %v1180_v22 = vadd.f32 %v1179_v20, %v1178_v17  ;;  %v1181_v24 = vpop.f32.mrb[22].mxu0  ;;  %v1192_v25 = vadd.f32 %v1191_v23, %v1190_v18  ;;  %v1193_v26 = vpop.f32.mrb[22].mxu1 }
 0x126   : > { %v1182_v27 = vpop.f32.mrb[23].mxu0  ;;  %v1194_v30 = vpop.f32.mrb[23].mxu1 }
 0x127   : > { %v846_v28 = vadd.f32 %v1180_v22, %v781_v33  ;;  %v1183_v29 = vadd.f32 %v1182_v27, %v1181_v24  ;;  %v862_v19 = vadd.f32 %v1192_v25, %v797_v61  ;;  %v1195_v31 = vadd.f32 %v1194_v30, %v1193_v26 }
 0x129   : > { %v869_v32 = vadd.f32 %v868_v16, %v846_v28  ;;  %v849_v34 = vadd.f32 %v1183_v29, %v784_v35  ;;  %v865_v36 = vadd.f32 %v1195_v31, %v800_v63 }
 0x12b   : > { %v870_v21 = vadd.f32 %v869_v32, %v849_v34 }
 0x12d   : > { %v871_v37 = vadd.f32 %v870_v21, %v854_v12 }
 0x12f   : > { %v872_v38 = vadd.f32 %v871_v37, %v857_v15 }
 0x131   : > { %v873_v39 = vadd.f32 %v872_v38, %v862_v19 }
 0x133   : > { %v874_v40 = vadd.f32 %v873_v39, %v865_v36 }
 0x135   : > { %v875_v41 = vrot.slane %v874_v40, 4 }
 0x137   : > { %v876_v42 = vadd.f32 %v875_v41, %v874_v40 }
 0x139   : > { %v877_v43 = vrot.slane %v876_v42, 2 }
 0x13b   : > { %v878_v44 = vadd.f32 %v877_v43, %v876_v42 }
 0x13d   : > { %v879_v45 = vrot.slane %v878_v44, 1 }
 0x13f   : > { %v880_v46 = vadd.f32 %v879_v45, %v878_v44 }
 0x141   : > { %v881_v47 = vmul.f32 0.015625, %v880_v46 }
 0x143   : > { %v882_v33 = vsub.f32 %v838_v9, %v881_v47  ;;  %v883_v48 = vsub.f32 %v841_v14, %v881_v47  ;;  %v884_v49 = vsub.f32 %v846_v28, %v881_v47  ;;  %v885_v50 = vsub.f32 %v849_v34, %v881_v47 }
 0x144   : > { %v886_v51 = vsub.f32 %v854_v12, %v881_v47  ;;  %v887_v52 = vsub.f32 %v857_v15, %v881_v47  ;;  %v888_v35 = vsub.f32 %v862_v19, %v881_v47  ;;  %v889_v53 = vsub.f32 %v865_v36, %v881_v47 }
 0x145   : > { %v890_v54 = vmul.f32 %v882_v33, %v882_v33  ;;  %v891_v55 = vmul.f32 %v883_v48, %v883_v48  ;;  %v892_v56 = vmul.f32 %v884_v49, %v884_v49  ;;  %v893_v58 = vmul.f32 %v885_v50, %v885_v50 }
 0x146   : > { %v894_v60 = vmul.f32 %v886_v51, %v886_v51  ;;  %v895_v62 = vmul.f32 %v887_v52, %v887_v52  ;;  %v896_v0 = vmul.f32 %v888_v35, %v888_v35  ;;  %v897_v2 = vmul.f32 %v889_v53, %v889_v53 }
 0x147   : > { %v898_v57 = vadd.f32 %v891_v55, %v890_v54 }
 0x149   : > { %v899_v59 = vadd.f32 %v898_v57, %v892_v56 }
 0x14b   : > { %v900_v61 = vadd.f32 %v899_v59, %v893_v58 }
 0x14d   : > { %v901_v63 = vadd.f32 %v900_v61, %v894_v60 }
 0x14f   : > { %v902_v1 = vadd.f32 %v901_v63, %v895_v62 }
 0x151   : > { %v903_v3 = vadd.f32 %v902_v1, %v896_v0 }
 0x153   : > { %v904_v4 = vadd.f32 %v903_v3, %v897_v2 }
 0x155   : > { %v905_v5 = vrot.slane %v904_v4, 4 }
 0x157   : > { %v906_v6 = vadd.f32 %v905_v5, %v904_v4 }
 0x159   : > { %v907_v7 = vrot.slane %v906_v6, 2 }
 0x15b   : > { %v908_v8 = vadd.f32 %v907_v7, %v906_v6 }
 0x15d   : > { %v909_v9 = vrot.slane %v908_v8, 1 }
 0x15f   : > { %v910_v10 = vadd.f32 %v909_v9, %v908_v8 }
 0x161   : > { %v911_v11 = vmul.f32 0.015625, %v910_v10 }
 0x163   : > { %v912_v12 = vadd.f32 1e-05, %v911_v11 }
 0x165   : > { %1305 = vrsqrt.f32 %v912_v12 }
 0x16f   : > { %v1306_v13 = vpop.eup %1305 }
 0x170   : > { %v914_v14 = vmul.f32 %v1306_v13, %v882_v33  ;;  %v915_v15 = vmul.f32 %v1306_v13, %v883_v48  ;;  %v916_v16 = vmul.f32 %v1306_v13, %v884_v49  ;;  %v917_v17 = vmul.f32 %v1306_v13, %v885_v50 }
 0x171   : > { %v918_v18 = vmul.f32 %v1306_v13, %v886_v51  ;;  %v919_v20 = vmul.f32 %v1306_v13, %v887_v52  ;;  %v920_v22 = vmul.f32 %v1306_v13, %v888_v35  ;;  %v921_v23 = vmul.f32 %v1306_v13, %v889_v53 }
 0x172   : > { %v922_v24 = vmax.f32 %v914_v14, 0.0  ;;  %v923_v25 = vmax.f32 %v915_v15, 0.0  ;;  %v924_v26 = vmax.f32 %v916_v16, 0.0  ;;  %v925_v27 = vmax.f32 %v917_v17, 0.0 }
 0x173   : > { %v926_v28 = vmax.f32 %v918_v18, 0.0  ;;  %v927_v29 = vmax.f32 %v919_v20, 0.0  ;;  %v928_v30 = vmax.f32 %v920_v22, 0.0  ;;  %v929_v19 = vmax.f32 %v921_v23, 0.0 }
 0x174   : > { %930 = vst [vmem:[%s143_s8] sm:$0xff] %v922_v24  ;;  %931 = vst [vmem:[%s143_s8 + $0x8] sm:$0xff] %v923_v25 }
 0x175   : > { %932 = vst [vmem:[%s143_s8 + $0x10] sm:$0xff] %v924_v26  ;;  %933 = vst [vmem:[%s143_s8 + $0x18] sm:$0xff] %v925_v27 }
 0x176   : > { %934 = vst [vmem:[%s143_s8 + $0x20] sm:$0xff] %v926_v28  ;;  %935 = vst [vmem:[%s143_s8 + $0x28] sm:$0xff] %v927_v29 }
 0x177   : > { %936 = vst [vmem:[%s143_s8 + $0x30] sm:$0xff] %v928_v30  ;;  %937 = vst [vmem:[%s143_s8 + $0x38] sm:$0xff] %v929_v19 }
 0x178 PF: > { %s12_s9 = sadd.s32 1, %s1313_s9  }
 0x179   : > { %p9_p4 = scmp.ge.s32.totalorder %s12_s9, 4  }
 0x17b   :  { %11 = sbr.rel (!%p9_p4) target bundleno = 1 (0x1), region = 58 }

// kernel: rhwf_encoder_forward.31
= control target key start
LH: loop header
LB: loop body
LE: loop exit
PB: predicated region body
PF: predicated region fallthrough
CT: control target
= control target key end

     0   :  { %s1401_s9 = smov 0   ;;  %s1596_s0 = inlined_call_operand.vmem [shape: bf16[2,64,768], index: 0, kind: input, shape index: {}]   ;;  %s1597_s1 = inlined_call_operand.vmem [shape: bf16[768,128], index: 1, kind: input, shape index: {}]   ;;  %s1598_s2 = inlined_call_operand.vmem [shape: bf16[2,64,128], index: 2, kind: output, shape index: {}]  }
   0x1 LB: > { %s1025_s10 = sadd.s32 4294967295, %s1384_s9   ;;  %p1029_p0 = scmp.ge.s32.totalorder %s1384_s9, 1  ;;  %s1384_s9 = sphi %s1401_s9, %s12_s9  }
   0x2   : > { %p112_p1 = scmp.lt.s32.totalorder %s1384_s9, 3 }
   0x4   : > { %p113_p2 = pnand %p1029_p0, %p112_p1 }
   0x5   : > { %v1292_v0 = vld [vmem:[%s1597_s1 + $0x40] sm:$0xff] (!%p113_p2)   ;;  %v1296_v4 = vld [vmem:[%s1597_s1 + $0x48] sm:$0xff] (!%p113_p2)   ;;  %v1300_v8 = vld [vmem:[%s1597_s1 + $0x50] sm:$0xff] (!%p113_p2)   ;;  %p134_p3 = scmp.lt.s32.totalorder (!%p113_p2), %s1025_s10, 1 }
   0x6   : > { %116 = sbr.rel (%p113_p2) target bundleno = 376 (0x178), region = 28  ;;  %v1293_v1 = vld [vmem:[%s1597_s1 + $0xc0] sm:$0xff] (!%p113_p2)   ;;  %1147 = vmatprep.subr.bf16.mxu0 (!%p113_p2), %v1292_v0  ;;  %v1297_v5 = vld [vmem:[%s1597_s1 + $0xc8] sm:$0xff] (!%p113_p2)   ;;  %v1301_v9 = vld [vmem:[%s1597_s1 + $0xd0] sm:$0xff] (!%p113_p2)  }
   0x7   : > { %v1294_v2 = vld [vmem:[%s1597_s1] sm:$0xff] (!%p113_p2)   ;;  %1187 = vmatprep.subr.bf16.mxu1 (!%p113_p2), %v1293_v1  ;;  %v1298_v6 = vld [vmem:[%s1597_s1 + $0x8] sm:$0xff] (!%p113_p2)   ;;  %v1302_v10 = vld [vmem:[%s1597_s1 + $0x10] sm:$0xff] (!%p113_p2)  }
   0x8   : > { %v1295_v3 = vld [vmem:[%s1597_s1 + $0x80] sm:$0xff] (!%p113_p2)   ;;  %1148 = vmatpush3.bf16.msra.mxu0 (!%p113_p2), %v1294_v2  ;;  %v1299_v7 = vld [vmem:[%s1597_s1 + $0x88] sm:$0xff] (!%p113_p2)   ;;  %v1303_v11 = vld [vmem:[%s1597_s1 + $0x90] sm:$0xff] (!%p113_p2)  }
   0x9   : > { %1188 = vmatpush3.bf16.msra.mxu1 (!%p113_p2), %v1295_v3  ;;  %1149 = vmatprep.subr.bf16.mxu0 (!%p113_p2), %v1296_v4  ;;  %v1304_v12 = vld [vmem:[%s1597_s1 + $0x58] sm:$0xff] (!%p113_p2)   ;;  %v1308_v16 = vld [vmem:[%s1597_s1 + $0x60] sm:$0xff] (!%p113_p2)   ;;  %v1312_v20 = vld [vmem:[%s1597_s1 + $0x68] sm:$0xff] (!%p113_p2)  }
   0xa   : > { %1189 = vmatprep.subr.bf16.mxu1 (!%p113_p2), %v1297_v5  ;;  %v1305_v13 = vld [vmem:[%s1597_s1 + $0xd8] sm:$0xff] (!%p113_p2)   ;;  %v1309_v17 = vld [vmem:[%s1597_s1 + $0xe0] sm:$0xff] (!%p113_p2)   ;;  %v1313_v21 = vld [vmem:[%s1597_s1 + $0xe8] sm:$0xff] (!%p113_p2)  }
   0xb   : > { %v1306_v14 = vld [vmem:[%s1597_s1 + $0x18] sm:$0xff] (!%p113_p2)   ;;  %v1310_v18 = vld [vmem:[%s1597_s1 + $0x20] sm:$0xff] (!%p113_p2)   ;;  %v1314_v22 = vld [vmem:[%s1597_s1 + $0x28] sm:$0xff] (!%p113_p2)  }
   0xc   : > { %1150 = vmatpush3.bf16.msra.mxu0 (!%p113_p2), %v1298_v6  ;;  %v1307_v15 = vld [vmem:[%s1597_s1 + $0x98] sm:$0xff] (!%p113_p2)   ;;  %v1311_v19 = vld [vmem:[%s1597_s1 + $0xa0] sm:$0xff] (!%p113_p2)   ;;  %v1315_v23 = vld [vmem:[%s1597_s1 + $0xa8] sm:$0xff] (!%p113_p2)  }
   0xd   : > { %1190 = vmatpush3.bf16.msra.mxu1 %v1299_v7  ;;  %1151 = vmatprep.subr.bf16.mxu0 %v1300_v8  ;;  %s1600_s10 = smov (!%p134_p3, %s1025_s10), 1  ;;  %v1316_v24 = vld [vmem:[%s1597_s1 + $0x70] sm:$0xff]   ;;  %v1320_v28 = vld [vmem:[%s1597_s1 + $0x78] sm:$0xff]   ;;  %v1330_v36 = vld [vmem:[%s1597_s1 + $0x140] sm:$0xff]  }
   0xe   : > { %1191 = vmatprep.subr.bf16.mxu1 %v1301_v9  ;;  %v1317_v25 = vld [vmem:[%s1597_s1 + $0xf0] sm:$0xff]   ;;  %s1283_s11 = smul.u32 192, %s1600_s10  ;;  %v1321_v29 = vld [vmem:[%s1597_s1 + $0xf8] sm:$0xff]   ;;  %v1331_v37 = vld [vmem:[%s1597_s1 + $0x100] sm:$0xff]  }
   0xf   : > { %v1318_v26 = vld [vmem:[%s1597_s1 + $0x30] sm:$0xff]   ;;  %v1322_v30 = vld [vmem:[%s1597_s1 + $0x38] sm:$0xff]   ;;  %v1332_v38 = vld [vmem:[%s1597_s1 + $0x148] sm:$0xff]  }
  0x10   : > { %1152 = vmatpush3.bf16.msra.mxu0 %v1302_v10  ;;  %v1319_v27 = vld [vmem:[%s1597_s1 + $0xb0] sm:$0xff]   ;;  %s1509_s22 = scalar_lea.vmem %s1596_s0, %s1283_s11  ;;  %v1323_v31 = vld [vmem:[%s1597_s1 + $0xb8] sm:$0xff]   ;;  %v1333_v39 = vld [vmem:[%s1597_s1 + $0x108] sm:$0xff]  }
  0x11   : > { %1192 = vmatpush3.bf16.msra.mxu1 %v1303_v11  ;;  %1153 = vmatprep.subr.bf16.mxu0 %v1304_v12  ;;  %v1324_v32 = vld [vmem:[%s1509_s22] ss:$24 sps:$4 sm:$0xff]   ;;  %v1326_v33 = vld [vmem:[%s1509_s22 + $0x4] ss:$24 sps:$4 sm:$0xff]   ;;  %v1334_v40 = vld [vmem:[%s1509_s22 + $0x34] ss:$24 sps:$4 sm:$0xff]  }
  0x12   : > { %1193 = vmatprep.subr.bf16.mxu1 %v1305_v13  ;;  %v1327_v34 = vld [vmem:[%s1509_s22 + $0x8] ss:$24 sps:$4 sm:$0xff]   ;;  %v1329_v35 = vld [vmem:[%s1509_s22 + $0xc] ss:$24 sps:$4 sm:$0xff]   ;;  %705 = vmatprep.mubr.bf16.mxu0 %v1326_v33  ;;  %v1336_v41 = vld [vmem:[%s1509_s22 + $0x3c] ss:$24 sps:$4 sm:$0xff]  }
  0x13   : > { %770 = vmatprep.mubr.bf16.mxu1 %v1329_v35  ;;  %v1338_v42 = vld [vmem:[%s1509_s22 + $0x30] ss:$24 sps:$4 sm:$0xff]   ;;  %v1342_v46 = vld [vmem:[%s1597_s1 + $0x158] sm:$0xff]   ;;  %v1346_v49 = vld [vmem:[%s1509_s22 + $0x6c] ss:$24 sps:$4 sm:$0xff]  }
  0x14   : > { %1154 = vmatpush3.bf16.msra.mxu0 %v1306_v14  ;;  %v1339_v43 = vld [vmem:[%s1509_s22 + $0x38] ss:$24 sps:$4 sm:$0xff]   ;;  %v1344_v48 = vld [vmem:[%s1509_s22 + $0x64] ss:$24 sps:$4 sm:$0xff]   ;;  %v1349_v52 = vld [vmem:[%s1509_s22 + $0x68] ss:$24 sps:$4 sm:$0xff]  }
  0x15   : > { %1194 = vmatpush3.bf16.msra.mxu1 %v1307_v15  ;;  %1155 = vmatprep.subr.bf16.mxu0 %v1308_v16  ;;  %v1340_v44 = vld [vmem:[%s1597_s1 + $0x150] sm:$0xff]   ;;  %v1343_v47 = vld [vmem:[%s1597_s1 + $0x118] sm:$0xff]   ;;  %v1350_v51 = vld [vmem:[%s1597_s1 + $0x160] sm:$0xff]  }
  0x16   : > { %1195 = vmatprep.subr.bf16.mxu1 %v1309_v17  ;;  %v1341_v45 = vld [vmem:[%s1597_s1 + $0x110] sm:$0xff]   ;;  %v1348_v50 = vld [vmem:[%s1509_s22 + $0x60] ss:$24 sps:$4 sm:$0xff]   ;;  %v1352_v54 = vld [vmem:[%s1597_s1 + $0x168] sm:$0xff]  }
  0x17   : > { %v1351_v53 = vld [vmem:[%s1597_s1 + $0x120] sm:$0xff]   ;;  %v1354_v55 = vld [vmem:[%s1509_s22 + $0x94] ss:$24 sps:$4 sm:$0xff]   ;;  %v1358_v59 = vld [vmem:[%s1509_s22 + $0x90] ss:$24 sps:$4 sm:$0xff]  }
  0x18   : > { %1156 = vmatpush3.bf16.msra.mxu0 %v1310_v18  ;;  %v1356_v56 = vld [vmem:[%s1509_s22 + $0x9c] ss:$24 sps:$4 sm:$0xff]   ;;  %v1353_v57 = vld [vmem:[%s1597_s1 + $0x128] sm:$0xff]   ;;  %v1359_v60 = vld [vmem:[%s1509_s22 + $0x98] ss:$24 sps:$4 sm:$0xff]  }
  0x19   : > { %1196 = vmatpush3.bf16.msra.mxu1 %v1311_v19  ;;  %1157 = vmatprep.subr.bf16.mxu0 %v1312_v20  ;;  %v1360_v58 = vld [vmem:[%s1597_s1 + $0x170] sm:$0xff]   ;;  %v1362_v62 = vld [vmem:[%s1597_s1 + $0x178] sm:$0xff]  }
  0x1a   : > { %1197 = vmatprep.subr.bf16.mxu1 %v1313_v21  ;;  %v1361_v61 = vld [vmem:[%s1597_s1 + $0x130] sm:$0xff]   ;;  %v1363_v1 = vld [vmem:[%s1597_s1 + $0x138] sm:$0xff]  }
  0x1b   : > { %v1366_v63 = vld [vmem:[%s1509_s22 + $0x14] ss:$24 sps:$4 sm:$0xff]   ;;  %v1364_v2 = vld [vmem:[%s1509_s22 + $0x10] ss:$24 sps:$4 sm:$0xff]   ;;  %v1370_v4 = vld [vmem:[%s1509_s22 + $0x44] ss:$24 sps:$4 sm:$0xff]  }
  0x1c   : > { %1158 = vmatpush3.bf16.msra.mxu0 %v1314_v22  ;;  %v1369_v0 = vld [vmem:[%s1509_s22 + $0x74] ss:$24 sps:$4 sm:$0xff]   ;;  %v1367_v3 = vld [vmem:[%s1509_s22 + $0x70] ss:$24 sps:$4 sm:$0xff]   ;;  %v1372_v5 = vld [vmem:[%s1509_s22 + $0xa4] ss:$24 sps:$4 sm:$0xff]  }
  0x1d   : > { %1198 = vmatpush3.bf16.msra.mxu1 %v1315_v23  ;;  %1159 = vmatprep.subr.bf16.mxu0 %v1316_v24  ;;  %v1374_v6 = vld [vmem:[%s1509_s22 + $0x40] ss:$24 sps:$4 sm:$0xff]  }
  0x1e   : > { %1199 = vmatprep.subr.bf16.mxu1 %v1317_v25  ;;  %v1375_v7 = vld [vmem:[%s1509_s22 + $0xa0] ss:$24 sps:$4 sm:$0xff]   ;;  %s1115_s22 = sshll.u32 %s1600_s10, 5 }
  0x1f   : > { %s143_s8 = scalar_lea.vmem %s1598_s2, %s1115_s22 }
  0x20   : > { %1160 = vmatpush3.bf16.msra.mxu0 %v1318_v26 }
  0x21   : > { %1200 = vmatpush3.bf16.msra.mxu1 %v1319_v27  ;;  %1161 = vmatprep.subr.bf16.mxu0 %v1320_v28 }
  0x22   : > { %1201 = vmatprep.subr.bf16.mxu1 %v1321_v29 }
  0x24   : > { %1162 = vmatpush3.bf16.msra.mxu0 %v1322_v30 }
  0x25   : > { %1202 = vmatpush3.bf16.msra.mxu1 %v1323_v31  ;;  %1227 = vmatprep.subr.bf16.mxu0 %v1330_v36 }
  0x26   : > { %1267 = vmatprep.subr.bf16.mxu1 %v1330_v36 }
  0x27   : > { %706 = vmatmul.mubr.bf16.vlgmr.msra.gmra.mrb[0].mxu0 %v1324_v32 }
  0x28   : > { %771 = vmatmul.mubr.bf16.vlgmr.msra.gmra.mrb[0].mxu1 %v1327_v34  ;;  %1228 = vmatpush3.bf16.msra.mxu0 %v1331_v37 }
  0x29   : > { %1275 = vmatpush3.bf16.msra.mxu1 %v1331_v37  ;;  %1229 = vmatprep.subr.bf16.mxu0 %v1332_v38 }
  0x2a   : > { %1268 = vmatprep.subr.bf16.mxu1 %v1332_v38  ;;  %713 = vmatprep.mubr.bf16.mxu0 %v1334_v40 }
  0x2b   : > { %778 = vmatprep.mubr.bf16.mxu1 %v1336_v41 }
  0x2c   : > { %1230 = vmatpush3.bf16.msra.mxu0 %v1333_v39 }
  0x2d   : > { %1276 = vmatpush3.bf16.msra.mxu1 %v1333_v39  ;;  %1231 = vmatprep.subr.bf16.mxu0 %v1340_v44 }
  0x2e   : > { %1269 = vmatprep.subr.bf16.mxu1 %v1340_v44 }
  0x2f   : > { %714 = vmatmul.mubr.bf16.gmra.mrb[4].mxu0 %v1338_v42 }
  0x30   : > { %779 = vmatmul.mubr.bf16.gmra.mrb[4].mxu1 %v1339_v43  ;;  %1232 = vmatpush3.bf16.msra.mxu0 %v1341_v45 }
  0x31   : > { %1277 = vmatpush3.bf16.msra.mxu1 %v1341_v45  ;;  %1233 = vmatprep.subr.bf16.mxu0 %v1342_v46 }
  0x32   : > { %1270 = vmatprep.subr.bf16.mxu1 %v1342_v46  ;;  %721 = vmatprep.mubr.bf16.mxu0 %v1344_v48 }
  0x33   : > { %786 = vmatprep.mubr.bf16.mxu1 %v1346_v49 }
  0x34   : > { %1234 = vmatpush3.bf16.msra.mxu0 %v1343_v47 }
  0x35   : > { %1278 = vmatpush3.bf16.msra.mxu1 %v1343_v47  ;;  %1235 = vmatprep.subr.bf16.mxu0 %v1350_v51 }
  0x36   : > { %1271 = vmatprep.subr.bf16.mxu1 %v1350_v51 }
  0x37   : > { %722 = vmatmul.mubr.bf16.gmra.mrb[8].mxu0 %v1348_v50 }
  0x38   : > { %787 = vmatmul.mubr.bf16.gmra.mrb[8].mxu1 %v1349_v52  ;;  %1236 = vmatpush3.bf16.msra.mxu0 %v1351_v53 }
  0x39   : > { %729 = vmatprep.mubr.bf16.mxu0 %v1354_v55  ;;  %1279 = vmatpush3.bf16.msra.mxu1 %v1351_v53 }
  0x3a   : > { %1237 = vmatprep.subr.bf16.mxu0 %v1352_v54  ;;  %1272 = vmatprep.subr.bf16.mxu1 %v1352_v54 }
  0x3b   : > { %794 = vmatprep.mubr.bf16.mxu1 %v1356_v56 }
  0x3c   : > { %1238 = vmatpush3.bf16.msra.mxu0 %v1353_v57 }
  0x3d   : > { %1280 = vmatpush3.bf16.msra.mxu1 %v1353_v57  ;;  %1239 = vmatprep.subr.bf16.mxu0 %v1360_v58 }
  0x3e   : > { %1273 = vmatprep.subr.bf16.mxu1 %v1360_v58 }
  0x3f   : > { %730 = vmatmul.mubr.bf16.gmra.mrb[12].mxu0 %v1358_v59 }
  0x40   : > { %795 = vmatmul.mubr.bf16.gmra.mrb[12].mxu1 %v1359_v60  ;;  %835 = vmatprep.mubr.bf16.mxu0 %v1366_v63 }
  0x41   : > { %1240 = vmatpush3.bf16.msra.mxu0 %v1361_v61  ;;  %1281 = vmatpush3.bf16.msra.mxu1 %v1361_v61 }
  0x42   : > { %1241 = vmatprep.subr.bf16.mxu0 %v1362_v62  ;;  %1274 = vmatprep.subr.bf16.mxu1 %v1362_v62 }
  0x43   : > { %851 = vmatprep.mubr.bf16.mxu1 %v1369_v0 }
  0x45   : > { %1242 = vmatpush3.bf16.msra.mxu0 %v1363_v1  ;;  %1282 = vmatpush3.bf16.msra.mxu1 %v1363_v1 }
  0x48   : > { %836 = vmatmul.mubr.bf16.vlgmr.msra.gmra.mrb[16].mxu0 %v1364_v2  ;;  %852 = vmatmul.mubr.bf16.vlgmr.msra.gmra.mrb[16].mxu1 %v1367_v3 }
  0x49   : > { %843 = vmatprep.mubr.bf16.mxu0 %v1370_v4  ;;  %859 = vmatprep.mubr.bf16.mxu1 %v1372_v5 }
  0x50   : > { %844 = vmatmul.mubr.bf16.gmra.mrb[20].mxu0 %v1374_v6  ;;  %860 = vmatmul.mubr.bf16.gmra.mrb[20].mxu1 %v1375_v7 }
  0xfa   : > { %v1163_v8 = vpop.f32.mrb[0].mxu0 }
  0xfb   : > { %v1203_v9 = vpop.f32.mrb[0].mxu1  ;;  %v1164_v10 = vpop.f32.mrb[1].mxu0 }
  0xfc   : > { %v1165_v11 = vadd.f32 %v1164_v10, %v1163_v8  ;;  %v1204_v12 = vpop.f32.mrb[1].mxu1  ;;  %v1166_v13 = vpop.f32.mrb[2].mxu0 }
  0xfd   : > { %v1205_v14 = vadd.f32 %v1204_v12, %v1203_v9  ;;  %v1206_v15 = vpop.f32.mrb[2].mxu1  ;;  %v1167_v16 = vpop.f32.mrb[3].mxu0 }
  0xfe   : > { %v1168_v17 = vadd.f32 %v1167_v16, %v1166_v13  ;;  %v1207_v18 = vpop.f32.mrb[3].mxu1 }
  0xff   : > { %v773_v19 = vadd.f32 %v1205_v14, %v1165_v11  ;;  %v1208_v20 = vadd.f32 %v1207_v18, %v1206_v15 }
 0x101   : > { %v776_v21 = vadd.f32 %v1208_v20, %v1168_v17 }
 0x102   : > { %v1169_v22 = vpop.f32.mrb[4].mxu0 }
 0x103   : > { %v1209_v23 = vpop.f32.mrb[4].mxu1  ;;  %v1170_v24 = vpop.f32.mrb[5].mxu0 }
 0x104   : > { %v1171_v25 = vadd.f32 %v1170_v24, %v1169_v22  ;;  %v1210_v26 = vpop.f32.mrb[5].mxu1  ;;  %v1172_v27 = vpop.f32.mrb[6].mxu0 }
 0x105   : > { %v1211_v28 = vadd.f32 %v1210_v26, %v1209_v23  ;;  %v1212_v29 = vpop.f32.mrb[6].mxu1  ;;  %v1173_v30 = vpop.f32.mrb[7].mxu0 }
 0x106   : > { %v1174_v31 = vadd.f32 %v1173_v30, %v1172_v27  ;;  %v1213_v32 = vpop.f32.mrb[7].mxu1 }
 0x107   : > { %v781_v33 = vadd.f32 %v1211_v28, %v1171_v25  ;;  %v1214_v34 = vadd.f32 %v1213_v32, %v1212_v29 }
 0x109   : > { %v784_v35 = vadd.f32 %v1214_v34, %v1174_v31 }
 0x10a   : > { %v1175_v36 = vpop.f32.mrb[8].mxu0 }
 0x10b   : > { %v1215_v37 = vpop.f32.mrb[8].mxu1  ;;  %v1176_v38 = vpop.f32.mrb[9].mxu0 }
 0x10c   : > { %v1177_v39 = vadd.f32 %v1176_v38, %v1175_v36  ;;  %v1216_v40 = vpop.f32.mrb[9].mxu1  ;;  %v1178_v41 = vpop.f32.mrb[10].mxu0 }
 0x10d   : > { %v1217_v42 = vadd.f32 %v1216_v40, %v1215_v37  ;;  %v1218_v43 = vpop.f32.mrb[10].mxu1  ;;  %v1179_v44 = vpop.f32.mrb[11].mxu0 }
 0x10e   : > { %v1180_v45 = vadd.f32 %v1179_v44, %v1178_v41  ;;  %v1219_v46 = vpop.f32.mrb[11].mxu1 }
 0x10f   : > { %v789_v47 = vadd.f32 %v1217_v42, %v1177_v39  ;;  %v1220_v48 = vadd.f32 %v1219_v46, %v1218_v43 }
 0x111   : > { %v792_v49 = vadd.f32 %v1220_v48, %v1180_v45 }
 0x112   : > { %v1181_v50 = vpop.f32.mrb[12].mxu0 }
 0x113   : > { %v1221_v51 = vpop.f32.mrb[12].mxu1  ;;  %v1182_v52 = vpop.f32.mrb[13].mxu0 }
 0x114   : > { %v1183_v53 = vadd.f32 %v1182_v52, %v1181_v50  ;;  %v1222_v54 = vpop.f32.mrb[13].mxu1  ;;  %v1184_v55 = vpop.f32.mrb[14].mxu0 }
 0x115   : > { %v1223_v56 = vadd.f32 %v1222_v54, %v1221_v51  ;;  %v1224_v57 = vpop.f32.mrb[14].mxu1  ;;  %v1185_v58 = vpop.f32.mrb[15].mxu0 }
 0x116   : > { %v1186_v59 = vadd.f32 %v1185_v58, %v1184_v55  ;;  %v1225_v60 = vpop.f32.mrb[15].mxu1 }
 0x117   : > { %v797_v61 = vadd.f32 %v1223_v56, %v1183_v53  ;;  %v1226_v62 = vadd.f32 %v1225_v60, %v1224_v57 }
 0x119   : > { %v800_v63 = vadd.f32 %v1226_v62, %v1186_v59 }
 0x11b   : > { %v1243_v0 = vpop.f32.mrb[16].mxu0  ;;  %v1255_v1 = vpop.f32.mrb[16].mxu1 }
 0x11c   : > { %v1244_v2 = vpop.f32.mrb[17].mxu0  ;;  %v1256_v4 = vpop.f32.mrb[17].mxu1 }
 0x11d   : > { %v1245_v3 = vadd.f32 %v1244_v2, %v1243_v0  ;;  %v1246_v5 = vpop.f32.mrb[18].mxu0  ;;  %v1257_v6 = vadd.f32 %v1256_v4, %v1255_v1  ;;  %v1258_v7 = vpop.f32.mrb[18].mxu1 }
 0x11e   : > { %v1247_v8 = vpop.f32.mrb[19].mxu0  ;;  %v1259_v11 = vpop.f32.mrb[19].mxu1 }
 0x11f   : > { %v838_v9 = vadd.f32 %v1245_v3, %v773_v19  ;;  %v1248_v10 = vadd.f32 %v1247_v8, %v1246_v5  ;;  %v854_v12 = vadd.f32 %v1257_v6, %v789_v47  ;;  %v1260_v13 = vadd.f32 %v1259_v11, %v1258_v7 }
 0x121   : > { %v841_v14 = vadd.f32 %v1248_v10, %v776_v21  ;;  %v857_v15 = vadd.f32 %v1260_v13, %v792_v49 }
 0x123   : > { %v868_v16 = vadd.f32 %v841_v14, %v838_v9  ;;  %v1249_v17 = vpop.f32.mrb[20].mxu0  ;;  %v1261_v18 = vpop.f32.mrb[20].mxu1 }
 0x124   : > { %v1250_v20 = vpop.f32.mrb[21].mxu0  ;;  %v1262_v23 = vpop.f32.mrb[21].mxu1 }
 0x125   : > { %v1251_v22 = vadd.f32 %v1250_v20, %v1249_v17  ;;  %v1252_v24 = vpop.f32.mrb[22].mxu0  ;;  %v1263_v25 = vadd.f32 %v1262_v23, %v1261_v18  ;;  %v1264_v26 = vpop.f32.mrb[22].mxu1 }
 0x126   : > { %v1253_v27 = vpop.f32.mrb[23].mxu0  ;;  %v1265_v30 = vpop.f32.mrb[23].mxu1 }
 0x127   : > { %v846_v28 = vadd.f32 %v1251_v22, %v781_v33  ;;  %v1254_v29 = vadd.f32 %v1253_v27, %v1252_v24  ;;  %v862_v19 = vadd.f32 %v1263_v25, %v797_v61  ;;  %v1266_v31 = vadd.f32 %v1265_v30, %v1264_v26 }
 0x129   : > { %v869_v32 = vadd.f32 %v868_v16, %v846_v28  ;;  %v849_v34 = vadd.f32 %v1254_v29, %v784_v35  ;;  %v865_v36 = vadd.f32 %v1266_v31, %v800_v63 }
 0x12b   : > { %v870_v21 = vadd.f32 %v869_v32, %v849_v34 }
 0x12d   : > { %v871_v37 = vadd.f32 %v870_v21, %v854_v12 }
 0x12f   : > { %v872_v38 = vadd.f32 %v871_v37, %v857_v15 }
 0x131   : > { %v873_v39 = vadd.f32 %v872_v38, %v862_v19 }
 0x133   : > { %v874_v40 = vadd.f32 %v873_v39, %v865_v36 }
 0x135   : > { %v875_v41 = vrot.slane %v874_v40, 4 }
 0x137   : > { %v876_v42 = vadd.f32 %v875_v41, %v874_v40 }
 0x139   : > { %v877_v43 = vrot.slane %v876_v42, 2 }
 0x13b   : > { %v878_v44 = vadd.f32 %v877_v43, %v876_v42 }
 0x13d   : > { %v879_v45 = vrot.slane %v878_v44, 1 }
 0x13f   : > { %v880_v46 = vadd.f32 %v879_v45, %v878_v44 }
 0x141   : > { %v881_v47 = vmul.f32 0.015625, %v880_v46 }
 0x143   : > { %v882_v33 = vsub.f32 %v838_v9, %v881_v47  ;;  %v883_v48 = vsub.f32 %v841_v14, %v881_v47  ;;  %v884_v49 = vsub.f32 %v846_v28, %v881_v47  ;;  %v885_v50 = vsub.f32 %v849_v34, %v881_v47 }
 0x144   : > { %v886_v51 = vsub.f32 %v854_v12, %v881_v47  ;;  %v887_v52 = vsub.f32 %v857_v15, %v881_v47  ;;  %v888_v35 = vsub.f32 %v862_v19, %v881_v47  ;;  %v889_v53 = vsub.f32 %v865_v36, %v881_v47 }
 0x145   : > { %v890_v54 = vmul.f32 %v882_v33, %v882_v33  ;;  %v891_v55 = vmul.f32 %v883_v48, %v883_v48  ;;  %v892_v56 = vmul.f32 %v884_v49, %v884_v49  ;;  %v893_v58 = vmul.f32 %v885_v50, %v885_v50 }
 0x146   : > { %v894_v60 = vmul.f32 %v886_v51, %v886_v51  ;;  %v895_v62 = vmul.f32 %v887_v52, %v887_v52  ;;  %v896_v0 = vmul.f32 %v888_v35, %v888_v35  ;;  %v897_v2 = vmul.f32 %v889_v53, %v889_v53 }
 0x147   : > { %v898_v57 = vadd.f32 %v891_v55, %v890_v54 }
 0x149   : > { %v899_v59 = vadd.f32 %v898_v57, %v892_v56 }
 0x14b   : > { %v900_v61 = vadd.f32 %v899_v59, %v893_v58 }
 0x14d   : > { %v901_v63 = vadd.f32 %v900_v61, %v894_v60 }
 0x14f   : > { %v902_v1 = vadd.f32 %v901_v63, %v895_v62 }
 0x151   : > { %v903_v3 = vadd.f32 %v902_v1, %v896_v0 }
 0x153   : > { %v904_v4 = vadd.f32 %v903_v3, %v897_v2 }
 0x155   : > { %v905_v5 = vrot.slane %v904_v4, 4 }
 0x157   : > { %v906_v6 = vadd.f32 %v905_v5, %v904_v4 }
 0x159   : > { %v907_v7 = vrot.slane %v906_v6, 2 }
 0x15b   : > { %v908_v8 = vadd.f32 %v907_v7, %v906_v6 }
 0x15d   : > { %v909_v9 = vrot.slane %v908_v8, 1 }
 0x15f   : > { %v910_v10 = vadd.f32 %v909_v9, %v908_v8 }
 0x161   : > { %v911_v11 = vmul.f32 0.015625, %v910_v10 }
 0x163   : > { %v912_v12 = vadd.f32 1e-05, %v911_v11 }
 0x165   : > { %1376 = vrsqrt.f32 %v912_v12 }
 0x16f   : > { %v1377_v13 = vpop.eup %1376 }
 0x170   : > { %v914_v14 = vmul.f32 %v1377_v13, %v882_v33  ;;  %v915_v15 = vmul.f32 %v1377_v13, %v883_v48  ;;  %v916_v16 = vmul.f32 %v1377_v13, %v884_v49  ;;  %v917_v17 = vmul.f32 %v1377_v13, %v885_v50 }
 0x171   : > { %v918_v18 = vmul.f32 %v1377_v13, %v886_v51  ;;  %v919_v20 = vmul.f32 %v1377_v13, %v887_v52  ;;  %v920_v22 = vmul.f32 %v1377_v13, %v888_v35  ;;  %v921_v23 = vmul.f32 %v1377_v13, %v889_v53 }
 0x172   : > { %v922_v24 = vmax.f32 %v914_v14, 0.0  ;;  %v923_v25 = vmax.f32 %v915_v15, 0.0  ;;  %v924_v26 = vmax.f32 %v916_v16, 0.0  ;;  %v925_v27 = vmax.f32 %v917_v17, 0.0 }
 0x173   : > { %v926_v28 = vmax.f32 %v918_v18, 0.0  ;;  %v927_v29 = vmax.f32 %v919_v20, 0.0  ;;  %v928_v30 = vmax.f32 %v920_v22, 0.0  ;;  %v929_v19 = vmax.f32 %v921_v23, 0.0 }
 0x174   : > { %v1127_v31 = vpack.c.bf16 %v923_v25, %v922_v24  ;;  %v1132_v32 = vpack.c.bf16 %v925_v27, %v924_v26 }
 0x175   : > { %v1137_v34 = vpack.c.bf16 %v927_v29, %v926_v28  ;;  %v1142_v36 = vpack.c.bf16 %v929_v19, %v928_v30 }
 0x176   : > { %1128 = vst [vmem:[%s143_s8] sm:$0xff] %v1127_v31   ;;  %1144 = vst [vmem:[%s143_s8 + $0x8] sm:$0xff] %v1132_v32  }
 0x177   : > { %1145 = vst [vmem:[%s143_s8 + $0x10] sm:$0xff] %v1137_v34   ;;  %1146 = vst [vmem:[%s143_s8 + $0x18] sm:$0xff] %v1142_v36  }
 0x178 PF: > { %s12_s9 = sadd.s32 1, %s1384_s9  }
 0x179   : > { %p9_p4 = scmp.ge.s32.totalorder %s12_s9, 4  }
 0x17b   :  { %11 = sbr.rel (!%p9_p4) target bundleno = 1 (0x1), region = 58 }

// kernel: rhwf_encoder_forward.36
= control target key start
LH: loop header
LB: loop body
LE: loop exit
PB: predicated region body
PF: predicated region fallthrough
CT: control target
= control target key end

     0   :  { %s993_s9 = smov 0   ;;  %s1170_s0 = inlined_call_operand.vmem [shape: bf16[2,16,768], index: 0, kind: input, shape index: {}]   ;;  %s1171_s1 = inlined_call_operand.vmem [shape: bf16[768,128], index: 1, kind: input, shape index: {}]   ;;  %s1172_s2 = inlined_call_operand.vmem [shape: f32[2,16,128], index: 2, kind: output, shape index: {}]  }
   0x1 LB: > { %s771_s10 = sadd.s32 4294967295, %s976_s9   ;;  %p775_p0 = scmp.ge.s32.totalorder %s976_s9, 1  ;;  %s976_s9 = sphi %s993_s9, %s12_s9  }
   0x2   : > { %p112_p1 = scmp.lt.s32.totalorder %s976_s9, 3 }
   0x4   : > { %p113_p2 = pnand %p775_p0, %p112_p1 }
   0x5   : > { %v911_v0 = vld [vmem:[%s1171_s1 + $0x40] sm:$0xff] (!%p113_p2)   ;;  %v915_v4 = vld [vmem:[%s1171_s1 + $0x48] sm:$0xff] (!%p113_p2)   ;;  %v919_v8 = vld [vmem:[%s1171_s1 + $0x50] sm:$0xff] (!%p113_p2)   ;;  %p134_p3 = scmp.lt.s32.totalorder (!%p113_p2), %s771_s10, 1 }
   0x6   : > { %116 = sbr.rel (%p113_p2) target bundleno = 344 (0x158), region = 28  ;;  %v912_v1 = vld [vmem:[%s1171_s1 + $0xc0] sm:$0xff] (!%p113_p2)   ;;  %836 = vmatprep.subr.bf16.mxu0 (!%p113_p2), %v911_v0  ;;  %v916_v5 = vld [vmem:[%s1171_s1 + $0xc8] sm:$0xff] (!%p113_p2)   ;;  %v920_v9 = vld [vmem:[%s1171_s1 + $0xd0] sm:$0xff] (!%p113_p2)  }
   0x7   : > { %v913_v2 = vld [vmem:[%s1171_s1] sm:$0xff] (!%p113_p2)   ;;  %858 = vmatprep.subr.bf16.mxu1 (!%p113_p2), %v912_v1  ;;  %v917_v6 = vld [vmem:[%s1171_s1 + $0x8] sm:$0xff] (!%p113_p2)   ;;  %v921_v10 = vld [vmem:[%s1171_s1 + $0x10] sm:$0xff] (!%p113_p2)  }
   0x8   : > { %v914_v3 = vld [vmem:[%s1171_s1 + $0x80] sm:$0xff] (!%p113_p2)   ;;  %837 = vmatpush3.bf16.msra.mxu0 (!%p113_p2), %v913_v2  ;;  %v918_v7 = vld [vmem:[%s1171_s1 + $0x88] sm:$0xff] (!%p113_p2)   ;;  %v922_v11 = vld [vmem:[%s1171_s1 + $0x90] sm:$0xff] (!%p113_p2)  }
   0x9   : > { %859 = vmatpush3.bf16.msra.mxu1 (!%p113_p2), %v914_v3  ;;  %838 = vmatprep.subr.bf16.mxu0 (!%p113_p2), %v915_v4  ;;  %v923_v12 = vld [vmem:[%s1171_s1 + $0x58] sm:$0xff] (!%p113_p2)   ;;  %v927_v16 = vld [vmem:[%s1171_s1 + $0x60] sm:$0xff] (!%p113_p2)   ;;  %v931_v20 = vld [vmem:[%s1171_s1 + $0x68] sm:$0xff] (!%p113_p2)  }
   0xa   : > { %860 = vmatprep.subr.bf16.mxu1 (!%p113_p2), %v916_v5  ;;  %v924_v13 = vld [vmem:[%s1171_s1 + $0xd8] sm:$0xff] (!%p113_p2)   ;;  %v928_v17 = vld [vmem:[%s1171_s1 + $0xe0] sm:$0xff] (!%p113_p2)   ;;  %v932_v21 = vld [vmem:[%s1171_s1 + $0xe8] sm:$0xff] (!%p113_p2)  }
   0xb   : > { %v925_v14 = vld [vmem:[%s1171_s1 + $0x18] sm:$0xff] (!%p113_p2)   ;;  %v929_v18 = vld [vmem:[%s1171_s1 + $0x20] sm:$0xff] (!%p113_p2)   ;;  %v933_v22 = vld [vmem:[%s1171_s1 + $0x28] sm:$0xff] (!%p113_p2)  }
   0xc   : > { %839 = vmatpush3.bf16.msra.mxu0 (!%p113_p2), %v917_v6  ;;  %v926_v15 = vld [vmem:[%s1171_s1 + $0x98] sm:$0xff] (!%p113_p2)   ;;  %v930_v19 = vld [vmem:[%s1171_s1 + $0xa0] sm:$0xff] (!%p113_p2)   ;;  %v934_v23 = vld [vmem:[%s1171_s1 + $0xa8] sm:$0xff] (!%p113_p2)  }
   0xd   : > { %861 = vmatpush3.bf16.msra.mxu1 %v918_v7  ;;  %840 = vmatprep.subr.bf16.mxu0 %v919_v8  ;;  %s1174_s10 = smov (!%p134_p3, %s771_s10), 1  ;;  %v935_v24 = vld [vmem:[%s1171_s1 + $0x70] sm:$0xff]   ;;  %v939_v28 = vld [vmem:[%s1171_s1 + $0x78] sm:$0xff]   ;;  %v949_v36 = vld [vmem:[%s1171_s1 + $0x140] sm:$0xff]  }
   0xe   : > { %862 = vmatprep.subr.bf16.mxu1 %v920_v9  ;;  %v936_v25 = vld [vmem:[%s1171_s1 + $0xf0] sm:$0xff]   ;;  %s902_s11 = smul.u32 48, %s1174_s10  ;;  %v940_v29 = vld [vmem:[%s1171_s1 + $0xf8] sm:$0xff]   ;;  %v950_v37 = vld [vmem:[%s1171_s1 + $0x100] sm:$0xff]  }
   0xf   : > { %v937_v26 = vld [vmem:[%s1171_s1 + $0x30] sm:$0xff]   ;;  %v941_v30 = vld [vmem:[%s1171_s1 + $0x38] sm:$0xff]   ;;  %v951_v38 = vld [vmem:[%s1171_s1 + $0x148] sm:$0xff]  }
  0x10   : > { %841 = vmatpush3.bf16.msra.mxu0 %v921_v10  ;;  %v938_v27 = vld [vmem:[%s1171_s1 + $0xb0] sm:$0xff]   ;;  %s1101_s22 = scalar_lea.vmem %s1170_s0, %s902_s11  ;;  %v942_v31 = vld [vmem:[%s1171_s1 + $0xb8] sm:$0xff]   ;;  %v952_v39 = vld [vmem:[%s1171_s1 + $0x108] sm:$0xff]  }
  0x11   : > { %863 = vmatpush3.bf16.msra.mxu1 %v922_v11  ;;  %842 = vmatprep.subr.bf16.mxu0 %v923_v12  ;;  %v943_v32 = vld [vmem:[%s1101_s22] ss:$24 sps:$4 sm:$0xff]   ;;  %v945_v33 = vld [vmem:[%s1101_s22 + $0x4] ss:$24 sps:$4 sm:$0xff]   ;;  %v953_v40 = vld [vmem:[%s1171_s1 + $0x150] sm:$0xff]  }
  0x12   : > { %864 = vmatprep.subr.bf16.mxu1 %v924_v13  ;;  %v946_v34 = vld [vmem:[%s1101_s22 + $0x8] ss:$24 sps:$4 sm:$0xff]   ;;  %v948_v35 = vld [vmem:[%s1101_s22 + $0xc] ss:$24 sps:$4 sm:$0xff]   ;;  %597 = vmatprep.mubr.bf16.mxu0 %v945_v33  ;;  %v954_v41 = vld [vmem:[%s1171_s1 + $0x110] sm:$0xff]  }
  0x13   : > { %638 = vmatprep.mubr.bf16.mxu1 %v948_v35  ;;  %v955_v42 = vld [vmem:[%s1171_s1 + $0x158] sm:$0xff]   ;;  %v957_v44 = vld [vmem:[%s1171_s1 + $0x160] sm:$0xff]   ;;  %v959_v46 = vld [vmem:[%s1171_s1 + $0x168] sm:$0xff]  }
  0x14   : > { %843 = vmatpush3.bf16.msra.mxu0 %v925_v14  ;;  %v956_v43 = vld [vmem:[%s1171_s1 + $0x118] sm:$0xff]   ;;  %v958_v45 = vld [vmem:[%s1171_s1 + $0x120] sm:$0xff]   ;;  %v967_v47 = vld [vmem:[%s1101_s22 + $0x14] ss:$24 sps:$4 sm:$0xff]  }
  0x15   : > { %865 = vmatpush3.bf16.msra.mxu1 %v926_v15  ;;  %844 = vmatprep.subr.bf16.mxu0 %v927_v16  ;;  %v960_v48 = vld [vmem:[%s1171_s1 + $0x128] sm:$0xff]   ;;  %v961_v49 = vld [vmem:[%s1171_s1 + $0x170] sm:$0xff]   ;;  %v963_v51 = vld [vmem:[%s1171_s1 + $0x178] sm:$0xff]  }
  0x16   : > { %866 = vmatprep.subr.bf16.mxu1 %v928_v17  ;;  %v962_v50 = vld [vmem:[%s1171_s1 + $0x130] sm:$0xff]   ;;  %v964_v52 = vld [vmem:[%s1171_s1 + $0x138] sm:$0xff]  }
  0x17   : > { %v965_v53 = vld [vmem:[%s1101_s22 + $0x10] ss:$24 sps:$4 sm:$0xff]   ;;  %s835_s22 = sshll.u32 %s1174_s10, 4 }
  0x18   : > { %845 = vmatpush3.bf16.msra.mxu0 %v929_v18  ;;  %s143_s8 = scalar_lea.vmem %s1172_s2, %s835_s22 }
  0x19   : > { %867 = vmatpush3.bf16.msra.mxu1 %v930_v19  ;;  %846 = vmatprep.subr.bf16.mxu0 %v931_v20 }
  0x1a   : > { %868 = vmatprep.subr.bf16.mxu1 %v932_v21 }
  0x1c   : > { %847 = vmatpush3.bf16.msra.mxu0 %v933_v22 }
  0x1d   : > { %869 = vmatpush3.bf16.msra.mxu1 %v934_v23  ;;  %848 = vmatprep.subr.bf16.mxu0 %v935_v24 }
  0x1e   : > { %870 = vmatprep.subr.bf16.mxu1 %v936_v25 }
  0x20   : > { %849 = vmatpush3.bf16.msra.mxu0 %v937_v26 }
  0x21   : > { %871 = vmatpush3.bf16.msra.mxu1 %v938_v27  ;;  %850 = vmatprep.subr.bf16.mxu0 %v939_v28 }
  0x22   : > { %872 = vmatprep.subr.bf16.mxu1 %v940_v29 }
  0x24   : > { %851 = vmatpush3.bf16.msra.mxu0 %v941_v30 }
  0x25   : > { %873 = vmatpush3.bf16.msra.mxu1 %v942_v31  ;;  %880 = vmatprep.subr.bf16.mxu0 %v949_v36 }
  0x27   : > { %598 = vmatmul.mubr.bf16.vlgmr.msra.gmra.mrb[0].mxu0 %v943_v32 }
  0x28   : > { %639 = vmatmul.mubr.bf16.vlgmr.msra.gmra.mrb[0].mxu1 %v946_v34  ;;  %881 = vmatpush3.bf16.msra.mxu0 %v950_v37 }
  0x29   : > { %882 = vmatprep.subr.bf16.mxu0 %v951_v38  ;;  %679 = vmatprep.mubr.bf16.mxu0 %v967_v47 }
  0x2c   : > { %883 = vmatpush3.bf16.msra.mxu0 %v952_v39 }
  0x2d   : > { %884 = vmatprep.subr.bf16.mxu0 %v953_v40 }
  0x30   : > { %885 = vmatpush3.bf16.msra.mxu0 %v954_v41 }
  0x31   : > { %886 = vmatprep.subr.bf16.mxu0 %v955_v42 }
  0x34   : > { %887 = vmatpush3.bf16.msra.mxu0 %v956_v43 }
  0x35   : > { %888 = vmatprep.subr.bf16.mxu0 %v957_v44 }
  0x38   : > { %889 = vmatpush3.bf16.msra.mxu0 %v958_v45 }
  0x39   : > { %890 = vmatprep.subr.bf16.mxu0 %v959_v46 }
  0x3c   : > { %891 = vmatpush3.bf16.msra.mxu0 %v960_v48 }
  0x3d   : > { %892 = vmatprep.subr.bf16.mxu0 %v961_v49 }
  0x40   : > { %893 = vmatpush3.bf16.msra.mxu0 %v962_v50 }
  0x41   : > { %894 = vmatprep.subr.bf16.mxu0 %v963_v51 }
  0x44   : > { %895 = vmatpush3.bf16.msra.mxu0 %v964_v52 }
  0x47   : > { %680 = vmatmul.mubr.bf16.vlgmr.msra.gmra.mrb[4].mxu0 %v965_v53 }
  0xfa   : > { %v852_v54 = vpop.f32.mrb[0].mxu0 }
  0xfb   : > { %v874_v55 = vpop.f32.mrb[0].mxu1  ;;  %v853_v56 = vpop.f32.mrb[1].mxu0 }
  0xfc   : > { %v854_v57 = vadd.f32 %v853_v56, %v852_v54  ;;  %v875_v58 = vpop.f32.mrb[1].mxu1  ;;  %v855_v59 = vpop.f32.mrb[2].mxu0 }
  0xfd   : > { %v876_v60 = vadd.f32 %v875_v58, %v874_v55  ;;  %v877_v61 = vpop.f32.mrb[2].mxu1  ;;  %v856_v62 = vpop.f32.mrb[3].mxu0 }
  0xfe   : > { %v857_v63 = vadd.f32 %v856_v62, %v855_v59  ;;  %v878_v0 = vpop.f32.mrb[3].mxu1 }
  0xff   : > { %v641_v1 = vadd.f32 %v876_v60, %v854_v57  ;;  %v879_v2 = vadd.f32 %v878_v0, %v877_v61 }
 0x101   : > { %v644_v3 = vadd.f32 %v879_v2, %v857_v63 }
 0x11a   : > { %v896_v4 = vpop.f32.mrb[4].mxu0 }
 0x11b   : > { %v897_v5 = vpop.f32.mrb[5].mxu0 }
 0x11c   : > { %v898_v6 = vadd.f32 %v897_v5, %v896_v4  ;;  %v899_v7 = vpop.f32.mrb[6].mxu0 }
 0x11d   : > { %v900_v8 = vpop.f32.mrb[7].mxu0 }
 0x11e   : > { %v682_v9 = vadd.f32 %v898_v6, %v641_v1  ;;  %v901_v10 = vadd.f32 %v900_v8, %v899_v7 }
 0x120   : > { %v685_v11 = vadd.f32 %v901_v10, %v644_v3 }
 0x122   : > { %v688_v12 = vadd.f32 %v685_v11, %v682_v9 }
 0x124   : > { %v689_v13 = vrot.slane %v688_v12, 4 }
 0x126   : > { %v690_v14 = vadd.f32 %v689_v13, %v688_v12 }
 0x128   : > { %v691_v15 = vrot.slane %v690_v14, 2 }
 0x12a   : > { %v692_v16 = vadd.f32 %v691_v15, %v690_v14 }
 0x12c   : > { %v693_v17 = vrot.slane %v692_v16, 1 }
 0x12e   : > { %v694_v18 = vadd.f32 %v693_v17, %v692_v16 }
 0x130   : > { %v695_v19 = vmul.f32 0.0625, %v694_v18 }
 0x132   : > { %v696_v20 = vsub.f32 %v682_v9, %v695_v19  ;;  %v697_v21 = vsub.f32 %v685_v11, %v695_v19 }
 0x134   : > { %v698_v22 = vmul.f32 %v696_v20, %v696_v20  ;;  %v699_v23 = vmul.f32 %v697_v21, %v697_v21 }
 0x136   : > { %v700_v24 = vadd.f32 %v699_v23, %v698_v22 }
 0x138   : > { %v701_v25 = vrot.slane %v700_v24, 4 }
 0x13a   : > { %v702_v26 = vadd.f32 %v701_v25, %v700_v24 }
 0x13c   : > { %v703_v27 = vrot.slane %v702_v26, 2 }
 0x13e   : > { %v704_v28 = vadd.f32 %v703_v27, %v702_v26 }
 0x140   : > { %v705_v29 = vrot.slane %v704_v28, 1 }
 0x142   : > { %v706_v30 = vadd.f32 %v705_v29, %v704_v28 }
 0x144   : > { %v707_v31 = vmul.f32 0.0625, %v706_v30 }
 0x146   : > { %v708_v32 = vadd.f32 1e-05, %v707_v31 }
 0x148   : > { %968 = vrsqrt.f32 %v708_v32 }
 0x152   : > { %v969_v33 = vpop.eup %968 }
 0x153   : > { %v710_v34 = vmul.f32 %v969_v33, %v696_v20  ;;  %v711_v35 = vmul.f32 %v969_v33, %v697_v21 }
 0x155   : > { %v712_v36 = vmax.f32 %v710_v34, 0.0  ;;  %v713_v37 = vmax.f32 %v711_v35, 0.0 }
 0x157   : > { %714 = vst [vmem:[%s143_s8] sm:$0xff] %v712_v36  ;;  %715 = vst [vmem:[%s143_s8 + $0x8] sm:$0xff] %v713_v37 }
 0x158 PF: > { %s12_s9 = sadd.s32 1, %s976_s9  }
 0x159   : > { %p9_p4 = scmp.ge.s32.totalorder %s12_s9, 4  }
 0x15b   :  { %11 = sbr.rel (!%p9_p4) target bundleno = 1 (0x1), region = 58 }

// kernel: rhwf_encoder_forward.35
= control target key start
LH: loop header
LB: loop body
LE: loop exit
PB: predicated region body
PF: predicated region fallthrough
CT: control target
= control target key end

     0   :  { %s1010_s9 = smov 0   ;;  %s1187_s0 = inlined_call_operand.vmem [shape: bf16[2,16,768], index: 0, kind: input, shape index: {}]   ;;  %s1188_s1 = inlined_call_operand.vmem [shape: bf16[768,128], index: 1, kind: input, shape index: {}]   ;;  %s1189_s2 = inlined_call_operand.vmem [shape: bf16[2,16,128], index: 2, kind: output, shape index: {}]  }
   0x1 LB: > { %s779_s10 = sadd.s32 4294967295, %s993_s9   ;;  %p783_p0 = scmp.ge.s32.totalorder %s993_s9, 1  ;;  %s993_s9 = sphi %s1010_s9, %s12_s9  }
   0x2   : > { %p112_p1 = scmp.lt.s32.totalorder %s993_s9, 3 }
   0x4   : > { %p113_p2 = pnand %p783_p0, %p112_p1 }
   0x5   : > { %v928_v0 = vld [vmem:[%s1188_s1 + $0x40] sm:$0xff] (!%p113_p2)   ;;  %v932_v4 = vld [vmem:[%s1188_s1 + $0x48] sm:$0xff] (!%p113_p2)   ;;  %v936_v8 = vld [vmem:[%s1188_s1 + $0x50] sm:$0xff] (!%p113_p2)   ;;  %p134_p3 = scmp.lt.s32.totalorder (!%p113_p2), %s779_s10, 1 }
   0x6   : > { %116 = sbr.rel (%p113_p2) target bundleno = 346 (0x15a), region = 28  ;;  %v929_v1 = vld [vmem:[%s1188_s1 + $0xc0] sm:$0xff] (!%p113_p2)   ;;  %853 = vmatprep.subr.bf16.mxu0 (!%p113_p2), %v928_v0  ;;  %v933_v5 = vld [vmem:[%s1188_s1 + $0xc8] sm:$0xff] (!%p113_p2)   ;;  %v937_v9 = vld [vmem:[%s1188_s1 + $0xd0] sm:$0xff] (!%p113_p2)  }
   0x7   : > { %v930_v2 = vld [vmem:[%s1188_s1] sm:$0xff] (!%p113_p2)   ;;  %875 = vmatprep.subr.bf16.mxu1 (!%p113_p2), %v929_v1  ;;  %v934_v6 = vld [vmem:[%s1188_s1 + $0x8] sm:$0xff] (!%p113_p2)   ;;  %v938_v10 = vld [vmem:[%s1188_s1 + $0x10] sm:$0xff] (!%p113_p2)  }
   0x8   : > { %v931_v3 = vld [vmem:[%s1188_s1 + $0x80] sm:$0xff] (!%p113_p2)   ;;  %854 = vmatpush3.bf16.msra.mxu0 (!%p113_p2), %v930_v2  ;;  %v935_v7 = vld [vmem:[%s1188_s1 + $0x88] sm:$0xff] (!%p113_p2)   ;;  %v939_v11 = vld [vmem:[%s1188_s1 + $0x90] sm:$0xff] (!%p113_p2)  }
   0x9   : > { %876 = vmatpush3.bf16.msra.mxu1 (!%p113_p2), %v931_v3  ;;  %855 = vmatprep.subr.bf16.mxu0 (!%p113_p2), %v932_v4  ;;  %v940_v12 = vld [vmem:[%s1188_s1 + $0x58] sm:$0xff] (!%p113_p2)   ;;  %v944_v16 = vld [vmem:[%s1188_s1 + $0x60] sm:$0xff] (!%p113_p2)   ;;  %v948_v20 = vld [vmem:[%s1188_s1 + $0x68] sm:$0xff] (!%p113_p2)  }
   0xa   : > { %877 = vmatprep.subr.bf16.mxu1 (!%p113_p2), %v933_v5  ;;  %v941_v13 = vld [vmem:[%s1188_s1 + $0xd8] sm:$0xff] (!%p113_p2)   ;;  %v945_v17 = vld [vmem:[%s1188_s1 + $0xe0] sm:$0xff] (!%p113_p2)   ;;  %v949_v21 = vld [vmem:[%s1188_s1 + $0xe8] sm:$0xff] (!%p113_p2)  }
   0xb   : > { %v942_v14 = vld [vmem:[%s1188_s1 + $0x18] sm:$0xff] (!%p113_p2)   ;;  %v946_v18 = vld [vmem:[%s1188_s1 + $0x20] sm:$0xff] (!%p113_p2)   ;;  %v950_v22 = vld [vmem:[%s1188_s1 + $0x28] sm:$0xff] (!%p113_p2)  }
   0xc   : > { %856 = vmatpush3.bf16.msra.mxu0 (!%p113_p2), %v934_v6  ;;  %v943_v15 = vld [vmem:[%s1188_s1 + $0x98] sm:$0xff] (!%p113_p2)   ;;  %v947_v19 = vld [vmem:[%s1188_s1 + $0xa0] sm:$0xff] (!%p113_p2)   ;;  %v951_v23 = vld [vmem:[%s1188_s1 + $0xa8] sm:$0xff] (!%p113_p2)  }
   0xd   : > { %878 = vmatpush3.bf16.msra.mxu1 %v935_v7  ;;  %857 = vmatprep.subr.bf16.mxu0 %v936_v8  ;;  %s1191_s10 = smov (!%p134_p3, %s779_s10), 1  ;;  %v952_v24 = vld [vmem:[%s1188_s1 + $0x70] sm:$0xff]   ;;  %v956_v28 = vld [vmem:[%s1188_s1 + $0x78] sm:$0xff]   ;;  %v966_v36 = vld [vmem:[%s1188_s1 + $0x140] sm:$0xff]  }
   0xe   : > { %879 = vmatprep.subr.bf16.mxu1 %v937_v9  ;;  %v953_v25 = vld [vmem:[%s1188_s1 + $0xf0] sm:$0xff]   ;;  %s919_s11 = smul.u32 48, %s1191_s10  ;;  %v957_v29 = vld [vmem:[%s1188_s1 + $0xf8] sm:$0xff]   ;;  %v967_v37 = vld [vmem:[%s1188_s1 + $0x100] sm:$0xff]  }
   0xf   : > { %v954_v26 = vld [vmem:[%s1188_s1 + $0x30] sm:$0xff]   ;;  %v958_v30 = vld [vmem:[%s1188_s1 + $0x38] sm:$0xff]   ;;  %v968_v38 = vld [vmem:[%s1188_s1 + $0x148] sm:$0xff]  }
  0x10   : > { %858 = vmatpush3.bf16.msra.mxu0 %v938_v10  ;;  %v955_v27 = vld [vmem:[%s1188_s1 + $0xb0] sm:$0xff]   ;;  %s1118_s22 = scalar_lea.vmem %s1187_s0, %s919_s11  ;;  %v959_v31 = vld [vmem:[%s1188_s1 + $0xb8] sm:$0xff]   ;;  %v969_v39 = vld [vmem:[%s1188_s1 + $0x108] sm:$0xff]  }
  0x11   : > { %880 = vmatpush3.bf16.msra.mxu1 %v939_v11  ;;  %859 = vmatprep.subr.bf16.mxu0 %v940_v12  ;;  %v960_v32 = vld [vmem:[%s1118_s22] ss:$24 sps:$4 sm:$0xff]   ;;  %v962_v33 = vld [vmem:[%s1118_s22 + $0x4] ss:$24 sps:$4 sm:$0xff]   ;;  %v970_v40 = vld [vmem:[%s1188_s1 + $0x150] sm:$0xff]  }
  0x12   : > { %881 = vmatprep.subr.bf16.mxu1 %v941_v13  ;;  %v963_v34 = vld [vmem:[%s1118_s22 + $0x8] ss:$24 sps:$4 sm:$0xff]   ;;  %v965_v35 = vld [vmem:[%s1118_s22 + $0xc] ss:$24 sps:$4 sm:$0xff]   ;;  %597 = vmatprep.mubr.bf16.mxu0 %v962_v33  ;;  %v971_v41 = vld [vmem:[%s1188_s1 + $0x110] sm:$0xff]  }
  0x13   : > { %638 = vmatprep.mubr.bf16.mxu1 %v965_v35  ;;  %v972_v42 = vld [vmem:[%s1188_s1 + $0x158] sm:$0xff]   ;;  %v974_v44 = vld [vmem:[%s1188_s1 + $0x160] sm:$0xff]   ;;  %v976_v46 = vld [vmem:[%s1188_s1 + $0x168] sm:$0xff]  }
  0x14   : > { %860 = vmatpush3.bf16.msra.mxu0 %v942_v14  ;;  %v973_v43 = vld [vmem:[%s1188_s1 + $0x118] sm:$0xff]   ;;  %v975_v45 = vld [vmem:[%s1188_s1 + $0x120] sm:$0xff]   ;;  %v984_v47 = vld [vmem:[%s1118_s22 + $0x14] ss:$24 sps:$4 sm:$0xff]  }
  0x15   : > { %882 = vmatpush3.bf16.msra.mxu1 %v943_v15  ;;  %861 = vmatprep.subr.bf16.mxu0 %v944_v16  ;;  %v977_v48 = vld [vmem:[%s1188_s1 + $0x128] sm:$0xff]   ;;  %v978_v49 = vld [vmem:[%s1188_s1 + $0x170] sm:$0xff]   ;;  %v980_v51 = vld [vmem:[%s1188_s1 + $0x178] sm:$0xff]  }
  0x16   : > { %883 = vmatprep.subr.bf16.mxu1 %v945_v17  ;;  %v979_v50 = vld [vmem:[%s1188_s1 + $0x130] sm:$0xff]   ;;  %v981_v52 = vld [vmem:[%s1188_s1 + $0x138] sm:$0xff]  }
  0x17   : > { %v982_v53 = vld [vmem:[%s1118_s22 + $0x10] ss:$24 sps:$4 sm:$0xff]   ;;  %s845_s22 = sshll.u32 %s1191_s10, 3 }
  0x18   : > { %862 = vmatpush3.bf16.msra.mxu0 %v946_v18  ;;  %s143_s8 = scalar_lea.vmem %s1189_s2, %s845_s22 }
  0x19   : > { %884 = vmatpush3.bf16.msra.mxu1 %v947_v19  ;;  %863 = vmatprep.subr.bf16.mxu0 %v948_v20 }
  0x1a   : > { %885 = vmatprep.subr.bf16.mxu1 %v949_v21 }
  0x1c   : > { %864 = vmatpush3.bf16.msra.mxu0 %v950_v22 }
  0x1d   : > { %886 = vmatpush3.bf16.msra.mxu1 %v951_v23  ;;  %865 = vmatprep.subr.bf16.mxu0 %v952_v24 }
  0x1e   : > { %887 = vmatprep.subr.bf16.mxu1 %v953_v25 }
  0x20   : > { %866 = vmatpush3.bf16.msra.mxu0 %v954_v26 }
  0x21   : > { %888 = vmatpush3.bf16.msra.mxu1 %v955_v27  ;;  %867 = vmatprep.subr.bf16.mxu0 %v956_v28 }
  0x22   : > { %889 = vmatprep.subr.bf16.mxu1 %v957_v29 }
  0x24   : > { %868 = vmatpush3.bf16.msra.mxu0 %v958_v30 }
  0x25   : > { %890 = vmatpush3.bf16.msra.mxu1 %v959_v31  ;;  %897 = vmatprep.subr.bf16.mxu0 %v966_v36 }
  0x27   : > { %598 = vmatmul.mubr.bf16.vlgmr.msra.gmra.mrb[0].mxu0 %v960_v32 }
  0x28   : > { %639 = vmatmul.mubr.bf16.vlgmr.msra.gmra.mrb[0].mxu1 %v963_v34  ;;  %898 = vmatpush3.bf16.msra.mxu0 %v967_v37 }
  0x29   : > { %899 = vmatprep.subr.bf16.mxu0 %v968_v38  ;;  %679 = vmatprep.mubr.bf16.mxu0 %v984_v47 }
  0x2c   : > { %900 = vmatpush3.bf16.msra.mxu0 %v969_v39 }
  0x2d   : > { %901 = vmatprep.subr.bf16.mxu0 %v970_v40 }
  0x30   : > { %902 = vmatpush3.bf16.msra.mxu0 %v971_v41 }
  0x31   : > { %903 = vmatprep.subr.bf16.mxu0 %v972_v42 }
  0x34   : > { %904 = vmatpush3.bf16.msra.mxu0 %v973_v43 }
  0x35   : > { %905 = vmatprep.subr.bf16.mxu0 %v974_v44 }
  0x38   : > { %906 = vmatpush3.bf16.msra.mxu0 %v975_v45 }
  0x39   : > { %907 = vmatprep.subr.bf16.mxu0 %v976_v46 }
  0x3c   : > { %908 = vmatpush3.bf16.msra.mxu0 %v977_v48 }
  0x3d   : > { %909 = vmatprep.subr.bf16.mxu0 %v978_v49 }
  0x40   : > { %910 = vmatpush3.bf16.msra.mxu0 %v979_v50 }
  0x41   : > { %911 = vmatprep.subr.bf16.mxu0 %v980_v51 }
  0x44   : > { %912 = vmatpush3.bf16.msra.mxu0 %v981_v52 }
  0x47   : > { %680 = vmatmul.mubr.bf16.vlgmr.msra.gmra.mrb[4].mxu0 %v982_v53 }
  0xfa   : > { %v869_v54 = vpop.f32.mrb[0].mxu0 }
  0xfb   : > { %v891_v55 = vpop.f32.mrb[0].mxu1  ;;  %v870_v56 = vpop.f32.mrb[1].mxu0 }
  0xfc   : > { %v871_v57 = vadd.f32 %v870_v56, %v869_v54  ;;  %v892_v58 = vpop.f32.mrb[1].mxu1  ;;  %v872_v59 = vpop.f32.mrb[2].mxu0 }
  0xfd   : > { %v893_v60 = vadd.f32 %v892_v58, %v891_v55  ;;  %v894_v61 = vpop.f32.mrb[2].mxu1  ;;  %v873_v62 = vpop.f32.mrb[3].mxu0 }
  0xfe   : > { %v874_v63 = vadd.f32 %v873_v62, %v872_v59  ;;  %v895_v0 = vpop.f32.mrb[3].mxu1 }
  0xff   : > { %v641_v1 = vadd.f32 %v893_v60, %v871_v57  ;;  %v896_v2 = vadd.f32 %v895_v0, %v894_v61 }
 0x101   : > { %v644_v3 = vadd.f32 %v896_v2, %v874_v63 }
 0x11a   : > { %v913_v4 = vpop.f32.mrb[4].mxu0 }
 0x11b   : > { %v914_v5 = vpop.f32.mrb[5].mxu0 }
 0x11c   : > { %v915_v6 = vadd.f32 %v914_v5, %v913_v4  ;;  %v916_v7 = vpop.f32.mrb[6].mxu0 }
 0x11d   : > { %v917_v8 = vpop.f32.mrb[7].mxu0 }
 0x11e   : > { %v682_v9 = vadd.f32 %v915_v6, %v641_v1  ;;  %v918_v10 = vadd.f32 %v917_v8, %v916_v7 }
 0x120   : > { %v685_v11 = vadd.f32 %v918_v10, %v644_v3 }
 0x122   : > { %v688_v12 = vadd.f32 %v685_v11, %v682_v9 }
 0x124   : > { %v689_v13 = vrot.slane %v688_v12, 4 }
 0x126   : > { %v690_v14 = vadd.f32 %v689_v13, %v688_v12 }
 0x128   : > { %v691_v15 = vrot.slane %v690_v14, 2 }
 0x12a   : > { %v692_v16 = vadd.f32 %v691_v15, %v690_v14 }
 0x12c   : > { %v693_v17 = vrot.slane %v692_v16, 1 }
 0x12e   : > { %v694_v18 = vadd.f32 %v693_v17, %v692_v16 }
 0x130   : > { %v695_v19 = vmul.f32 0.0625, %v694_v18 }
 0x132   : > { %v696_v20 = vsub.f32 %v682_v9, %v695_v19  ;;  %v697_v21 = vsub.f32 %v685_v11, %v695_v19 }
 0x134   : > { %v698_v22 = vmul.f32 %v696_v20, %v696_v20  ;;  %v699_v23 = vmul.f32 %v697_v21, %v697_v21 }
 0x136   : > { %v700_v24 = vadd.f32 %v699_v23, %v698_v22 }
 0x138   : > { %v701_v25 = vrot.slane %v700_v24, 4 }
 0x13a   : > { %v702_v26 = vadd.f32 %v701_v25, %v700_v24 }
 0x13c   : > { %v703_v27 = vrot.slane %v702_v26, 2 }
 0x13e   : > { %v704_v28 = vadd.f32 %v703_v27, %v702_v26 }
 0x140   : > { %v705_v29 = vrot.slane %v704_v28, 1 }
 0x142   : > { %v706_v30 = vadd.f32 %v705_v29, %v704_v28 }
 0x144   : > { %v707_v31 = vmul.f32 0.0625, %v706_v30 }
 0x146   : > { %v708_v32 = vadd.f32 1e-05, %v707_v31 }
 0x148   : > { %985 = vrsqrt.f32 %v708_v32 }
 0x152   : > { %v986_v33 = vpop.eup %985 }
 0x153   : > { %v710_v34 = vmul.f32 %v986_v33, %v696_v20  ;;  %v711_v35 = vmul.f32 %v986_v33, %v697_v21 }
 0x155   : > { %v712_v36 = vmax.f32 %v710_v34, 0.0  ;;  %v713_v37 = vmax.f32 %v711_v35, 0.0 }
 0x157   : > { %v851_v38 = vpack.c.bf16 %v713_v37, %v712_v36 }
 0x159   : > { %852 = vst [vmem:[%s143_s8] sm:$0xff] %v851_v38  }
 0x15a PF: > { %s12_s9 = sadd.s32 1, %s993_s9  }
 0x15b   : > { %p9_p4 = scmp.ge.s32.totalorder %s12_s9, 4  }
 0x15d   :  { %11 = sbr.rel (!%p9_p4) target bundleno = 1 (0x1), region = 58 }

// kernel: rhwf_encoder_forward.41
= control target key start
LH: loop header
LB: loop body
LE: loop exit
PB: predicated region body
PF: predicated region fallthrough
CT: control target
= control target key end

     0   :  { %s483_s12 = smov 0   ;;  %s555_s0 = inlined_call_operand.vmem [shape: bf16[2,16,128], index: 0, kind: input, shape index: {}]   ;;  %s556_s1 = inlined_call_operand.vmem [shape: bf16[128,256], index: 1, kind: input, shape index: {}]   ;;  %s557_s2 = inlined_call_operand.vmem [shape: f32[1,256], index: 2, kind: input, shape index: {}]   ;;  %s558_s3 = inlined_call_operand.vmem [shape: f32[2,16,256], index: 3, kind: output, shape index: {}]  }
   0x1 LB: > { %s390_s13 = sadd.s32 4294967295, %s460_s12   ;;  %p394_p0 = scmp.ge.s32.totalorder %s460_s12, 1  ;;  %s460_s12 = sphi %s483_s12, %s13_s12  }
   0x2   : > { %p137_p1 = scmp.lt.s32.totalorder %s460_s12, 3 }
   0x4   : > { %p138_p2 = pnand %p394_p0, %p137_p1 }
   0x5   : > { %v429_v0 = vld [vmem:[%s556_s1 + $0x4] ss:$8 sps:$4 sm:$0xff] (!%p138_p2)   ;;  %p161_p3 = scmp.lt.s32.totalorder (!%p138_p2), %s390_s13, 1  ;;  %v431_v1 = vld [vmem:[%s556_s1] ss:$8 sps:$4 sm:$0xff] (!%p138_p2)   ;;  %v462_v2 = vmov (!%p138_p2), 0   ;;  %v192_v18 = vlaneseq (!%p138_p2) }
   0x6   : > { %141 = sbr.rel (%p138_p2) target bundleno = 256 (0x100), region = 32  ;;  %320 = vmatprep.mubr.bf16.mxu0 (!%p138_p2), %v462_v2  ;;  %288 = vmatprep.subr.bf16.mxu0 (!%p138_p2), %v429_v0  ;;  %v432_v3 = vld [vmem:[%s556_s1 + $0x14] ss:$8 sps:$4 sm:$0xff] (!%p138_p2)   ;;  %v434_v4 = vld [vmem:[%s556_s1 + $0x10] ss:$8 sps:$4 sm:$0xff] (!%p138_p2)  }
   0x7   : > { %289 = vmatpush1.bf16.msra.mxu0 (!%p138_p2), %v431_v1  ;;  %v435_v5 = vld [vmem:[%s556_s1 + $0x24] ss:$8 sps:$4 sm:$0xff] (!%p138_p2)   ;;  %v437_v6 = vld [vmem:[%s556_s1 + $0x20] ss:$8 sps:$4 sm:$0xff] (!%p138_p2)   ;;  %v438_v7 = vld [vmem:[%s556_s1 + $0x34] ss:$8 sps:$4 sm:$0xff] (!%p138_p2)  }
   0x8   : > { %290 = vmatprep.subr.bf16.mxu0 (!%p138_p2), %v432_v3  ;;  %v440_v8 = vld [vmem:[%s556_s1 + $0x30] ss:$8 sps:$4 sm:$0xff] (!%p138_p2)   ;;  %v441_v9 = vld [vmem:[%s556_s1 + $0x44] ss:$8 sps:$4 sm:$0xff] (!%p138_p2)   ;;  %v443_v10 = vld [vmem:[%s556_s1 + $0x40] ss:$8 sps:$4 sm:$0xff] (!%p138_p2)  }
   0x9   : > { %v444_v11 = vld [vmem:[%s556_s1 + $0x54] ss:$8 sps:$4 sm:$0xff] (!%p138_p2)   ;;  %v446_v12 = vld [vmem:[%s556_s1 + $0x50] ss:$8 sps:$4 sm:$0xff] (!%p138_p2)   ;;  %v447_v13 = vld [vmem:[%s556_s1 + $0x64] ss:$8 sps:$4 sm:$0xff] (!%p138_p2)  }
   0xa   : > { %v449_v14 = vld [vmem:[%s556_s1 + $0x60] ss:$8 sps:$4 sm:$0xff] (!%p138_p2)   ;;  %v450_v15 = vld [vmem:[%s556_s1 + $0x74] ss:$8 sps:$4 sm:$0xff] (!%p138_p2)   ;;  %v452_v16 = vld [vmem:[%s556_s1 + $0x70] ss:$8 sps:$4 sm:$0xff] (!%p138_p2)  }
   0xb   : > { %291 = vmatpush1.bf16.msra.mxu0 (!%p138_p2), %v434_v4  ;;  %v193_v19 = vshrl.u32 (!%p138_p2), %v192_v18, 7  ;;  %v190_v21 = vld [vmem:[%s557_s2] sm:$0x3] (!%p138_p2) }
   0xc   : > { %292 = vmatprep.subr.bf16.mxu0 (!%p138_p2), %v435_v5 }
   0xd   : > { %s560_s13 = smov (!%p161_p3, %s390_s13), 1  ;;  %v194_v20 = vsub.s32 0, %v193_v19  ;;  %v198_v22 = vsub.s32 1, %v193_v19 }
   0xe   : > { %s418_s24 = sshll.u32 %s560_s13, 3  ;;  %s419_s27 = sshll.u32 %s560_s13, 5 }
   0xf   : > { %s165_s4 = scalar_lea.vmem %s555_s0, %s418_s24  ;;  %293 = vmatpush1.bf16.msra.mxu0 %v437_v6  ;;  %v195_v23 = vrot.slane %v190_v21, %v194_v20  ;;  %v199_v24 = vrot.slane %v190_v21, %v198_v22  ;;  %s170_s30 = scalar_lea.vmem %s558_s3, %s419_s27 }
  0x10   : > { %294 = vmatprep.subr.bf16.mxu0 %v438_v7  ;;  %v453_v17 = vld [vmem:[%s165_s4] sm:$0xff]  }
  0x13   : > { %295 = vmatpush1.bf16.msra.mxu0 %v440_v8 }
  0x14   : > { %296 = vmatprep.subr.bf16.mxu0 %v441_v9 }
  0x17   : > { %297 = vmatpush1.bf16.msra.mxu0 %v443_v10 }
  0x18   : > { %298 = vmatprep.subr.bf16.mxu0 %v444_v11 }
  0x1b   : > { %299 = vmatpush1.bf16.msra.mxu0 %v446_v12 }
  0x1c   : > { %300 = vmatprep.subr.bf16.mxu0 %v447_v13 }
  0x1f   : > { %301 = vmatpush1.bf16.msra.mxu0 %v449_v14 }
  0x20   : > { %302 = vmatprep.subr.bf16.mxu0 %v450_v15 }
  0x23   : > { %303 = vmatpush1.bf16.msra.mxu0 %v452_v16 }
  0x26   : > { %321 = vmatmul.mubr.bf16.vlgmr.msra.gmra.mrb[0].mxu0 %v453_v17 }
  0xf9   : > { %v322_v25 = vpop.f32.mrb[0].mxu0 }
  0xfa   : > { %v323_v26 = vadd.f32 %v322_v25, %v195_v23  ;;  %v324_v27 = vpop.f32.mrb[1].mxu0 }
  0xfb   : > { %v325_v28 = vadd.f32 %v324_v27, %v199_v24  ;;  %v326_v29 = vpop.f32.mrb[2].mxu0 }
  0xfc   : > { %331 = vst [vmem:[%s170_s30] sm:$0xff] %v323_v26  ;;  %v327_v30 = vadd.f32 %v326_v29, %v195_v23  ;;  %v328_v31 = vpop.f32.mrb[3].mxu0 }
  0xfd   : > { %332 = vst [vmem:[%s170_s30 + $0x8] sm:$0xff] %v325_v28  ;;  %v329_v32 = vadd.f32 %v328_v31, %v199_v24 }
  0xfe   : > { %333 = vst [vmem:[%s170_s30 + $0x10] sm:$0xff] %v327_v30 }
  0xff   : > { %334 = vst [vmem:[%s170_s30 + $0x18] sm:$0xff] %v329_v32 }
 0x100 PF: > { %s13_s12 = sadd.s32 1, %s460_s12  }
 0x101   : > { %p10_p4 = scmp.ge.s32.totalorder %s13_s12, 4  }
 0x103   :  { %12 = sbr.rel (!%p10_p4) target bundleno = 1 (0x1), region = 62 }

// kernel: rhwf_encoder_forward.37
= control target key start
LH: loop header
LB: loop body
LE: loop exit
PB: predicated region body
PF: predicated region fallthrough
CT: control target
= control target key end

     0   :  { %s526_s12 = smov 0   ;;  %s578_s0 = inlined_call_operand.vmem [shape: bf16[2,16,128], index: 0, kind: input, shape index: {}]   ;;  %s579_s1 = inlined_call_operand.vmem [shape: bf16[128,128], index: 1, kind: input, shape index: {}]   ;;  %s580_s2 = inlined_call_operand.vmem [shape: f32[2,16,128], index: 2, kind: input, shape index: {}]   ;;  %s581_s3 = inlined_call_operand.vmem [shape: bf16[2,16,128], index: 3, kind: output, shape index: {}]  }
   0x1 LB: > { %s412_s13 = sadd.s32 4294967295, %s502_s12   ;;  %p416_p0 = scmp.ge.s32.totalorder %s502_s12, 1  ;;  %s502_s12 = sphi %s526_s12, %s13_s12  }
   0x2   : > { %p147_p1 = scmp.lt.s32.totalorder %s502_s12, 3 }
   0x4   : > { %p148_p2 = pnand %p416_p0, %p147_p1 }
   0x5   : > { %v485_v0 = vld [vmem:[%s579_s1] sm:$0xff] (!%p148_p2)   ;;  %v504_v1 = vmov (!%p148_p2), 0.0   ;;  %v486_v2 = vld [vmem:[%s579_s1 + $0x8] sm:$0xff] (!%p148_p2)   ;;  %vm505_vm0 = vmmov (!%p148_p2), 0   ;;  %p176_p3 = scmp.lt.s32.totalorder (!%p148_p2), %s412_s13, 1  ;;  %v487_v3 = vld [vmem:[%s579_s1 + $0x10] sm:$0xff] (!%p148_p2)  }
   0x6   : > { %151 = sbr.rel (%p148_p2) target bundleno = 310 (0x136), region = 32  ;;  %455 = vmatprep.subr.bf16.mxu0 (!%p148_p2), %v504_v1  ;;  %471 = vmatprep.mubr.msk.bf16.mxu0 (!%p148_p2), %vm505_vm0, %v504_v1  ;;  %v488_v4 = vld [vmem:[%s579_s1 + $0x18] sm:$0xff] (!%p148_p2)   ;;  %v489_v5 = vld [vmem:[%s579_s1 + $0x20] sm:$0xff] (!%p148_p2)   ;;  %v490_v6 = vld [vmem:[%s579_s1 + $0x28] sm:$0xff] (!%p148_p2)  }
   0x7   : > { %456 = vmatpush3.bf16.msra.mxu0 (!%p148_p2), %v485_v0  ;;  %v491_v7 = vld [vmem:[%s579_s1 + $0x30] sm:$0xff] (!%p148_p2)   ;;  %v492_v8 = vld [vmem:[%s579_s1 + $0x38] sm:$0xff] (!%p148_p2)  }
   0x8   : > { %457 = vmatprep.subr.bf16.mxu0 (!%p148_p2), %v504_v1 }
   0xb   : > { %458 = vmatpush3.bf16.msra.mxu0 (!%p148_p2), %v486_v2 }
   0xc   : > { %459 = vmatprep.subr.bf16.mxu0 (!%p148_p2), %v504_v1 }
   0xd   : > { %s583_s13 = smov (!%p176_p3, %s412_s13), 1 }
   0xe   : > { %s436_s20 = sshll.u32 %s583_s13, 3  ;;  %s437_s7 = sshll.u32 %s583_s13, 4 }
   0xf   : > { %s180_s23 = scalar_lea.vmem %s578_s0, %s436_s20  ;;  %460 = vmatpush3.bf16.msra.mxu0 %v487_v3  ;;  %s185_s10 = scalar_lea.vmem %s580_s2, %s437_s7 }
  0x10   : > { %461 = vmatprep.subr.bf16.mxu0 %v504_v1  ;;  %v493_v9 = vld [vmem:[%s180_s23] sm:$0xff]   ;;  %v330_v37 = vld [vmem:[%s185_s10 + $0x8] sm:$0xff]  ;;  %s190_s15 = scalar_lea.vmem %s581_s3, %s436_s20 }
  0x11   : > { %v329_v36 = vld [vmem:[%s185_s10] sm:$0xff] }
  0x13   : > { %462 = vmatpush3.bf16.msra.mxu0 %v488_v4 }
  0x14   : > { %463 = vmatprep.subr.bf16.mxu0 %v504_v1 }
  0x17   : > { %464 = vmatpush3.bf16.msra.mxu0 %v489_v5 }
  0x18   : > { %465 = vmatprep.subr.bf16.mxu0 %v504_v1 }
  0x1b   : > { %466 = vmatpush3.bf16.msra.mxu0 %v490_v6 }
  0x1c   : > { %467 = vmatprep.subr.bf16.mxu0 %v504_v1 }
  0x1f   : > { %468 = vmatpush3.bf16.msra.mxu0 %v491_v7 }
  0x20   : > { %469 = vmatprep.subr.bf16.mxu0 %v504_v1 }
  0x23   : > { %470 = vmatpush3.bf16.msra.mxu0 %v492_v8 }
  0x26   : > { %472 = vmatmul.mubr.bf16.vlgmr.msra.gmra.mrb[0].mxu0 %v493_v9 }
  0xf9   : > { %v298_v10 = vpop.f32.mrb[0].mxu0 }
  0xfa   : > { %v473_v11 = vpop.f32.mrb[1].mxu0 }
  0xfb   : > { %v301_v12 = vpop.f32.mrb[2].mxu0 }
  0xfc   : > { %v305_v13 = vadd.f32 %v301_v12, %v298_v10  ;;  %v474_v14 = vpop.f32.mrb[3].mxu0 }
  0xfe   : > { %v306_v15 = vrot.slane %v305_v13, 4 }
 0x100   : > { %v307_v16 = vadd.f32 %v306_v15, %v305_v13 }
 0x102   : > { %v308_v17 = vrot.slane %v307_v16, 2 }
 0x104   : > { %v309_v18 = vadd.f32 %v308_v17, %v307_v16 }
 0x106   : > { %v310_v19 = vrot.slane %v309_v18, 1 }
 0x108   : > { %v311_v20 = vadd.f32 %v310_v19, %v309_v18 }
 0x10a   : > { %v312_v21 = vmul.f32 0.0625, %v311_v20 }
 0x10c   : > { %v313_v22 = vsub.f32 %v298_v10, %v312_v21  ;;  %v314_v23 = vsub.f32 %v301_v12, %v312_v21 }
 0x10e   : > { %v315_v24 = vmul.f32 %v313_v22, %v313_v22  ;;  %v316_v25 = vmul.f32 %v314_v23, %v314_v23 }
 0x110   : > { %v317_v26 = vadd.f32 %v316_v25, %v315_v24 }
 0x112   : > { %v318_v27 = vrot.slane %v317_v26, 4 }
 0x114   : > { %v319_v28 = vadd.f32 %v318_v27, %v317_v26 }
 0x116   : > { %v320_v29 = vrot.slane %v319_v28, 2 }
 0x118   : > { %v321_v30 = vadd.f32 %v320_v29, %v319_v28 }
 0x11a   : > { %v322_v31 = vrot.slane %v321_v30, 1 }
 0x11c   : > { %v323_v32 = vadd.f32 %v322_v31, %v321_v30 }
 0x11e   : > { %v324_v33 = vmul.f32 0.0625, %v323_v32 }
 0x120   : > { %v325_v34 = vadd.f32 1e-05, %v324_v33 }
 0x122   : > { %494 = vrsqrt.f32 %v325_v34 }
 0x12c   : > { %v495_v35 = vpop.eup %494 }
 0x12d   : > { %v327_v38 = vmul.f32 %v495_v35, %v313_v22  ;;  %v328_v39 = vmul.f32 %v495_v35, %v314_v23 }
 0x12f   : > { %v331_v40 = vadd.f32 %v329_v36, %v327_v38  ;;  %v332_v41 = vadd.f32 %v330_v37, %v328_v39 }
 0x131   : > { %v333_v42 = vmax.f32 %v331_v40, 0.0  ;;  %v334_v43 = vmax.f32 %v332_v41, 0.0 }
 0x133   : > { %v444_v44 = vpack.c.bf16 %v334_v43, %v333_v42 }
 0x135   : > { %445 = vst [vmem:[%s190_s15] sm:$0xff] %v444_v44  }
 0x136 PF: > { %s13_s12 = sadd.s32 1, %s502_s12  }
 0x137   : > { %p10_p4 = scmp.ge.s32.totalorder %s13_s12, 4  }
 0x139   :  { %12 = sbr.rel (!%p10_p4) target bundleno = 1 (0x1), region = 65 }

// kernel: rhwf_encoder_forward.34
= control target key start
LH: loop header
LB: loop body
LE: loop exit
PB: predicated region body
PF: predicated region fallthrough
CT: control target
= control target key end

     0   :  { %8 = vsyncpa [#allocation3], 0  ;;  %s866_s0 = inlined_call_operand.vmem [shape: bf16[2,64,128], index: 0, kind: input, shape index: {}]   ;;  %s867_s1 = inlined_call_operand.vmem [shape: bf16[128,256], index: 1, kind: input, shape index: {}]   ;;  %s868_s2 = inlined_call_operand.vmem [shape: f32[1,256], index: 2, kind: input, shape index: {}]   ;;  %s869_s3 = inlined_call_operand.hbm [shape: f32[2,64,256], index: 3, kind: output, shape index: {}]  }
   0x1   :  { %10 = vsyncpa [#allocation3 + $0x1], 0  ;;  %s683_s12 = smov 0   ;;  %s685_s13 = smov 0  }
   0x2   :  { %s687_s14 = smov 0   ;;  %s689_s15 = smov 0  }
   0x3 LB: > { %s704_s16 = sadd.s32 4294967295, %s657_s15   ;;  %s475_s17 = sadd.s32 4294967294, %s657_s15   ;;  %s657_s15 = sphi %s689_s15, %s875_s15   ;;  %s653_s14 = sphi %s687_s14, %s874_s14   ;;  %s649_s13 = sphi %s685_s13, %s873_s13   ;;  %s645_s12 = sphi %s683_s12, %s872_s12  }
   0x4   : > { %s708_s18 = sadd.s32 1, %s657_s15   ;;  %s91_s19 = sadd.s32 1, %s653_s14 }
   0x5   : > { %s88_s20 = ssub.s32 %s657_s15, %s708_s18  ;;  %p101_p0 = scmp.ne.s32.totalorder %s653_s14, %s649_s13 }
   0x6   : > { %p89_p1 = scmp.eq.s32.totalorder %s88_s20, 0  ;;  %p102_p2 = scmp.eq.s32.totalorder %s704_s16, 1 }
   0x7   : > { %p107_p3 = scmp.ne.s32.totalorder %s649_s13, %s645_s12  ;;  %p108_p4 = scmp.eq.s32.totalorder %s475_s17, 1 }
   0x8   : > { %s719_s21 = scalar_select %p89_p1, %s653_s14, %s91_s19  }
   0x9   : > { %p721_p5 = por %p102_p2, %p101_p0  ;;  %p725_p6 = por %p108_p4, %p107_p3 }
   0xa   : > { %p478_p7 = scmp.ge.s32.totalorder %s657_s15, 1  ;;  %p140_p8 = scmp.lt.s32.totalorder %s657_s15, 3 }
   0xc   : > { %p141_p9 = pnand %p478_p7, %p140_p8 }
   0xd   : > { %v567_v0 = vld [vmem:[%s867_s1 + $0x4] ss:$8 sps:$4 sm:$0xff] (!%p141_p9)   ;;  %p164_p10 = scmp.lt.s32.totalorder (!%p141_p9), %s704_s16, 1  ;;  %v569_v1 = vld [vmem:[%s867_s1] ss:$8 sps:$4 sm:$0xff] (!%p141_p9)   ;;  %v659_v2 = vmov (!%p141_p9), 0   ;;  %v196_v21 = vlaneseq (!%p141_p9) }
   0xe   : > { %144 = sbr.rel (%p141_p9) target bundleno = 287 (0x11f), region = 32  ;;  %342 = vmatprep.mubr.bf16.mxu0 (!%p141_p9), %v659_v2  ;;  %362 = vmatprep.mubr.bf16.mxu1 (!%p141_p9), %v659_v2  ;;  %v570_v3 = vld [vmem:[%s867_s1 + $0x14] ss:$8 sps:$4 sm:$0xff] (!%p141_p9)   ;;  %v572_v4 = vld [vmem:[%s867_s1 + $0x10] ss:$8 sps:$4 sm:$0xff] (!%p141_p9)   ;;  %s161_s26 = sand.u32 (!%p141_p9), 1, %s649_s13  }
   0xf   : > { %310 = vmatprep.subr.bf16.mxu0 (!%p141_p9), %v567_v0  ;;  %509 = vmatprep.subr.bf16.mxu1 (!%p141_p9), %v567_v0  ;;  %v573_v5 = vld [vmem:[%s867_s1 + $0x24] ss:$8 sps:$4 sm:$0xff] (!%p141_p9)   ;;  %v575_v6 = vld [vmem:[%s867_s1 + $0x20] ss:$8 sps:$4 sm:$0xff] (!%p141_p9)   ;;  %v576_v7 = vld [vmem:[%s867_s1 + $0x34] ss:$8 sps:$4 sm:$0xff] (!%p141_p9)  }
  0x10   : > { %311 = vmatpush1.bf16.msra.mxu0 (!%p141_p9), %v569_v1  ;;  %517 = vmatpush1.bf16.msra.mxu1 (!%p141_p9), %v569_v1  ;;  %v578_v8 = vld [vmem:[%s867_s1 + $0x30] ss:$8 sps:$4 sm:$0xff] (!%p141_p9)   ;;  %v579_v9 = vld [vmem:[%s867_s1 + $0x44] ss:$8 sps:$4 sm:$0xff] (!%p141_p9)   ;;  %v581_v10 = vld [vmem:[%s867_s1 + $0x40] ss:$8 sps:$4 sm:$0xff] (!%p141_p9)  }
  0x11   : > { %312 = vmatprep.subr.bf16.mxu0 (!%p141_p9), %v570_v3  ;;  %510 = vmatprep.subr.bf16.mxu1 (!%p141_p9), %v570_v3  ;;  %v582_v11 = vld [vmem:[%s867_s1 + $0x54] ss:$8 sps:$4 sm:$0xff] (!%p141_p9)   ;;  %v584_v12 = vld [vmem:[%s867_s1 + $0x50] ss:$8 sps:$4 sm:$0xff] (!%p141_p9)   ;;  %v585_v13 = vld [vmem:[%s867_s1 + $0x64] ss:$8 sps:$4 sm:$0xff] (!%p141_p9)  }
  0x12   : > { %v587_v14 = vld [vmem:[%s867_s1 + $0x60] ss:$8 sps:$4 sm:$0xff] (!%p141_p9)   ;;  %v588_v15 = vld [vmem:[%s867_s1 + $0x74] ss:$8 sps:$4 sm:$0xff] (!%p141_p9)   ;;  %v590_v16 = vld [vmem:[%s867_s1 + $0x70] ss:$8 sps:$4 sm:$0xff] (!%p141_p9)  }
  0x13   : > { %v197_v22 = vshrl.u32 (!%p141_p9), %v196_v21, 7  ;;  %v194_v24 = vld [vmem:[%s868_s2] sm:$0x3] (!%p141_p9)  ;;  %s479_s29 = sshll.u32 (!%p141_p9), %s161_s26, 7  ;;  %s825_s7 = scalar_lea.sflag (!%p141_p9), [#allocation3], %s161_s26 }
  0x14   : > { %313 = vmatpush1.bf16.msra.mxu0 (!%p141_p9), %v572_v4  ;;  %518 = vmatpush1.bf16.msra.mxu1 (!%p141_p9), %v572_v4  ;;  %s660_s9 = smov (!%p141_p9), [#allocation2]  }
  0x15   : > { %s165_s30 = scalar_select %p164_p10, %s704_s16, 1  ;;  %314 = vmatprep.subr.bf16.mxu0 %v573_v5  ;;  %511 = vmatprep.subr.bf16.mxu1 %v573_v5  ;;  %v198_v23 = vsub.s32 0, %v197_v22  ;;  %v202_v25 = vsub.s32 1, %v197_v22 }
  0x16   : > { %s599_s10 = sshll.u32 %s660_s9, 4  ;;  %s600_s10 = int_to_ptr.vmem [resolvable:$false] %s599_s10 }
  0x17   : > { %s507_s8 = sshll.u32 %s165_s30, 5  ;;  %v199_v26 = vrot.slane %v194_v24, %v198_v23  ;;  %v203_v27 = vrot.slane %v194_v24, %v202_v25  ;;  %s508_s30 = sshll.u32 %s704_s16, 11 }
  0x18   : > { %s757_s24 = scalar_lea.vmem %s866_s0, %s507_s8  ;;  %315 = vmatpush1.bf16.msra.mxu0 %v575_v6  ;;  %519 = vmatpush1.bf16.msra.mxu1 %v575_v6  ;;  %s813_s6 = scalar_lea.hbm %s869_s3, %s508_s30 }
  0x19   : > { %316 = vmatprep.subr.bf16.mxu0 %v576_v7  ;;  %512 = vmatprep.subr.bf16.mxu1 %v576_v7  ;;  %v591_v17 = vld [vmem:[%s757_s24] sm:$0xff]   ;;  %v592_v18 = vld [vmem:[%s757_s24 + $0x10] sm:$0xff]   ;;  %v593_v19 = vld [vmem:[%s757_s24 + $0x8] sm:$0xff]   ;;  %s601_s11 = scalar_lea.vmem %s600_s10, 4096 }
  0x1a   : > { %v594_v20 = vld [vmem:[%s757_s24 + $0x18] sm:$0xff]   ;;  %s796_s24 = scalar_lea.vmem [#allocation2], %s479_s29 }
  0x1b   : > { %s413_s4 = sshll.u32 %s796_s24, 4  ;;  %s815_s4 = int_to_ptr.vmem [resolvable:$true] %s413_s4 }
  0x1c   : > { %317 = vmatpush1.bf16.msra.mxu0 %v578_v8  ;;  %520 = vmatpush1.bf16.msra.mxu1 %v578_v8  ;;  %s595_s8 = scalar_lea.vmem %s815_s4, 2048  ;;  %p602_p0 = scmp.lt.s32.totalorder %s815_s4, %s600_s10 }
  0x1d   : > { %318 = vmatprep.subr.bf16.mxu0 %v579_v9  ;;  %513 = vmatprep.subr.bf16.mxu1 %v579_v9  ;;  %p596_p11 = scmp.ne.s32.totalorder %s815_s4, %s595_s8  ;;  %p603_p1 = scmp.lt.s32.totalorder %s601_s11, %s595_s8 }
  0x1f   : > { %p597_p12 = pnand %p596_p11, %p721_p5  ;;  %p604_p2 = por %p603_p1, %p602_p0 }
  0x20   : > { %319 = vmatpush1.bf16.msra.mxu0 %v581_v10  ;;  %521 = vmatpush1.bf16.msra.mxu1 %v581_v10 }
  0x21   : > { %320 = vmatprep.subr.bf16.mxu0 %v582_v11  ;;  %514 = vmatprep.subr.bf16.mxu1 %v582_v11  ;;  %p598_p13 = pneg %p597_p12 }
  0x23   : > { %p605_p3 = pnand %p604_p2, %p598_p13 }
  0x24   : > { %321 = vmatpush1.bf16.msra.mxu0 %v584_v12  ;;  %522 = vmatpush1.bf16.msra.mxu1 %v584_v12 }
  0x25   : > { %322 = vmatprep.subr.bf16.mxu0 %v585_v13  ;;  %515 = vmatprep.subr.bf16.mxu1 %v585_v13 }
  0x28   : > { %323 = vmatpush1.bf16.msra.mxu0 %v587_v14  ;;  %523 = vmatpush1.bf16.msra.mxu1 %v587_v14 }
  0x29   : > { %324 = vmatprep.subr.bf16.mxu0 %v588_v15  ;;  %516 = vmatprep.subr.bf16.mxu1 %v588_v15 }
  0x2c   : > { %325 = vmatpush1.bf16.msra.mxu0 %v590_v16  ;;  %524 = vmatpush1.bf16.msra.mxu1 %v590_v16 }
  0x2f   : > { %343 = vmatmul.mubr.bf16.vlgmr.msra.gmra.mrb[0].mxu0 %v591_v17  ;;  %363 = vmatmul.mubr.bf16.vlgmr.msra.gmra.mrb[0].mxu1 %v592_v18 }
  0x30   : > { %352 = vmatprep.mubr.bf16.mxu0 %v659_v2  ;;  %372 = vmatprep.mubr.bf16.mxu1 %v659_v2 }
  0x37   : > { %353 = vmatmul.mubr.bf16.gmra.mrb[4].mxu0 %v593_v19  ;;  %373 = vmatmul.mubr.bf16.gmra.mrb[4].mxu1 %v594_v20 }
 0x102   : > { %v344_v28 = vpop.f32.mrb[0].mxu0  ;;  %v364_v29 = vpop.f32.mrb[0].mxu1 }
 0x103   : > { %v345_v30 = vadd.f32 %v344_v28, %v199_v26  ;;  %v365_v31 = vadd.f32 %v364_v29, %v199_v26  ;;  %v346_v32 = vpop.f32.mrb[1].mxu0  ;;  %v366_v33 = vpop.f32.mrb[1].mxu1 }
 0x104   : > { %v347_v34 = vadd.f32 %v346_v32, %v203_v27  ;;  %v367_v35 = vadd.f32 %v366_v33, %v203_v27  ;;  %v348_v36 = vpop.f32.mrb[2].mxu0  ;;  %v368_v37 = vpop.f32.mrb[2].mxu1 }
 0x105   : > { %383 = vst [vmem:[%s796_s24] sm:$0xff] %v345_v30  ;;  %391 = vst [vmem:[%s796_s24 + $0x40] sm:$0xff] %v365_v31  ;;  %v349_v38 = vadd.f32 %v348_v36, %v199_v26  ;;  %v369_v39 = vadd.f32 %v368_v37, %v199_v26  ;;  %v350_v40 = vpop.f32.mrb[3].mxu0  ;;  %v370_v41 = vpop.f32.mrb[3].mxu1 }
 0x106   : > { %384 = vst [vmem:[%s796_s24 + $0x8] sm:$0xff] %v347_v34  ;;  %392 = vst [vmem:[%s796_s24 + $0x48] sm:$0xff] %v367_v35  ;;  %v351_v42 = vadd.f32 %v350_v40, %v203_v27  ;;  %v371_v43 = vadd.f32 %v370_v41, %v203_v27 }
 0x107   : > { %385 = vst [vmem:[%s796_s24 + $0x10] sm:$0xff] %v349_v38  ;;  %393 = vst [vmem:[%s796_s24 + $0x50] sm:$0xff] %v369_v39 }
 0x108   : > { %386 = vst [vmem:[%s796_s24 + $0x18] sm:$0xff] %v351_v42  ;;  %394 = vst [vmem:[%s796_s24 + $0x58] sm:$0xff] %v371_v43 }
 0x10a   : > { %v354_v44 = vpop.f32.mrb[4].mxu0  ;;  %v374_v45 = vpop.f32.mrb[4].mxu1 }
 0x10b   : > { %v355_v46 = vadd.f32 %v354_v44, %v199_v26  ;;  %v375_v47 = vadd.f32 %v374_v45, %v199_v26  ;;  %v356_v48 = vpop.f32.mrb[5].mxu0  ;;  %v376_v49 = vpop.f32.mrb[5].mxu1 }
 0x10c   : > { %v357_v50 = vadd.f32 %v356_v48, %v203_v27  ;;  %v377_v51 = vadd.f32 %v376_v49, %v203_v27  ;;  %v358_v52 = vpop.f32.mrb[6].mxu0  ;;  %v378_v53 = vpop.f32.mrb[6].mxu1 }
 0x10d   : > { %387 = vst [vmem:[%s796_s24 + $0x20] sm:$0xff] %v355_v46  ;;  %395 = vst [vmem:[%s796_s24 + $0x60] sm:$0xff] %v375_v47  ;;  %v359_v54 = vadd.f32 %v358_v52, %v199_v26  ;;  %v379_v55 = vadd.f32 %v378_v53, %v199_v26  ;;  %v360_v56 = vpop.f32.mrb[7].mxu0  ;;  %v380_v57 = vpop.f32.mrb[7].mxu1 }
 0x10e   : > { %388 = vst [vmem:[%s796_s24 + $0x28] sm:$0xff] %v357_v50  ;;  %396 = vst [vmem:[%s796_s24 + $0x68] sm:$0xff] %v377_v51  ;;  %v361_v58 = vadd.f32 %v360_v56, %v203_v27  ;;  %v381_v59 = vadd.f32 %v380_v57, %v203_v27 }
 0x10f   : > { %389 = vst [vmem:[%s796_s24 + $0x30] sm:$0xff] %v359_v54  ;;  %397 = vst [vmem:[%s796_s24 + $0x70] sm:$0xff] %v379_v55 }
 0x110   : > { %390 = vst [vmem:[%s796_s24 + $0x38] sm:$0xff] %v361_v58  ;;  %398 = vst [vmem:[%s796_s24 + $0x78] sm:$0xff] %v381_v59 }
 0x111   : > { %608 = shalt.err (!%p605_p3)
}
 0x112   : > { %s609_s17 = scalar_lea.hbm %s813_s6, 2048  ;;  %s613_s25 = scalar_lea.hbm %s869_s3, 4096 }
 0x113   : > { %p610_p4 = scmp.ne.s32.totalorder %s813_s6, %s609_s17  ;;  %p614_p9 = scmp.lt.u32.totalorder %s813_s6, %s869_s3 }
 0x114   : > { %p615_p10 = scmp.lt.u32.totalorder %s613_s25, %s609_s17  ;;  %p617_p12 = scmp.lt.u32.totalorder %s609_s17, %s813_s6 }
 0x115   : > { %p611_p7 = pnand %p610_p4, %p721_p5 }
 0x116   : > { %p616_p11 = por %p615_p10, %p614_p9 }
 0x117   : > { %p612_p8 = pneg %p611_p7 }
 0x118   : > { %p618_p13 = por %p617_p12, %p616_p11 }
 0x11a   : > { %p619_p0 = pnand %p618_p13, %p612_p8 }
 0x11c   : > { %622 = shalt.err (!%p619_p0)
}
 0x11d   : > { %s661_s28 = smov 256   ;;  %s662_s29 = smov 16  }
 0x11e   : > { %525 = dma.vmem_to_hbm [thread:$0]  (%p721_p5), %s815_s4, 2048, %s813_s6, %s825_s7, %s661_s28, %s661_s28, %s662_s29  }
 0x11f PF: > { %p531_p1 = scmp.ge.s32.totalorder %s657_s15, 2  ;;  %s428_s24 = sand.u32 1, %s645_s12  }
 0x120   : > { %s429_s30 = scalar_lea.sflag [#allocation3], %s428_s24 }
 0x121   : > { %p528_p2 = pnand %p531_p1, %p725_p6 }
 0x123   : > { %640 = dma.done.wait (!%p528_p2), %s429_s30, 2048  }
 0x124   : > { %642 = vsyncadd (!%p528_p2), %s429_s30, 4294965248  ;;  %p13_p3 = scmp.ge.s32.totalorder %s708_s18, 4   ;;  %s872_s12 = smov %s649_s13 }
 0x125   : > { %s873_s13 = smov %s653_s14  ;;  %s874_s14 = smov %s719_s21 }
 0x126   : > { %s875_s15 = smov %s708_s18  ;;  %15 = sbr.rel (!%p13_p3) target bundleno = 3 (0x3), region = 67 }
 0x12d   :  { %434 = vsyncpa [#allocation3], 1 }
 0x12e   :  { %436 = vsyncpa [#allocation3 + $0x1], 1 }

</bundles_post_ra>
